<compile_context>
chip_gen: v7x
topology: tpu7x:2x2x1
jax: 0.10.0
libtpu: 0.0.40
codegen_flags: <defaults>
</compile_context>

<pallas_src>
import jax
import jax.numpy as jnp
import numpy as np
from jax.experimental import pallas as pl
from jax.experimental.pallas import tpu as pltpu

KSIZE = 7
PAD = 3
LPAD = 8          # aligned left zero-pad inside the band scratch (>= PAD, multiple of 8)
RPAD = 8          # right zero-pad inside the band scratch (>= PAD)
EPS = 1e-6
_SQRT_2_OVER_PI = 0.7978845608028654


def _gelu_tanh(x):
    # TODO(synk): PyTorch nn.GELU() is erf-based; Mosaic has no erf primitive, so the
    # tanh-form GELU (EUP tanh, error << the 2e-2 test tolerance) is used instead.
    return 0.5 * x * (1.0 + jnp.tanh(_SQRT_2_OVER_PI * (x + 0.044715 * x * x * x)))


def _vmem_budget():
    """Per-generation VMEM budget (bytes) with headroom for Mosaic internals."""
    cap = 128 * 2 ** 20
    try:
        cap = int(getattr(pltpu.get_tpu_info(), "vmem_capacity_bytes", cap))
    except Exception:
        pass
    return int(cap * 3 // 4)      # ~96 MiB on v5e/v6e, ~48 MiB on v7x


def _vmem_estimate(th, w, c, in_itemsize):
    """Rough per-step VMEM footprint (bytes) for band height `th`."""
    c4 = 4 * c
    band = (th + 2 * PAD) * (LPAD + w + RPAD) * c * 4          # f32 band scratch
    io = 2 * in_itemsize * (2 * th * w * c)                    # dbl-buffered in + out blocks
    halos = 2 * in_itemsize * (2 * th * w * c) // max(th, 1)   # tiny halo blocks
    temps = ((th + 2 * PAD) * w + 3 * th * w) * c * 4          # live plane + acc + xn + y
    hidden = 2 * th * w * c4 * 4                               # pwconv1 / GELU activations
    wts = 2 * 2 * 2 * c * c4 + 4 * (KSIZE * KSIZE * c + 2 * c + c4)
    return band + io + halos + temps + hidden + wts


def _band_height(h, w, c, in_itemsize, budget):
    """Largest band height dividing H (>= PAD) that fits the VMEM budget; prefer >=2 bands."""
    divs = [d for d in range(h, PAD - 1, -1) if h % d == 0]    # descending, all >= PAD
    for th in divs:                                            # prefer NB >= 2 (pipelining)
        if th <= max(h // 2, PAD) and _vmem_estimate(th, w, c, in_itemsize) <= budget:
            return th
    for th in divs:                                            # else biggest that fits
        if _vmem_estimate(th, w, c, in_itemsize) <= budget:
            return th
    return divs[-1]


def convnext_block_kernel(x_ref, top_ref, bot_ref, dww_ref, dwb_ref,
                          w1_ref, b1_ref, w2_ref, b2_ref, out_ref, band_ref):
    _, TH, W, C = out_ref.shape
    HB = top_ref.shape[1]
    h = pl.program_id(1)
    nb = pl.num_programs(1)

    # --- assemble the zero-padded (TH+6, LPAD+W+RPAD, C) band in VMEM (no HBM pad copy) ---
    band_ref[:, 0:LPAD, :] = jnp.zeros((TH + 2 * PAD, LPAD, C), jnp.float32)
    band_ref[:, LPAD + W:LPAD + W + RPAD, :] = jnp.zeros((TH + 2 * PAD, RPAD, C), jnp.float32)
    band_ref[PAD:PAD + TH, LPAD:LPAD + W, :] = x_ref[0].astype(jnp.float32)

    @pl.when(h == 0)                      # top image edge -> zero halo rows
    def _():
        band_ref[0:PAD, LPAD:LPAD + W, :] = jnp.zeros((PAD, W, C), jnp.float32)

    @pl.when(h > 0)                       # interior: previous band's last PAD rows
    def _():
        band_ref[0:PAD, LPAD:LPAD + W, :] = top_ref[0, HB - PAD:HB, :].astype(jnp.float32)

    @pl.when(h == nb - 1)                 # bottom image edge -> zero halo rows
    def _():
        band_ref[PAD + TH:PAD + TH + PAD, LPAD:LPAD + W, :] = jnp.zeros((PAD, W, C), jnp.float32)

    @pl.when(h < nb - 1)                  # interior: next band's first PAD rows
    def _():
        band_ref[PAD + TH:PAD + TH + PAD, LPAD:LPAD + W, :] = bot_ref[0, 0:PAD, :].astype(jnp.float32)

    # --- depthwise 7x7 conv: kx-outer / ky-inner keeps exactly one shifted plane live ---
    # TODO(synk): on v6e/v7x the 49-tap MAC could use bf16 VALU operands for up to ~2x VPU
    # throughput; kept f32 here for accuracy headroom and v5e portability.
    acc = jnp.zeros((TH, W, C), jnp.float32)
    for kx in range(KSIZE):
        plane = band_ref[:, LPAD - PAD + kx:LPAD - PAD + kx + W, :]     # (TH+6, W, C)
        for ky in range(KSIZE):
            acc = acc + plane[ky:ky + TH] * dww_ref[ky:ky + 1, kx:kx + 1, :]
    acc = acc + dwb_ref[...]                                            # (1, C) broadcast

    # --- LayerNorm over C (two-pass stats; affine folded into w1/b1 upstream) ---
    mean = jnp.mean(acc, axis=-1, keepdims=True)
    d = acc - mean
    var = jnp.mean(d * d, axis=-1, keepdims=True)
    xn = d * jax.lax.rsqrt(var + EPS)

    # --- pwconv1 -> GELU -> pwconv2 on the MXU (bf16 operands, f32 accumulation) ---
    x2 = xn.reshape(TH * W, C).astype(jnp.bfloat16)
    hid = jnp.dot(x2, w1_ref[...], preferred_element_type=jnp.float32) + b1_ref[0]
    hid = _gelu_tanh(hid)
    y2 = jnp.dot(hid.astype(jnp.bfloat16), w2_ref[...],
                 preferred_element_type=jnp.float32) + b2_ref[0]
    y = y2.reshape(TH, W, C)              # layer-scale gamma already folded into w2/b2

    # --- residual add (drop_path 0.0 -> Identity); residual reused from the VMEM block ---
    out_ref[0] = (x_ref[0].astype(jnp.float32) + y).astype(out_ref.dtype)


def convnext_block(x_nchw, params):
    """params in PyTorch layout:
    (dwconv.weight (C,1,7,7), dwconv.bias (C,), norm.weight (C,), norm.bias (C,),
     pwconv1.weight (4C,C), pwconv1.bias (4C,), pwconv2.weight (C,4C), pwconv2.bias (C,),
     gamma (C,))"""
    dw_w, dw_b, ln_w, ln_b, pw1_w, pw1_b, pw2_w, pw2_b, gamma = params
    B, C, H, W = x_nchw.shape
    C4 = pw1_w.shape[0]
    assert H >= PAD and W >= 1

    # PyTorch -> kernel layouts; fold LN affine into pwconv1 and gamma into pwconv2 (exact).
    dww = jnp.transpose(dw_w[:, 0, :, :], (1, 2, 0)).astype(jnp.float32)   # (7, 7, C)
    dwb = dw_b.reshape(1, C).astype(jnp.float32)
    w1 = pw1_w.T                                                           # (C, 4C)
    w2 = pw2_w.T                                                           # (4C, C)
    w1f = (ln_w[:, None] * w1).astype(jnp.bfloat16)
    b1f = (pw1_b + ln_b @ w1).reshape(1, C4).astype(jnp.float32)
    w2f = (w2 * gamma[None, :]).astype(jnp.bfloat16)
    b2f = (pw2_b * gamma).reshape(1, C).astype(jnp.float32)

    budget = _vmem_budget()
    itemsize = int(x_nchw.dtype.itemsize)
    TH = _band_height(H, W, C, itemsize, budget)   # output rows per grid step
    NB = H // TH
    HB = min(d for d in range(PAD, TH + 1) if TH % d == 0)   # halo-source block height
    KT = TH // HB
    NHB = H // HB
    est = _vmem_estimate(TH, W, C, itemsize)
    vmem_limit = int(min(budget, max(32 * 2 ** 20, 2 * est)))

    # TODO(synk): NCHW<->NHWC transposes kept only to preserve the module's NCHW interface;
    # in an NHWC network they (and their HBM traffic) go away.
    x = jnp.transpose(x_nchw, (0, 2, 3, 1))                                # NHWC, unpadded

    def top_map(b, h):      # previous band's edge rows; clamped (zeroed in-kernel at h==0)
        return (b, jnp.maximum(h * KT - 1, 0), 0, 0)

    def bot_map(b, h):      # next band's edge rows; clamped (zeroed in-kernel at h==NB-1)
        return (b, jnp.minimum((h + 1) * KT, NHB - 1), 0, 0)

    out = pl.pallas_call(
        convnext_block_kernel,
        out_shape=jax.ShapeDtypeStruct((B, H, W, C), x.dtype),
        grid_spec=pltpu.PrefetchScalarGridSpec(
            num_scalar_prefetch=0,
            grid=(B, NB),
            in_specs=[
                pl.BlockSpec((1, TH, W, C), lambda b, h: (b, h, 0, 0)),     # band rows (also residual)
                pl.BlockSpec((1, HB, W, C), top_map),                       # top-halo source rows
                pl.BlockSpec((1, HB, W, C), bot_map),                       # bottom-halo source rows
                pl.BlockSpec((KSIZE, KSIZE, C), lambda b, h: (0, 0, 0)),    # dwconv weight
                pl.BlockSpec((1, C), lambda b, h: (0, 0)),                  # dwconv bias
                pl.BlockSpec((C, C4), lambda b, h: (0, 0)),                 # folded pwconv1 W (bf16)
                pl.BlockSpec((1, C4), lambda b, h: (0, 0)),                 # folded pwconv1 b
                pl.BlockSpec((C4, C), lambda b, h: (0, 0)),                 # folded pwconv2 W (bf16)
                pl.BlockSpec((1, C), lambda b, h: (0, 0)),                  # folded pwconv2 b
            ],
            out_specs=pl.BlockSpec((1, TH, W, C), lambda b, h: (b, h, 0, 0)),
            scratch_shapes=[pltpu.VMEM((TH + 2 * PAD, LPAD + W + RPAD, C), jnp.float32)],
        ),
        compiler_params=pltpu.CompilerParams(
            dimension_semantics=("parallel", "parallel"),
            vmem_limit_bytes=vmem_limit,
        ),
    )(x, x, x, dww, dwb, w1f, b1f, w2f, b2f)
    # TODO(synk): with C < 128 (test C=8; ConvNeXt stages 96/192) the VPU lanes and the
    # output writeback are partially masked; padding C to a 128 multiple at the network
    # level would make the whole layout lane-dense.
    return jnp.transpose(out, (0, 3, 1, 2))                                # back to NCHW


def reference_block(x_nchw, params):
    """Pure-JAX reference mirroring the PyTorch forward (exact erf GELU, f32 HIGHEST)."""
    dw_w, dw_b, ln_w, ln_b, pw1_w, pw1_b, pw2_w, pw2_b, gamma = params
    x = jnp.transpose(x_nchw, (0, 2, 3, 1))
    B, H, W, C = x.shape
    xp = jnp.pad(x, ((0, 0), (PAD, PAD), (PAD, PAD), (0, 0)))
    dww = jnp.transpose(dw_w[:, 0, :, :], (1, 2, 0))
    acc = jnp.zeros_like(x)
    for ky in range(KSIZE):
        for kx in range(KSIZE):
            acc = acc + xp[:, ky:ky + H, kx:kx + W, :] * dww[ky, kx]
    acc = acc + dw_b
    u = acc.mean(-1, keepdims=True)
    d = acc - u
    var = (d * d).mean(-1, keepdims=True)
    xn = d / jnp.sqrt(var + EPS) * ln_w + ln_b
    hp = jax.lax.Precision.HIGHEST
    h = jnp.einsum('bhwc,dc->bhwd', xn, pw1_w, precision=hp) + pw1_b
    h = jax.nn.gelu(h, approximate=False)
    y = jnp.einsum('bhwd,cd->bhwc', h, pw2_w, precision=hp) + pw2_b
    y = y * gamma
    return jnp.transpose(x + y, (0, 3, 1, 2))


if __name__ == "__main__":
    B, dim, H, W = 2, 8, 16, 16
    ks = jax.random.split(jax.random.PRNGKey(0), 9)

    # Deterministic synthetic parameters in PyTorch layout (Block.__init__ with dim=8).
    dw_w = 0.1 * jax.random.normal(ks[0], (dim, 1, KSIZE, KSIZE), jnp.float32)
    dw_b = 0.1 * jax.random.normal(ks[1], (dim,), jnp.float32)
    ln_w = 1.0 + 0.1 * jax.random.normal(ks[2], (dim,), jnp.float32)
    ln_b = 0.1 * jax.random.normal(ks[3], (dim,), jnp.float32)
    pw1_w = 0.1 * jax.random.normal(ks[4], (4 * dim, dim), jnp.float32)
    pw1_b = 0.1 * jax.random.normal(ks[5], (4 * dim,), jnp.float32)
    pw2_w = 0.1 * jax.random.normal(ks[6], (dim, 4 * dim), jnp.float32)
    pw2_b = 0.1 * jax.random.normal(ks[7], (dim,), jnp.float32)
    x = jax.random.normal(ks[8], (B, dim, H, W), jnp.float32)               # NCHW input

    fwd = jax.jit(convnext_block)

    # Numerical check with gamma=1 so the full dwconv/LN/MLP branch is exercised.
    gamma_check = jnp.ones((dim,), jnp.float32)
    params_check = (dw_w, dw_b, ln_w, ln_b, pw1_w, pw1_b, pw2_w, pw2_b, gamma_check)
    got = jax.block_until_ready(fwd(x, params_check))
    want = jax.block_until_ready(reference_block(x, params_check))
    np.testing.assert_allclose(np.asarray(got), np.asarray(want), atol=2e-2, rtol=2e-2)

    # Module-faithful run (gamma initialized to layer_scale_init_value = 1e-6).
    gamma = 1e-6 * jnp.ones((dim,), jnp.float32)
    params = (dw_w, dw_b, ln_w, ln_b, pw1_w, pw1_b, pw2_w, pw2_b, gamma)
    out = jax.block_until_ready(fwd(x, params))
    want2 = jax.block_until_ready(reference_block(x, params))
    np.testing.assert_allclose(np.asarray(out), np.asarray(want2), atol=2e-2, rtol=2e-2)
    assert out.shape == (B, dim, H, W) and out.dtype == jnp.float32

    print("KERNEL_OK")
</pallas_src>

<mosaic_0001>
module attributes {stable_mosaic.version = 11 : i64} {
  func.func @convnext_block_kernel(%arg0: i32, %arg1: i32, %arg2: memref<1x8x16x8xf32, #tpu.memory_space<vmem>>, %arg3: memref<1x4x16x8xf32, #tpu.memory_space<vmem>>, %arg4: memref<1x4x16x8xf32, #tpu.memory_space<vmem>>, %arg5: memref<7x7x8xf32, #tpu.memory_space<vmem>>, %arg6: memref<1x8xf32, #tpu.memory_space<vmem>>, %arg7: memref<8x32xbf16, #tpu.memory_space<vmem>>, %arg8: memref<1x32xf32, #tpu.memory_space<vmem>>, %arg9: memref<32x8xbf16, #tpu.memory_space<vmem>>, %arg10: memref<1x8xf32, #tpu.memory_space<vmem>>, %arg11: memref<1x8x16x8xf32, #tpu.memory_space<vmem>>, %arg12: memref<14x32x8xf32, #tpu.memory_space<vmem>>) attributes {dimension_semantics = [#tpu.dimension_semantics<parallel>, #tpu.dimension_semantics<parallel>], iteration_bounds = array<i64: 2, 2>, scalar_prefetch = 0 : i64, scratch_operands = 1 : i64, tpu.core_type = #tpu.core_type<tc>, window_params = [{transform_indices = @transform_0, window_bounds = array<i64: 1, 8, 16, 8>}, {transform_indices = @transform_1, window_bounds = array<i64: 1, 4, 16, 8>}, {transform_indices = @transform_2, window_bounds = array<i64: 1, 4, 16, 8>}, {pipeline_mode = #tpu.pipeline_mode<synchronous>, transform_indices = @transform_3, window_bounds = array<i64: 7, 7, 8>}, {pipeline_mode = #tpu.pipeline_mode<synchronous>, transform_indices = @transform_4, window_bounds = array<i64: 1, 8>}, {pipeline_mode = #tpu.pipeline_mode<synchronous>, transform_indices = @transform_5, window_bounds = array<i64: 8, 32>}, {pipeline_mode = #tpu.pipeline_mode<synchronous>, transform_indices = @transform_6, window_bounds = array<i64: 1, 32>}, {pipeline_mode = #tpu.pipeline_mode<synchronous>, transform_indices = @transform_7, window_bounds = array<i64: 32, 8>}, {pipeline_mode = #tpu.pipeline_mode<synchronous>, transform_indices = @transform_8, window_bounds = array<i64: 1, 8>}, {transform_indices = @transform_9, window_bounds = array<i64: 1, 8, 16, 8>}]} {
    %cst = arith.constant 0.000000e+00 : f32
    %0 = vector.broadcast %cst : f32 to vector<14x8x8xf32>
    %c0 = arith.constant 0 : index
    %c0_0 = arith.constant 0 : index
    %c0_1 = arith.constant 0 : index
    %1 = vector.load %arg12[%c0, %c0_0, %c0_1] : memref<14x32x8xf32, #tpu.memory_space<vmem>>, vector<14x8x8xf32>
    tpu.vector_store %arg12[%c0, %c0_0, %c0_1], %0 {strides = array<i32>} : memref<14x32x8xf32, #tpu.memory_space<vmem>>, vector<14x8x8xf32>,
    %cst_2 = arith.constant 0.000000e+00 : f32
    %2 = vector.broadcast %cst_2 : f32 to vector<14x8x8xf32>
    %c0_3 = arith.constant 0 : index
    %c24 = arith.constant 24 : index
    %c0_4 = arith.constant 0 : index
    %3 = vector.load %arg12[%c0_3, %c24, %c0_4] : memref<14x32x8xf32, #tpu.memory_space<vmem>>, vector<14x8x8xf32>
    tpu.vector_store %arg12[%c0_3, %c24, %c0_4], %2 {strides = array<i32>} : memref<14x32x8xf32, #tpu.memory_space<vmem>>, vector<14x8x8xf32>,
    %c0_5 = arith.constant 0 : index
    %c0_6 = arith.constant 0 : index
    %c0_7 = arith.constant 0 : index
    %c0_8 = arith.constant 0 : index
    %4 = vector.load %arg2[%c0_5, %c0_6, %c0_7, %c0_8] : memref<1x8x16x8xf32, #tpu.memory_space<vmem>>, vector<1x8x16x8xf32>
    %5 = vector.shape_cast %4 : vector<1x8x16x8xf32> to vector<8x16x8xf32>
    %c3 = arith.constant 3 : index
    %c8 = arith.constant 8 : index
    %c0_9 = arith.constant 0 : index
    %6 = vector.load %arg12[%c3, %c8, %c0_9] : memref<14x32x8xf32, #tpu.memory_space<vmem>>, vector<8x16x8xf32>
    tpu.vector_store %arg12[%c3, %c8, %c0_9], %5 {strides = array<i32>} : memref<14x32x8xf32, #tpu.memory_space<vmem>>, vector<8x16x8xf32>,
    %c0_i32 = arith.constant 0 : i32
    %7 = arith.cmpi eq, %arg1, %c0_i32 : i32
    %8 = arith.extui %7 : i1 to i32
    %c0_i32_10 = arith.constant 0 : i32
    %9 = arith.cmpi ne, %8, %c0_i32_10 : i32
    scf.if %9 {
      %cst_205 = arith.constant 0.000000e+00 : f32
      %329 = vector.broadcast %cst_205 : f32 to vector<3x16x8xf32>
      %c0_206 = arith.constant 0 : index
      %c8_207 = arith.constant 8 : index
      %c0_208 = arith.constant 0 : index
      %330 = vector.load %arg12[%c0_206, %c8_207, %c0_208] : memref<14x32x8xf32, #tpu.memory_space<vmem>>, vector<3x16x8xf32>
      tpu.vector_store %arg12[%c0_206, %c8_207, %c0_208], %329 {strides = array<i32>} : memref<14x32x8xf32, #tpu.memory_space<vmem>>, vector<3x16x8xf32>,
    } else {
    }
    %c0_i32_11 = arith.constant 0 : i32
    %10 = arith.cmpi sgt, %arg1, %c0_i32_11 : i32
    %11 = arith.extui %10 : i1 to i32
    %c0_i32_12 = arith.constant 0 : i32
    %12 = arith.cmpi ne, %11, %c0_i32_12 : i32
    scf.if %12 {
      %c0_205 = arith.constant 0 : index
      %c1_206 = arith.constant 1 : index
      %c0_207 = arith.constant 0 : index
      %c0_208 = arith.constant 0 : index
      %329 = vector.load %arg3[%c0_205, %c1_206, %c0_207, %c0_208] : memref<1x4x16x8xf32, #tpu.memory_space<vmem>>, vector<1x3x16x8xf32>
      %330 = vector.shape_cast %329 : vector<1x3x16x8xf32> to vector<3x16x8xf32>
      %c0_209 = arith.constant 0 : index
      %c8_210 = arith.constant 8 : index
      %c0_211 = arith.constant 0 : index
      %331 = vector.load %arg12[%c0_209, %c8_210, %c0_211] : memref<14x32x8xf32, #tpu.memory_space<vmem>>, vector<3x16x8xf32>
      tpu.vector_store %arg12[%c0_209, %c8_210, %c0_211], %330 {strides = array<i32>} : memref<14x32x8xf32, #tpu.memory_space<vmem>>, vector<3x16x8xf32>,
    } else {
    }
    %c1_i32 = arith.constant 1 : i32
    %13 = arith.cmpi eq, %arg1, %c1_i32 : i32
    %14 = arith.extui %13 : i1 to i32
    %c0_i32_13 = arith.constant 0 : i32
    %15 = arith.cmpi ne, %14, %c0_i32_13 : i32
    scf.if %15 {
      %cst_205 = arith.constant 0.000000e+00 : f32
      %329 = vector.broadcast %cst_205 : f32 to vector<3x16x8xf32>
      %c11_206 = arith.constant 11 : index
      %c8_207 = arith.constant 8 : index
      %c0_208 = arith.constant 0 : index
      %330 = vector.load %arg12[%c11_206, %c8_207, %c0_208] : memref<14x32x8xf32, #tpu.memory_space<vmem>>, vector<3x16x8xf32>
      tpu.vector_store %arg12[%c11_206, %c8_207, %c0_208], %329 {strides = array<i32>} : memref<14x32x8xf32, #tpu.memory_space<vmem>>, vector<3x16x8xf32>,
    } else {
    }
    %c1_i32_14 = arith.constant 1 : i32
    %16 = arith.cmpi slt, %arg1, %c1_i32_14 : i32
    %17 = arith.extui %16 : i1 to i32
    %c0_i32_15 = arith.constant 0 : i32
    %18 = arith.cmpi ne, %17, %c0_i32_15 : i32
    scf.if %18 {
      %c0_205 = arith.constant 0 : index
      %c0_206 = arith.constant 0 : index
      %c0_207 = arith.constant 0 : index
      %c0_208 = arith.constant 0 : index
      %329 = vector.load %arg4[%c0_205, %c0_206, %c0_207, %c0_208] : memref<1x4x16x8xf32, #tpu.memory_space<vmem>>, vector<1x3x16x8xf32>
      %330 = vector.shape_cast %329 : vector<1x3x16x8xf32> to vector<3x16x8xf32>
      %c11_209 = arith.constant 11 : index
      %c8_210 = arith.constant 8 : index
      %c0_211 = arith.constant 0 : index
      %331 = vector.load %arg12[%c11_209, %c8_210, %c0_211] : memref<14x32x8xf32, #tpu.memory_space<vmem>>, vector<3x16x8xf32>
      tpu.vector_store %arg12[%c11_209, %c8_210, %c0_211], %330 {strides = array<i32>} : memref<14x32x8xf32, #tpu.memory_space<vmem>>, vector<3x16x8xf32>,
    } else {
    }
    %cst_16 = arith.constant 0.000000e+00 : f32
    %19 = vector.broadcast %cst_16 : f32 to vector<8x16x8xf32>
    %c0_17 = arith.constant 0 : index
    %c5 = arith.constant 5 : index
    %c0_18 = arith.constant 0 : index
    %20 = vector.load %arg12[%c0_17, %c5, %c0_18] : memref<14x32x8xf32, #tpu.memory_space<vmem>>, vector<14x16x8xf32>
    %21 = vector.extract_strided_slice %20 {offsets = [0, 0, 0], sizes = [8, 16, 8], strides = [1, 1, 1]} : vector<14x16x8xf32> to vector<8x16x8xf32>
    %c0_19 = arith.constant 0 : index
    %c0_20 = arith.constant 0 : index
    %c0_21 = arith.constant 0 : index
    %22 = vector.load %arg5[%c0_19, %c0_20, %c0_21] : memref<7x7x8xf32, #tpu.memory_space<vmem>>, vector<1x1x8xf32>
    %23 = vector.broadcast %22 : vector<1x1x8xf32> to vector<8x16x8xf32>
    %24 = arith.mulf %21, %23 : vector<8x16x8xf32>
    %25 = arith.addf %19, %24 : vector<8x16x8xf32>
    %26 = vector.extract_strided_slice %20 {offsets = [1, 0, 0], sizes = [8, 16, 8], strides = [1, 1, 1]} : vector<14x16x8xf32> to vector<8x16x8xf32>
    %c1 = arith.constant 1 : index
    %c0_22 = arith.constant 0 : index
    %c0_23 = arith.constant 0 : index
    %27 = vector.load %arg5[%c1, %c0_22, %c0_23] : memref<7x7x8xf32, #tpu.memory_space<vmem>>, vector<1x1x8xf32>
    %28 = vector.broadcast %27 : vector<1x1x8xf32> to vector<8x16x8xf32>
    %29 = arith.mulf %26, %28 : vector<8x16x8xf32>
    %30 = arith.addf %25, %29 : vector<8x16x8xf32>
    %31 = vector.extract_strided_slice %20 {offsets = [2, 0, 0], sizes = [8, 16, 8], strides = [1, 1, 1]} : vector<14x16x8xf32> to vector<8x16x8xf32>
    %c2 = arith.constant 2 : index
    %c0_24 = arith.constant 0 : index
    %c0_25 = arith.constant 0 : index
    %32 = vector.load %arg5[%c2, %c0_24, %c0_25] : memref<7x7x8xf32, #tpu.memory_space<vmem>>, vector<1x1x8xf32>
    %33 = vector.broadcast %32 : vector<1x1x8xf32> to vector<8x16x8xf32>
    %34 = arith.mulf %31, %33 : vector<8x16x8xf32>
    %35 = arith.addf %30, %34 : vector<8x16x8xf32>
    %36 = vector.extract_strided_slice %20 {offsets = [3, 0, 0], sizes = [8, 16, 8], strides = [1, 1, 1]} : vector<14x16x8xf32> to vector<8x16x8xf32>
    %c3_26 = arith.constant 3 : index
    %c0_27 = arith.constant 0 : index
    %c0_28 = arith.constant 0 : index
    %37 = vector.load %arg5[%c3_26, %c0_27, %c0_28] : memref<7x7x8xf32, #tpu.memory_space<vmem>>, vector<1x1x8xf32>
    %38 = vector.broadcast %37 : vector<1x1x8xf32> to vector<8x16x8xf32>
    %39 = arith.mulf %36, %38 : vector<8x16x8xf32>
    %40 = arith.addf %35, %39 : vector<8x16x8xf32>
    %41 = vector.extract_strided_slice %20 {offsets = [4, 0, 0], sizes = [8, 16, 8], strides = [1, 1, 1]} : vector<14x16x8xf32> to vector<8x16x8xf32>
    %c4 = arith.constant 4 : index
    %c0_29 = arith.constant 0 : index
    %c0_30 = arith.constant 0 : index
    %42 = vector.load %arg5[%c4, %c0_29, %c0_30] : memref<7x7x8xf32, #tpu.memory_space<vmem>>, vector<1x1x8xf32>
    %43 = vector.broadcast %42 : vector<1x1x8xf32> to vector<8x16x8xf32>
    %44 = arith.mulf %41, %43 : vector<8x16x8xf32>
    %45 = arith.addf %40, %44 : vector<8x16x8xf32>
    %46 = vector.extract_strided_slice %20 {offsets = [5, 0, 0], sizes = [8, 16, 8], strides = [1, 1, 1]} : vector<14x16x8xf32> to vector<8x16x8xf32>
    %c5_31 = arith.constant 5 : index
    %c0_32 = arith.constant 0 : index
    %c0_33 = arith.constant 0 : index
    %47 = vector.load %arg5[%c5_31, %c0_32, %c0_33] : memref<7x7x8xf32, #tpu.memory_space<vmem>>, vector<1x1x8xf32>
    %48 = vector.broadcast %47 : vector<1x1x8xf32> to vector<8x16x8xf32>
    %49 = arith.mulf %46, %48 : vector<8x16x8xf32>
    %50 = arith.addf %45, %49 : vector<8x16x8xf32>
    %51 = vector.extract_strided_slice %20 {offsets = [6, 0, 0], sizes = [8, 16, 8], strides = [1, 1, 1]} : vector<14x16x8xf32> to vector<8x16x8xf32>
    %c6 = arith.constant 6 : index
    %c0_34 = arith.constant 0 : index
    %c0_35 = arith.constant 0 : index
    %52 = vector.load %arg5[%c6, %c0_34, %c0_35] : memref<7x7x8xf32, #tpu.memory_space<vmem>>, vector<1x1x8xf32>
    %53 = vector.broadcast %52 : vector<1x1x8xf32> to vector<8x16x8xf32>
    %54 = arith.mulf %51, %53 : vector<8x16x8xf32>
    %55 = arith.addf %50, %54 : vector<8x16x8xf32>
    %c0_36 = arith.constant 0 : index
    %c6_37 = arith.constant 6 : index
    %c0_38 = arith.constant 0 : index
    %56 = vector.load %arg12[%c0_36, %c6_37, %c0_38] : memref<14x32x8xf32, #tpu.memory_space<vmem>>, vector<14x16x8xf32>
    %57 = vector.extract_strided_slice %56 {offsets = [0, 0, 0], sizes = [8, 16, 8], strides = [1, 1, 1]} : vector<14x16x8xf32> to vector<8x16x8xf32>
    %c0_39 = arith.constant 0 : index
    %c1_40 = arith.constant 1 : index
    %c0_41 = arith.constant 0 : index
    %58 = vector.load %arg5[%c0_39, %c1_40, %c0_41] : memref<7x7x8xf32, #tpu.memory_space<vmem>>, vector<1x1x8xf32>
    %59 = vector.broadcast %58 : vector<1x1x8xf32> to vector<8x16x8xf32>
    %60 = arith.mulf %57, %59 : vector<8x16x8xf32>
    %61 = arith.addf %55, %60 : vector<8x16x8xf32>
    %62 = vector.extract_strided_slice %56 {offsets = [1, 0, 0], sizes = [8, 16, 8], strides = [1, 1, 1]} : vector<14x16x8xf32> to vector<8x16x8xf32>
    %c1_42 = arith.constant 1 : index
    %c1_43 = arith.constant 1 : index
    %c0_44 = arith.constant 0 : index
    %63 = vector.load %arg5[%c1_42, %c1_43, %c0_44] : memref<7x7x8xf32, #tpu.memory_space<vmem>>, vector<1x1x8xf32>
    %64 = vector.broadcast %63 : vector<1x1x8xf32> to vector<8x16x8xf32>
    %65 = arith.mulf %62, %64 : vector<8x16x8xf32>
    %66 = arith.addf %61, %65 : vector<8x16x8xf32>
    %67 = vector.extract_strided_slice %56 {offsets = [2, 0, 0], sizes = [8, 16, 8], strides = [1, 1, 1]} : vector<14x16x8xf32> to vector<8x16x8xf32>
    %c2_45 = arith.constant 2 : index
    %c1_46 = arith.constant 1 : index
    %c0_47 = arith.constant 0 : index
    %68 = vector.load %arg5[%c2_45, %c1_46, %c0_47] : memref<7x7x8xf32, #tpu.memory_space<vmem>>, vector<1x1x8xf32>
    %69 = vector.broadcast %68 : vector<1x1x8xf32> to vector<8x16x8xf32>
    %70 = arith.mulf %67, %69 : vector<8x16x8xf32>
    %71 = arith.addf %66, %70 : vector<8x16x8xf32>
    %72 = vector.extract_strided_slice %56 {offsets = [3, 0, 0], sizes = [8, 16, 8], strides = [1, 1, 1]} : vector<14x16x8xf32> to vector<8x16x8xf32>
    %c3_48 = arith.constant 3 : index
    %c1_49 = arith.constant 1 : index
    %c0_50 = arith.constant 0 : index
    %73 = vector.load %arg5[%c3_48, %c1_49, %c0_50] : memref<7x7x8xf32, #tpu.memory_space<vmem>>, vector<1x1x8xf32>
    %74 = vector.broadcast %73 : vector<1x1x8xf32> to vector<8x16x8xf32>
    %75 = arith.mulf %72, %74 : vector<8x16x8xf32>
    %76 = arith.addf %71, %75 : vector<8x16x8xf32>
    %77 = vector.extract_strided_slice %56 {offsets = [4, 0, 0], sizes = [8, 16, 8], strides = [1, 1, 1]} : vector<14x16x8xf32> to vector<8x16x8xf32>
    %c4_51 = arith.constant 4 : index
    %c1_52 = arith.constant 1 : index
    %c0_53 = arith.constant 0 : index
    %78 = vector.load %arg5[%c4_51, %c1_52, %c0_53] : memref<7x7x8xf32, #tpu.memory_space<vmem>>, vector<1x1x8xf32>
    %79 = vector.broadcast %78 : vector<1x1x8xf32> to vector<8x16x8xf32>
    %80 = arith.mulf %77, %79 : vector<8x16x8xf32>
    %81 = arith.addf %76, %80 : vector<8x16x8xf32>
    %82 = vector.extract_strided_slice %56 {offsets = [5, 0, 0], sizes = [8, 16, 8], strides = [1, 1, 1]} : vector<14x16x8xf32> to vector<8x16x8xf32>
    %c5_54 = arith.constant 5 : index
    %c1_55 = arith.constant 1 : index
    %c0_56 = arith.constant 0 : index
    %83 = vector.load %arg5[%c5_54, %c1_55, %c0_56] : memref<7x7x8xf32, #tpu.memory_space<vmem>>, vector<1x1x8xf32>
    %84 = vector.broadcast %83 : vector<1x1x8xf32> to vector<8x16x8xf32>
    %85 = arith.mulf %82, %84 : vector<8x16x8xf32>
    %86 = arith.addf %81, %85 : vector<8x16x8xf32>
    %87 = vector.extract_strided_slice %56 {offsets = [6, 0, 0], sizes = [8, 16, 8], strides = [1, 1, 1]} : vector<14x16x8xf32> to vector<8x16x8xf32>
    %c6_57 = arith.constant 6 : index
    %c1_58 = arith.constant 1 : index
    %c0_59 = arith.constant 0 : index
    %88 = vector.load %arg5[%c6_57, %c1_58, %c0_59] : memref<7x7x8xf32, #tpu.memory_space<vmem>>, vector<1x1x8xf32>
    %89 = vector.broadcast %88 : vector<1x1x8xf32> to vector<8x16x8xf32>
    %90 = arith.mulf %87, %89 : vector<8x16x8xf32>
    %91 = arith.addf %86, %90 : vector<8x16x8xf32>
    %c0_60 = arith.constant 0 : index
    %c7 = arith.constant 7 : index
    %c0_61 = arith.constant 0 : index
    %92 = vector.load %arg12[%c0_60, %c7, %c0_61] : memref<14x32x8xf32, #tpu.memory_space<vmem>>, vector<14x16x8xf32>
    %93 = vector.extract_strided_slice %92 {offsets = [0, 0, 0], sizes = [8, 16, 8], strides = [1, 1, 1]} : vector<14x16x8xf32> to vector<8x16x8xf32>
    %c0_62 = arith.constant 0 : index
    %c2_63 = arith.constant 2 : index
    %c0_64 = arith.constant 0 : index
    %94 = vector.load %arg5[%c0_62, %c2_63, %c0_64] : memref<7x7x8xf32, #tpu.memory_space<vmem>>, vector<1x1x8xf32>
    %95 = vector.broadcast %94 : vector<1x1x8xf32> to vector<8x16x8xf32>
    %96 = arith.mulf %93, %95 : vector<8x16x8xf32>
    %97 = arith.addf %91, %96 : vector<8x16x8xf32>
    %98 = vector.extract_strided_slice %92 {offsets = [1, 0, 0], sizes = [8, 16, 8], strides = [1, 1, 1]} : vector<14x16x8xf32> to vector<8x16x8xf32>
    %c1_65 = arith.constant 1 : index
    %c2_66 = arith.constant 2 : index
    %c0_67 = arith.constant 0 : index
    %99 = vector.load %arg5[%c1_65, %c2_66, %c0_67] : memref<7x7x8xf32, #tpu.memory_space<vmem>>, vector<1x1x8xf32>
    %100 = vector.broadcast %99 : vector<1x1x8xf32> to vector<8x16x8xf32>
    %101 = arith.mulf %98, %100 : vector<8x16x8xf32>
    %102 = arith.addf %97, %101 : vector<8x16x8xf32>
    %103 = vector.extract_strided_slice %92 {offsets = [2, 0, 0], sizes = [8, 16, 8], strides = [1, 1, 1]} : vector<14x16x8xf32> to vector<8x16x8xf32>
    %c2_68 = arith.constant 2 : index
    %c2_69 = arith.constant 2 : index
    %c0_70 = arith.constant 0 : index
    %104 = vector.load %arg5[%c2_68, %c2_69, %c0_70] : memref<7x7x8xf32, #tpu.memory_space<vmem>>, vector<1x1x8xf32>
    %105 = vector.broadcast %104 : vector<1x1x8xf32> to vector<8x16x8xf32>
    %106 = arith.mulf %103, %105 : vector<8x16x8xf32>
    %107 = arith.addf %102, %106 : vector<8x16x8xf32>
    %108 = vector.extract_strided_slice %92 {offsets = [3, 0, 0], sizes = [8, 16, 8], strides = [1, 1, 1]} : vector<14x16x8xf32> to vector<8x16x8xf32>
    %c3_71 = arith.constant 3 : index
    %c2_72 = arith.constant 2 : index
    %c0_73 = arith.constant 0 : index
    %109 = vector.load %arg5[%c3_71, %c2_72, %c0_73] : memref<7x7x8xf32, #tpu.memory_space<vmem>>, vector<1x1x8xf32>
    %110 = vector.broadcast %109 : vector<1x1x8xf32> to vector<8x16x8xf32>
    %111 = arith.mulf %108, %110 : vector<8x16x8xf32>
    %112 = arith.addf %107, %111 : vector<8x16x8xf32>
    %113 = vector.extract_strided_slice %92 {offsets = [4, 0, 0], sizes = [8, 16, 8], strides = [1, 1, 1]} : vector<14x16x8xf32> to vector<8x16x8xf32>
    %c4_74 = arith.constant 4 : index
    %c2_75 = arith.constant 2 : index
    %c0_76 = arith.constant 0 : index
    %114 = vector.load %arg5[%c4_74, %c2_75, %c0_76] : memref<7x7x8xf32, #tpu.memory_space<vmem>>, vector<1x1x8xf32>
    %115 = vector.broadcast %114 : vector<1x1x8xf32> to vector<8x16x8xf32>
    %116 = arith.mulf %113, %115 : vector<8x16x8xf32>
    %117 = arith.addf %112, %116 : vector<8x16x8xf32>
    %118 = vector.extract_strided_slice %92 {offsets = [5, 0, 0], sizes = [8, 16, 8], strides = [1, 1, 1]} : vector<14x16x8xf32> to vector<8x16x8xf32>
    %c5_77 = arith.constant 5 : index
    %c2_78 = arith.constant 2 : index
    %c0_79 = arith.constant 0 : index
    %119 = vector.load %arg5[%c5_77, %c2_78, %c0_79] : memref<7x7x8xf32, #tpu.memory_space<vmem>>, vector<1x1x8xf32>
    %120 = vector.broadcast %119 : vector<1x1x8xf32> to vector<8x16x8xf32>
    %121 = arith.mulf %118, %120 : vector<8x16x8xf32>
    %122 = arith.addf %117, %121 : vector<8x16x8xf32>
    %123 = vector.extract_strided_slice %92 {offsets = [6, 0, 0], sizes = [8, 16, 8], strides = [1, 1, 1]} : vector<14x16x8xf32> to vector<8x16x8xf32>
    %c6_80 = arith.constant 6 : index
    %c2_81 = arith.constant 2 : index
    %c0_82 = arith.constant 0 : index
    %124 = vector.load %arg5[%c6_80, %c2_81, %c0_82] : memref<7x7x8xf32, #tpu.memory_space<vmem>>, vector<1x1x8xf32>
    %125 = vector.broadcast %124 : vector<1x1x8xf32> to vector<8x16x8xf32>
    %126 = arith.mulf %123, %125 : vector<8x16x8xf32>
    %127 = arith.addf %122, %126 : vector<8x16x8xf32>
    %c0_83 = arith.constant 0 : index
    %c8_84 = arith.constant 8 : index
    %c0_85 = arith.constant 0 : index
    %128 = vector.load %arg12[%c0_83, %c8_84, %c0_85] : memref<14x32x8xf32, #tpu.memory_space<vmem>>, vector<14x16x8xf32>
    %129 = vector.extract_strided_slice %128 {offsets = [0, 0, 0], sizes = [8, 16, 8], strides = [1, 1, 1]} : vector<14x16x8xf32> to vector<8x16x8xf32>
    %c0_86 = arith.constant 0 : index
    %c3_87 = arith.constant 3 : index
    %c0_88 = arith.constant 0 : index
    %130 = vector.load %arg5[%c0_86, %c3_87, %c0_88] : memref<7x7x8xf32, #tpu.memory_space<vmem>>, vector<1x1x8xf32>
    %131 = vector.broadcast %130 : vector<1x1x8xf32> to vector<8x16x8xf32>
    %132 = arith.mulf %129, %131 : vector<8x16x8xf32>
    %133 = arith.addf %127, %132 : vector<8x16x8xf32>
    %134 = vector.extract_strided_slice %128 {offsets = [1, 0, 0], sizes = [8, 16, 8], strides = [1, 1, 1]} : vector<14x16x8xf32> to vector<8x16x8xf32>
    %c1_89 = arith.constant 1 : index
    %c3_90 = arith.constant 3 : index
    %c0_91 = arith.constant 0 : index
    %135 = vector.load %arg5[%c1_89, %c3_90, %c0_91] : memref<7x7x8xf32, #tpu.memory_space<vmem>>, vector<1x1x8xf32>
    %136 = vector.broadcast %135 : vector<1x1x8xf32> to vector<8x16x8xf32>
    %137 = arith.mulf %134, %136 : vector<8x16x8xf32>
    %138 = arith.addf %133, %137 : vector<8x16x8xf32>
    %139 = vector.extract_strided_slice %128 {offsets = [2, 0, 0], sizes = [8, 16, 8], strides = [1, 1, 1]} : vector<14x16x8xf32> to vector<8x16x8xf32>
    %c2_92 = arith.constant 2 : index
    %c3_93 = arith.constant 3 : index
    %c0_94 = arith.constant 0 : index
    %140 = vector.load %arg5[%c2_92, %c3_93, %c0_94] : memref<7x7x8xf32, #tpu.memory_space<vmem>>, vector<1x1x8xf32>
    %141 = vector.broadcast %140 : vector<1x1x8xf32> to vector<8x16x8xf32>
    %142 = arith.mulf %139, %141 : vector<8x16x8xf32>
    %143 = arith.addf %138, %142 : vector<8x16x8xf32>
    %144 = vector.extract_strided_slice %128 {offsets = [3, 0, 0], sizes = [8, 16, 8], strides = [1, 1, 1]} : vector<14x16x8xf32> to vector<8x16x8xf32>
    %c3_95 = arith.constant 3 : index
    %c3_96 = arith.constant 3 : index
    %c0_97 = arith.constant 0 : index
    %145 = vector.load %arg5[%c3_95, %c3_96, %c0_97] : memref<7x7x8xf32, #tpu.memory_space<vmem>>, vector<1x1x8xf32>
    %146 = vector.broadcast %145 : vector<1x1x8xf32> to vector<8x16x8xf32>
    %147 = arith.mulf %144, %146 : vector<8x16x8xf32>
    %148 = arith.addf %143, %147 : vector<8x16x8xf32>
    %149 = vector.extract_strided_slice %128 {offsets = [4, 0, 0], sizes = [8, 16, 8], strides = [1, 1, 1]} : vector<14x16x8xf32> to vector<8x16x8xf32>
    %c4_98 = arith.constant 4 : index
    %c3_99 = arith.constant 3 : index
    %c0_100 = arith.constant 0 : index
    %150 = vector.load %arg5[%c4_98, %c3_99, %c0_100] : memref<7x7x8xf32, #tpu.memory_space<vmem>>, vector<1x1x8xf32>
    %151 = vector.broadcast %150 : vector<1x1x8xf32> to vector<8x16x8xf32>
    %152 = arith.mulf %149, %151 : vector<8x16x8xf32>
    %153 = arith.addf %148, %152 : vector<8x16x8xf32>
    %154 = vector.extract_strided_slice %128 {offsets = [5, 0, 0], sizes = [8, 16, 8], strides = [1, 1, 1]} : vector<14x16x8xf32> to vector<8x16x8xf32>
    %c5_101 = arith.constant 5 : index
    %c3_102 = arith.constant 3 : index
    %c0_103 = arith.constant 0 : index
    %155 = vector.load %arg5[%c5_101, %c3_102, %c0_103] : memref<7x7x8xf32, #tpu.memory_space<vmem>>, vector<1x1x8xf32>
    %156 = vector.broadcast %155 : vector<1x1x8xf32> to vector<8x16x8xf32>
    %157 = arith.mulf %154, %156 : vector<8x16x8xf32>
    %158 = arith.addf %153, %157 : vector<8x16x8xf32>
    %159 = vector.extract_strided_slice %128 {offsets = [6, 0, 0], sizes = [8, 16, 8], strides = [1, 1, 1]} : vector<14x16x8xf32> to vector<8x16x8xf32>
    %c6_104 = arith.constant 6 : index
    %c3_105 = arith.constant 3 : index
    %c0_106 = arith.constant 0 : index
    %160 = vector.load %arg5[%c6_104, %c3_105, %c0_106] : memref<7x7x8xf32, #tpu.memory_space<vmem>>, vector<1x1x8xf32>
    %161 = vector.broadcast %160 : vector<1x1x8xf32> to vector<8x16x8xf32>
    %162 = arith.mulf %159, %161 : vector<8x16x8xf32>
    %163 = arith.addf %158, %162 : vector<8x16x8xf32>
    %c0_107 = arith.constant 0 : index
    %c9 = arith.constant 9 : index
    %c0_108 = arith.constant 0 : index
    %164 = vector.load %arg12[%c0_107, %c9, %c0_108] : memref<14x32x8xf32, #tpu.memory_space<vmem>>, vector<14x16x8xf32>
    %165 = vector.extract_strided_slice %164 {offsets = [0, 0, 0], sizes = [8, 16, 8], strides = [1, 1, 1]} : vector<14x16x8xf32> to vector<8x16x8xf32>
    %c0_109 = arith.constant 0 : index
    %c4_110 = arith.constant 4 : index
    %c0_111 = arith.constant 0 : index
    %166 = vector.load %arg5[%c0_109, %c4_110, %c0_111] : memref<7x7x8xf32, #tpu.memory_space<vmem>>, vector<1x1x8xf32>
    %167 = vector.broadcast %166 : vector<1x1x8xf32> to vector<8x16x8xf32>
    %168 = arith.mulf %165, %167 : vector<8x16x8xf32>
    %169 = arith.addf %163, %168 : vector<8x16x8xf32>
    %170 = vector.extract_strided_slice %164 {offsets = [1, 0, 0], sizes = [8, 16, 8], strides = [1, 1, 1]} : vector<14x16x8xf32> to vector<8x16x8xf32>
    %c1_112 = arith.constant 1 : index
    %c4_113 = arith.constant 4 : index
    %c0_114 = arith.constant 0 : index
    %171 = vector.load %arg5[%c1_112, %c4_113, %c0_114] : memref<7x7x8xf32, #tpu.memory_space<vmem>>, vector<1x1x8xf32>
    %172 = vector.broadcast %171 : vector<1x1x8xf32> to vector<8x16x8xf32>
    %173 = arith.mulf %170, %172 : vector<8x16x8xf32>
    %174 = arith.addf %169, %173 : vector<8x16x8xf32>
    %175 = vector.extract_strided_slice %164 {offsets = [2, 0, 0], sizes = [8, 16, 8], strides = [1, 1, 1]} : vector<14x16x8xf32> to vector<8x16x8xf32>
    %c2_115 = arith.constant 2 : index
    %c4_116 = arith.constant 4 : index
    %c0_117 = arith.constant 0 : index
    %176 = vector.load %arg5[%c2_115, %c4_116, %c0_117] : memref<7x7x8xf32, #tpu.memory_space<vmem>>, vector<1x1x8xf32>
    %177 = vector.broadcast %176 : vector<1x1x8xf32> to vector<8x16x8xf32>
    %178 = arith.mulf %175, %177 : vector<8x16x8xf32>
    %179 = arith.addf %174, %178 : vector<8x16x8xf32>
    %180 = vector.extract_strided_slice %164 {offsets = [3, 0, 0], sizes = [8, 16, 8], strides = [1, 1, 1]} : vector<14x16x8xf32> to vector<8x16x8xf32>
    %c3_118 = arith.constant 3 : index
    %c4_119 = arith.constant 4 : index
    %c0_120 = arith.constant 0 : index
    %181 = vector.load %arg5[%c3_118, %c4_119, %c0_120] : memref<7x7x8xf32, #tpu.memory_space<vmem>>, vector<1x1x8xf32>
    %182 = vector.broadcast %181 : vector<1x1x8xf32> to vector<8x16x8xf32>
    %183 = arith.mulf %180, %182 : vector<8x16x8xf32>
    %184 = arith.addf %179, %183 : vector<8x16x8xf32>
    %185 = vector.extract_strided_slice %164 {offsets = [4, 0, 0], sizes = [8, 16, 8], strides = [1, 1, 1]} : vector<14x16x8xf32> to vector<8x16x8xf32>
    %c4_121 = arith.constant 4 : index
    %c4_122 = arith.constant 4 : index
    %c0_123 = arith.constant 0 : index
    %186 = vector.load %arg5[%c4_121, %c4_122, %c0_123] : memref<7x7x8xf32, #tpu.memory_space<vmem>>, vector<1x1x8xf32>
    %187 = vector.broadcast %186 : vector<1x1x8xf32> to vector<8x16x8xf32>
    %188 = arith.mulf %185, %187 : vector<8x16x8xf32>
    %189 = arith.addf %184, %188 : vector<8x16x8xf32>
    %190 = vector.extract_strided_slice %164 {offsets = [5, 0, 0], sizes = [8, 16, 8], strides = [1, 1, 1]} : vector<14x16x8xf32> to vector<8x16x8xf32>
    %c5_124 = arith.constant 5 : index
    %c4_125 = arith.constant 4 : index
    %c0_126 = arith.constant 0 : index
    %191 = vector.load %arg5[%c5_124, %c4_125, %c0_126] : memref<7x7x8xf32, #tpu.memory_space<vmem>>, vector<1x1x8xf32>
    %192 = vector.broadcast %191 : vector<1x1x8xf32> to vector<8x16x8xf32>
    %193 = arith.mulf %190, %192 : vector<8x16x8xf32>
    %194 = arith.addf %189, %193 : vector<8x16x8xf32>
    %195 = vector.extract_strided_slice %164 {offsets = [6, 0, 0], sizes = [8, 16, 8], strides = [1, 1, 1]} : vector<14x16x8xf32> to vector<8x16x8xf32>
    %c6_127 = arith.constant 6 : index
    %c4_128 = arith.constant 4 : index
    %c0_129 = arith.constant 0 : index
    %196 = vector.load %arg5[%c6_127, %c4_128, %c0_129] : memref<7x7x8xf32, #tpu.memory_space<vmem>>, vector<1x1x8xf32>
    %197 = vector.broadcast %196 : vector<1x1x8xf32> to vector<8x16x8xf32>
    %198 = arith.mulf %195, %197 : vector<8x16x8xf32>
    %199 = arith.addf %194, %198 : vector<8x16x8xf32>
    %c0_130 = arith.constant 0 : index
    %c10 = arith.constant 10 : index
    %c0_131 = arith.constant 0 : index
    %200 = vector.load %arg12[%c0_130, %c10, %c0_131] : memref<14x32x8xf32, #tpu.memory_space<vmem>>, vector<14x16x8xf32>
    %201 = vector.extract_strided_slice %200 {offsets = [0, 0, 0], sizes = [8, 16, 8], strides = [1, 1, 1]} : vector<14x16x8xf32> to vector<8x16x8xf32>
    %c0_132 = arith.constant 0 : index
    %c5_133 = arith.constant 5 : index
    %c0_134 = arith.constant 0 : index
    %202 = vector.load %arg5[%c0_132, %c5_133, %c0_134] : memref<7x7x8xf32, #tpu.memory_space<vmem>>, vector<1x1x8xf32>
    %203 = vector.broadcast %202 : vector<1x1x8xf32> to vector<8x16x8xf32>
    %204 = arith.mulf %201, %203 : vector<8x16x8xf32>
    %205 = arith.addf %199, %204 : vector<8x16x8xf32>
    %206 = vector.extract_strided_slice %200 {offsets = [1, 0, 0], sizes = [8, 16, 8], strides = [1, 1, 1]} : vector<14x16x8xf32> to vector<8x16x8xf32>
    %c1_135 = arith.constant 1 : index
    %c5_136 = arith.constant 5 : index
    %c0_137 = arith.constant 0 : index
    %207 = vector.load %arg5[%c1_135, %c5_136, %c0_137] : memref<7x7x8xf32, #tpu.memory_space<vmem>>, vector<1x1x8xf32>
    %208 = vector.broadcast %207 : vector<1x1x8xf32> to vector<8x16x8xf32>
    %209 = arith.mulf %206, %208 : vector<8x16x8xf32>
    %210 = arith.addf %205, %209 : vector<8x16x8xf32>
    %211 = vector.extract_strided_slice %200 {offsets = [2, 0, 0], sizes = [8, 16, 8], strides = [1, 1, 1]} : vector<14x16x8xf32> to vector<8x16x8xf32>
    %c2_138 = arith.constant 2 : index
    %c5_139 = arith.constant 5 : index
    %c0_140 = arith.constant 0 : index
    %212 = vector.load %arg5[%c2_138, %c5_139, %c0_140] : memref<7x7x8xf32, #tpu.memory_space<vmem>>, vector<1x1x8xf32>
    %213 = vector.broadcast %212 : vector<1x1x8xf32> to vector<8x16x8xf32>
    %214 = arith.mulf %211, %213 : vector<8x16x8xf32>
    %215 = arith.addf %210, %214 : vector<8x16x8xf32>
    %216 = vector.extract_strided_slice %200 {offsets = [3, 0, 0], sizes = [8, 16, 8], strides = [1, 1, 1]} : vector<14x16x8xf32> to vector<8x16x8xf32>
    %c3_141 = arith.constant 3 : index
    %c5_142 = arith.constant 5 : index
    %c0_143 = arith.constant 0 : index
    %217 = vector.load %arg5[%c3_141, %c5_142, %c0_143] : memref<7x7x8xf32, #tpu.memory_space<vmem>>, vector<1x1x8xf32>
    %218 = vector.broadcast %217 : vector<1x1x8xf32> to vector<8x16x8xf32>
    %219 = arith.mulf %216, %218 : vector<8x16x8xf32>
    %220 = arith.addf %215, %219 : vector<8x16x8xf32>
    %221 = vector.extract_strided_slice %200 {offsets = [4, 0, 0], sizes = [8, 16, 8], strides = [1, 1, 1]} : vector<14x16x8xf32> to vector<8x16x8xf32>
    %c4_144 = arith.constant 4 : index
    %c5_145 = arith.constant 5 : index
    %c0_146 = arith.constant 0 : index
    %222 = vector.load %arg5[%c4_144, %c5_145, %c0_146] : memref<7x7x8xf32, #tpu.memory_space<vmem>>, vector<1x1x8xf32>
    %223 = vector.broadcast %222 : vector<1x1x8xf32> to vector<8x16x8xf32>
    %224 = arith.mulf %221, %223 : vector<8x16x8xf32>
    %225 = arith.addf %220, %224 : vector<8x16x8xf32>
    %226 = vector.extract_strided_slice %200 {offsets = [5, 0, 0], sizes = [8, 16, 8], strides = [1, 1, 1]} : vector<14x16x8xf32> to vector<8x16x8xf32>
    %c5_147 = arith.constant 5 : index
    %c5_148 = arith.constant 5 : index
    %c0_149 = arith.constant 0 : index
    %227 = vector.load %arg5[%c5_147, %c5_148, %c0_149] : memref<7x7x8xf32, #tpu.memory_space<vmem>>, vector<1x1x8xf32>
    %228 = vector.broadcast %227 : vector<1x1x8xf32> to vector<8x16x8xf32>
    %229 = arith.mulf %226, %228 : vector<8x16x8xf32>
    %230 = arith.addf %225, %229 : vector<8x16x8xf32>
    %231 = vector.extract_strided_slice %200 {offsets = [6, 0, 0], sizes = [8, 16, 8], strides = [1, 1, 1]} : vector<14x16x8xf32> to vector<8x16x8xf32>
    %c6_150 = arith.constant 6 : index
    %c5_151 = arith.constant 5 : index
    %c0_152 = arith.constant 0 : index
    %232 = vector.load %arg5[%c6_150, %c5_151, %c0_152] : memref<7x7x8xf32, #tpu.memory_space<vmem>>, vector<1x1x8xf32>
    %233 = vector.broadcast %232 : vector<1x1x8xf32> to vector<8x16x8xf32>
    %234 = arith.mulf %231, %233 : vector<8x16x8xf32>
    %235 = arith.addf %230, %234 : vector<8x16x8xf32>
    %c0_153 = arith.constant 0 : index
    %c11 = arith.constant 11 : index
    %c0_154 = arith.constant 0 : index
    %236 = vector.load %arg12[%c0_153, %c11, %c0_154] : memref<14x32x8xf32, #tpu.memory_space<vmem>>, vector<14x16x8xf32>
    %237 = vector.extract_strided_slice %236 {offsets = [0, 0, 0], sizes = [8, 16, 8], strides = [1, 1, 1]} : vector<14x16x8xf32> to vector<8x16x8xf32>
    %c0_155 = arith.constant 0 : index
    %c6_156 = arith.constant 6 : index
    %c0_157 = arith.constant 0 : index
    %238 = vector.load %arg5[%c0_155, %c6_156, %c0_157] : memref<7x7x8xf32, #tpu.memory_space<vmem>>, vector<1x1x8xf32>
    %239 = vector.broadcast %238 : vector<1x1x8xf32> to vector<8x16x8xf32>
    %240 = arith.mulf %237, %239 : vector<8x16x8xf32>
    %241 = arith.addf %235, %240 : vector<8x16x8xf32>
    %242 = vector.extract_strided_slice %236 {offsets = [1, 0, 0], sizes = [8, 16, 8], strides = [1, 1, 1]} : vector<14x16x8xf32> to vector<8x16x8xf32>
    %c1_158 = arith.constant 1 : index
    %c6_159 = arith.constant 6 : index
    %c0_160 = arith.constant 0 : index
    %243 = vector.load %arg5[%c1_158, %c6_159, %c0_160] : memref<7x7x8xf32, #tpu.memory_space<vmem>>, vector<1x1x8xf32>
    %244 = vector.broadcast %243 : vector<1x1x8xf32> to vector<8x16x8xf32>
    %245 = arith.mulf %242, %244 : vector<8x16x8xf32>
    %246 = arith.addf %241, %245 : vector<8x16x8xf32>
    %247 = vector.extract_strided_slice %236 {offsets = [2, 0, 0], sizes = [8, 16, 8], strides = [1, 1, 1]} : vector<14x16x8xf32> to vector<8x16x8xf32>
    %c2_161 = arith.constant 2 : index
    %c6_162 = arith.constant 6 : index
    %c0_163 = arith.constant 0 : index
    %248 = vector.load %arg5[%c2_161, %c6_162, %c0_163] : memref<7x7x8xf32, #tpu.memory_space<vmem>>, vector<1x1x8xf32>
    %249 = vector.broadcast %248 : vector<1x1x8xf32> to vector<8x16x8xf32>
    %250 = arith.mulf %247, %249 : vector<8x16x8xf32>
    %251 = arith.addf %246, %250 : vector<8x16x8xf32>
    %252 = vector.extract_strided_slice %236 {offsets = [3, 0, 0], sizes = [8, 16, 8], strides = [1, 1, 1]} : vector<14x16x8xf32> to vector<8x16x8xf32>
    %c3_164 = arith.constant 3 : index
    %c6_165 = arith.constant 6 : index
    %c0_166 = arith.constant 0 : index
    %253 = vector.load %arg5[%c3_164, %c6_165, %c0_166] : memref<7x7x8xf32, #tpu.memory_space<vmem>>, vector<1x1x8xf32>
    %254 = vector.broadcast %253 : vector<1x1x8xf32> to vector<8x16x8xf32>
    %255 = arith.mulf %252, %254 : vector<8x16x8xf32>
    %256 = arith.addf %251, %255 : vector<8x16x8xf32>
    %257 = vector.extract_strided_slice %236 {offsets = [4, 0, 0], sizes = [8, 16, 8], strides = [1, 1, 1]} : vector<14x16x8xf32> to vector<8x16x8xf32>
    %c4_167 = arith.constant 4 : index
    %c6_168 = arith.constant 6 : index
    %c0_169 = arith.constant 0 : index
    %258 = vector.load %arg5[%c4_167, %c6_168, %c0_169] : memref<7x7x8xf32, #tpu.memory_space<vmem>>, vector<1x1x8xf32>
    %259 = vector.broadcast %258 : vector<1x1x8xf32> to vector<8x16x8xf32>
    %260 = arith.mulf %257, %259 : vector<8x16x8xf32>
    %261 = arith.addf %256, %260 : vector<8x16x8xf32>
    %262 = vector.extract_strided_slice %236 {offsets = [5, 0, 0], sizes = [8, 16, 8], strides = [1, 1, 1]} : vector<14x16x8xf32> to vector<8x16x8xf32>
    %c5_170 = arith.constant 5 : index
    %c6_171 = arith.constant 6 : index
    %c0_172 = arith.constant 0 : index
    %263 = vector.load %arg5[%c5_170, %c6_171, %c0_172] : memref<7x7x8xf32, #tpu.memory_space<vmem>>, vector<1x1x8xf32>
    %264 = vector.broadcast %263 : vector<1x1x8xf32> to vector<8x16x8xf32>
    %265 = arith.mulf %262, %264 : vector<8x16x8xf32>
    %266 = arith.addf %261, %265 : vector<8x16x8xf32>
    %267 = vector.extract_strided_slice %236 {offsets = [6, 0, 0], sizes = [8, 16, 8], strides = [1, 1, 1]} : vector<14x16x8xf32> to vector<8x16x8xf32>
    %c6_173 = arith.constant 6 : index
    %c6_174 = arith.constant 6 : index
    %c0_175 = arith.constant 0 : index
    %268 = vector.load %arg5[%c6_173, %c6_174, %c0_175] : memref<7x7x8xf32, #tpu.memory_space<vmem>>, vector<1x1x8xf32>
    %269 = vector.broadcast %268 : vector<1x1x8xf32> to vector<8x16x8xf32>
    %270 = arith.mulf %267, %269 : vector<8x16x8xf32>
    %271 = arith.addf %266, %270 : vector<8x16x8xf32>
    %c0_176 = arith.constant 0 : index
    %c0_177 = arith.constant 0 : index
    %272 = vector.load %arg6[%c0_176, %c0_177] : memref<1x8xf32, #tpu.memory_space<vmem>>, vector<1x8xf32>
    %273 = vector.shape_cast %272 : vector<1x8xf32> to vector<1x1x8xf32>
    %274 = vector.broadcast %273 : vector<1x1x8xf32> to vector<8x16x8xf32>
    %275 = arith.addf %271, %274 : vector<8x16x8xf32>
    %cst_178 = arith.constant dense<0.000000e+00> : vector<8x16xf32>
    %276 = vector.multi_reduction <add>, %275, %cst_178 [2] : vector<8x16x8xf32> to vector<8x16xf32>
    %277 = vector.shape_cast %276 : vector<8x16xf32> to vector<8x16x1xf32>
    %cst_179 = arith.constant 8.000000e+00 : f32
    %278 = vector.broadcast %cst_179 : f32 to vector<8x16x1xf32>
    %279 = arith.divf %277, %278 : vector<8x16x1xf32>
    %280 = vector.broadcast %279 : vector<8x16x1xf32> to vector<8x16x8xf32>
    %281 = arith.subf %275, %280 : vector<8x16x8xf32>
    %282 = arith.mulf %281, %281 : vector<8x16x8xf32>
    %cst_180 = arith.constant dense<0.000000e+00> : vector<8x16xf32>
    %283 = vector.multi_reduction <add>, %282, %cst_180 [2] : vector<8x16x8xf32> to vector<8x16xf32>
    %284 = vector.shape_cast %283 : vector<8x16xf32> to vector<8x16x1xf32>
    %cst_181 = arith.constant 8.000000e+00 : f32
    %285 = vector.broadcast %cst_181 : f32 to vector<8x16x1xf32>
    %286 = arith.divf %284, %285 : vector<8x16x1xf32>
    %cst_182 = arith.constant 9.99999997E-7 : f32
    %287 = vector.broadcast %cst_182 : f32 to vector<8x16x1xf32>
    %288 = arith.addf %286, %287 : vector<8x16x1xf32>
    %289 = math.rsqrt %288 : vector<8x16x1xf32>
    %290 = vector.broadcast %289 : vector<8x16x1xf32> to vector<8x16x8xf32>
    %291 = arith.mulf %281, %290 : vector<8x16x8xf32>
    %292 = vector.shape_cast %291 : vector<8x16x8xf32> to vector<128x8xf32>
    %293 = arith.truncf %292 : vector<128x8xf32> to vector<128x8xbf16>
    %c0_183 = arith.constant 0 : index
    %c0_184 = arith.constant 0 : index
    %294 = vector.load %arg7[%c0_183, %c0_184] : memref<8x32xbf16, #tpu.memory_space<vmem>>, vector<8x32xbf16>
    %cst_185 = arith.constant dense<0.000000e+00> : vector<128x32xf32>
    %295 = tpu.matmul %293, %294, %cst_185 {dimension_numbers = #tpu.dot_dimension_numbers<[1], [0], [0], [1], [0, 0, 1, 1], [], []>} : vector<128x8xbf16>, vector<8x32xbf16>, vector<128x32xf32> -> vector<128x32xf32>
    %c0_186 = arith.constant 0 : index
    %c0_187 = arith.constant 0 : index
    %296 = vector.load %arg8[%c0_186, %c0_187] : memref<1x32xf32, #tpu.memory_space<vmem>>, vector<1x32xf32>
    %297 = vector.shape_cast %296 : vector<1x32xf32> to vector<32xf32>
    %298 = vector.shape_cast %297 : vector<32xf32> to vector<1x32xf32>
    %299 = vector.broadcast %298 : vector<1x32xf32> to vector<128x32xf32>
    %300 = arith.addf %295, %299 : vector<128x32xf32>
    %cst_188 = arith.constant 5.000000e-01 : f32
    %301 = vector.broadcast %cst_188 : f32 to vector<128x32xf32>
    %302 = arith.mulf %301, %300 : vector<128x32xf32>
    %cst_189 = arith.constant 4.471500e-02 : f32
    %303 = vector.broadcast %cst_189 : f32 to vector<128x32xf32>
    %304 = arith.mulf %303, %300 : vector<128x32xf32>
    %305 = arith.mulf %304, %300 : vector<128x32xf32>
    %306 = arith.mulf %305, %300 : vector<128x32xf32>
    %307 = arith.addf %300, %306 : vector<128x32xf32>
    %cst_190 = arith.constant 0.797884583 : f32
    %308 = vector.broadcast %cst_190 : f32 to vector<128x32xf32>
    %309 = arith.mulf %308, %307 : vector<128x32xf32>
    %310 = math.tanh %309 : vector<128x32xf32>
    %cst_191 = arith.constant 1.000000e+00 : f32
    %311 = vector.broadcast %cst_191 : f32 to vector<128x32xf32>
    %312 = arith.addf %311, %310 : vector<128x32xf32>
    %313 = arith.mulf %302, %312 : vector<128x32xf32>
    %314 = arith.truncf %313 : vector<128x32xf32> to vector<128x32xbf16>
    %c0_192 = arith.constant 0 : index
    %c0_193 = arith.constant 0 : index
    %315 = vector.load %arg9[%c0_192, %c0_193] : memref<32x8xbf16, #tpu.memory_space<vmem>>, vector<32x8xbf16>
    %cst_194 = arith.constant dense<0.000000e+00> : vector<128x8xf32>
    %316 = tpu.matmul %314, %315, %cst_194 {dimension_numbers = #tpu.dot_dimension_numbers<[1], [0], [0], [1], [0, 0, 1, 1], [], []>} : vector<128x32xbf16>, vector<32x8xbf16>, vector<128x8xf32> -> vector<128x8xf32>
    %c0_195 = arith.constant 0 : index
    %c0_196 = arith.constant 0 : index
    %317 = vector.load %arg10[%c0_195, %c0_196] : memref<1x8xf32, #tpu.memory_space<vmem>>, vector<1x8xf32>
    %318 = vector.shape_cast %317 : vector<1x8xf32> to vector<8xf32>
    %319 = vector.shape_cast %318 : vector<8xf32> to vector<1x8xf32>
    %320 = vector.broadcast %319 : vector<1x8xf32> to vector<128x8xf32>
    %321 = arith.addf %316, %320 : vector<128x8xf32>
    %322 = vector.shape_cast %321 : vector<128x8xf32> to vector<8x16x8xf32>
    %c0_197 = arith.constant 0 : index
    %c0_198 = arith.constant 0 : index
    %c0_199 = arith.constant 0 : index
    %c0_200 = arith.constant 0 : index
    %323 = vector.load %arg2[%c0_197, %c0_198, %c0_199, %c0_200] : memref<1x8x16x8xf32, #tpu.memory_space<vmem>>, vector<1x8x16x8xf32>
    %324 = vector.shape_cast %323 : vector<1x8x16x8xf32> to vector<8x16x8xf32>
    %325 = arith.addf %324, %322 : vector<8x16x8xf32>
    %c0_201 = arith.constant 0 : index
    %c0_202 = arith.constant 0 : index
    %c0_203 = arith.constant 0 : index
    %c0_204 = arith.constant 0 : index
    %326 = vector.load %arg11[%c0_201, %c0_202, %c0_203, %c0_204] : memref<1x8x16x8xf32, #tpu.memory_space<vmem>>, vector<1x8x16x8xf32>
    %327 = vector.shape_cast %326 : vector<1x8x16x8xf32> to vector<8x16x8xf32>
    %328 = vector.shape_cast %325 : vector<8x16x8xf32> to vector<1x8x16x8xf32>
    tpu.vector_store %arg11[%c0_201, %c0_202, %c0_203, %c0_204], %328 {strides = array<i32>} : memref<1x8x16x8xf32, #tpu.memory_space<vmem>>, vector<1x8x16x8xf32>,
    return
  }
  func.func @transform_0(%arg0: i32, %arg1: i32) -> (i32, i32, i32, i32) {
    %c0_i32 = arith.constant 0 : i32
    %c0_i32_0 = arith.constant 0 : i32
    %c0_i32_1 = arith.constant 0 : i32
    return %arg0, %arg1, %c0_i32, %c0_i32_0 : i32, i32, i32, i32
  }
  func.func @transform_1(%arg0: i32, %arg1: i32) -> (i32, i32, i32, i32) {
    %c2_i32 = arith.constant 2 : i32
    %0 = arith.muli %arg1, %c2_i32 : i32
    %c1_i32 = arith.constant 1 : i32
    %1 = arith.subi %0, %c1_i32 : i32
    %c0_i32 = arith.constant 0 : i32
    %2 = arith.maxsi %1, %c0_i32 : i32
    %c0_i32_0 = arith.constant 0 : i32
    %c0_i32_1 = arith.constant 0 : i32
    %c0_i32_2 = arith.constant 0 : i32
    return %arg0, %2, %c0_i32_0, %c0_i32_1 : i32, i32, i32, i32
  }
  func.func @transform_2(%arg0: i32, %arg1: i32) -> (i32, i32, i32, i32) {
    %c1_i32 = arith.constant 1 : i32
    %0 = arith.addi %arg1, %c1_i32 : i32
    %c2_i32 = arith.constant 2 : i32
    %1 = arith.muli %0, %c2_i32 : i32
    %c3_i32 = arith.constant 3 : i32
    %2 = arith.minsi %1, %c3_i32 : i32
    %c0_i32 = arith.constant 0 : i32
    %c0_i32_0 = arith.constant 0 : i32
    %c0_i32_1 = arith.constant 0 : i32
    return %arg0, %2, %c0_i32, %c0_i32_0 : i32, i32, i32, i32
  }
  func.func @transform_3(%arg0: i32, %arg1: i32) -> (i32, i32, i32) {
    %c0_i32 = arith.constant 0 : i32
    %c0_i32_0 = arith.constant 0 : i32
    %c0_i32_1 = arith.constant 0 : i32
    %c0_i32_2 = arith.constant 0 : i32
    return %c0_i32, %c0_i32_0, %c0_i32_1 : i32, i32, i32
  }
  func.func @transform_4(%arg0: i32, %arg1: i32) -> (i32, i32) {
    %c0_i32 = arith.constant 0 : i32
    %c0_i32_0 = arith.constant 0 : i32
    %c0_i32_1 = arith.constant 0 : i32
    return %c0_i32, %c0_i32_0 : i32, i32
  }
  func.func @transform_5(%arg0: i32, %arg1: i32) -> (i32, i32) {
    %c0_i32 = arith.constant 0 : i32
    %c0_i32_0 = arith.constant 0 : i32
    %c0_i32_1 = arith.constant 0 : i32
    return %c0_i32, %c0_i32_0 : i32, i32
  }
  func.func @transform_6(%arg0: i32, %arg1: i32) -> (i32, i32) {
    %c0_i32 = arith.constant 0 : i32
    %c0_i32_0 = arith.constant 0 : i32
    %c0_i32_1 = arith.constant 0 : i32
    return %c0_i32, %c0_i32_0 : i32, i32
  }
  func.func @transform_7(%arg0: i32, %arg1: i32) -> (i32, i32) {
    %c0_i32 = arith.constant 0 : i32
    %c0_i32_0 = arith.constant 0 : i32
    %c0_i32_1 = arith.constant 0 : i32
    return %c0_i32, %c0_i32_0 : i32, i32
  }
  func.func @transform_8(%arg0: i32, %arg1: i32) -> (i32, i32) {
    %c0_i32 = arith.constant 0 : i32
    %c0_i32_0 = arith.constant 0 : i32
    %c0_i32_1 = arith.constant 0 : i32
    return %c0_i32, %c0_i32_0 : i32, i32
  }
  func.func @transform_9(%arg0: i32, %arg1: i32) -> (i32, i32, i32, i32) {
    %c0_i32 = arith.constant 0 : i32
    %c0_i32_0 = arith.constant 0 : i32
    %c0_i32_1 = arith.constant 0 : i32
    return %arg0, %arg1, %c0_i32, %c0_i32_0 : i32, i32, i32, i32
  }
}

</mosaic_0001>

<bundles_post_ra>
// kernel: convnext_block.1
= control target key start
LH: loop header
LB: loop body
LE: loop exit
PB: predicated region body
PF: predicated region fallthrough
CT: control target
= control target key end

     0   :  { %s4187_s30 = smov 0   ;;  %s4189_s10 = smov 0   ;;  %s7843_s0 = inlined_call_operand.vmem [shape: f32[2,16,16,8], index: 0, kind: input, shape index: {}, may-alias: {0,1,2}]   ;;  %s7844_s1 = inlined_call_operand.vmem [shape: f32[2,16,16,8], index: 1, kind: input, shape index: {}, may-alias: {0,1,2}]   ;;  %s7845_s2 = inlined_call_operand.vmem [shape: f32[2,16,16,8], index: 2, kind: input, shape index: {}, may-alias: {0,1,2}]   ;;  %s7846_s3 = inlined_call_operand.vmem [shape: f32[7,7,8], index: 3, kind: input, shape index: {}]   ;;  %s7847_s4 = inlined_call_operand.vmem [shape: f32[1,8], index: 4, kind: input, shape index: {}]   ;;  %s7848_s5 = inlined_call_operand.vmem [shape: bf16[8,32], index: 5, kind: input, shape index: {}]   ;;  %s7849_s6 = inlined_call_operand.vmem [shape: f32[1,32], index: 6, kind: input, shape index: {}]   ;;  %s7850_s7 = inlined_call_operand.vmem [shape: bf16[32,8], index: 7, kind: input, shape index: {}]   ;;  %s7851_s8 = inlined_call_operand.vmem [shape: f32[1,8], index: 8, kind: input, shape index: {}]   ;;  %s7852_s9 = inlined_call_operand.vmem [shape: f32[2,16,16,8], index: 9, kind: output, shape index: {}]  }
   0x1   :  { %8371 = sst [smem:[#allocation124_spill]] %s7843_s0  ;;  %s4191_s11 = smov 0  }
   0x2   :  { %8372 = sst [smem:[#allocation125_spill]] %s7852_s9  ;;  %s4193_s12 = smov 0  }
   0x3   :  { %s4195_s13 = smov 0  }
   0x4 LB: > { %s28_s14 = sadd.s32 1, %s4124_s11  ;;  %s31_s15 = sadd.s32 1, %s4128_s12  ;;  %s4132_s13 = sphi %s4195_s13, %s19_s13   ;;  %s4128_s12 = sphi %s4193_s12, %s9264_s12   ;;  %s4124_s11 = sphi %s4191_s11, %s9263_s11   ;;  %s4120_s10 = sphi %s4189_s10, %s9262_s10   ;;  %s4116_s30 = sphi %s4187_s30, %s9261_s30  }
   0x5   : > { %p29_p0 = scmp.ge.s32.totalorder %s28_s14, 2  ;;  %p3513_p1 = scmp.ge.s32.totalorder %s4132_s13, 1 }
   0x6   : > { %p377_p2 = scmp.lt.s32.totalorder %s4132_s13, 5 }
   0x7   : > { %s9266_s14 = smov (%p29_p0, %s28_s14), 0  ;;  %s9268_s15 = smov (!%p29_p0, %s31_s15), %s4128_s12 }
   0x8   : > { %p378_p3 = pnand %p3513_p1, %p377_p2  ;;  %p33_p4 = scmp.ge.s32.totalorder %s9268_s15, 2 }
   0xa   : > { %s9270_s15 = smov (%p33_p4, %s9268_s15), 0  ;;  %381 = sbr.rel (%p378_p3) target bundleno = 1370 (0x55a), region = 56 }
  0x11   : > { %vm512_vm0 = vcmask 64512   ;;  %s3514_s16 = sshll.u32 %s4116_s30, 3  ;;  %p452_p5 = scmp.lt.s32.totalorder %s4120_s10, 1  ;;  %v4134_v0 = vmov 0.0  }
  0x12   : > { %513 = vst.msk [vmem:[#allocation2] sm:$0xff] %vm512_vm0, %v4134_v0  ;;  %514 = vst.msk [vmem:[#allocation2 + $0x20] sm:$0xff] %vm512_vm0, %v4134_v0  ;;  %p454_p6 = scmp.lt.s32.totalorder %s3514_s16, 15  ;;  %s3518_s17 = sshll.u32 %s4116_s30, 1 }
  0x13   : > { %515 = vst.msk [vmem:[#allocation2 + $0x40] sm:$0xff] %vm512_vm0, %v4134_v0  ;;  %516 = vst.msk [vmem:[#allocation2 + $0x60] sm:$0xff] %vm512_vm0, %v4134_v0  ;;  %s9272_s10 = smov (!%p452_p5, %s4120_s10), 1  ;;  %s3519_s19 = sadd.s32 4294967295, %s3518_s17 }
  0x14   : > { %517 = vst.msk [vmem:[#allocation2 + $0x80] sm:$0xff] %vm512_vm0, %v4134_v0  ;;  %518 = vst.msk [vmem:[#allocation2 + $0xa0] sm:$0xff] %vm512_vm0, %v4134_v0  ;;  %s9274_s16 = smov (!%p454_p6, %s3514_s16), 15  ;;  %s4259_s18 = sshll.u32 %s9272_s10, 5 }
  0x15   : > { %519 = vst.msk [vmem:[#allocation2 + $0xc0] sm:$0xff] %vm512_vm0, %v4134_v0  ;;  %520 = vst.msk [vmem:[#allocation2 + $0xe0] sm:$0xff] %vm512_vm0, %v4134_v0  ;;  %s3515_s20 = sshll.u32 %s9274_s16, 1  ;;  %p464_p7 = scmp.gt.s32.totalorder %s3519_s19, 0 }
  0x16   : > { %521 = vst.msk [vmem:[#allocation2 + $0x100] sm:$0xff] %vm512_vm0, %v4134_v0  ;;  %522 = vst.msk [vmem:[#allocation2 + $0x120] sm:$0xff] %vm512_vm0, %v4134_v0  ;;  %s458_s21 = sadd.s32 %s4259_s18, %s3515_s20  ;;  %s3662_s22 = sadd.s32 2, %s3518_s17 }
  0x17   : > { %523 = vst.msk [vmem:[#allocation2 + $0x140] sm:$0xff] %vm512_vm0, %v4134_v0  ;;  %524 = vst.msk [vmem:[#allocation2 + $0x160] sm:$0xff] %vm512_vm0, %v4134_v0  ;;  %s3517_s23 = sshll.u32 %s458_s21, 3  ;;  %p483_p8 = scmp.lt.s32.totalorder %s3662_s22, 3 }
  0x18   : > { %525 = vst.msk [vmem:[#allocation2 + $0x180] sm:$0xff] %vm512_vm0, %v4134_v0  ;;  %526 = vst.msk [vmem:[#allocation2 + $0x1a0] sm:$0xff] %vm512_vm0, %v4134_v0  ;;  %s8373_s0 = sld [smem:[#allocation124_spill]]  ;;  %s8374_s9 = sld [smem:[#allocation125_spill]] }
  0x19   : > { %527 = vst.msk [vmem:[#allocation2 + $0x18] sm:$0xff] %vm512_vm0, %v4134_v0  ;;  %528 = vst.msk [vmem:[#allocation2 + $0x38] sm:$0xff] %vm512_vm0, %v4134_v0  ;;  %s9276_s19 = smov (!%p464_p7, %s3519_s19), 0  ;;  %s9278_s22 = smov (!%p483_p8, %s3662_s22), 3 }
  0x1a   : > { %529 = vst.msk [vmem:[#allocation2 + $0x58] sm:$0xff] %vm512_vm0, %v4134_v0  ;;  %530 = vst.msk [vmem:[#allocation2 + $0x78] sm:$0xff] %vm512_vm0, %v4134_v0  ;;  %s3520_s10 = sshll.u32 %s9276_s19, 2  ;;  %s3525_s17 = sshll.u32 %s9278_s22, 2 }
  0x1b   : > { %531 = vst.msk [vmem:[#allocation2 + $0x98] sm:$0xff] %vm512_vm0, %v4134_v0  ;;  %532 = vst.msk [vmem:[#allocation2 + $0xb8] sm:$0xff] %vm512_vm0, %v4134_v0  ;;  %p4292_p9 = scmp.lt.s32.totalorder %s3520_s10, 15  ;;  %p488_p10 = scmp.lt.s32.totalorder %s3525_s17, 15 }
  0x1c   : > { %533 = vst.msk [vmem:[#allocation2 + $0xd8] sm:$0xff] %vm512_vm0, %v4134_v0  ;;  %534 = vst.msk [vmem:[#allocation2 + $0xf8] sm:$0xff] %vm512_vm0, %v4134_v0  ;;  %p3533_p11 = scmp.ne.s32.totalorder %s4116_s30, 0 }
  0x1d   : > { %535 = vst.msk [vmem:[#allocation2 + $0x118] sm:$0xff] %vm512_vm0, %v4134_v0  ;;  %536 = vst.msk [vmem:[#allocation2 + $0x138] sm:$0xff] %vm512_vm0, %v4134_v0  ;;  %s9280_s10 = smov (!%p4292_p9, %s3520_s10), 15  ;;  %s9282_s17 = smov (!%p488_p10, %s3525_s17), 15 }
  0x1e   : > { %537 = vst.msk [vmem:[#allocation2 + $0x158] sm:$0xff] %vm512_vm0, %v4134_v0  ;;  %538 = vst.msk [vmem:[#allocation2 + $0x178] sm:$0xff] %vm512_vm0, %v4134_v0  ;;  %s4265_s26 = scalar_lea.vmem %s8373_s0, %s3517_s23  ;;  %s4270_s29 = scalar_lea.vmem %s8374_s9, %s3517_s23  ;;  %v4135_v17 = vmov (!%p3533_p11), 0.0  }
  0x1f   : > { %539 = vst.msk [vmem:[#allocation2 + $0x198] sm:$0xff] %vm512_vm0, %v4134_v0  ;;  %540 = vst.msk [vmem:[#allocation2 + $0x1b8] sm:$0xff] %vm512_vm0, %v4134_v0  ;;  %v541_v1 = vld [vmem:[%s4265_s26] sm:$0xff]  ;;  %v542_v2 = vld [vmem:[%s4265_s26 + $0x8] sm:$0xff]  ;;  %s3521_s19 = sshll.u32 %s9280_s10, 1  ;;  %s3526_s21 = sshll.u32 %s9282_s17, 1 }
  0x20   : > { %v543_v3 = vld [vmem:[%s4265_s26 + $0x10] sm:$0xff]  ;;  %558 = vst.msk [vmem:[#allocation2 + $0x68] sm:$0xff] %vm512_vm0, %v541_v1  ;;  %559 = vst.msk [vmem:[#allocation2 + $0x70] sm:$0xff] %vm512_vm0, %v542_v2  ;;  %v544_v4 = vld [vmem:[%s4265_s26 + $0x18] sm:$0xff]  ;;  %s473_s20 = sadd.s32 %s3521_s19, %s4259_s18  ;;  %s492_s23 = sadd.s32 %s3526_s21, %s4259_s18 }
  0x21   : > { %560 = vst.msk [vmem:[#allocation2 + $0x88] sm:$0xff] %vm512_vm0, %v543_v3  ;;  %v545_v5 = vld [vmem:[%s4265_s26 + $0x20] sm:$0xff]  ;;  %v546_v6 = vld [vmem:[%s4265_s26 + $0x28] sm:$0xff]  ;;  %561 = vst.msk [vmem:[#allocation2 + $0x90] sm:$0xff] %vm512_vm0, %v544_v4  ;;  %s3523_s22 = sshll.u32 %s473_s20, 3  ;;  %s3528_s28 = sshll.u32 %s492_s23, 3 }
  0x22   : > { %562 = vst.msk [vmem:[#allocation2 + $0xa8] sm:$0xff] %vm512_vm0, %v545_v5  ;;  %563 = vst.msk [vmem:[#allocation2 + $0xb0] sm:$0xff] %vm512_vm0, %v546_v6  ;;  %v547_v7 = vld [vmem:[%s4265_s26 + $0x30] sm:$0xff]  ;;  %v548_v8 = vld [vmem:[%s4265_s26 + $0x38] sm:$0xff]  ;;  %s475_s27 = scalar_lea.vmem %s7844_s1, %s3523_s22  ;;  %s4324_s9 = scalar_lea.vmem %s7845_s2, %s3528_s28 }
  0x23   : > { %v549_v9 = vld [vmem:[%s4265_s26 + $0x40] sm:$0xff]  ;;  %564 = vst.msk [vmem:[#allocation2 + $0xc8] sm:$0xff] %vm512_vm0, %v547_v7  ;;  %565 = vst.msk [vmem:[#allocation2 + $0xd0] sm:$0xff] %vm512_vm0, %v548_v8  ;;  %v550_v10 = vld [vmem:[%s4265_s26 + $0x48] sm:$0xff]  ;;  %577 = sbr.rel (%p3533_p11) target bundleno = 43 (0x2b), region = 60 }
  0x24   : > { %566 = vst.msk [vmem:[#allocation2 + $0xe8] sm:$0xff] %vm512_vm0, %v549_v9  ;;  %v551_v11 = vld [vmem:[%s4265_s26 + $0x50] sm:$0xff]  ;;  %v552_v12 = vld [vmem:[%s4265_s26 + $0x58] sm:$0xff]  ;;  %567 = vst.msk [vmem:[#allocation2 + $0xf0] sm:$0xff] %vm512_vm0, %v550_v10 }
  0x25   : > { %568 = vst.msk [vmem:[#allocation2 + $0x108] sm:$0xff] %vm512_vm0, %v551_v11  ;;  %569 = vst.msk [vmem:[#allocation2 + $0x110] sm:$0xff] %vm512_vm0, %v552_v12  ;;  %v553_v13 = vld [vmem:[%s4265_s26 + $0x60] sm:$0xff]  ;;  %v554_v14 = vld [vmem:[%s4265_s26 + $0x68] sm:$0xff] }
  0x26   : > { %v555_v15 = vld [vmem:[%s4265_s26 + $0x70] sm:$0xff]  ;;  %570 = vst.msk [vmem:[#allocation2 + $0x128] sm:$0xff] %vm512_vm0, %v553_v13  ;;  %571 = vst.msk [vmem:[#allocation2 + $0x130] sm:$0xff] %vm512_vm0, %v554_v14  ;;  %v556_v16 = vld [vmem:[%s4265_s26 + $0x78] sm:$0xff] }
  0x27   : > { %572 = vst.msk [vmem:[#allocation2 + $0x148] sm:$0xff] %vm512_vm0, %v555_v15  ;;  %573 = vst.msk [vmem:[#allocation2 + $0x150] sm:$0xff] %vm512_vm0, %v556_v16 }
  0x28   : > { %578 = vst.msk [vmem:[#allocation2 + $0x8] sm:$0xff] (!%p3533_p11), %vm512_vm0, %v4135_v17  ;;  %579 = vst.msk [vmem:[#allocation2 + $0x10] sm:$0xff] (!%p3533_p11), %vm512_vm0, %v4135_v17 }
  0x29   : > { %580 = vst.msk [vmem:[#allocation2 + $0x28] sm:$0xff] (!%p3533_p11), %vm512_vm0, %v4135_v17  ;;  %581 = vst.msk [vmem:[#allocation2 + $0x30] sm:$0xff] (!%p3533_p11), %vm512_vm0, %v4135_v17 }
  0x2a   : > { %582 = vst.msk [vmem:[#allocation2 + $0x48] sm:$0xff] %vm512_vm0, %v4135_v17  ;;  %583 = vst.msk [vmem:[#allocation2 + $0x50] sm:$0xff] %vm512_vm0, %v4135_v17 }
  0x2b PF: > { %p3534_p12 = scmp.le.s32.totalorder %s4116_s30, 0 }
  0x2c   : > { %v3535_v18 = vld [vmem:[%s475_s27 + $0x10] sm:$0xff] (!%p3534_p12)  ;;  %v3536_v19 = vld [vmem:[%s475_s27 + $0x18] sm:$0xff] (!%p3534_p12)  ;;  %v3537_v20 = vld [vmem:[%s475_s27 + $0x20] sm:$0xff] (!%p3534_p12) }
  0x2d   : > { %587 = sbr.rel (%p3534_p12) target bundleno = 52 (0x34), region = 64  ;;  %595 = vst.msk [vmem:[#allocation2 + $0x8] sm:$0xff] (!%p3534_p12), %vm512_vm0, %v3535_v18  ;;  %596 = vst.msk [vmem:[#allocation2 + $0x10] sm:$0xff] (!%p3534_p12), %vm512_vm0, %v3536_v19  ;;  %v3538_v21 = vld [vmem:[%s475_s27 + $0x28] sm:$0xff] (!%p3534_p12)  ;;  %v3539_v22 = vld [vmem:[%s475_s27 + $0x30] sm:$0xff] (!%p3534_p12) }
  0x2e   : > { %597 = vst.msk [vmem:[#allocation2 + $0x28] sm:$0xff] (!%p3534_p12), %vm512_vm0, %v3537_v20  ;;  %v3540_v23 = vld [vmem:[%s475_s27 + $0x38] sm:$0xff] (!%p3534_p12)  ;;  %598 = vst.msk [vmem:[#allocation2 + $0x30] sm:$0xff] (!%p3534_p12), %vm512_vm0, %v3538_v21 }
  0x2f   : > { %599 = vst.msk [vmem:[#allocation2 + $0x48] sm:$0xff] (!%p3534_p12), %vm512_vm0, %v3539_v22  ;;  %600 = vst.msk [vmem:[#allocation2 + $0x50] sm:$0xff] (!%p3534_p12), %vm512_vm0, %v3540_v23 }
  0x34 PF: > { %p3541_p13 = scmp.ne.s32.totalorder %s4116_s30, 1 }
  0x35   : > { %v4136_v24 = vmov (!%p3541_p13), 0.0  }
  0x36   : > { %604 = sbr.rel (%p3541_p13) target bundleno = 61 (0x3d), region = 68  ;;  %606 = vst.msk [vmem:[#allocation2 + $0x168] sm:$0xff] (!%p3541_p13), %vm512_vm0, %v4136_v24  ;;  %607 = vst.msk [vmem:[#allocation2 + $0x170] sm:$0xff] (!%p3541_p13), %vm512_vm0, %v4136_v24 }
  0x37   : > { %608 = vst.msk [vmem:[#allocation2 + $0x188] sm:$0xff] (!%p3541_p13), %vm512_vm0, %v4136_v24  ;;  %609 = vst.msk [vmem:[#allocation2 + $0x190] sm:$0xff] (!%p3541_p13), %vm512_vm0, %v4136_v24 }
  0x38   : > { %610 = vst.msk [vmem:[#allocation2 + $0x1a8] sm:$0xff] (!%p3541_p13), %vm512_vm0, %v4136_v24  ;;  %611 = vst.msk [vmem:[#allocation2 + $0x1b0] sm:$0xff] (!%p3541_p13), %vm512_vm0, %v4136_v24 }
  0x3d PF: > { %p3542_p0 = scmp.ge.s32.totalorder %s4116_s30, 1 }
  0x3e   : > { %v616_v25 = vld [vmem:[%s4324_s9] sm:$0xff] (!%p3542_p0)  ;;  %v617_v26 = vld [vmem:[%s4324_s9 + $0x8] sm:$0xff] (!%p3542_p0)  ;;  %v618_v27 = vld [vmem:[%s4324_s9 + $0x10] sm:$0xff] (!%p3542_p0) }
  0x3f   : > { %615 = sbr.rel (%p3542_p0) target bundleno = 70 (0x46), region = 72  ;;  %623 = vst.msk [vmem:[#allocation2 + $0x168] sm:$0xff] (!%p3542_p0), %vm512_vm0, %v616_v25  ;;  %624 = vst.msk [vmem:[#allocation2 + $0x170] sm:$0xff] (!%p3542_p0), %vm512_vm0, %v617_v26  ;;  %v619_v28 = vld [vmem:[%s4324_s9 + $0x18] sm:$0xff] (!%p3542_p0)  ;;  %v620_v29 = vld [vmem:[%s4324_s9 + $0x20] sm:$0xff] (!%p3542_p0) }
  0x40   : > { %625 = vst.msk [vmem:[#allocation2 + $0x188] sm:$0xff] (!%p3542_p0), %vm512_vm0, %v618_v27  ;;  %v621_v30 = vld [vmem:[%s4324_s9 + $0x28] sm:$0xff] (!%p3542_p0)  ;;  %626 = vst.msk [vmem:[#allocation2 + $0x190] sm:$0xff] (!%p3542_p0), %vm512_vm0, %v619_v28 }
  0x41   : > { %627 = vst.msk [vmem:[#allocation2 + $0x1a8] sm:$0xff] (!%p3542_p0), %vm512_vm0, %v620_v29  ;;  %628 = vst.msk [vmem:[#allocation2 + $0x1b0] sm:$0xff] (!%p3542_p0), %vm512_vm0, %v621_v30 }
  0x46 PF: > { %v629_v31 = vld [vmem:[#allocation2 + $0x5] sm:$0xff]  ;;  %v4367_v35 = vld [vmem:[%s7846_s3] ss:$0 sm:$0xff]  ;;  %v4379_v39 = vld [vmem:[%s7846_s3 + $0x10] ss:$0 sm:$0xff]  ;;  %vm2916_vm1 = vcmask 1043456  }
  0x47   : > { %v631_v32 = vld [vmem:[#allocation2 + $0x25] sm:$0xff]  ;;  %v662_v37 = vmul.f32 %v4367_v35, %v629_v31  ;;  %v4384_v40 = vld [vmem:[%s7846_s3 + $0x18] ss:$0 sm:$0xff]  ;;  %v4391_v43 = vld [vmem:[%s7846_s3 + $0x20] ss:$0 sm:$0xff]  ;;  %vm3192_vm2 = vcmask 261120  }
  0x48   : > { %v4360_v33 = vld [vmem:[#allocation2 + $0x45] sm:$0xff]  ;;  %v4408_v51 = vld [vmem:[%s7846_s3 + $0x30] ss:$0 sm:$0xff]  ;;  %v4415_v55 = vld [vmem:[%s7846_s3 + $0x1] ss:$0 sm:$0xff]  ;;  %v664_v56 = vmul.f32 %v4367_v35, %v631_v32 }
  0x49   : > { %v4362_v34 = vld [vmem:[#allocation2 + $0x65] sm:$0xff]  ;;  %v738_v42 = vmul.f32 %v4379_v39, %v4360_v33  ;;  %v4431_v1 = vld [vmem:[%s7846_s3 + $0x11] ss:$0 sm:$0xff]  ;;  %v4441_v7 = vld [vmem:[%s7846_s3 + $0x19] ss:$0 sm:$0xff] }
  0x4a   : > { %v4372_v36 = vld [vmem:[%s7846_s3 + $0x8] ss:$0 sm:$0xff]  ;;  %v776_v45 = vmul.f32 %v4384_v40, %v4362_v34  ;;  %v4425_v61 = vld [vmem:[%s7846_s3 + $0x9] ss:$0 sm:$0xff]  ;;  %v740_v3 = vmul.f32 %v4379_v39, %v4362_v34  ;;  %v4449_v11 = vld [vmem:[%s7846_s3 + $0x21] ss:$0 sm:$0xff] }
  0x4b   : > { %v700_v38 = vmul.f32 %v4372_v36, %v631_v32  ;;  %v637_v41 = vld [vmem:[#allocation2 + $0x85] sm:$0xff]  ;;  %v702_v57 = vmul.f32 %v4372_v36, %v4360_v33  ;;  %8377 = vst [vmem:[#allocation4_spill] sm:$0xff] %v4449_v11  ;;  %v4468_v21 = vld [vmem:[%s7846_s3 + $0x31] ss:$0 sm:$0xff] }
  0x4c   : > { %v4395_v46 = vld [vmem:[#allocation2 + $0xa5] sm:$0xff]  ;;  %v814_v49 = vmul.f32 %v4391_v43, %v637_v41  ;;  %v778_v13 = vmul.f32 %v4384_v40, %v637_v41  ;;  %8381 = vst [vmem:[#allocation8_spill] sm:$0xff] %v4468_v21 }
  0x4d   : > { %v716_v44 = vadd.f32 %v700_v38, %v662_v37  ;;  %v4400_v47 = vld [vmem:[%s7846_s3 + $0x28] ss:$0 sm:$0xff]  ;;  %v718_v2 = vadd.f32 %v702_v57, %v664_v56  ;;  %v4459_v17 = vld [vmem:[%s7846_s3 + $0x29] ss:$0 sm:$0xff]  ;;  %v816_v24 = vmul.f32 %v4391_v43, %v4395_v46  ;;  %v4485_v37 = vld [vmem:[%s7846_s3 + $0x2] ss:$0 sm:$0xff] }
  0x4e   : > { %v4403_v50 = vld [vmem:[#allocation2 + $0xc5] sm:$0xff]  ;;  %v852_v53 = vmul.f32 %v4400_v47, %v4395_v46  ;;  %8379 = vst [vmem:[#allocation6_spill] sm:$0xff] %v4459_v17  ;;  %8386 = vst [vmem:[#allocation13_spill] sm:$0xff] %v4485_v37  ;;  %v4532_v57 = vld [vmem:[%s7846_s3 + $0x32] ss:$0 sm:$0xff] }
  0x4f   : > { %v754_v48 = vadd.f32 %v738_v42, %v716_v44  ;;  %v922_v54 = vld [vmem:[#allocation2 + $0x6] sm:$0xff]  ;;  %v890_v59 = vmul.f32 %v4408_v51, %v4403_v50  ;;  %v756_v12 = vadd.f32 %v740_v3, %v718_v2  ;;  %v854_v38 = vmul.f32 %v4400_v47, %v4403_v50  ;;  %8393 = vst [vmem:[#allocation20_spill] sm:$0xff] %v4532_v57 }
  0x50   : > { %v924_v60 = vld [vmem:[#allocation2 + $0x26] sm:$0xff]  ;;  %v955_v63 = vmul.f32 %v4415_v55, %v922_v54  ;;  %v666_v42 = vmul.f32 %v4367_v35, %v4360_v33  ;;  %v704_v44 = vmul.f32 %v4372_v36, %v4362_v34  ;;  %v4509_v33 = vld [vmem:[%s7846_s3 + $0x12] ss:$0 sm:$0xff]  ;;  %v4514_v34 = vld [vmem:[%s7846_s3 + $0x1a] ss:$0 sm:$0xff] }
  0x51   : > { %v792_v52 = vadd.f32 %v776_v45, %v754_v48  ;;  %v926_v0 = vld [vmem:[#allocation2 + $0x46] sm:$0xff]  ;;  %v992_v5 = vmul.f32 %v4425_v61, %v924_v60  ;;  %v794_v23 = vadd.f32 %v778_v13, %v756_v12  ;;  %v4494_v45 = vmul.f32 %v4379_v39, %v637_v41  ;;  %8389 = vst [vmem:[#allocation16_spill] sm:$0xff] %v4509_v33  ;;  %v4522_v54 = vld [vmem:[%s7846_s3 + $0x22] ss:$0 sm:$0xff] }
  0x52   : > { %v4436_v6 = vld [vmem:[#allocation2 + $0x66] sm:$0xff]  ;;  %v1029_v9 = vmul.f32 %v4431_v1, %v926_v0  ;;  %v4497_v48 = vmul.f32 %v4415_v55, %v926_v0  ;;  %8390 = vst [vmem:[#allocation17_spill] sm:$0xff] %v4514_v34  ;;  %v4517_v41 = vmul.f32 %v4415_v55, %v924_v60  ;;  %8391 = vst [vmem:[#allocation18_spill] sm:$0xff] %v4522_v54 }
  0x53   : > { %v830_v58 = vadd.f32 %v814_v49, %v792_v52  ;;  %v4444_v10 = vld [vmem:[#allocation2 + $0x86] sm:$0xff]  ;;  %v1066_v15 = vmul.f32 %v4441_v7, %v4436_v6  ;;  %v4539_v60 = vmul.f32 %v4431_v1, %v4436_v6 }
  0x54   : > { %8376 = vst [vmem:[#allocation3_spill] sm:$0xff] %v4444_v10  ;;  %v4454_v16 = vld [vmem:[#allocation2 + $0xa6] sm:$0xff]  ;;  %v1103_v19 = vmul.f32 %v4449_v11, %v4444_v10  ;;  %8387 = vst [vmem:[#allocation14_spill] sm:$0xff] %v4497_v48 }
  0x55   : > { %v868_v62 = vadd.f32 %v852_v53, %v830_v58  ;;  %8378 = vst [vmem:[#allocation5_spill] sm:$0xff] %v4454_v16  ;;  %v4463_v20 = vld [vmem:[#allocation2 + $0xc6] sm:$0xff]  ;;  %v1140_v26 = vmul.f32 %v4459_v17, %v4454_v16  ;;  %v832_v58 = vadd.f32 %v816_v24, %v794_v23 }
  0x56   : > { %8380 = vst [vmem:[#allocation7_spill] sm:$0xff] %v4463_v20  ;;  %v1209_v22 = vld [vmem:[#allocation2 + $0x7] sm:$0xff]  ;;  %v1177_v52 = vmul.f32 %v4468_v21, %v4463_v20 }
  0x57   : > { %v906_v4 = vadd.f32 %v890_v59, %v868_v62  ;;  %v1211_v27 = vld [vmem:[#allocation2 + $0x27] sm:$0xff]  ;;  %v4535_v59 = vmul.f32 %v4425_v61, %v926_v0  ;;  %v4543_v62 = vmul.f32 %v4441_v7, %v4444_v10  ;;  %v1242_v2 = vmul.f32 %v4485_v37, %v1209_v22 }
  0x58   : > { %v1213_v28 = vld [vmem:[#allocation2 + $0x47] sm:$0xff]  ;;  %v4551_v0 = vmul.f32 %v4449_v11, %v4454_v16  ;;  %v4605_v16 = vmul.f32 %v4485_v37, %v1211_v27 }
  0x59   : > { %v971_v8 = vadd.f32 %v955_v63, %v906_v4  ;;  %v4474_v29 = vld [vmem:[#allocation2 + $0x67] sm:$0xff]  ;;  %v4547_v3 = vmul.f32 %v4485_v37, %v1213_v28  ;;  %v4678_v37 = vld [vmem:[%s7846_s3 + $0x4] ss:$0 sm:$0xff] }
  0x5a   : > { %8382 = vst [vmem:[#allocation9_spill] sm:$0xff] %v4474_v29  ;;  %v4476_v30 = vld [vmem:[#allocation2 + $0x87] sm:$0xff]  ;;  %v1353_v12 = vmul.f32 %v4514_v34, %v4474_v29  ;;  %8412 = vst [vmem:[#allocation39_spill] sm:$0xff] %v4678_v37 }
  0x5b   : > { %v1008_v14 = vadd.f32 %v992_v5, %v971_v8  ;;  %8383 = vst [vmem:[#allocation10_spill] sm:$0xff] %v4476_v30  ;;  %v4478_v31 = vld [vmem:[#allocation2 + $0xa7] sm:$0xff]  ;;  %8394 = vst [vmem:[#allocation21_spill] sm:$0xff] %v4547_v3  ;;  %v4567_v22 = vmul.f32 %v4522_v54, %v4476_v30  ;;  %v4602_v3 = vld [vmem:[%s7846_s3 + $0x23] ss:$0 sm:$0xff] }
  0x5c   : > { %8384 = vst [vmem:[#allocation11_spill] sm:$0xff] %v4478_v31  ;;  %v4480_v32 = vld [vmem:[#allocation2 + $0xc7] sm:$0xff]  ;;  %8402 = vst [vmem:[#allocation29_spill] sm:$0xff] %v4602_v3 }
  0x5d   : > { %v1045_v18 = vadd.f32 %v1029_v9, %v1008_v14  ;;  %8385 = vst [vmem:[#allocation12_spill] sm:$0xff] %v4480_v32  ;;  %v4504_v53 = vld [vmem:[%s7846_s3 + $0xa] ss:$0 sm:$0xff]  ;;  %v1316_v9 = vmul.f32 %v4509_v33, %v1213_v28  ;;  %v4575_v24 = vmul.f32 %v4532_v57, %v4480_v32  ;;  %v4612_v57 = vmul.f32 %v4509_v33, %v4474_v29  ;;  %v4619_v10 = vld [vmem:[%s7846_s3 + $0x2b] ss:$0 sm:$0xff] }
  0x5e   : > { %8388 = vst [vmem:[#allocation15_spill] sm:$0xff] %v4504_v53  ;;  %v4527_v56 = vld [vmem:[%s7846_s3 + $0x2a] ss:$0 sm:$0xff]  ;;  %v1279_v8 = vmul.f32 %v4504_v53, %v1211_v27  ;;  %v4608_v48 = vmul.f32 %v4504_v53, %v1213_v28  ;;  %8404 = vst [vmem:[#allocation31_spill] sm:$0xff] %v4619_v10  ;;  %v4624_v27 = vld [vmem:[%s7846_s3 + $0x33] ss:$0 sm:$0xff]  ;;  %v4628_v28 = vmul.f32 %v4514_v34, %v4476_v30 }
  0x5f   : > { %v1082_v25 = vadd.f32 %v1066_v15, %v1045_v18  ;;  %8392 = vst [vmem:[#allocation19_spill] sm:$0xff] %v4527_v56  ;;  %v1496_v4 = vld [vmem:[#allocation2 + $0x8] sm:$0xff]  ;;  %v4563_v18 = vmul.f32 %v4459_v17, %v4463_v20  ;;  %v4571_v23 = vmul.f32 %v4527_v56, %v4478_v31  ;;  %v870_v20 = vadd.f32 %v854_v38, %v832_v58 }
  0x60   : > { %v1498_v5 = vld [vmem:[#allocation2 + $0x28] sm:$0xff]  ;;  %8405 = vst [vmem:[#allocation32_spill] sm:$0xff] %v4624_v27  ;;  %v4632_v38 = vmul.f32 %v4522_v54, %v4478_v31  ;;  %v4636_v58 = vmul.f32 %v4527_v56, %v4480_v32  ;;  %v720_v33 = vadd.f32 %v704_v44, %v666_v42 }
  0x61   : > { %v1119_v49 = vadd.f32 %v1103_v19, %v1082_v25  ;;  %v1500_v13 = vld [vmem:[#allocation2 + $0x48] sm:$0xff] }
  0x62   : > { %v4557_v14 = vld [vmem:[#allocation2 + $0x68] sm:$0xff]  ;;  %8406 = vst [vmem:[#allocation33_spill] sm:$0xff] %v4632_v38  ;;  %8407 = vst [vmem:[#allocation34_spill] sm:$0xff] %v4636_v58 }
  0x63   : > { %v1156_v63 = vadd.f32 %v1140_v26, %v1119_v49  ;;  %8395 = vst [vmem:[#allocation22_spill] sm:$0xff] %v4557_v14  ;;  %v4559_v15 = vld [vmem:[#allocation2 + $0x88] sm:$0xff]  ;;  %v4582_v26 = vld [vmem:[%s7846_s3 + $0x3] ss:$0 sm:$0xff] }
  0x64   : > { %8396 = vst [vmem:[#allocation23_spill] sm:$0xff] %v4559_v15  ;;  %v4577_v25 = vld [vmem:[#allocation2 + $0xa8] sm:$0xff]  ;;  %8398 = vst [vmem:[#allocation25_spill] sm:$0xff] %v4582_v26  ;;  %v4656_v32 = vmul.f32 %v4602_v3, %v4559_v15 }
  0x65   : > { %v1193_v19 = vadd.f32 %v1177_v52, %v1156_v63  ;;  %8397 = vst [vmem:[#allocation24_spill] sm:$0xff] %v4577_v25  ;;  %v4587_v49 = vld [vmem:[%s7846_s3 + $0xb] ss:$0 sm:$0xff]  ;;  %v4592_v52 = vld [vmem:[%s7846_s3 + $0x13] ss:$0 sm:$0xff] }
  0x66   : > { %8399 = vst [vmem:[#allocation26_spill] sm:$0xff] %v4587_v49  ;;  %8400 = vst [vmem:[#allocation27_spill] sm:$0xff] %v4592_v52  ;;  %v4597_v63 = vld [vmem:[%s7846_s3 + $0x1b] ss:$0 sm:$0xff]  ;;  %v4614_v11 = vld [vmem:[#allocation2 + $0xc8] sm:$0xff]  ;;  %v4645_v29 = vmul.f32 %v4587_v49, %v1498_v5  ;;  %v4648_v34 = vmul.f32 %v4592_v52, %v1500_v13  ;;  %v4685_v38 = vmul.f32 %v4592_v52, %v4557_v14 }
  0x67   : > { %8401 = vst [vmem:[#allocation28_spill] sm:$0xff] %v4597_v63  ;;  %v1258_v17 = vadd.f32 %v1242_v2, %v1193_v19  ;;  %8403 = vst [vmem:[#allocation30_spill] sm:$0xff] %v4614_v11  ;;  %v4639_v2 = vmul.f32 %v4582_v26, %v1496_v4  ;;  %v4642_v19 = vmul.f32 %v4582_v26, %v1500_v13  ;;  %v4658_v4 = vld [vmem:[#allocation2 + $0xe5] sm:$0xff]  ;;  %v4705_v52 = vld [vmem:[#allocation2 + $0x6d] sm:$0xff] }
  0x68   : > { %v4652_v31 = vmul.f32 %v4597_v63, %v4557_v14  ;;  %8409 = vst [vmem:[#allocation36_spill] sm:$0xff] %v4658_v4  ;;  %v1783_v42 = vld [vmem:[#allocation2 + $0x9] sm:$0xff]  ;;  %v892_v44 = vmul.f32 %v4408_v51, %v4658_v4  ;;  %8414 = vst [vmem:[#allocation41_spill] sm:$0xff] %v4685_v38 }
  0x69   : > { %8408 = vst [vmem:[#allocation35_spill] sm:$0xff] %v4642_v19  ;;  %v1295_v30 = vadd.f32 %v1279_v8, %v1258_v17  ;;  %v4662_v19 = vmul.f32 %v4619_v10, %v4577_v25  ;;  %v4666_v17 = vmul.f32 %v4624_v27, %v4614_v11  ;;  %v4671_v8 = vmul.f32 %v4582_v26, %v1498_v5  ;;  %v1785_v54 = vld [vmem:[#allocation2 + $0x29] sm:$0xff] }
  0x6a   : > { %v1787_v53 = vld [vmem:[#allocation2 + $0x49] sm:$0xff]  ;;  %v4681_v27 = vmul.f32 %v4587_v49, %v1500_v13  ;;  %v4689_v5 = vmul.f32 %v4597_v63, %v4559_v15  ;;  %v908_v26 = vadd.f32 %v892_v44, %v870_v20  ;;  %v4701_v13 = vmul.f32 %v4619_v10, %v4614_v11  ;;  %8420 = vst [vmem:[#allocation47_spill] sm:$0xff] %v4705_v52  ;;  %v4718_v44 = vld [vmem:[%s7846_s3 + $0x14] ss:$0 sm:$0xff]  ;;  %v4723_v11 = vld [vmem:[%s7846_s3 + $0x1c] ss:$0 sm:$0xff] }
  0x6b   : > { %8410 = vst [vmem:[#allocation37_spill] sm:$0xff] %v4671_v8  ;;  %v1332_v56 = vadd.f32 %v1316_v9, %v1295_v30  ;;  %v4673_v58 = vld [vmem:[#allocation2 + $0x69] sm:$0xff]  ;;  %v4697_v8 = vmul.f32 %v4602_v3, %v4577_v25  ;;  %v4708_v15 = vadd.f32 %v4494_v45, %v720_v33  ;;  %8422 = vst [vmem:[#allocation49_spill] sm:$0xff] %v4718_v44  ;;  %v4740_v10 = vld [vmem:[%s7846_s3 + $0x24] ss:$0 sm:$0xff] }
  0x6c   : > { %8411 = vst [vmem:[#allocation38_spill] sm:$0xff] %v4673_v58  ;;  %8413 = vst [vmem:[#allocation40_spill] sm:$0xff] %v4681_v27  ;;  %v630_v30 = vld [vmem:[#allocation2 + $0xd] sm:$0xff]  ;;  %v4713_v20 = vld [vmem:[%s7846_s3 + $0xc] ss:$0 sm:$0xff]  ;;  %v4730_v33 = vmul.f32 %v4384_v40, %v4395_v46  ;;  %v973_v3 = vadd.f32 %v4517_v41, %v908_v26  ;;  %v4749_v46 = vmul.f32 %v4391_v43, %v4403_v50 }
  0x6d   : > { %8415 = vst [vmem:[#allocation42_spill] sm:$0xff] %v4689_v5  ;;  %v4691_v9 = vld [vmem:[#allocation2 + $0x2d] sm:$0xff]  ;;  %8417 = vst [vmem:[#allocation44_spill] sm:$0xff] %v4697_v8  ;;  %v1369_v63 = vadd.f32 %v1353_v12, %v1332_v56  ;;  %v663_v25 = vmul.f32 %v4367_v35, %v630_v30  ;;  %v4735_v12 = vmul.f32 %v4678_v37, %v1783_v42  ;;  %v4760_v41 = vld [vmem:[%s7846_s3 + $0x2c] ss:$0 sm:$0xff] }
  0x6e   : > { %v4693_v4 = vld [vmem:[#allocation2 + $0x89] sm:$0xff]  ;;  %8418 = vst [vmem:[#allocation45_spill] sm:$0xff] %v4701_v13  ;;  %8421 = vst [vmem:[#allocation48_spill] sm:$0xff] %v4713_v20  ;;  %v701_v45 = vmul.f32 %v4372_v36, %v4691_v9  ;;  %v4755_v8 = vmul.f32 %v4678_v37, %v1787_v53  ;;  %v4765_v26 = vld [vmem:[%s7846_s3 + $0x34] ss:$0 sm:$0xff]  ;;  %v777_v50 = vmul.f32 %v4384_v40, %v4705_v52 }
  0x6f   : > { %8416 = vst [vmem:[#allocation43_spill] sm:$0xff] %v4693_v4  ;;  %v4703_v14 = vld [vmem:[#allocation2 + $0x4d] sm:$0xff]  ;;  %8423 = vst [vmem:[#allocation50_spill] sm:$0xff] %v4723_v11  ;;  %v1406_v49 = vadd.f32 %v4567_v22, %v1369_v63  ;;  %v4770_v22 = vmul.f32 %v4713_v20, %v1785_v54  ;;  %v4773_v63 = vmul.f32 %v4718_v44, %v1787_v53 }
  0x70   : > { %8419 = vst [vmem:[#allocation46_spill] sm:$0xff] %v4703_v14  ;;  %v4732_v56 = vld [vmem:[#allocation2 + $0xa9] sm:$0xff]  ;;  %8425 = vst [vmem:[#allocation52_spill] sm:$0xff] %v4735_v12  ;;  %v739_v13 = vmul.f32 %v4379_v39, %v4703_v14  ;;  %v717_v5 = vadd.f32 %v701_v45, %v663_v25  ;;  %v1010_v38 = vadd.f32 %v4535_v59, %v973_v3 }
  0x71   : > { %8424 = vst [vmem:[#allocation51_spill] sm:$0xff] %v4732_v56  ;;  %8426 = vst [vmem:[#allocation53_spill] sm:$0xff] %v4740_v10  ;;  %v4743_v30 = vld [vmem:[#allocation2 + $0x8d] sm:$0xff]  ;;  %v1443_v12 = vadd.f32 %v4571_v23, %v1406_v49  ;;  %v4785_v25 = vmul.f32 %v4740_v10, %v4693_v4  ;;  %v4799_v23 = vmul.f32 %v4678_v37, %v1785_v54 }
  0x72   : > { %8427 = vst [vmem:[#allocation54_spill] sm:$0xff] %v4743_v30  ;;  %v4752_v42 = vld [vmem:[#allocation2 + $0xc9] sm:$0xff]  ;;  %8429 = vst [vmem:[#allocation56_spill] sm:$0xff] %v4755_v8  ;;  %v4777_v8 = vmul.f32 %v4723_v11, %v4673_v58  ;;  %v755_v45 = vadd.f32 %v739_v13, %v717_v5  ;;  %v1047_v3 = vadd.f32 %v4539_v60, %v1010_v38 }
  0x73   : > { %8428 = vst [vmem:[#allocation55_spill] sm:$0xff] %v4752_v42  ;;  %8430 = vst [vmem:[#allocation57_spill] sm:$0xff] %v4760_v41  ;;  %v4780_v27 = vld [vmem:[#allocation2 + $0xad] sm:$0xff]  ;;  %v1480_v5 = vadd.f32 %v4575_v24, %v1443_v12  ;;  %v4829_v37 = vmul.f32 %v4723_v11, %v4693_v4 }
  0x74   : > { %8431 = vst [vmem:[#allocation58_spill] sm:$0xff] %v4765_v26  ;;  %8432 = vst [vmem:[#allocation59_spill] sm:$0xff] %v4770_v22  ;;  %v815_v22 = vmul.f32 %v4391_v43, %v4743_v30  ;;  %v2070_v59 = vld [vmem:[#allocation2 + $0xa] sm:$0xff]  ;;  %v793_v60 = vadd.f32 %v777_v50, %v755_v45  ;;  %v853_v54 = vmul.f32 %v4400_v47, %v4780_v27 }
  0x75   : > { %8433 = vst [vmem:[#allocation60_spill] sm:$0xff] %v4773_v63  ;;  %8434 = vst [vmem:[#allocation61_spill] sm:$0xff] %v4777_v8  ;;  %v4791_v63 = vmul.f32 %v4760_v41, %v4732_v56  ;;  %v4795_v8 = vmul.f32 %v4765_v26, %v4752_v42  ;;  %v4801_v49 = vld [vmem:[#allocation2 + $0xcd] sm:$0xff]  ;;  %v1084_v12 = vadd.f32 %v4543_v62, %v1047_v3  ;;  %v4844_v62 = vld [vmem:[%s7846_s3 + $0x15] ss:$0 sm:$0xff] }
  0x76   : > { %8435 = vst [vmem:[#allocation62_spill] sm:$0xff] %v4780_v27  ;;  %8436 = vst [vmem:[#allocation63_spill] sm:$0xff] %v4785_v25  ;;  %v2072_v13 = vld [vmem:[#allocation2 + $0x2a] sm:$0xff]  ;;  %v1545_v45 = vadd.f32 %v4639_v2, %v1480_v5  ;;  %v4849_v3 = vld [vmem:[%s7846_s3 + $0x1d] ss:$0 sm:$0xff]  ;;  %v831_v2 = vadd.f32 %v815_v22, %v793_v60  ;;  %v891_v5 = vmul.f32 %v4408_v51, %v4801_v49 }
  0x77   : > { %8437 = vst [vmem:[#allocation64_spill] sm:$0xff] %v4791_v63  ;;  %8438 = vst [vmem:[#allocation65_spill] sm:$0xff] %v4795_v8  ;;  %v4804_v25 = vld [vmem:[#allocation2 + $0x4a] sm:$0xff]  ;;  %v4809_v63 = vld [vmem:[%s7846_s3 + $0x5] ss:$0 sm:$0xff]  ;;  %v4814_v8 = vmul.f32 %v4713_v20, %v1787_v53  ;;  %v4833_v53 = vmul.f32 %v4740_v10, %v4732_v56  ;;  %v4853_v56 = vmul.f32 %v4760_v41, %v4752_v42 }
  0x78   : > { %8439 = vst [vmem:[#allocation66_spill] sm:$0xff] %v4799_v23  ;;  %8440 = vst [vmem:[#allocation67_spill] sm:$0xff] %v4801_v49  ;;  %v4811_v26 = vld [vmem:[#allocation2 + $0xe6] sm:$0xff]  ;;  %v4825_v23 = vmul.f32 %v4718_v44, %v4673_v58  ;;  %v923_v50 = vld [vmem:[#allocation2 + $0xe] sm:$0xff]  ;;  %v4860_v58 = vmul.f32 %v4809_v63, %v2070_v59  ;;  %v4871_v22 = vmul.f32 %v4809_v63, %v2072_v13 }
  0x79   : > { %8441 = vst [vmem:[#allocation68_spill] sm:$0xff] %v4804_v25  ;;  %8442 = vst [vmem:[#allocation69_spill] sm:$0xff] %v4809_v63  ;;  %v4818_v38 = vld [vmem:[#allocation2 + $0x6a] sm:$0xff]  ;;  %v1179_v42 = vmul.f32 %v4468_v21, %v4811_v26 }
  0x7a   : > { %8443 = vst [vmem:[#allocation70_spill] sm:$0xff] %v4811_v26  ;;  %8444 = vst [vmem:[#allocation71_spill] sm:$0xff] %v4814_v8  ;;  %v4820_v24 = vld [vmem:[#allocation2 + $0x8a] sm:$0xff]  ;;  %v956_v26 = vmul.f32 %v4415_v55, %v923_v50  ;;  %v4900_v63 = vmul.f32 %v4849_v3, %v4818_v38 }
  0x7b   : > { %8445 = vst [vmem:[#allocation72_spill] sm:$0xff] %v4818_v38  ;;  %8446 = vst [vmem:[#allocation73_spill] sm:$0xff] %v4820_v24  ;;  %v4839_v8 = vld [vmem:[%s7846_s3 + $0xd] ss:$0 sm:$0xff]  ;;  %v4873_v60 = vld [vmem:[#allocation2 + $0x2e] sm:$0xff] }
  0x7c   : > { %8447 = vst [vmem:[#allocation74_spill] sm:$0xff] %v4825_v23  ;;  %8448 = vst [vmem:[#allocation75_spill] sm:$0xff] %v4829_v37  ;;  %v4857_v4 = vld [vmem:[#allocation2 + $0xaa] sm:$0xff]  ;;  %v1121_v37 = vadd.f32 %v4551_v0, %v1084_v12  ;;  %v4886_v0 = vld [vmem:[%s7846_s3 + $0x35] ss:$0 sm:$0xff]  ;;  %v869_v12 = vadd.f32 %v853_v54, %v831_v2 }
  0x7d   : > { %8449 = vst [vmem:[#allocation76_spill] sm:$0xff] %v4833_v53  ;;  %8450 = vst [vmem:[#allocation77_spill] sm:$0xff] %v4839_v8  ;;  %v4865_v53 = vld [vmem:[%s7846_s3 + $0x25] ss:$0 sm:$0xff]  ;;  %v4876_v23 = vld [vmem:[#allocation2 + $0xca] sm:$0xff] }
  0x7e   : > { %8451 = vst [vmem:[#allocation78_spill] sm:$0xff] %v4844_v62  ;;  %8452 = vst [vmem:[#allocation79_spill] sm:$0xff] %v4849_v3  ;;  %v4881_v59 = vld [vmem:[%s7846_s3 + $0x2d] ss:$0 sm:$0xff]  ;;  %v1158_v41 = vadd.f32 %v4563_v18, %v1121_v37  ;;  %v4903_v10 = vld [vmem:[#allocation2 + $0x4e] sm:$0xff]  ;;  %v4918_v2 = vmul.f32 %v4886_v0, %v4876_v23 }
  0x7f   : > { %8453 = vst [vmem:[#allocation80_spill] sm:$0xff] %v4853_v56  ;;  %8454 = vst [vmem:[#allocation81_spill] sm:$0xff] %v4857_v4  ;;  %v1582_v56 = vadd.f32 %v4645_v29, %v1545_v45  ;;  %v4892_v29 = vmul.f32 %v4839_v8, %v2072_v13  ;;  %v4896_v45 = vmul.f32 %v4844_v62, %v4804_v25  ;;  %v4924_v18 = vld [vmem:[#allocation2 + $0x6e] sm:$0xff]  ;;  %v8501_v11 = vld [vmem:[#allocation59_spill] sm:$0xff] }
  0x80   : > { %8455 = vst [vmem:[#allocation82_spill] sm:$0xff] %v4865_v53  ;;  %8456 = vst [vmem:[#allocation83_spill] sm:$0xff] %v4871_v22  ;;  %v796_v22 = vadd.f32 %v4730_v33, %v4708_v15  ;;  %v4908_v15 = vmul.f32 %v4865_v53, %v4820_v24  ;;  %v907_v33 = vadd.f32 %v891_v5, %v869_v12  ;;  %v2357_v5 = vld [vmem:[#allocation2 + $0xb] sm:$0xff]  ;;  %v4930_v12 = vld [vmem:[%s7846_s3 + $0x6] ss:$0 sm:$0xff] }
  0x81   : > { %8457 = vst [vmem:[#allocation84_spill] sm:$0xff] %v4876_v23  ;;  %8458 = vst [vmem:[#allocation85_spill] sm:$0xff] %v4881_v59  ;;  %v1619_v54 = vadd.f32 %v4648_v34, %v1582_v56  ;;  %v993_v13 = vmul.f32 %v4425_v61, %v4873_v60  ;;  %v4914_v50 = vmul.f32 %v4881_v59, %v4857_v4 }
  0x82   : > { %8459 = vst [vmem:[#allocation86_spill] sm:$0xff] %v4903_v10  ;;  %8460 = vst [vmem:[#allocation87_spill] sm:$0xff] %v4908_v15  ;;  %v1195_v37 = vadd.f32 %v1179_v42, %v1158_v41  ;;  %v4922_v34 = vmul.f32 %v4839_v8, %v4804_v25  ;;  %v1030_v42 = vmul.f32 %v4431_v1, %v4903_v10  ;;  %v2359_v41 = vld [vmem:[#allocation2 + $0x2b] sm:$0xff] }
  0x83   : > { %8461 = vst [vmem:[#allocation88_spill] sm:$0xff] %v4914_v50  ;;  %8462 = vst [vmem:[#allocation89_spill] sm:$0xff] %v4918_v2  ;;  %v1656_v56 = vadd.f32 %v4652_v31, %v1619_v54  ;;  %v4934_v50 = vmul.f32 %v4844_v62, %v4818_v38  ;;  %v972_v2 = vadd.f32 %v956_v26, %v907_v33  ;;  %v4941_v25 = vld [vmem:[%s7846_s3 + $0xe] ss:$0 sm:$0xff]  ;;  %v5059_v8 = vld [vmem:[#allocation2 + $0x4f] sm:$0xff] }
  0x84   : > { %8463 = vst [vmem:[#allocation90_spill] sm:$0xff] %v4922_v34  ;;  %8464 = vst [vmem:[#allocation91_spill] sm:$0xff] %v4924_v18  ;;  %v1260_v31 = vadd.f32 %v4605_v16, %v1195_v37  ;;  %v4946_v54 = vmul.f32 %v4849_v3, %v4820_v24  ;;  %v4950_v38 = vmul.f32 %v4865_v53, %v4857_v4  ;;  %v4956_v33 = vld [vmem:[#allocation2 + $0x8e] sm:$0xff]  ;;  %v4964_v16 = vld [vmem:[%s7846_s3 + $0x16] ss:$0 sm:$0xff] }
  0x85   : > { %8465 = vst [vmem:[#allocation92_spill] sm:$0xff] %v4934_v50  ;;  %8466 = vst [vmem:[#allocation93_spill] sm:$0xff] %v4941_v25  ;;  %v4954_v26 = vmul.f32 %v4881_v59, %v4876_v23  ;;  %v1693_v50 = vadd.f32 %v4656_v32, %v1656_v56  ;;  %v4959_v34 = vld [vmem:[#allocation2 + $0x4b] sm:$0xff]  ;;  %v1009_v24 = vadd.f32 %v993_v13, %v972_v2  ;;  %v8479_v13 = vld [vmem:[#allocation3_spill] sm:$0xff] }
  0x86   : > { %8467 = vst [vmem:[#allocation94_spill] sm:$0xff] %v4946_v54  ;;  %8468 = vst [vmem:[#allocation95_spill] sm:$0xff] %v4950_v38  ;;  %v4966_v37 = vld [vmem:[#allocation2 + $0xae] sm:$0xff]  ;;  %v1067_v4 = vmul.f32 %v4441_v7, %v4924_v18  ;;  %v4971_v23 = vadd.f32 %v4749_v46, %v796_v22  ;;  %v4978_v32 = vmul.f32 %v4930_v12, %v2357_v5  ;;  %v4996_v5 = vld [vmem:[%s7846_s3 + $0x1e] ss:$0 sm:$0xff] }
  0x87   : > { %8469 = vst [vmem:[#allocation96_spill] sm:$0xff] %v4954_v26  ;;  %8470 = vst [vmem:[#allocation97_spill] sm:$0xff] %v4956_v33  ;;  %v4973_v26 = vld [vmem:[#allocation2 + $0x6b] sm:$0xff]  ;;  %v1297_v56 = vadd.f32 %v4608_v48, %v1260_v31  ;;  %v4983_v54 = vmul.f32 %v4425_v61, %v4436_v6  ;;  %v4987_v2 = vmul.f32 %v4431_v1, %v8479_v13  ;;  %v5001_v48 = vld [vmem:[%s7846_s3 + $0x26] ss:$0 sm:$0xff] }
  0x88   : > { %8471 = vst [vmem:[#allocation98_spill] sm:$0xff] %v4959_v34  ;;  %8472 = vst [vmem:[#allocation99_spill] sm:$0xff] %v4964_v16  ;;  %v4975_v38 = vld [vmem:[#allocation2 + $0x8b] sm:$0xff]  ;;  %v1730_v46 = vadd.f32 %v4662_v19, %v1693_v50  ;;  %v4991_v22 = vmul.f32 %v4941_v25, %v2359_v41  ;;  %v1046_v31 = vadd.f32 %v1030_v42, %v1009_v24 }
  0x89   : > { %8473 = vst [vmem:[#allocation100_spill] sm:$0xff] %v4966_v37  ;;  %8474 = vst [vmem:[#allocation101_spill] sm:$0xff] %v4971_v23  ;;  %v5003_v6 = vld [vmem:[#allocation2 + $0xce] sm:$0xff]  ;;  %v5009_v19 = vmul.f32 %v4964_v16, %v4959_v34  ;;  %v1334_v50 = vadd.f32 %v4612_v57, %v1297_v56  ;;  %v5029_v56 = vmul.f32 %v4996_v5, %v4973_v26 }
  0x8a   : > { %8475 = vst [vmem:[#allocation102_spill] sm:$0xff] %v4973_v26  ;;  %8476 = vst [vmem:[#allocation103_spill] sm:$0xff] %v4975_v38  ;;  %v8485_v13 = vld [vmem:[#allocation4_spill] sm:$0xff]  ;;  %v1083_v24 = vadd.f32 %v1067_v4, %v1046_v31  ;;  %v8500_v23 = vld [vmem:[#allocation13_spill] sm:$0xff] }
  0x8b   : > { %8477 = vst [vmem:[#allocation104_spill] sm:$0xff] %v4978_v32  ;;  %8478 = vst [vmem:[#allocation105_spill] sm:$0xff] %v4983_v54  ;;  %v1104_v59 = vmul.f32 %v8485_v13, %v4956_v33  ;;  %v1767_v54 = vadd.f32 %v4666_v17, %v1730_v46  ;;  %v5017_v3 = vld [vmem:[#allocation2 + $0xe7] sm:$0xff]  ;;  %v1210_v42 = vld [vmem:[#allocation2 + $0xf] sm:$0xff]  ;;  %v703_v32 = vmul.f32 %v4372_v36, %v4703_v14 }
  0x8c   : > { %8480 = vst [vmem:[#allocation3_spill] sm:$0xff] %v4987_v2  ;;  %8481 = vst [vmem:[#allocation106_spill] sm:$0xff] %v4991_v22  ;;  %v8487_v2 = vld [vmem:[#allocation6_spill] sm:$0xff]  ;;  %v665_v22 = vmul.f32 %v4367_v35, %v4691_v9  ;;  %v5023_v62 = vld [vmem:[#allocation2 + $0xab] sm:$0xff]  ;;  %v5033_v35 = vmul.f32 %v5001_v48, %v4975_v38  ;;  %v1371_v4 = vadd.f32 %v4628_v28, %v1334_v50 }
  0x8d   : > { %8482 = vst [vmem:[#allocation107_spill] sm:$0xff] %v4996_v5  ;;  %8483 = vst [vmem:[#allocation108_spill] sm:$0xff] %v5001_v48  ;;  %v1141_v53 = vmul.f32 %v8487_v2, %v4966_v37  ;;  %v5025_v57 = vld [vmem:[#allocation2 + $0xcb] sm:$0xff]  ;;  %v1178_v36 = vmul.f32 %v4468_v21, %v5003_v6  ;;  %v5047_v46 = vld [vmem:[%s7846_s3 + $0x36] ss:$0 sm:$0xff]  ;;  %v1120_v31 = vadd.f32 %v1104_v59, %v1083_v24 }
  0x8e   : > { %8484 = vst [vmem:[#allocation109_spill] sm:$0xff] %v5003_v6  ;;  %8486 = vst [vmem:[#allocation4_spill] sm:$0xff] %v5009_v19  ;;  %v741_v19 = vmul.f32 %v4379_v39, %v4705_v52  ;;  %v8493_v17 = vld [vmem:[#allocation52_spill] sm:$0xff]  ;;  %v719_v14 = vadd.f32 %v703_v32, %v665_v22  ;;  %v779_v28 = vmul.f32 %v4384_v40, %v4743_v30  ;;  %v8496_v50 = vld [vmem:[#allocation33_spill] sm:$0xff] }
  0x8f   : > { %8488 = vst [vmem:[#allocation6_spill] sm:$0xff] %v5017_v3  ;;  %8489 = vst [vmem:[#allocation110_spill] sm:$0xff] %v5023_v62  ;;  %v1832_v9 = vadd.f32 %v8493_v17, %v1767_v54  ;;  %v5042_v39 = vld [vmem:[%s7846_s3 + $0x2e] ss:$0 sm:$0xff]  ;;  %v5049_v52 = vld [vmem:[#allocation2 + $0x2f] sm:$0xff]  ;;  %v1243_v15 = vmul.f32 %v8500_v23, %v1210_v42  ;;  %v1157_v24 = vadd.f32 %v1141_v53, %v1120_v31 }
  0x90   : > { %8490 = vst [vmem:[#allocation111_spill] sm:$0xff] %v5025_v57  ;;  %8491 = vst [vmem:[#allocation112_spill] sm:$0xff] %v5029_v56  ;;  %v8497_v54 = vld [vmem:[#allocation20_spill] sm:$0xff]  ;;  %v5057_v56 = vmul.f32 %v4930_v12, %v2359_v41  ;;  %v757_v21 = vadd.f32 %v741_v19, %v719_v14  ;;  %v817_v32 = vmul.f32 %v4391_v43, %v4780_v27  ;;  %v8504_v41 = vld [vmem:[#allocation34_spill] sm:$0xff] }
  0x91   : > { %8492 = vst [vmem:[#allocation113_spill] sm:$0xff] %v5033_v35  ;;  %8494 = vst [vmem:[#allocation52_spill] sm:$0xff] %v5042_v39  ;;  %v1408_v35 = vadd.f32 %v8496_v50, %v1371_v4  ;;  %v1466_v17 = vmul.f32 %v8497_v54, %v5017_v3  ;;  %v1869_v59 = vadd.f32 %v8501_v11, %v1832_v9  ;;  %v8505_v50 = vld [vmem:[#allocation15_spill] sm:$0xff]  ;;  %v8507_v11 = vld [vmem:[#allocation60_spill] sm:$0xff] }
  0x92   : > { %8495 = vst [vmem:[#allocation114_spill] sm:$0xff] %v5047_v46  ;;  %8498 = vst [vmem:[#allocation33_spill] sm:$0xff] %v5057_v56  ;;  %v5067_v40 = vmul.f32 %v5042_v39, %v5023_v62  ;;  %v5071_v22 = vmul.f32 %v5047_v46, %v5025_v57  ;;  %v1280_v42 = vmul.f32 %v8505_v50, %v5049_v52  ;;  %v5076_v56 = vld [vmem:[#allocation2 + $0xed] sm:$0xff] }
  0x93   : > { %8499 = vst [vmem:[#allocation20_spill] sm:$0xff] %v5059_v8  ;;  %v1445_v4 = vadd.f32 %v8504_v41, %v1408_v35  ;;  %8506 = vst [vmem:[#allocation34_spill] sm:$0xff] %v5076_v56  ;;  %v1906_v14 = vadd.f32 %v8507_v11, %v1869_v59  ;;  %v5079_v53 = vld [vmem:[#allocation2 + $0xe8] sm:$0xff]  ;;  %v1194_v19 = vadd.f32 %v1178_v36, %v1157_v24  ;;  %v8514_v30 = vld [vmem:[#allocation61_spill] sm:$0xff] }
  0x94   : > { %8502 = vst [vmem:[#allocation13_spill] sm:$0xff] %v5067_v40  ;;  %8503 = vst [vmem:[#allocation59_spill] sm:$0xff] %v5071_v22  ;;  %v5081_v43 = vld [vmem:[#allocation2 + $0xe9] sm:$0xff]  ;;  %v795_v31 = vadd.f32 %v779_v28, %v757_v21  ;;  %v855_v27 = vmul.f32 %v4400_v47, %v4801_v49  ;;  %v5089_v35 = vmul.f32 %v4941_v25, %v4959_v34 }
  0x95   : > { %8508 = vst [vmem:[#allocation15_spill] sm:$0xff] %v5079_v53  ;;  %8509 = vst [vmem:[#allocation60_spill] sm:$0xff] %v5081_v43  ;;  %v5083_v9 = vld [vmem:[#allocation2 + $0x6f] sm:$0xff]  ;;  %v1482_v3 = vadd.f32 %v1466_v17, %v1445_v4  ;;  %v5093_v41 = vmul.f32 %v4964_v16, %v4973_v26  ;;  %v1943_v36 = vadd.f32 %v8514_v30, %v1906_v14  ;;  %v8521_v16 = vld [vmem:[#allocation63_spill] sm:$0xff] }
  0x96   : > { %8510 = vst [vmem:[#allocation115_spill] sm:$0xff] %v5083_v9  ;;  %8511 = vst [vmem:[#allocation116_spill] sm:$0xff] %v5089_v35  ;;  %v8513_v59 = vld [vmem:[#allocation16_spill] sm:$0xff]  ;;  %v1259_v28 = vadd.f32 %v1243_v15, %v1194_v19  ;;  %v833_v49 = vadd.f32 %v817_v32, %v795_v31  ;;  %v893_v17 = vmul.f32 %v4408_v51, %v5076_v56  ;;  %v8517_v4 = vld [vmem:[#allocation37_spill] sm:$0xff] }
  0x97   : > { %8512 = vst [vmem:[#allocation117_spill] sm:$0xff] %v5093_v41  ;;  %v1317_v11 = vmul.f32 %v8513_v59, %v5059_v8  ;;  %v5098_v24 = vld [vmem:[#allocation2 + $0xea] sm:$0xff]  ;;  %v1547_v34 = vadd.f32 %v8517_v4, %v1482_v3  ;;  %v8519_v41 = vld [vmem:[#allocation58_spill] sm:$0xff]  ;;  %v1980_v40 = vadd.f32 %v8521_v16, %v1943_v36  ;;  %v958_v19 = vmul.f32 %v4415_v55, %v4873_v60 }
  0x98   : > { %8515 = vst [vmem:[#allocation16_spill] sm:$0xff] %v5098_v24  ;;  %v5100_v21 = vld [vmem:[#allocation2 + $0x8f] sm:$0xff]  ;;  %v5109_v22 = vmul.f32 %v8519_v41, %v5081_v43  ;;  %v1296_v15 = vadd.f32 %v1280_v42, %v1259_v28  ;;  %v871_v32 = vadd.f32 %v855_v27, %v833_v49  ;;  %v5121_v4 = vmul.f32 %v4886_v0, %v5098_v24 }
  0x99   : > { %8516 = vst [vmem:[#allocation61_spill] sm:$0xff] %v5100_v21  ;;  %v8518_v35 = vld [vmem:[#allocation32_spill] sm:$0xff]  ;;  %v8520_v30 = vld [vmem:[#allocation17_spill] sm:$0xff]  ;;  %v5125_v43 = vmul.f32 %v4996_v5, %v4975_v38  ;;  %v5139_v38 = vmul.f32 %v5001_v48, %v5023_v62  ;;  %v5143_v24 = vmul.f32 %v5042_v39, %v5025_v57  ;;  %v8537_v62 = vld [vmem:[#allocation42_spill] sm:$0xff] }
  0x9a   : > { %v1753_v26 = vmul.f32 %v8518_v35, %v5079_v53  ;;  %v1354_v14 = vmul.f32 %v8520_v30, %v5083_v9  ;;  %v5114_v25 = vld [vmem:[#allocation2 + $0xaf] sm:$0xff]  ;;  %8524 = vst [vmem:[#allocation17_spill] sm:$0xff] %v5121_v4  ;;  %v8526_v53 = vld [vmem:[#allocation18_spill] sm:$0xff]  ;;  %v1333_v55 = vadd.f32 %v1317_v11, %v1296_v15  ;;  %v909_v60 = vadd.f32 %v893_v17, %v871_v32 }
  0x9b   : > { %8522 = vst [vmem:[#allocation37_spill] sm:$0xff] %v5114_v25  ;;  %v8523_v3 = vld [vmem:[#allocation40_spill] sm:$0xff]  ;;  %8525 = vst [vmem:[#allocation63_spill] sm:$0xff] %v5125_v43  ;;  %v1391_v16 = vmul.f32 %v8526_v53, %v5100_v21  ;;  %v1497_v49 = vld [vmem:[#allocation2 + $0x10] sm:$0xff] }
  0x9c   : > { %v1584_v31 = vadd.f32 %v8523_v3, %v1547_v34  ;;  %v8527_v36 = vld [vmem:[#allocation64_spill] sm:$0xff]  ;;  %v995_v34 = vmul.f32 %v4425_v61, %v4903_v10  ;;  %v8530_v28 = vld [vmem:[#allocation41_spill] sm:$0xff]  ;;  %v1370_v15 = vadd.f32 %v1354_v14, %v1333_v55 }
  0x9d   : > { %v2017_v56 = vadd.f32 %v8527_v36, %v1980_v40  ;;  %v5130_v42 = vld [vmem:[#allocation2 + $0xeb] sm:$0xff]  ;;  %8531 = vst [vmem:[#allocation64_spill] sm:$0xff] %v5139_v38  ;;  %8532 = vst [vmem:[#allocation41_spill] sm:$0xff] %v5143_v24  ;;  %v8533_v40 = vld [vmem:[#allocation19_spill] sm:$0xff] }
  0x9e   : > { %8528 = vst [vmem:[#allocation40_spill] sm:$0xff] %v5130_v42  ;;  %v5132_v27 = vld [vmem:[#allocation2 + $0xcf] sm:$0xff]  ;;  %v1621_v3 = vadd.f32 %v8530_v28, %v1584_v31  ;;  %v1428_v36 = vmul.f32 %v8533_v40, %v5114_v25  ;;  %v974_v31 = vadd.f32 %v958_v19, %v909_v60  ;;  %v1032_v28 = vmul.f32 %v4431_v1, %v4924_v18 }
  0x9f   : > { %8529 = vst [vmem:[#allocation18_spill] sm:$0xff] %v5132_v27  ;;  %v8534_v43 = vld [vmem:[#allocation65_spill] sm:$0xff]  ;;  %v5159_v57 = vmul.f32 %v5047_v46, %v5130_v42  ;;  %v1407_v39 = vadd.f32 %v1391_v16, %v1370_v15  ;;  %v8544_v46 = vld [vmem:[#allocation26_spill] sm:$0xff] }
  0xa0   : > { %v2054_v11 = vadd.f32 %v8534_v43, %v2017_v56  ;;  %v5148_v17 = vld [vmem:[#allocation2 + $0x30] sm:$0xff]  ;;  %v1658_v38 = vadd.f32 %v8537_v62, %v1621_v3  ;;  %v1465_v56 = vmul.f32 %v8497_v54, %v5132_v27  ;;  %v1011_v1 = vadd.f32 %v995_v34, %v974_v31  ;;  %v8543_v3 = vld [vmem:[#allocation44_spill] sm:$0xff] }
  0xa1   : > { %v5150_v32 = vld [vmem:[#allocation2 + $0x50] sm:$0xff]  ;;  %8538 = vst [vmem:[#allocation42_spill] sm:$0xff] %v5159_v57  ;;  %v1069_v62 = vmul.f32 %v4441_v7, %v4956_v33  ;;  %v1567_v57 = vmul.f32 %v8544_v46, %v5148_v17  ;;  %v1444_v15 = vadd.f32 %v1428_v36, %v1407_v39 }
  0xa2   : > { %8535 = vst [vmem:[#allocation19_spill] sm:$0xff] %v5150_v32  ;;  %v5152_v61 = vld [vmem:[#allocation2 + $0x70] sm:$0xff]  ;;  %v2119_v55 = vadd.f32 %v4860_v58, %v2054_v11  ;;  %v1695_v42 = vadd.f32 %v8543_v3, %v1658_v38  ;;  %v8546_v58 = vld [vmem:[#allocation28_spill] sm:$0xff]  ;;  %v1048_v31 = vadd.f32 %v1032_v28, %v1011_v1  ;;  %v1106_v38 = vmul.f32 %v8485_v13, %v4966_v37  ;;  %v8554_v37 = vld [vmem:[#allocation39_spill] sm:$0xff] }
  0xa3   : > { %8536 = vst [vmem:[#allocation65_spill] sm:$0xff] %v5152_v61  ;;  %v8539_v43 = vld [vmem:[#allocation25_spill] sm:$0xff]  ;;  %v1641_v16 = vmul.f32 %v8546_v58, %v5152_v61  ;;  %v1481_v28 = vadd.f32 %v1465_v56, %v1444_v15 }
  0xa4   : > { %v1530_v14 = vmul.f32 %v8539_v43, %v1497_v49  ;;  %v5165_v24 = vld [vmem:[#allocation2 + $0x90] sm:$0xff]  ;;  %v8545_v49 = vld [vmem:[#allocation27_spill] sm:$0xff]  ;;  %v2156_v11 = vadd.f32 %v4892_v29, %v2119_v55  ;;  %v1085_v1 = vadd.f32 %v1069_v62, %v1048_v31  ;;  %v8559_v31 = vld [vmem:[#allocation66_spill] sm:$0xff] }
  0xa5   : > { %8540 = vst [vmem:[#allocation25_spill] sm:$0xff] %v5165_v24  ;;  %v5167_v19 = vld [vmem:[#allocation2 + $0xb0] sm:$0xff]  ;;  %v1604_v18 = vmul.f32 %v8545_v49, %v5150_v32  ;;  %v8551_v49 = vld [vmem:[#allocation31_spill] sm:$0xff] }
  0xa6   : > { %8541 = vst [vmem:[#allocation118_spill] sm:$0xff] %v5167_v19  ;;  %v5169_v60 = vld [vmem:[#allocation2 + $0xd0] sm:$0xff]  ;;  %v1715_v58 = vmul.f32 %v8551_v49, %v5167_v19  ;;  %v2193_v36 = vadd.f32 %v4896_v45, %v2156_v11  ;;  %v5214_v45 = vld [vmem:[#allocation2 + $0x105] sm:$0xff]  ;;  %v1546_v62 = vadd.f32 %v1530_v14, %v1481_v28 }
  0xa7   : > { %8542 = vst [vmem:[#allocation119_spill] sm:$0xff] %v5169_v60  ;;  %v1784_v10 = vld [vmem:[#allocation2 + $0x11] sm:$0xff]  ;;  %v5194_v29 = vmul.f32 %v8518_v35, %v5169_v60  ;;  %8555 = vst [vmem:[#allocation121_spill] sm:$0xff] %v5214_v45  ;;  %v8562_v14 = vld [vmem:[#allocation87_spill] sm:$0xff] }
  0xa8   : > { %v5181_v48 = vld [vmem:[#allocation2 + $0x31] sm:$0xff]  ;;  %v2230_v56 = vadd.f32 %v4900_v63, %v2193_v36  ;;  %v1583_v28 = vadd.f32 %v1567_v57, %v1546_v62  ;;  %v8568_v57 = vld [vmem:[#allocation88_spill] sm:$0xff] }
  0xa9   : > { %8547 = vst [vmem:[#allocation44_spill] sm:$0xff] %v5181_v48  ;;  %v5183_v34 = vld [vmem:[#allocation2 + $0x51] sm:$0xff]  ;;  %v5208_v49 = vmul.f32 %v4713_v20, %v5181_v48 }
  0xaa   : > { %8548 = vst [vmem:[#allocation26_spill] sm:$0xff] %v5183_v34  ;;  %v8549_v3 = vld [vmem:[#allocation45_spill] sm:$0xff]  ;;  %v5212_v35 = vmul.f32 %v4718_v44, %v5183_v34  ;;  %v8560_v20 = vld [vmem:[#allocation50_spill] sm:$0xff]  ;;  %v1245_v44 = vmul.f32 %v8500_v23, %v5049_v52  ;;  %v8561_v34 = vld [vmem:[#allocation36_spill] sm:$0xff]  ;;  %v2267_v36 = vadd.f32 %v8562_v14, %v2230_v56  ;;  %v1620_v62 = vadd.f32 %v1604_v18, %v1583_v28 }
  0xab   : > { %v1732_v33 = vadd.f32 %v8549_v3, %v1695_v42  ;;  %v8550_v4 = vld [vmem:[#allocation29_spill] sm:$0xff]  ;;  %v1143_v42 = vmul.f32 %v8487_v2, %v5003_v6  ;;  %v856_v63 = vmul.f32 %v4400_v47, %v8561_v34 }
  0xac   : > { %v1678_v5 = vmul.f32 %v8550_v4, %v5165_v24  ;;  %v5196_v39 = vld [vmem:[#allocation2 + $0xee] sm:$0xff]  ;;  %v5204_v4 = vmul.f32 %v8554_v37, %v1784_v10  ;;  %v2304_v56 = vadd.f32 %v8568_v57, %v2267_v36  ;;  %v1657_v28 = vadd.f32 %v1641_v16, %v1620_v62 }
  0xad   : > { %8552 = vst [vmem:[#allocation45_spill] sm:$0xff] %v5196_v39  ;;  %v5199_v55 = vld [vmem:[#allocation2 + $0x71] sm:$0xff]  ;;  %v1769_v3 = vadd.f32 %v1753_v26, %v1732_v33  ;;  %v1122_v26 = vadd.f32 %v1106_v38, %v1085_v1  ;;  %v8558_v10 = vld [vmem:[#allocation8_spill] sm:$0xff] }
  0xae   : > { %8553 = vst [vmem:[#allocation120_spill] sm:$0xff] %v5199_v55  ;;  %v5217_v11 = vld [vmem:[#allocation2 + $0x91] sm:$0xff]  ;;  %v1180_v33 = vmul.f32 %v8558_v10, %v5196_v39  ;;  %v5226_v37 = vmul.f32 %v8560_v20, %v5199_v55  ;;  %v1694_v62 = vadd.f32 %v1678_v5, %v1657_v28 }
  0xaf   : > { %8556 = vst [vmem:[#allocation122_spill] sm:$0xff] %v5217_v11  ;;  %v5219_v15 = vld [vmem:[#allocation2 + $0xb1] sm:$0xff]  ;;  %v1834_v6 = vadd.f32 %v8559_v31, %v1769_v3  ;;  %v1159_v1 = vadd.f32 %v1143_v42, %v1122_v26  ;;  %v894_v3 = vmul.f32 %v4408_v51, %v5214_v45  ;;  %v8564_v31 = vld [vmem:[#allocation71_spill] sm:$0xff] }
  0xb0   : > { %8557 = vst [vmem:[#allocation123_spill] sm:$0xff] %v5219_v15  ;;  %v5233_v48 = vld [vmem:[#allocation2 + $0xd1] sm:$0xff]  ;;  %v1731_v5 = vadd.f32 %v1715_v58, %v1694_v62  ;;  %v8591_v58 = vld [vmem:[#allocation4_spill] sm:$0xff] }
  0xb1   : > { %8563 = vst [vmem:[#allocation8_spill] sm:$0xff] %v5233_v48  ;;  %v2071_v38 = vld [vmem:[#allocation2 + $0x12] sm:$0xff]  ;;  %v1871_v39 = vadd.f32 %v8564_v31, %v1834_v6  ;;  %v1196_v51 = vadd.f32 %v1180_v33, %v1159_v1  ;;  %v1282_v6 = vmul.f32 %v8505_v50, %v5059_v8  ;;  %v5257_v45 = vmul.f32 %v8519_v41, %v5233_v48  ;;  %v8574_v1 = vld [vmem:[#allocation75_spill] sm:$0xff] }
  0xb2   : > { %v8565_v20 = vld [vmem:[#allocation53_spill] sm:$0xff]  ;;  %v8570_v26 = vld [vmem:[#allocation74_spill] sm:$0xff]  ;;  %v1319_v33 = vmul.f32 %v8513_v59, %v5083_v9  ;;  %v8581_v9 = vld [vmem:[#allocation79_spill] sm:$0xff] }
  0xb3   : > { %v5240_v55 = vmul.f32 %v8565_v20, %v5217_v11  ;;  %v8566_v52 = vld [vmem:[#allocation57_spill] sm:$0xff]  ;;  %v1908_v31 = vadd.f32 %v8570_v26, %v1871_v39  ;;  %v1261_v57 = vadd.f32 %v1245_v44, %v1196_v51  ;;  %v8576_v41 = vld [vmem:[#allocation78_spill] sm:$0xff]  ;;  %v1356_v51 = vmul.f32 %v8520_v30, %v5100_v21 }
  0xb4   : > { %v5244_v23 = vmul.f32 %v8566_v52, %v5219_v15  ;;  %v8567_v47 = vld [vmem:[#allocation101_spill] sm:$0xff] }
  0xb5   : > { %v872_v34 = vadd.f32 %v856_v63, %v8567_v47  ;;  %v5248_v14 = vld [vmem:[#allocation2 + $0x32] sm:$0xff]  ;;  %v1945_v8 = vadd.f32 %v8574_v1, %v1908_v31  ;;  %v1298_v44 = vadd.f32 %v1282_v6, %v1261_v57  ;;  %v8580_v31 = vld [vmem:[#allocation76_spill] sm:$0xff]  ;;  %v1393_v57 = vmul.f32 %v8526_v53, %v5114_v25 }
  0xb6   : > { %v5250_v42 = vld [vmem:[#allocation2 + $0x52] sm:$0xff] }
  0xb7   : > { %8569 = vst [vmem:[#allocation66_spill] sm:$0xff] %v5250_v42  ;;  %v8571_v52 = vld [vmem:[#allocation69_spill] sm:$0xff]  ;;  %v910_v63 = vadd.f32 %v894_v3, %v872_v34  ;;  %v8577_v3 = vld [vmem:[#allocation14_spill] sm:$0xff]  ;;  %v1982_v1 = vadd.f32 %v8580_v31, %v1945_v8  ;;  %v1335_v6 = vadd.f32 %v1319_v33, %v1298_v44  ;;  %v1768_v33 = vadd.f32 %v5194_v29, %v1731_v5 }
  0xb8   : > { %v5260_v20 = vmul.f32 %v8571_v52, %v2071_v38  ;;  %v8572_v36 = vld [vmem:[#allocation89_spill] sm:$0xff]  ;;  %v5274_v38 = vmul.f32 %v8576_v41, %v5250_v42  ;;  %v8587_v31 = vld [vmem:[#allocation82_spill] sm:$0xff] }
  0xb9   : > { %v2341_v18 = vadd.f32 %v8572_v36, %v2304_v56  ;;  %v5263_v47 = vld [vmem:[#allocation2 + $0x72] sm:$0xff]  ;;  %v975_v34 = vadd.f32 %v8577_v3, %v910_v63  ;;  %v8578_v56 = vld [vmem:[#allocation104_spill] sm:$0xff]  ;;  %v1372_v44 = vadd.f32 %v1356_v51, %v1335_v6  ;;  %v1833_v5 = vadd.f32 %v5204_v4, %v1768_v33 }
  0xba   : > { %8573 = vst [vmem:[#allocation36_spill] sm:$0xff] %v5263_v47  ;;  %v8575_v39 = vld [vmem:[#allocation77_spill] sm:$0xff]  ;;  %v8584_v3 = vld [vmem:[#allocation106_spill] sm:$0xff] }
  0xbb   : > { %v5270_v26 = vmul.f32 %v8575_v39, %v5248_v14  ;;  %v2406_v16 = vadd.f32 %v8578_v56, %v2341_v18  ;;  %v5278_v36 = vld [vmem:[#allocation2 + $0x92] sm:$0xff]  ;;  %v5285_v39 = vmul.f32 %v8581_v9, %v5263_v47  ;;  %v8586_v56 = vld [vmem:[#allocation80_spill] sm:$0xff]  ;;  %v1870_v4 = vadd.f32 %v5208_v49, %v1833_v5 }
  0xbc   : > { %8579 = vst [vmem:[#allocation87_spill] sm:$0xff] %v5278_v36  ;;  %v8582_v52 = vld [vmem:[#allocation105_spill] sm:$0xff]  ;;  %v2019_v8 = vadd.f32 %v8586_v56, %v1982_v1  ;;  %v5298_v21 = vmul.f32 %v8587_v31, %v5278_v36  ;;  %v1430_v1 = vmul.f32 %v8533_v40, %v5132_v27 }
  0xbd   : > { %v1012_v41 = vadd.f32 %v8582_v52, %v975_v34  ;;  %v8583_v42 = vld [vmem:[#allocation5_spill] sm:$0xff]  ;;  %v2443_v18 = vadd.f32 %v8584_v3, %v2406_v16  ;;  %v8589_v52 = vld [vmem:[#allocation3_spill] sm:$0xff]  ;;  %v1907_v49 = vadd.f32 %v5212_v35, %v1870_v4 }
  0xbe   : > { %v1070_v63 = vmul.f32 %v4441_v7, %v8583_v42  ;;  %v5291_v28 = vld [vmem:[#allocation2 + $0xb2] sm:$0xff]  ;;  %v8590_v7 = vld [vmem:[#allocation7_spill] sm:$0xff]  ;;  %v2056_v56 = vadd.f32 %v5109_v22, %v2019_v8 }
  0xbf   : > { %8585 = vst [vmem:[#allocation71_spill] sm:$0xff] %v5291_v28  ;;  %v5300_v9 = vld [vmem:[#allocation2 + $0xef] sm:$0xff]  ;;  %v1049_v34 = vadd.f32 %v8589_v52, %v1012_v41  ;;  %v1107_v42 = vmul.f32 %v8485_v13, %v8590_v7  ;;  %v2480_v16 = vadd.f32 %v8591_v58, %v2443_v18  ;;  %v5311_v3 = vld [vmem:[#allocation2 + $0x106] sm:$0xff]  ;;  %v8595_v13 = vld [vmem:[#allocation70_spill] sm:$0xff]  ;;  %v1409_v58 = vadd.f32 %v1393_v57, %v1372_v44 }
  0xc0   : > { %8588 = vst [vmem:[#allocation101_spill] sm:$0xff] %v5300_v9  ;;  %v5307_v62 = vld [vmem:[#allocation2 + $0xd2] sm:$0xff]  ;;  %8593 = vst [vmem:[#allocation74_spill] sm:$0xff] %v5311_v3  ;;  %v1144_v18 = vmul.f32 %v8487_v2, %v8595_v13  ;;  %v8596_v7 = vld [vmem:[#allocation112_spill] sm:$0xff]  ;;  %v1467_v27 = vmul.f32 %v8497_v54, %v5300_v9  ;;  %v1181_v2 = vmul.f32 %v8558_v10, %v5311_v3 }
  0xc1   : > { %8592 = vst [vmem:[#allocation88_spill] sm:$0xff] %v5307_v62  ;;  %v8594_v25 = vld [vmem:[#allocation85_spill] sm:$0xff]  ;;  %v1086_v52 = vadd.f32 %v1070_v63, %v1049_v34  ;;  %v2517_v29 = vadd.f32 %v8596_v7, %v2480_v16  ;;  %v8597_v22 = vld [vmem:[#allocation83_spill] sm:$0xff]  ;;  %v1446_v57 = vadd.f32 %v1430_v1, %v1409_v58  ;;  %v1532_v44 = vmul.f32 %v8539_v43, %v5148_v17  ;;  %v8599_v13 = vld [vmem:[#allocation90_spill] sm:$0xff] }
  0xc2   : > { %v5316_v41 = vmul.f32 %v8594_v25, %v5291_v28  ;;  %v2358_v51 = vld [vmem:[#allocation2 + $0x13] sm:$0xff]  ;;  %v2121_v8 = vadd.f32 %v8597_v22, %v2056_v56  ;;  %v5329_v25 = vmul.f32 %v4886_v0, %v5307_v62  ;;  %v1569_v17 = vmul.f32 %v8544_v46, %v5150_v32  ;;  %v5356_v43 = vld [vmem:[%s7847_s4] ss:$0 sm:$0xff] }
  0xc3   : > { %v5322_v6 = vld [vmem:[#allocation2 + $0x33] sm:$0xff]  ;;  %v1123_v63 = vadd.f32 %v1107_v42, %v1086_v52  ;;  %v5341_v7 = vmul.f32 %v4930_v12, %v2358_v51  ;;  %v1483_v1 = vadd.f32 %v1467_v27, %v1446_v57  ;;  %8602 = vst [vmem:[#allocation89_spill] sm:$0xff] %v5356_v43  ;;  %v8603_v51 = vld [vmem:[#allocation92_spill] sm:$0xff]  ;;  %v1944_v4 = vadd.f32 %v5226_v37, %v1907_v49 }
  0xc4   : > { %v8598_v34 = vld [vmem:[#allocation113_spill] sm:$0xff]  ;;  %v2158_v56 = vadd.f32 %v8599_v13, %v2121_v8  ;;  %v8604_v8 = vld [vmem:[#allocation99_spill] sm:$0xff]  ;;  %v8608_v3 = vld [vmem:[#allocation94_spill] sm:$0xff] }
  0xc5   : > { %v2554_v16 = vadd.f32 %v8598_v34, %v2517_v29  ;;  %v5335_v33 = vld [vmem:[#allocation2 + $0x53] sm:$0xff]  ;;  %v1160_v10 = vadd.f32 %v1144_v18, %v1123_v63  ;;  %v1548_v57 = vadd.f32 %v1532_v44, %v1483_v1  ;;  %v8607_v13 = vld [vmem:[#allocation27_spill] sm:$0xff]  ;;  %v1981_v37 = vadd.f32 %v5240_v55, %v1944_v4 }
  0xc6   : > { %v8600_v42 = vld [vmem:[#allocation93_spill] sm:$0xff]  ;;  %v2195_v58 = vadd.f32 %v8603_v51, %v2158_v56  ;;  %v5361_v18 = vmul.f32 %v8604_v8, %v5335_v33  ;;  %v8609_v56 = vld [vmem:[#allocation107_spill] sm:$0xff] }
  0xc7   : > { %v5345_v52 = vmul.f32 %v8600_v42, %v5322_v6  ;;  %v8601_v22 = vld [vmem:[#allocation13_spill] sm:$0xff]  ;;  %v1197_v63 = vadd.f32 %v1181_v2, %v1160_v10  ;;  %v8611_v2 = vld [vmem:[#allocation10_spill] sm:$0xff]  ;;  %v1585_v44 = vadd.f32 %v1569_v17, %v1548_v57  ;;  %v8614_v1 = vld [vmem:[#allocation95_spill] sm:$0xff] }
  0xc8   : > { %v2591_v29 = vadd.f32 %v8601_v22, %v2554_v16  ;;  %v5349_v5 = vld [vmem:[#allocation2 + $0x73] sm:$0xff]  ;;  %v8606_v16 = vld [vmem:[#allocation59_spill] sm:$0xff]  ;;  %v1606_v22 = vmul.f32 %v8607_v13, %v5152_v61  ;;  %v2232_v32 = vadd.f32 %v8608_v3, %v2195_v58  ;;  %v1320_v10 = vmul.f32 %v8513_v59, %v8611_v2 }
  0xc9   : > { %v8605_v34 = vld [vmem:[#allocation9_spill] sm:$0xff]  ;;  %v5372_v51 = vmul.f32 %v8609_v56, %v5349_v5  ;;  %v8616_v61 = vld [vmem:[#allocation11_spill] sm:$0xff] }
  0xca   : > { %v1283_v35 = vmul.f32 %v8505_v50, %v8605_v34  ;;  %v2628_v27 = vadd.f32 %v8606_v16, %v2591_v29  ;;  %v8610_v8 = vld [vmem:[#allocation21_spill] sm:$0xff]  ;;  %v8613_v29 = vld [vmem:[#allocation28_spill] sm:$0xff]  ;;  %v2269_v3 = vadd.f32 %v8614_v1, %v2232_v32  ;;  %v1622_v55 = vadd.f32 %v1606_v22, %v1585_v44  ;;  %v8618_v17 = vld [vmem:[#allocation31_spill] sm:$0xff] }
  0xcb   : > { %v1262_v9 = vadd.f32 %v8610_v8, %v1197_v63  ;;  %v1643_v49 = vmul.f32 %v8613_v29, %v5165_v24  ;;  %v8615_v58 = vld [vmem:[#allocation29_spill] sm:$0xff]  ;;  %v1357_v8 = vmul.f32 %v8520_v30, %v8616_v61  ;;  %v2018_v63 = vadd.f32 %v5244_v23, %v1981_v37  ;;  %v8619_v32 = vld [vmem:[#allocation96_spill] sm:$0xff]  ;;  %v5401_v30 = vld [vmem:[%s7846_s3] ss:$0 sm:$0xff] }
  0xcc   : > { %v5378_v50 = vadd.f32 %v5356_v43, %v2628_v27  ;;  %v1680_v34 = vmul.f32 %v8615_v58, %v5167_v19  ;;  %v5391_v27 = vld [vmem:[#allocation2 + $0xf0] sm:$0xff]  ;;  %v1717_v4 = vmul.f32 %v8618_v17, %v5169_v60  ;;  %v2306_v57 = vadd.f32 %v8619_v32, %v2269_v3  ;;  %v8620_v1 = vld [vmem:[#allocation12_spill] sm:$0xff]  ;;  %v8621_v61 = vld [vmem:[#allocation46_spill] sm:$0xff] }
  0xcd   : > { %v1299_v16 = vadd.f32 %v1283_v35, %v1262_v9  ;;  %8617 = vst [vmem:[#allocation14_spill] sm:$0xff] %v5391_v27  ;;  %v1394_v9 = vmul.f32 %v8526_v53, %v8620_v1  ;;  %v667_v23 = vmul.f32 %v5401_v30, %v8621_v61  ;;  %v2055_v35 = vadd.f32 %v5257_v45, %v2018_v63  ;;  %v5406_v37 = vld [vmem:[#allocation2 + $0x107] sm:$0xff]  ;;  %v5418_v3 = vld [vmem:[%s7846_s3 + $0x10] ss:$0 sm:$0xff]  ;;  %v8627_v1 = vld [vmem:[#allocation6_spill] sm:$0xff] }
  0xce   : > { %8612 = vst [vmem:[#allocation75_spill] sm:$0xff] %v5378_v50  ;;  %v2667_v59 = vsel %vm512_vm0, %v5378_v50, 0.0  ;;  %v1659_v22 = vadd.f32 %v1643_v49, %v1622_v55  ;;  %8622 = vst [vmem:[#allocation104_spill] sm:$0xff] %v5406_v37  ;;  %v8623_v44 = vld [vmem:[#allocation47_spill] sm:$0xff]  ;;  %v8625_v45 = vld [vmem:[#allocation17_spill] sm:$0xff]  ;;  %v1431_v61 = vmul.f32 %v8533_v40, %v8627_v1 }
  0xcf   : > { %2668 = vadd.xlane.f32.xlu0 %v2667_v59  ;;  %v1336_v2 = vadd.f32 %v1320_v10, %v1299_v16  ;;  %v5411_v10 = vld [vmem:[%s7846_s3 + $0x8] ss:$0 sm:$0xff]  ;;  %v8624_v16 = vld [vmem:[#allocation54_spill] sm:$0xff]  ;;  %v2343_v49 = vadd.f32 %v8625_v45, %v2306_v57  ;;  %v2120_v50 = vadd.f32 %v5260_v20, %v2055_v35  ;;  %v8630_v45 = vld [vmem:[#allocation33_spill] sm:$0xff]  ;;  %v1468_v20 = vmul.f32 %v8497_v54, %v5406_v37 }
  0xd0   : > { %v705_v53 = vmul.f32 %v5411_v10, %v8623_v44  ;;  %v743_v59 = vmul.f32 %v5418_v3, %v8624_v16  ;;  %v8626_v63 = vld [vmem:[#allocation32_spill] sm:$0xff]  ;;  %v5428_v44 = vld [vmem:[#allocation2 + $0x93] sm:$0xff]  ;;  %v1696_v60 = vadd.f32 %v1680_v34, %v1659_v22  ;;  %v5446_v22 = vld [vmem:[%s7846_s3 + $0x20] ss:$0 sm:$0xff] }
  0xd1   : > { %v1754_v55 = vmul.f32 %v8626_v63, %v5391_v27  ;;  %v1373_v32 = vadd.f32 %v1357_v8, %v1336_v2  ;;  %8628 = vst [vmem:[#allocation76_spill] sm:$0xff] %v5428_v44  ;;  %v5433_v24 = vld [vmem:[%s7846_s3 + $0x18] ss:$0 sm:$0xff]  ;;  %v2408_v27 = vadd.f32 %v8630_v45, %v2343_v49  ;;  %v8631_v8 = vld [vmem:[#allocation44_spill] sm:$0xff]  ;;  %v8632_v2 = vld [vmem:[#allocation39_spill] sm:$0xff]  ;;  %v2157_v34 = vadd.f32 %v5270_v26, %v2120_v50 }
  0xd2   : > { %v721_v19 = vadd.f32 %v705_v53, %v667_v23  ;;  %v8629_v16 = vld [vmem:[#allocation62_spill] sm:$0xff]  ;;  %v1819_v56 = vmul.f32 %v8632_v2, %v8631_v8  ;;  %v1733_v23 = vadd.f32 %v1717_v4, %v1696_v60  ;;  %v8633_v53 = vld [vmem:[#allocation67_spill] sm:$0xff]  ;;  %v8634_v49 = vld [vmem:[#allocation116_spill] sm:$0xff] }
  0xd3   : > { %v781_v57 = vmul.f32 %v5433_v24, %v8629_v16  ;;  %v1410_v40 = vadd.f32 %v1394_v9, %v1373_v32  ;;  %v819_v16 = vmul.f32 %v5446_v22, %v8633_v53  ;;  %v2445_v45 = vadd.f32 %v8634_v49, %v2408_v27  ;;  %v8635_v8 = vld [vmem:[#allocation108_spill] sm:$0xff]  ;;  %v8636_v32 = vld [vmem:[#allocation26_spill] sm:$0xff]  ;;  %v8640_v49 = vld [vmem:[#allocation117_spill] sm:$0xff] }
  0xd4   : > { %v759_v35 = vadd.f32 %v743_v59, %v721_v19  ;;  %v5453_v9 = vmul.f32 %v8635_v8, %v5428_v44  ;;  %v8637_v54 = vld [vmem:[#allocation48_spill] sm:$0xff]  ;;  %v2194_v19 = vadd.f32 %v5274_v38, %v2157_v34  ;;  %v1770_v50 = vadd.f32 %v1754_v55, %v1733_v23  ;;  %v8639_v27 = vld [vmem:[#allocation34_spill] sm:$0xff]  ;;  %v8642_v8 = vld [vmem:[#allocation49_spill] sm:$0xff] }
  0xd5   : > { %v1856_v2 = vmul.f32 %v8637_v54, %v8636_v32  ;;  %v1447_v26 = vadd.f32 %v1431_v61, %v1410_v40  ;;  %v5457_v60 = vld [vmem:[#allocation2 + $0x10d] sm:$0xff]  ;;  %v5463_v59 = vld [vmem:[%s7846_s3 + $0x28] ss:$0 sm:$0xff]  ;;  %v2482_v37 = vadd.f32 %v8640_v49, %v2445_v45  ;;  %v8643_v40 = vld [vmem:[#allocation22_spill] sm:$0xff] }
  0xd6   : > { %8638 = vst [vmem:[#allocation105_spill] sm:$0xff] %v5457_v60  ;;  %v797_v4 = vadd.f32 %v781_v57, %v759_v35  ;;  %v857_v53 = vmul.f32 %v5463_v59, %v8639_v27  ;;  %v8641_v1 = vld [vmem:[#allocation120_spill] sm:$0xff]  ;;  %v1570_v44 = vmul.f32 %v8544_v46, %v8643_v40  ;;  %v2231_v38 = vadd.f32 %v5285_v39, %v2194_v19  ;;  %v5476_v34 = vld [vmem:[%s7846_s3 + $0x30] ss:$0 sm:$0xff]  ;;  %v8645_v35 = vld [vmem:[#allocation63_spill] sm:$0xff] }
  0xd7   : > { %v1893_v32 = vmul.f32 %v8642_v8, %v8641_v1  ;;  %v1484_v61 = vadd.f32 %v1468_v20, %v1447_v26  ;;  %v1835_v55 = vadd.f32 %v1819_v56, %v1770_v50  ;;  %8644 = vst [vmem:[#allocation5_spill] sm:$0xff] %v5476_v34  ;;  %v895_v23 = vmul.f32 %v5476_v34, %v5457_v60  ;;  %v8646_v49 = vld [vmem:[#allocation50_spill] sm:$0xff]  ;;  %v8647_v26 = vld [vmem:[#allocation35_spill] sm:$0xff]  ;;  %v8651_v40 = vld [vmem:[#allocation64_spill] sm:$0xff] }
  0xd8   : > { %v835_v57 = vadd.f32 %v819_v16, %v797_v4  ;;  %v2519_v45 = vadd.f32 %v8645_v35, %v2482_v37  ;;  %v1930_v20 = vmul.f32 %v8646_v49, %v5217_v11  ;;  %v8648_v46 = vld [vmem:[#allocation23_spill] sm:$0xff]  ;;  %v2268_v56 = vadd.f32 %v5298_v21, %v2231_v38  ;;  %v8650_v4 = vld [vmem:[#allocation86_spill] sm:$0xff]  ;;  %v8652_v60 = vld [vmem:[#allocation53_spill] sm:$0xff] }
  0xd9   : > { %v1549_v27 = vadd.f32 %v8647_v26, %v1484_v61  ;;  %v1607_v39 = vmul.f32 %v8607_v13, %v8648_v46  ;;  %v1872_v16 = vadd.f32 %v1856_v2, %v1835_v55  ;;  %v5490_v50 = vld [vmem:[%s7846_s3 + $0x1] ss:$0 sm:$0xff]  ;;  %v1967_v61 = vmul.f32 %v8652_v60, %v5219_v15  ;;  %v8653_v11 = vld [vmem:[#allocation24_spill] sm:$0xff]  ;;  %v5500_v2 = vld [vmem:[#allocation2 + $0xf1] sm:$0xff] }
  0xda   : > { %v873_v19 = vadd.f32 %v857_v53, %v835_v57  ;;  %8649 = vst [vmem:[#allocation106_spill] sm:$0xff] %v5490_v50  ;;  %v960_v37 = vmul.f32 %v5490_v50, %v8650_v4  ;;  %v2556_v35 = vadd.f32 %v8651_v40, %v2519_v45  ;;  %v1644_v13 = vmul.f32 %v8613_v29, %v8653_v11  ;;  %v5505_v55 = vld [vmem:[%s7846_s3 + $0x9] ss:$0 sm:$0xff]  ;;  %v8655_v57 = vld [vmem:[#allocation91_spill] sm:$0xff]  ;;  %v8656_v46 = vld [vmem:[#allocation41_spill] sm:$0xff] }
  0xdb   : > { %v1586_v26 = vadd.f32 %v1570_v44, %v1549_v27  ;;  %v2305_v21 = vadd.f32 %v5316_v41, %v2268_v56  ;;  %8654 = vst [vmem:[#allocation80_spill] sm:$0xff] %v5500_v2  ;;  %v1909_v53 = vadd.f32 %v1893_v32, %v1872_v16  ;;  %v997_v45 = vmul.f32 %v5505_v55, %v8655_v57  ;;  %v8657_v44 = vld [vmem:[#allocation57_spill] sm:$0xff]  ;;  %v8658_v29 = vld [vmem:[#allocation30_spill] sm:$0xff]  ;;  %v5515_v56 = vld [vmem:[#allocation2 + $0x108] sm:$0xff] }
  0xdc   : > { %v911_v38 = vadd.f32 %v895_v23, %v873_v19  ;;  %v2593_v4 = vadd.f32 %v8656_v46, %v2556_v35  ;;  %v2004_v27 = vmul.f32 %v8657_v44, %v5233_v48  ;;  %v1681_v41 = vmul.f32 %v8615_v58, %v8658_v29  ;;  %8659 = vst [vmem:[#allocation82_spill] sm:$0xff] %v5515_v56  ;;  %v5520_v19 = vld [vmem:[%s7846_s3 + $0x11] ss:$0 sm:$0xff]  ;;  %v8661_v57 = vld [vmem:[#allocation42_spill] sm:$0xff]  ;;  %v8663_v29 = vld [vmem:[#allocation15_spill] sm:$0xff] }
  0xdd   : > { %v1623_v11 = vadd.f32 %v1607_v39, %v1586_v26  ;;  %v2342_v32 = vadd.f32 %v5329_v25, %v2305_v21  ;;  %v1946_v23 = vadd.f32 %v1930_v20, %v1909_v53  ;;  %v8660_v40 = vld [vmem:[#allocation97_spill] sm:$0xff]  ;;  %v8662_v39 = vld [vmem:[#allocation58_spill] sm:$0xff]  ;;  %v1718_v25 = vmul.f32 %v8618_v17, %v8663_v29 }
  0xde   : > { %v976_v16 = vadd.f32 %v960_v37, %v911_v38  ;;  %v1034_v35 = vmul.f32 %v5520_v19, %v8660_v40  ;;  %v2630_v46 = vadd.f32 %v8661_v57, %v2593_v4  ;;  %v2041_v26 = vmul.f32 %v8662_v39, %v5500_v2  ;;  %v5529_v20 = vld [vmem:[#allocation2 + $0xb3] sm:$0xff]  ;;  %v8666_v40 = vld [vmem:[#allocation100_spill] sm:$0xff] }
  0xdf   : > { %v1660_v58 = vadd.f32 %v1644_v13, %v1623_v11  ;;  %8664 = vst [vmem:[#allocation3_spill] sm:$0xff] %v5529_v20  ;;  %v2407_v37 = vadd.f32 %v5341_v7, %v2342_v32  ;;  %v1983_v21 = vadd.f32 %v1967_v61, %v1946_v23  ;;  %v5535_v38 = vld [vmem:[%s7846_s3 + $0x19] ss:$0 sm:$0xff]  ;;  %v8668_v13 = vld [vmem:[#allocation69_spill] sm:$0xff]  ;;  %v1755_v7 = vmul.f32 %v8626_v63, %v5515_v56 }
  0xe0   : > { %v1013_v53 = vadd.f32 %v997_v45, %v976_v16  ;;  %8665 = vst [vmem:[#allocation7_spill] sm:$0xff] %v5535_v38  ;;  %v1071_v4 = vmul.f32 %v5535_v38, %v8666_v40  ;;  %v5540_v57 = vadd.f32 %v5356_v43, %v2630_v46  ;;  %v2106_v17 = vmul.f32 %v8668_v13, %v5248_v14  ;;  %v5546_v61 = vld [vmem:[#allocation2 + $0xd3] sm:$0xff]  ;;  %v5552_v16 = vld [vmem:[%s7846_s3 + $0x21] ss:$0 sm:$0xff] }
  0xe1   : > { %v1697_v11 = vadd.f32 %v1681_v41, %v1660_v58  ;;  %8669 = vst [vmem:[#allocation70_spill] sm:$0xff] %v5546_v61  ;;  %v2444_v45 = vadd.f32 %v5345_v52, %v2407_v37  ;;  %v2020_v32 = vadd.f32 %v2004_v27, %v1983_v21  ;;  %8670 = vst [vmem:[#allocation112_spill] sm:$0xff] %v5552_v16  ;;  %v8671_v46 = vld [vmem:[#allocation109_spill] sm:$0xff]  ;;  %v8672_v41 = vld [vmem:[#allocation52_spill] sm:$0xff] }
  0xe2   : > { %8667 = vst [vmem:[#allocation4_spill] sm:$0xff] %v5540_v57  ;;  %v1050_v23 = vadd.f32 %v1034_v35, %v1013_v53  ;;  %v1108_v29 = vmul.f32 %v5552_v16, %v8671_v46  ;;  %v2673_v14 = vsel %vm512_vm0, %v5540_v57, 0.0  ;;  %v2576_v63 = vmul.f32 %v8672_v41, %v5529_v20  ;;  %v8673_v58 = vld [vmem:[#allocation66_spill] sm:$0xff]  ;;  %v8674_v40 = vld [vmem:[#allocation77_spill] sm:$0xff]  ;;  %v5568_v53 = vld [vmem:[%s7846_s3 + $0x29] ss:$0 sm:$0xff] }
  0xe3   : > { %v2143_v56 = vmul.f32 %v8674_v40, %v8673_v58  ;;  %v1734_v52 = vadd.f32 %v1718_v25, %v1697_v11  ;;  %v5562_v27 = vld [vmem:[#allocation2 + $0x10e] sm:$0xff]  ;;  %2674 = vadd.xlane.f32.xlu1 %v2673_v14  ;;  %v2481_v35 = vadd.f32 %v5361_v18, %v2444_v45  ;;  %v2057_v37 = vadd.f32 %v2041_v26, %v2020_v32  ;;  %v8678_v2 = vld [vmem:[#allocation114_spill] sm:$0xff] }
  0xe4   : > { %8675 = vst [vmem:[#allocation83_spill] sm:$0xff] %v5562_v27  ;;  %v1087_v21 = vadd.f32 %v1071_v4, %v1050_v23  ;;  %8676 = vst [vmem:[#allocation113_spill] sm:$0xff] %v5568_v53  ;;  %v8677_v46 = vld [vmem:[#allocation45_spill] sm:$0xff]  ;;  %v2613_v48 = vmul.f32 %v8678_v2, %v5546_v61  ;;  %v8679_v25 = vld [vmem:[#allocation78_spill] sm:$0xff] }
  0xe5   : > { %v1145_v57 = vmul.f32 %v5568_v53, %v8677_v46  ;;  %v2180_v11 = vmul.f32 %v8679_v25, %v5263_v47  ;;  %v1771_v58 = vadd.f32 %v1755_v7, %v1734_v52  ;;  %v8680_v14 = vld [vmem:[#allocation38_spill] sm:$0xff]  ;;  %v2518_v26 = vadd.f32 %v5372_v51, %v2481_v35  ;;  %v5584_v23 = vld [vmem:[%s7846_s3 + $0x31] ss:$0 sm:$0xff]  ;;  %v8683_v47 = vld [vmem:[#allocation79_spill] sm:$0xff] }
  0xe6   : > { %v1857_v18 = vmul.f32 %v8637_v54, %v8680_v14  ;;  %v5579_v4 = vld [vmem:[#allocation2 + $0xf2] sm:$0xff]  ;;  %v2122_v45 = vadd.f32 %v2106_v17, %v2057_v37  ;;  %v1124_v32 = vadd.f32 %v1108_v29, %v1087_v21  ;;  %8682 = vst [vmem:[#allocation93_spill] sm:$0xff] %v5584_v23  ;;  %v1182_v46 = vmul.f32 %v5584_v23, %v5562_v27  ;;  %v8684_v52 = vld [vmem:[#allocation56_spill] sm:$0xff]  ;;  %v8685_v35 = vld [vmem:[#allocation43_spill] sm:$0xff] }
  0xe7   : > { %8681 = vst [vmem:[#allocation90_spill] sm:$0xff] %v5579_v4  ;;  %v2217_v7 = vmul.f32 %v8683_v47, %v5278_v36  ;;  %v2254_v54 = vmul.f32 %v8587_v31, %v5291_v28  ;;  %v1836_v51 = vadd.f32 %v8684_v52, %v1771_v58  ;;  %v1894_v17 = vmul.f32 %v8642_v8, %v8685_v35  ;;  %v5599_v14 = vld [vmem:[%s7846_s3 + $0x2] ss:$0 sm:$0xff]  ;;  %v8686_v27 = vld [vmem:[#allocation20_spill] sm:$0xff]  ;;  %v8687_v15 = vld [vmem:[#allocation85_spill] sm:$0xff] }
  0xe8   : > { %v2555_v29 = vadd.f32 %v5453_v9, %v2518_v26  ;;  %v2159_v37 = vadd.f32 %v2143_v56, %v2122_v45  ;;  %v1161_v21 = vadd.f32 %v1145_v57, %v1124_v32  ;;  %v1247_v36 = vmul.f32 %v5599_v14, %v8686_v27  ;;  %v8688_v8 = vld [vmem:[#allocation51_spill] sm:$0xff]  ;;  %v5612_v45 = vld [vmem:[%s7846_s3 + $0xa] ss:$0 sm:$0xff] }
  0xe9   : > { %v2291_v28 = vmul.f32 %v8687_v15, %v5307_v62  ;;  %v2328_v58 = vmul.f32 %v4886_v0, %v5579_v4  ;;  %v1873_v52 = vadd.f32 %v1857_v18, %v1836_v51  ;;  %v1931_v9 = vmul.f32 %v8646_v49, %v8688_v8  ;;  %v8689_v32 = vld [vmem:[#allocation115_spill] sm:$0xff]  ;;  %v8691_v51 = vld [vmem:[#allocation60_spill] sm:$0xff] }
  0xea   : > { %v2592_v56 = vadd.f32 %v2576_v63, %v2555_v29  ;;  %v2196_v57 = vadd.f32 %v2180_v11, %v2159_v37  ;;  %v1198_v26 = vadd.f32 %v1182_v46, %v1161_v21  ;;  %v1284_v27 = vmul.f32 %v5612_v45, %v8689_v32  ;;  %v8690_v4 = vld [vmem:[#allocation55_spill] sm:$0xff]  ;;  %v5622_v11 = vld [vmem:[#allocation2 + $0x109] sm:$0xff]  ;;  %v5627_v37 = vld [vmem:[%s7846_s3 + $0x12] ss:$0 sm:$0xff] }
  0xeb   : > { %v2393_v35 = vmul.f32 %v4930_v12, %v5322_v6  ;;  %v1910_v62 = vadd.f32 %v1894_v17, %v1873_v52  ;;  %v1968_v18 = vmul.f32 %v8652_v60, %v8690_v4  ;;  %v2005_v49 = vmul.f32 %v8657_v44, %v8691_v51  ;;  %8692 = vst [vmem:[#allocation13_spill] sm:$0xff] %v5622_v11  ;;  %v8693_v21 = vld [vmem:[#allocation61_spill] sm:$0xff]  ;;  %v3847_v52 = vld [vmem:[#allocation2 + $0x65] sm:$0xff] }
  0xec   : > { %v2629_v63 = vadd.f32 %v2613_v48, %v2592_v56  ;;  %v2233_v46 = vadd.f32 %v2217_v7, %v2196_v57  ;;  %v1263_v29 = vadd.f32 %v1247_v36, %v1198_v26  ;;  %v1321_v6 = vmul.f32 %v5627_v37, %v8693_v21  ;;  %v5632_v4 = vld [vmem:[#allocation2 + $0x85] sm:$0xff] }
  0xed   : > { %v1947_v17 = vadd.f32 %v1931_v9, %v1910_v62  ;;  %v668_v60 = vmul.f32 %v3847_v52, %v5401_v30  ;;  %8694 = vst [vmem:[#allocation92_spill] sm:$0xff] %v5632_v4  ;;  %v706_v48 = vmul.f32 %v5632_v4, %v5411_v10  ;;  %v5636_v44 = vld [vmem:[#allocation2 + $0xa5] sm:$0xff]  ;;  %v5646_v62 = vld [vmem:[%s7846_s3 + $0x1a] ss:$0 sm:$0xff]  ;;  %v8697_v9 = vld [vmem:[#allocation37_spill] sm:$0xff]  ;;  %v2042_v32 = vmul.f32 %v8662_v39, %v5622_v11 }
  0xee   : > { %8695 = vst [vmem:[#allocation9_spill] sm:$0xff] %v5636_v44  ;;  %v744_v36 = vmul.f32 %v5636_v44, %v5418_v3  ;;  %v5641_v7 = vadd.f32 %v5356_v43, %v2629_v63  ;;  %v2270_v8 = vadd.f32 %v2254_v54, %v2233_v46  ;;  %v1300_v56 = vadd.f32 %v1284_v27, %v1263_v29  ;;  %v5652_v21 = vld [vmem:[#allocation2 + $0xc5] sm:$0xff]  ;;  %v5661_v29 = vld [vmem:[%s7846_s3 + $0x22] ss:$0 sm:$0xff]  ;;  %v8715_v4 = vld [vmem:[#allocation65_spill] sm:$0xff] }
  0xef   : > { %v1358_v57 = vmul.f32 %v5646_v62, %v8697_v9  ;;  %v1984_v26 = vadd.f32 %v1968_v18, %v1947_v17  ;;  %v722_v51 = vadd.f32 %v706_v48, %v668_v60  ;;  %8698 = vst [vmem:[#allocation27_spill] sm:$0xff] %v5652_v21  ;;  %v782_v63 = vmul.f32 %v5652_v21, %v5433_v24  ;;  %v8699_v18 = vld [vmem:[#allocation18_spill] sm:$0xff]  ;;  %v8700_v39 = vld [vmem:[#allocation68_spill] sm:$0xff]  ;;  %v5693_v21 = vld [vmem:[%s7846_s3 + $0x32] ss:$0 sm:$0xff] }
  0xf0   : > { %8696 = vst [vmem:[#allocation59_spill] sm:$0xff] %v5641_v7  ;;  %v2670_v54 = vsel %vm512_vm0, %v5641_v7, 0.0  ;;  %v2307_v27 = vadd.f32 %v2291_v28, %v2270_v8  ;;  %v1337_v46 = vadd.f32 %v1321_v6, %v1300_v56  ;;  %v1395_v17 = vmul.f32 %v5661_v29, %v8699_v18  ;;  %v5667_v48 = vld [vmem:[#allocation2 + $0x10f] sm:$0xff]  ;;  %v5669_v11 = vld [vmem:[#allocation2 + $0xe5] sm:$0xff] }
  0xf1   : > { %v2107_v52 = vmul.f32 %v8668_v13, %v8700_v39  ;;  %2671 = vadd.xlane.f32.xlu0 %v2670_v54  ;;  %v2021_v60 = vadd.f32 %v2005_v49, %v1984_v26  ;;  %8701 = vst [vmem:[#allocation94_spill] sm:$0xff] %v5667_v48  ;;  %v760_v9 = vadd.f32 %v744_v36, %v722_v51  ;;  %8702 = vst [vmem:[#allocation21_spill] sm:$0xff] %v5669_v11  ;;  %v5678_v18 = vld [vmem:[%s7846_s3 + $0x2a] ss:$0 sm:$0xff]  ;;  %v8703_v13 = vld [vmem:[#allocation101_spill] sm:$0xff] }
  0xf2   : > { %v820_v28 = vmul.f32 %v5669_v11, %v5446_v22  ;;  %v2344_v6 = vadd.f32 %v2328_v58, %v2307_v27  ;;  %v2430_v8 = vmul.f32 %v8600_v42, %v5335_v33  ;;  %v1374_v56 = vadd.f32 %v1358_v57, %v1337_v46  ;;  %v5682_v26 = vld [vmem:[#allocation2 + $0x125] sm:$0xff]  ;;  %v8706_v58 = vld [vmem:[#allocation121_spill] sm:$0xff] }
  0xf3   : > { %v1432_v49 = vmul.f32 %v5678_v18, %v8703_v13  ;;  %8704 = vst [vmem:[#allocation10_spill] sm:$0xff] %v5682_v26  ;;  %v2058_v36 = vadd.f32 %v2042_v32, %v2021_v60  ;;  %v8705_v51 = vld [vmem:[#allocation72_spill] sm:$0xff]  ;;  %v798_v39 = vadd.f32 %v782_v63, %v760_v9  ;;  %v858_v27 = vmul.f32 %v5463_v59, %v8706_v58  ;;  %v8707_v57 = vld [vmem:[#allocation99_spill] sm:$0xff]  ;;  %v8708_v13 = vld [vmem:[#allocation73_spill] sm:$0xff] }
  0xf4   : > { %v2144_v54 = vmul.f32 %v8674_v40, %v8705_v51  ;;  %v2409_v7 = vadd.f32 %v2393_v35, %v2344_v6  ;;  %v2467_v46 = vmul.f32 %v8707_v57, %v5349_v5  ;;  %v1411_v11 = vadd.f32 %v1395_v17, %v1374_v56  ;;  %v8709_v6 = vld [vmem:[#allocation76_spill] sm:$0xff]  ;;  %v8710_v51 = vld [vmem:[#allocation107_spill] sm:$0xff] }
  0xf5   : > { %v1469_v32 = vmul.f32 %v5693_v21, %v5667_v48  ;;  %v2123_v60 = vadd.f32 %v2107_v52, %v2058_v36  ;;  %v2181_v40 = vmul.f32 %v8679_v25, %v8708_v13  ;;  %v836_v63 = vadd.f32 %v820_v28, %v798_v39  ;;  %v5706_v58 = vld [vmem:[%s7846_s3 + $0x3] ss:$0 sm:$0xff]  ;;  %v8712_v48 = vld [vmem:[#allocation81_spill] sm:$0xff]  ;;  %v3857_v13 = vld [vmem:[#allocation2 + $0x66] sm:$0xff] }
  0xf6   : > { %v896_v35 = vmul.f32 %v5476_v34, %v5682_v26  ;;  %v2446_v9 = vadd.f32 %v2430_v8, %v2409_v7  ;;  %v2504_v17 = vmul.f32 %v8710_v51, %v8709_v6  ;;  %v1448_v56 = vadd.f32 %v1432_v49, %v1411_v11  ;;  %v8711_v44 = vld [vmem:[#allocation19_spill] sm:$0xff]  ;;  %v8713_v39 = vld [vmem:[#allocation108_spill] sm:$0xff] }
  0xf7   : > { %v1534_v52 = vmul.f32 %v5706_v58, %v8711_v44  ;;  %v2160_v36 = vadd.f32 %v2144_v54, %v2123_v60  ;;  %v2218_v25 = vmul.f32 %v8683_v47, %v8712_v48  ;;  %v874_v28 = vadd.f32 %v858_v27, %v836_v63  ;;  %v5718_v26 = vld [vmem:[%s7846_s3 + $0xb] ss:$0 sm:$0xff]  ;;  %v5722_v54 = vld [vmem:[#allocation2 + $0xf3] sm:$0xff] }
  0xf8   : > { %v961_v7 = vmul.f32 %v3857_v13, %v5490_v50  ;;  %v2483_v8 = vadd.f32 %v2467_v46, %v2446_v9  ;;  %v2541_v11 = vmul.f32 %v8713_v39, %v5529_v20  ;;  %v1485_v49 = vadd.f32 %v1469_v32, %v1448_v56  ;;  %8714 = vst [vmem:[#allocation28_spill] sm:$0xff] %v5718_v26  ;;  %v8717_v48 = vld [vmem:[#allocation84_spill] sm:$0xff] }
  0xf9   : > { %v1571_v44 = vmul.f32 %v5718_v26, %v8715_v4  ;;  %8716 = vst [vmem:[#allocation95_spill] sm:$0xff] %v5722_v54  ;;  %v2197_v47 = vadd.f32 %v2181_v40, %v2160_v36  ;;  %v2255_v27 = vmul.f32 %v8587_v31, %v8717_v48  ;;  %v912_v60 = vadd.f32 %v896_v35, %v874_v28  ;;  %v5726_v46 = vld [vmem:[#allocation2 + $0x86] sm:$0xff]  ;;  %v5737_v4 = vld [vmem:[%s7846_s3 + $0x13] ss:$0 sm:$0xff] }
  0xfa   : > { %8718 = vst [vmem:[#allocation29_spill] sm:$0xff] %v5726_v46  ;;  %v998_v32 = vmul.f32 %v5726_v46, %v5505_v55  ;;  %v2520_v63 = vadd.f32 %v2504_v17, %v2483_v8  ;;  %v2578_v9 = vmul.f32 %v8672_v41, %v5546_v61  ;;  %v5732_v56 = vld [vmem:[#allocation2 + $0x10a] sm:$0xff]  ;;  %v1550_v13 = vadd.f32 %v1534_v52, %v1485_v49  ;;  %v5752_v61 = vld [vmem:[%s7846_s3 + $0x1b] ss:$0 sm:$0xff] }
  0xfb   : > { %8719 = vst [vmem:[#allocation11_spill] sm:$0xff] %v5732_v56  ;;  %8720 = vst [vmem:[#allocation31_spill] sm:$0xff] %v5737_v4  ;;  %v8721_v40 = vld [vmem:[#allocation25_spill] sm:$0xff]  ;;  %v2234_v35 = vadd.f32 %v2218_v25, %v2197_v47  ;;  %v8722_v36 = vld [vmem:[#allocation16_spill] sm:$0xff]  ;;  %v977_v48 = vadd.f32 %v961_v7, %v912_v60  ;;  %v2615_v52 = vmul.f32 %v8678_v2, %v5722_v54 }
  0xfc   : > { %v1608_v31 = vmul.f32 %v5737_v4, %v8721_v40  ;;  %v2292_v28 = vmul.f32 %v8687_v15, %v8722_v36  ;;  %v5743_v17 = vld [vmem:[#allocation2 + $0xa6] sm:$0xff]  ;;  %v2557_v46 = vadd.f32 %v2541_v11, %v2520_v63  ;;  %v1587_v49 = vadd.f32 %v1571_v44, %v1550_v13  ;;  %8724 = vst [vmem:[#allocation12_spill] sm:$0xff] %v5752_v61  ;;  %v8725_v25 = vld [vmem:[#allocation118_spill] sm:$0xff]  ;;  %v5765_v13 = vld [vmem:[%s7846_s3 + $0x23] ss:$0 sm:$0xff] }
  0xfd   : > { %8723 = vst [vmem:[#allocation96_spill] sm:$0xff] %v5743_v17  ;;  %v1035_v8 = vmul.f32 %v5743_v17, %v5520_v19  ;;  %v1645_v47 = vmul.f32 %v5752_v61, %v8725_v25  ;;  %v2271_v15 = vadd.f32 %v2255_v27, %v2234_v35  ;;  %v2329_v7 = vmul.f32 %v4886_v0, %v5732_v56  ;;  %v5758_v40 = vld [vmem:[#allocation2 + $0xc6] sm:$0xff]  ;;  %v8729_v27 = vld [vmem:[#allocation98_spill] sm:$0xff] }
  0xfe   : > { %v1014_v60 = vadd.f32 %v998_v32, %v977_v48  ;;  %8726 = vst [vmem:[#allocation46_spill] sm:$0xff] %v5758_v40  ;;  %v1072_v11 = vmul.f32 %v5758_v40, %v5535_v38  ;;  %v2594_v63 = vadd.f32 %v2578_v9, %v2557_v46  ;;  %v1624_v44 = vadd.f32 %v1608_v31, %v1587_v49  ;;  %v8728_v36 = vld [vmem:[#allocation119_spill] sm:$0xff]  ;;  %v5771_v32 = vld [vmem:[#allocation2 + $0x110] sm:$0xff]  ;;  %v5780_v49 = vld [vmem:[%s7846_s3 + $0x2b] ss:$0 sm:$0xff] }
  0xff   : > { %8727 = vst [vmem:[#allocation47_spill] sm:$0xff] %v5765_v13  ;;  %v1682_v25 = vmul.f32 %v5765_v13, %v8728_v36  ;;  %v2394_v35 = vmul.f32 %v4930_v12, %v8729_v27  ;;  %v2308_v0 = vadd.f32 %v2292_v28, %v2271_v15  ;;  %8730 = vst [vmem:[#allocation54_spill] sm:$0xff] %v5771_v32  ;;  %v5773_v56 = vld [vmem:[#allocation2 + $0xe6] sm:$0xff]  ;;  %v8732_v36 = vld [vmem:[#allocation14_spill] sm:$0xff] }
 0x100   : > { %v1051_v48 = vadd.f32 %v1035_v8, %v1014_v60  ;;  %8731 = vst [vmem:[#allocation17_spill] sm:$0xff] %v5773_v56  ;;  %v1109_v46 = vmul.f32 %v5773_v56, %v5552_v16  ;;  %v2631_v9 = vadd.f32 %v2615_v52, %v2594_v63  ;;  %v1661_v31 = vadd.f32 %v1645_v47, %v1624_v44  ;;  %v5784_v12 = vld [vmem:[#allocation2 + $0x126] sm:$0xff]  ;;  %v8734_v15 = vld [vmem:[#allocation102_spill] sm:$0xff]  ;;  %v5796_v63 = vld [vmem:[%s7846_s3 + $0x33] ss:$0 sm:$0xff] }
 0x101   : > { %v1719_v40 = vmul.f32 %v5780_v49, %v8732_v36  ;;  %8733 = vst [vmem:[#allocation32_spill] sm:$0xff] %v5784_v12  ;;  %v2345_v28 = vadd.f32 %v2329_v7, %v2308_v0  ;;  %v2431_v8 = vmul.f32 %v8600_v42, %v8734_v15  ;;  %v8735_v27 = vld [vmem:[#allocation74_spill] sm:$0xff]  ;;  %v1756_v44 = vmul.f32 %v5796_v63, %v5771_v32  ;;  %v8737_v0 = vld [vmem:[#allocation103_spill] sm:$0xff]  ;;  %v5824_v32 = vld [vmem:[#allocation2 + $0x8d] sm:$0xff] }
 0x102   : > { %v1088_v60 = vadd.f32 %v1072_v11, %v1051_v48  ;;  %v1146_v56 = vmul.f32 %v5568_v53, %v8735_v27  ;;  %v5791_v52 = vadd.f32 %v5356_v43, %v2631_v9  ;;  %v1698_v47 = vadd.f32 %v1682_v25, %v1661_v31  ;;  %v8738_v25 = vld [vmem:[#allocation110_spill] sm:$0xff]  ;;  %v5811_v36 = vld [vmem:[%s7846_s3 + $0x4] ss:$0 sm:$0xff]  ;;  %8740 = vst [vmem:[#allocation33_spill] sm:$0xff] %v5824_v32  ;;  %v8761_v17 = vld [vmem:[#allocation80_spill] sm:$0xff] }
 0x103   : > { %v2410_v7 = vadd.f32 %v2394_v35, %v2345_v28  ;;  %v2468_v42 = vmul.f32 %v8707_v57, %v8737_v0  ;;  %v1183_v48 = vmul.f32 %v5584_v23, %v5784_v12  ;;  %v2505_v31 = vmul.f32 %v8710_v51, %v8738_v25  ;;  %v8739_v35 = vld [vmem:[#allocation26_spill] sm:$0xff]  ;;  %v3871_v25 = vld [vmem:[#allocation2 + $0x6d] sm:$0xff] }
 0x104   : > { %8736 = vst [vmem:[#allocation62_spill] sm:$0xff] %v5791_v52  ;;  %v1125_v11 = vadd.f32 %v1109_v46, %v1088_v60  ;;  %v2676_v9 = vsel %vm512_vm0, %v5791_v52, 0.0  ;;  %v1735_v15 = vadd.f32 %v1719_v40, %v1698_v47  ;;  %v1821_v28 = vmul.f32 %v5811_v36, %v8739_v35  ;;  %v5818_v46 = vld [vmem:[%s7846_s3 + $0xc] ss:$0 sm:$0xff]  ;;  %v8746_v12 = vld [vmem:[#allocation122_spill] sm:$0xff] }
 0x105   : > { %2677 = vadd.xlane.f32.xlu1 %v2676_v9  ;;  %v2447_v57 = vadd.f32 %v2431_v8, %v2410_v7  ;;  %v1858_v60 = vmul.f32 %v5818_v46, %v8641_v1  ;;  %v3870_v40 = vld [vmem:[#allocation2 + $0x67] sm:$0xff]  ;;  %v669_v52 = vmul.f32 %v3871_v25, %v5401_v30  ;;  %v707_v8 = vmul.f32 %v5824_v32, %v5411_v10  ;;  %v5843_v32 = vld [vmem:[%s7846_s3 + $0x14] ss:$0 sm:$0xff] }
 0x106   : > { %v1162_v51 = vadd.f32 %v1146_v56, %v1125_v11  ;;  %v1248_v47 = vmul.f32 %v3870_v40, %v5599_v14  ;;  %v1772_v0 = vadd.f32 %v1756_v44, %v1735_v15  ;;  %v5828_v7 = vld [vmem:[#allocation2 + $0xad] sm:$0xff]  ;;  %v8742_v1 = vld [vmem:[#allocation111_spill] sm:$0xff]  ;;  %8745 = vst [vmem:[#allocation116_spill] sm:$0xff] %v5843_v32 }
 0x107   : > { %8741 = vst [vmem:[#allocation44_spill] sm:$0xff] %v5828_v7  ;;  %v745_v9 = vmul.f32 %v5828_v7, %v5418_v3  ;;  %v2484_v35 = vadd.f32 %v2468_v42, %v2447_v57  ;;  %v2542_v56 = vmul.f32 %v8713_v39, %v8742_v1  ;;  %v5834_v40 = vld [vmem:[#allocation2 + $0x87] sm:$0xff]  ;;  %v1895_v42 = vmul.f32 %v5843_v32, %v8746_v12  ;;  %v5860_v12 = vld [vmem:[%s7846_s3 + $0x1c] ss:$0 sm:$0xff] }
 0x108   : > { %v1199_v11 = vadd.f32 %v1183_v48, %v1162_v51  ;;  %8743 = vst [vmem:[#allocation39_spill] sm:$0xff] %v5834_v40  ;;  %v1285_v44 = vmul.f32 %v5834_v40, %v5612_v45  ;;  %v5838_v15 = vld [vmem:[#allocation2 + $0x10b] sm:$0xff]  ;;  %v1837_v25 = vadd.f32 %v1821_v28, %v1772_v0  ;;  %v723_v57 = vadd.f32 %v707_v8, %v669_v52  ;;  %v8751_v52 = vld [vmem:[#allocation123_spill] sm:$0xff] }
 0x109   : > { %8744 = vst [vmem:[#allocation67_spill] sm:$0xff] %v5838_v15  ;;  %v5847_v7 = vld [vmem:[#allocation2 + $0xcd] sm:$0xff]  ;;  %v2521_v48 = vadd.f32 %v2505_v31, %v2484_v35  ;;  %8750 = vst [vmem:[#allocation120_spill] sm:$0xff] %v5860_v12  ;;  %v1932_v8 = vmul.f32 %v5860_v12, %v8751_v52  ;;  %v8752_v31 = vld [vmem:[#allocation34_spill] sm:$0xff] }
 0x10a   : > { %8747 = vst [vmem:[#allocation48_spill] sm:$0xff] %v5847_v7  ;;  %v783_v39 = vmul.f32 %v5847_v7, %v5433_v24  ;;  %v8748_v51 = vld [vmem:[#allocation40_spill] sm:$0xff]  ;;  %v1264_v40 = vadd.f32 %v1248_v47, %v1199_v11  ;;  %v1874_v27 = vadd.f32 %v1858_v60, %v1837_v25  ;;  %v761_v7 = vadd.f32 %v745_v9, %v723_v57  ;;  %v5877_v9 = vld [vmem:[%s7846_s3 + $0x24] ss:$0 sm:$0xff]  ;;  %v8757_v52 = vld [vmem:[#allocation105_spill] sm:$0xff] }
 0x10b   : > { %v2579_v1 = vmul.f32 %v8672_v41, %v8748_v51  ;;  %v5853_v28 = vld [vmem:[#allocation2 + $0xa7] sm:$0xff]  ;;  %v821_v35 = vmul.f32 %v5446_v22, %v8752_v31  ;;  %v2558_v41 = vadd.f32 %v2542_v56, %v2521_v48  ;;  %v2616_v47 = vmul.f32 %v8678_v2, %v5838_v15  ;;  %8755 = vst [vmem:[#allocation63_spill] sm:$0xff] %v5877_v9  ;;  %v8759_v15 = vld [vmem:[#allocation6_spill] sm:$0xff] }
 0x10c   : > { %8749 = vst [vmem:[#allocation117_spill] sm:$0xff] %v5853_v28  ;;  %v1322_v0 = vmul.f32 %v5853_v28, %v5627_v37  ;;  %v1301_v11 = vadd.f32 %v1285_v44, %v1264_v40  ;;  %v5868_v51 = vld [vmem:[#allocation2 + $0xc7] sm:$0xff]  ;;  %v1911_v28 = vadd.f32 %v1895_v42, %v1874_v27  ;;  %v799_v48 = vadd.f32 %v783_v39, %v761_v7  ;;  %v5883_v44 = vld [vmem:[#allocation2 + $0x111] sm:$0xff] }
 0x10d   : > { %8753 = vst [vmem:[#allocation49_spill] sm:$0xff] %v5868_v51  ;;  %v1359_v60 = vmul.f32 %v5868_v51, %v5646_v62  ;;  %v5872_v25 = vld [vmem:[#allocation2 + $0x12d] sm:$0xff]  ;;  %v859_v2 = vmul.f32 %v5463_v59, %v8757_v52  ;;  %v2595_v40 = vadd.f32 %v2579_v1, %v2558_v41  ;;  %8758 = vst [vmem:[#allocation50_spill] sm:$0xff] %v5883_v44  ;;  %v5890_v42 = vld [vmem:[%s7846_s3 + $0x2c] ss:$0 sm:$0xff] }
 0x10e   : > { %8754 = vst [vmem:[#allocation22_spill] sm:$0xff] %v5872_v25  ;;  %v8756_v57 = vld [vmem:[#allocation8_spill] sm:$0xff]  ;;  %v1338_v31 = vadd.f32 %v1322_v0, %v1301_v11  ;;  %v1396_v51 = vmul.f32 %v5661_v29, %v8759_v15  ;;  %v1948_v27 = vadd.f32 %v1932_v8, %v1911_v28  ;;  %8760 = vst [vmem:[#allocation35_spill] sm:$0xff] %v5890_v42  ;;  %v5903_v8 = vld [vmem:[%s7846_s3 + $0x34] ss:$0 sm:$0xff] }
 0x10f   : > { %v1969_v56 = vmul.f32 %v5877_v9, %v8756_v57  ;;  %v2006_v57 = vmul.f32 %v5890_v42, %v8761_v17  ;;  %v5894_v7 = vld [vmem:[#allocation2 + $0x127] sm:$0xff]  ;;  %v837_v39 = vadd.f32 %v821_v35, %v799_v48  ;;  %v897_v1 = vmul.f32 %v5476_v34, %v5872_v25 }
 0x110   : > { %8762 = vst [vmem:[#allocation23_spill] sm:$0xff] %v5894_v7  ;;  %v2632_v41 = vadd.f32 %v2616_v47, %v2595_v40  ;;  %v1375_v0 = vadd.f32 %v1359_v60, %v1338_v31  ;;  %v8763_v11 = vld [vmem:[#allocation104_spill] sm:$0xff]  ;;  %v2043_v17 = vmul.f32 %v5903_v8, %v5883_v44  ;;  %v1470_v60 = vmul.f32 %v5693_v21, %v5894_v7  ;;  %v5916_v40 = vld [vmem:[%s7846_s3 + $0x5] ss:$0 sm:$0xff]  ;;  %v8765_v31 = vld [vmem:[#allocation66_spill] sm:$0xff] }
 0x111   : > { %v1433_v15 = vmul.f32 %v5678_v18, %v8763_v11  ;;  %v1985_v28 = vadd.f32 %v1969_v56, %v1948_v27  ;;  %v875_v52 = vadd.f32 %v859_v2, %v837_v39  ;;  %v3883_v42 = vld [vmem:[#allocation2 + $0x6e] sm:$0xff]  ;;  %v2108_v27 = vmul.f32 %v5916_v40, %v8765_v31  ;;  %v5930_v44 = vld [vmem:[%s7846_s3 + $0xd] ss:$0 sm:$0xff] }
 0x112   : > { %v962_v35 = vmul.f32 %v3883_v42, %v5490_v50  ;;  %v5909_v48 = vadd.f32 %v5356_v43, %v2632_v41  ;;  %v1412_v47 = vadd.f32 %v1396_v51, %v1375_v0  ;;  %v5920_v39 = vld [vmem:[#allocation2 + $0x8e] sm:$0xff]  ;;  %8767 = vst [vmem:[#allocation53_spill] sm:$0xff] %v5930_v44  ;;  %v5976_v25 = vld [vmem:[%s7846_s3 + $0x2d] ss:$0 sm:$0xff] }
 0x113   : > { %v2022_v56 = vadd.f32 %v2006_v57, %v1985_v28  ;;  %v913_v2 = vadd.f32 %v897_v1, %v875_v52  ;;  %8766 = vst [vmem:[#allocation64_spill] sm:$0xff] %v5920_v39  ;;  %v999_v42 = vmul.f32 %v5920_v39, %v5505_v55  ;;  %v3886_v0 = vld [vmem:[#allocation2 + $0x68] sm:$0xff]  ;;  %8780 = vst [vmem:[#allocation15_spill] sm:$0xff] %v5976_v25 }
 0x114   : > { %8764 = vst [vmem:[#allocation86_spill] sm:$0xff] %v5909_v48  ;;  %v2679_v51 = vsel %vm512_vm0, %v5909_v48, 0.0  ;;  %v1449_v41 = vadd.f32 %v1433_v15, %v1412_v47  ;;  %v1535_v57 = vmul.f32 %v3886_v0, %v5706_v58  ;;  %v8768_v52 = vld [vmem:[#allocation36_spill] sm:$0xff]  ;;  %v5947_v0 = vld [vmem:[%s7846_s3 + $0x15] ss:$0 sm:$0xff] }
 0x115   : > { %2680 = vadd.xlane.f32.xlu0 %v2679_v51  ;;  %v2059_v28 = vadd.f32 %v2043_v17, %v2022_v56  ;;  %v2145_v1 = vmul.f32 %v5930_v44, %v8768_v52  ;;  %v978_v31 = vadd.f32 %v962_v35, %v913_v2  ;;  %v5934_v7 = vld [vmem:[#allocation2 + $0xae] sm:$0xff]  ;;  %8772 = vst [vmem:[#allocation57_spill] sm:$0xff] %v5947_v0  ;;  %v8773_v35 = vld [vmem:[#allocation87_spill] sm:$0xff] }
 0x116   : > { %8769 = vst [vmem:[#allocation24_spill] sm:$0xff] %v5934_v7  ;;  %v1036_v48 = vmul.f32 %v5934_v7, %v5520_v19  ;;  %v1486_v15 = vadd.f32 %v1470_v60, %v1449_v41  ;;  %v5938_v47 = vld [vmem:[#allocation2 + $0x88] sm:$0xff]  ;;  %v5942_v56 = vld [vmem:[#allocation2 + $0x112] sm:$0xff]  ;;  %v2182_v2 = vmul.f32 %v5947_v0, %v8773_v35  ;;  %v5958_v41 = vld [vmem:[%s7846_s3 + $0x1d] ss:$0 sm:$0xff] }
 0x117   : > { %8770 = vst [vmem:[#allocation91_spill] sm:$0xff] %v5938_v47  ;;  %v1572_v17 = vmul.f32 %v5938_v47, %v5718_v26  ;;  %8771 = vst [vmem:[#allocation41_spill] sm:$0xff] %v5942_v56  ;;  %v2124_v51 = vadd.f32 %v2108_v27, %v2059_v28  ;;  %v1015_v52 = vadd.f32 %v999_v42, %v978_v31  ;;  %v5951_v39 = vld [vmem:[#allocation2 + $0xce] sm:$0xff]  ;;  %v8776_v27 = vld [vmem:[#allocation71_spill] sm:$0xff] }
 0x118   : > { %8774 = vst [vmem:[#allocation30_spill] sm:$0xff] %v5951_v39  ;;  %v1073_v60 = vmul.f32 %v5951_v39, %v5535_v38  ;;  %8775 = vst [vmem:[#allocation97_spill] sm:$0xff] %v5958_v41  ;;  %v2219_v28 = vmul.f32 %v5958_v41, %v8776_v27  ;;  %v5965_v47 = vld [vmem:[%s7846_s3 + $0x25] ss:$0 sm:$0xff]  ;;  %v8778_v35 = vld [vmem:[#allocation88_spill] sm:$0xff]  ;;  %v1551_v31 = vadd.f32 %v1535_v57, %v1486_v15 }
 0x119   : > { %8777 = vst [vmem:[#allocation42_spill] sm:$0xff] %v5965_v47  ;;  %v2256_v42 = vmul.f32 %v5965_v47, %v8778_v35  ;;  %v5969_v7 = vld [vmem:[#allocation2 + $0xa8] sm:$0xff]  ;;  %v2161_v11 = vadd.f32 %v2145_v1, %v2124_v51  ;;  %v8781_v27 = vld [vmem:[#allocation90_spill] sm:$0xff]  ;;  %v1052_v41 = vadd.f32 %v1036_v48, %v1015_v52  ;;  %v8783_v0 = vld [vmem:[#allocation45_spill] sm:$0xff] }
 0x11a   : > { %8779 = vst [vmem:[#allocation58_spill] sm:$0xff] %v5969_v7  ;;  %v1609_v39 = vmul.f32 %v5969_v7, %v5737_v4  ;;  %v2293_v43 = vmul.f32 %v5976_v25, %v8781_v27  ;;  %v5980_v26 = vld [vmem:[#allocation2 + $0x12e] sm:$0xff]  ;;  %v1110_v57 = vmul.f32 %v5552_v16, %v8783_v0  ;;  %v5994_v51 = vld [vmem:[%s7846_s3 + $0x6] ss:$0 sm:$0xff]  ;;  %v1588_v48 = vadd.f32 %v1572_v17, %v1551_v31  ;;  %v6016_v17 = vld [vmem:[%s7846_s3 + $0x16] ss:$0 sm:$0xff] }
 0x11b   : > { %8782 = vst [vmem:[#allocation100_spill] sm:$0xff] %v5980_v26  ;;  %v5987_v15 = vld [vmem:[%s7846_s3 + $0x35] ss:$0 sm:$0xff]  ;;  %8785 = vst [vmem:[#allocation109_spill] sm:$0xff] %v5994_v51  ;;  %v2395_v35 = vmul.f32 %v5994_v51, %v5335_v33  ;;  %v5998_v52 = vld [vmem:[#allocation2 + $0xc8] sm:$0xff]  ;;  %v2198_v27 = vadd.f32 %v2182_v2, %v2161_v11  ;;  %v6020_v11 = vmul.f32 %v6016_v17, %v8709_v6 }
 0x11c   : > { %8784 = vst [vmem:[#allocation69_spill] sm:$0xff] %v5987_v15  ;;  %v2330_v1 = vmul.f32 %v5987_v15, %v5942_v56  ;;  %8786 = vst [vmem:[#allocation52_spill] sm:$0xff] %v5998_v52  ;;  %v1646_v0 = vmul.f32 %v5998_v52, %v5752_v61  ;;  %v6005_v7 = vld [vmem:[%s7846_s3 + $0xe] ss:$0 sm:$0xff]  ;;  %v1089_v15 = vadd.f32 %v1073_v60, %v1052_v41  ;;  %v8788_v4 = vld [vmem:[#allocation83_spill] sm:$0xff] }
 0x11d   : > { %8787 = vst [vmem:[#allocation77_spill] sm:$0xff] %v6005_v7  ;;  %v6009_v56 = vmul.f32 %v6005_v7, %v5349_v5  ;;  %v1147_v33 = vmul.f32 %v5568_v53, %v8788_v4  ;;  %8789 = vst [vmem:[#allocation114_spill] sm:$0xff] %v6016_v17  ;;  %v1625_v2 = vadd.f32 %v1609_v39, %v1588_v48  ;;  %v6022_v31 = vld [vmem:[#allocation2 + $0xe8] sm:$0xff]  ;;  %v8793_v51 = vld [vmem:[#allocation9_spill] sm:$0xff] }
 0x11e   : > { %8790 = vst [vmem:[#allocation78_spill] sm:$0xff] %v6022_v31  ;;  %v1683_v5 = vmul.f32 %v6022_v31, %v5765_v13  ;;  %v1184_v60 = vmul.f32 %v5584_v23, %v5980_v26  ;;  %v2235_v41 = vadd.f32 %v2219_v28, %v2198_v27  ;;  %v6028_v4 = vld [vmem:[#allocation2 + $0x128] sm:$0xff]  ;;  %v1126_v52 = vadd.f32 %v1110_v57, %v1089_v15  ;;  %v8794_v39 = vld [vmem:[#allocation82_spill] sm:$0xff]  ;;  %v8795_v13 = vld [vmem:[#allocation27_spill] sm:$0xff] }
 0x11f   : > { %8791 = vst [vmem:[#allocation38_spill] sm:$0xff] %v6028_v4  ;;  %v8792_v7 = vld [vmem:[#allocation92_spill] sm:$0xff]  ;;  %v708_v6 = vmul.f32 %v8793_v51, %v5411_v10  ;;  %v1662_v17 = vadd.f32 %v1646_v0, %v1625_v2  ;;  %v1720_v48 = vmul.f32 %v5780_v49, %v8794_v39  ;;  %v746_v26 = vmul.f32 %v8795_v13, %v5418_v3  ;;  %v8796_v57 = vld [vmem:[#allocation21_spill] sm:$0xff] }
 0x120   : > { %v670_v61 = vmul.f32 %v8792_v7, %v5401_v30  ;;  %v3902_v53 = vld [vmem:[#allocation2 + $0x6f] sm:$0xff]  ;;  %v2272_v28 = vadd.f32 %v2256_v42, %v2235_v41  ;;  %v1163_v27 = vadd.f32 %v1147_v33, %v1126_v52  ;;  %v784_v15 = vmul.f32 %v8796_v57, %v5433_v24  ;;  %v6044_v7 = vld [vmem:[%s7846_s3 + $0x1e] ss:$0 sm:$0xff]  ;;  %v6059_v57 = vld [vmem:[%s7846_s3 + $0x26] ss:$0 sm:$0xff] }
 0x121   : > { %v1249_v31 = vmul.f32 %v3902_v53, %v5599_v14  ;;  %v2506_v0 = vmul.f32 %v6044_v7, %v5529_v20  ;;  %v1699_v2 = vadd.f32 %v1683_v5, %v1662_v17  ;;  %v1757_v53 = vmul.f32 %v5796_v63, %v6028_v4  ;;  %v6050_v51 = vld [vmem:[#allocation2 + $0x8f] sm:$0xff]  ;;  %v8799_v17 = vld [vmem:[#allocation70_spill] sm:$0xff] }
 0x122   : > { %v724_v23 = vadd.f32 %v708_v6, %v670_v61  ;;  %8797 = vst [vmem:[#allocation79_spill] sm:$0xff] %v6050_v51  ;;  %v1286_v61 = vmul.f32 %v6050_v51, %v5612_v45  ;;  %v2309_v42 = vadd.f32 %v2293_v43, %v2272_v28  ;;  %v1200_v52 = vadd.f32 %v1184_v60, %v1163_v27  ;;  %v8798_v41 = vld [vmem:[#allocation121_spill] sm:$0xff] }
 0x123   : > { %v822_v6 = vmul.f32 %v5446_v22, %v8798_v41  ;;  %v2543_v5 = vmul.f32 %v6059_v57, %v8799_v17  ;;  %v1736_v20 = vadd.f32 %v1720_v48, %v1699_v2  ;;  %v3906_v13 = vld [vmem:[#allocation2 + $0x69] sm:$0xff]  ;;  %v6070_v60 = vld [vmem:[#allocation2 + $0x113] sm:$0xff] }
 0x124   : > { %v762_v33 = vadd.f32 %v746_v26, %v724_v23  ;;  %v1822_v4 = vmul.f32 %v3906_v13, %v5811_v36  ;;  %v6064_v39 = vld [vmem:[#allocation2 + $0xaf] sm:$0xff]  ;;  %v6068_v23 = vld [vmem:[#allocation2 + $0x145] sm:$0xff]  ;;  %v2346_v26 = vadd.f32 %v2330_v1, %v2309_v42  ;;  %8802 = vst [vmem:[#allocation20_spill] sm:$0xff] %v6070_v60  ;;  %v1265_v28 = vadd.f32 %v1249_v31, %v1200_v52  ;;  %v8803_v41 = vld [vmem:[#allocation10_spill] sm:$0xff] }
 0x125   : > { %8800 = vst [vmem:[#allocation56_spill] sm:$0xff] %v6064_v39  ;;  %v1323_v43 = vmul.f32 %v6064_v39, %v5627_v37  ;;  %8801 = vst [vmem:[#allocation43_spill] sm:$0xff] %v6068_v23  ;;  %v860_v51 = vmul.f32 %v5463_v59, %v8803_v41  ;;  %v6077_v48 = vld [vmem:[%s7846_s3 + $0x2e] ss:$0 sm:$0xff]  ;;  %v1773_v2 = vadd.f32 %v1757_v53, %v1736_v20  ;;  %v6085_v42 = vld [vmem:[#allocation2 + $0xcf] sm:$0xff] }
 0x126   : > { %v800_v27 = vadd.f32 %v784_v15, %v762_v33  ;;  %v2580_v13 = vmul.f32 %v6077_v48, %v5722_v54  ;;  %v6081_v17 = vld [vmem:[#allocation2 + $0x89] sm:$0xff]  ;;  %8805 = vst [vmem:[#allocation51_spill] sm:$0xff] %v6085_v42  ;;  %v1360_v31 = vmul.f32 %v6085_v42, %v5646_v62  ;;  %v2411_v15 = vadd.f32 %v2395_v35, %v2346_v26  ;;  %v6094_v20 = vld [vmem:[%s7846_s3 + $0x36] ss:$0 sm:$0xff] }
 0x127   : > { %8804 = vst [vmem:[#allocation85_spill] sm:$0xff] %v6081_v17  ;;  %v1859_v1 = vmul.f32 %v6081_v17, %v5818_v46  ;;  %v1302_v52 = vadd.f32 %v1286_v61, %v1265_v28  ;;  %v898_v41 = vmul.f32 %v5476_v34, %v6068_v23  ;;  %8806 = vst [vmem:[#allocation115_spill] sm:$0xff] %v6094_v20  ;;  %v6098_v17 = vld [vmem:[#allocation2 + $0xa9] sm:$0xff] }
 0x128   : > { %v838_v33 = vadd.f32 %v822_v6, %v800_v27  ;;  %v2617_v53 = vmul.f32 %v6094_v20, %v6070_v60  ;;  %v1838_v54 = vadd.f32 %v1822_v4, %v1773_v2  ;;  %8807 = vst [vmem:[#allocation55_spill] sm:$0xff] %v6098_v17  ;;  %v1896_v42 = vmul.f32 %v6098_v17, %v5843_v32  ;;  %v8808_v35 = vld [vmem:[#allocation101_spill] sm:$0xff] }
 0x129   : > { %v1397_v61 = vmul.f32 %v5661_v29, %v8808_v35  ;;  %v2448_v6 = vadd.f32 %v6009_v56, %v2411_v15  ;;  %v6105_v26 = vld [vmem:[#allocation2 + $0x129] sm:$0xff]  ;;  %v1339_v27 = vadd.f32 %v1323_v43, %v1302_v52  ;;  %v8814_v15 = vld [vmem:[#allocation94_spill] sm:$0xff] }
 0x12a   : > { %8809 = vst [vmem:[#allocation60_spill] sm:$0xff] %v6105_v26  ;;  %v6107_v28 = vld [vmem:[#allocation2 + $0x12f] sm:$0xff]  ;;  %v876_v23 = vadd.f32 %v860_v51, %v838_v33  ;;  %v1875_v4 = vadd.f32 %v1859_v1, %v1838_v54  ;;  %v1434_v35 = vmul.f32 %v5678_v18, %v8814_v15 }
 0x12b   : > { %8810 = vst [vmem:[#allocation61_spill] sm:$0xff] %v6107_v28  ;;  %v8811_v39 = vld [vmem:[#allocation29_spill] sm:$0xff]  ;;  %v2485_v43 = vadd.f32 %v6020_v11, %v2448_v6  ;;  %v1376_v51 = vadd.f32 %v1360_v31, %v1339_v27  ;;  %v8818_v11 = vld [vmem:[#allocation46_spill] sm:$0xff] }
 0x12c   : > { %v963_v60 = vmul.f32 %v8811_v39, %v5490_v50  ;;  %v6111_v2 = vld [vmem:[#allocation2 + $0xc9] sm:$0xff]  ;;  %v914_v52 = vadd.f32 %v898_v41, %v876_v23  ;;  %v1912_v1 = vadd.f32 %v1896_v42, %v1875_v4  ;;  %v8817_v50 = vld [vmem:[#allocation35_spill] sm:$0xff]  ;;  %v1037_v31 = vmul.f32 %v8818_v11, %v5520_v19 }
 0x12d   : > { %8812 = vst [vmem:[#allocation37_spill] sm:$0xff] %v6111_v2  ;;  %v1933_v17 = vmul.f32 %v6111_v2, %v5860_v12  ;;  %v6115_v32 = vld [vmem:[#allocation2 + $0xe9] sm:$0xff]  ;;  %v2044_v2 = vmul.f32 %v5903_v8, %v6105_v26  ;;  %v1413_v12 = vadd.f32 %v1397_v61, %v1376_v51 }
 0x12e   : > { %8813 = vst [vmem:[#allocation18_spill] sm:$0xff] %v6115_v32  ;;  %v1970_v56 = vmul.f32 %v6115_v32, %v5877_v9  ;;  %v8815_v39 = vld [vmem:[#allocation96_spill] sm:$0xff]  ;;  %v8816_v33 = vld [vmem:[#allocation13_spill] sm:$0xff]  ;;  %v1471_v32 = vmul.f32 %v5693_v21, %v6107_v28  ;;  %v2522_v9 = vadd.f32 %v2506_v0, %v2485_v43  ;;  %v979_v15 = vadd.f32 %v963_v60, %v914_v52 }
 0x12f   : > { %v1000_v54 = vmul.f32 %v8815_v39, %v5505_v55  ;;  %v2007_v34 = vmul.f32 %v8817_v50, %v8816_v33  ;;  %v1949_v23 = vadd.f32 %v1933_v17, %v1912_v1  ;;  %v3915_v41 = vld [vmem:[#allocation2 + $0x6a] sm:$0xff]  ;;  %v1450_v39 = vadd.f32 %v1434_v35, %v1413_v12  ;;  %v8828_v35 = vld [vmem:[#allocation74_spill] sm:$0xff] }
 0x130   : > { %v2109_v6 = vmul.f32 %v3915_v41, %v5916_v40  ;;  %v6133_v42 = vld [vmem:[#allocation2 + $0x8a] sm:$0xff]  ;;  %v2559_v33 = vadd.f32 %v2543_v5, %v2522_v9 }
 0x131   : > { %8819 = vst [vmem:[#allocation68_spill] sm:$0xff] %v6133_v42  ;;  %v2146_v27 = vmul.f32 %v6133_v42, %v5930_v44  ;;  %v3917_v4 = vld [vmem:[#allocation2 + $0x70] sm:$0xff]  ;;  %v1016_v0 = vadd.f32 %v1000_v54, %v979_v15  ;;  %v1986_v43 = vadd.f32 %v1970_v56, %v1949_v23  ;;  %v1487_v15 = vadd.f32 %v1471_v32, %v1450_v39  ;;  %v6168_v32 = vld [vmem:[#allocation2 + $0x146] sm:$0xff] }
 0x132   : > { %v1536_v26 = vmul.f32 %v3917_v4, %v5706_v58  ;;  %v8820_v60 = vld [vmem:[#allocation17_spill] sm:$0xff]  ;;  %v8826_v4 = vld [vmem:[#allocation28_spill] sm:$0xff]  ;;  %v2596_v9 = vadd.f32 %v2580_v13, %v2559_v33  ;;  %v1111_v54 = vmul.f32 %v5552_v16, %v8828_v35  ;;  %v8832_v13 = vld [vmem:[#allocation31_spill] sm:$0xff]  ;;  %8833 = vst [vmem:[#allocation81_spill] sm:$0xff] %v6168_v32 }
 0x133   : > { %v1074_v61 = vmul.f32 %v8820_v60, %v5535_v38  ;;  %v6140_v51 = vld [vmem:[#allocation2 + $0xaa] sm:$0xff]  ;;  %v1053_v56 = vadd.f32 %v1037_v31, %v1016_v0  ;;  %v2023_v23 = vadd.f32 %v2007_v34, %v1986_v43 }
 0x134   : > { %8821 = vst [vmem:[#allocation72_spill] sm:$0xff] %v6140_v51  ;;  %v8822_v17 = vld [vmem:[#allocation57_spill] sm:$0xff]  ;;  %v2633_v39 = vadd.f32 %v2617_v53, %v2596_v9  ;;  %v1552_v31 = vadd.f32 %v1536_v26, %v1487_v15  ;;  %v8834_v34 = vld [vmem:[#allocation32_spill] sm:$0xff] }
 0x135   : > { %v2183_v52 = vmul.f32 %v6140_v51, %v8822_v17  ;;  %v6144_v1 = vld [vmem:[#allocation2 + $0xca] sm:$0xff]  ;;  %v1090_v0 = vadd.f32 %v1074_v61, %v1053_v56 }
 0x136   : > { %8823 = vst [vmem:[#allocation99_spill] sm:$0xff] %v6144_v1  ;;  %v8824_v41 = vld [vmem:[#allocation97_spill] sm:$0xff] }
 0x137   : > { %v2220_v42 = vmul.f32 %v6144_v1, %v8824_v41  ;;  %v6148_v11 = vld [vmem:[#allocation2 + $0x90] sm:$0xff]  ;;  %v8830_v1 = vld [vmem:[#allocation11_spill] sm:$0xff]  ;;  %v1127_v9 = vadd.f32 %v1111_v54, %v1090_v0 }
 0x138   : > { %8825 = vst [vmem:[#allocation73_spill] sm:$0xff] %v6148_v11  ;;  %v1573_v12 = vmul.f32 %v6148_v11, %v8826_v4  ;;  %v6152_v5 = vld [vmem:[#allocation2 + $0x12a] sm:$0xff]  ;;  %v6162_v28 = vmul.f32 %v5976_v25, %v8830_v1  ;;  %v2060_v11 = vadd.f32 %v2044_v2, %v2023_v23 }
 0x139   : > { %8827 = vst [vmem:[#allocation76_spill] sm:$0xff] %v6152_v5  ;;  %v6156_v51 = vld [vmem:[#allocation2 + $0xea] sm:$0xff] }
 0x13a   : > { %8829 = vst [vmem:[#allocation107_spill] sm:$0xff] %v6156_v51  ;;  %v2257_v60 = vmul.f32 %v6156_v51, %v5965_v47  ;;  %v6164_v41 = vld [vmem:[#allocation2 + $0xb0] sm:$0xff]  ;;  %v1589_v61 = vadd.f32 %v1573_v12, %v1552_v31  ;;  %v2125_v56 = vadd.f32 %v2109_v6, %v2060_v11 }
 0x13b   : > { %8831 = vst [vmem:[#allocation19_spill] sm:$0xff] %v6164_v41  ;;  %v1610_v33 = vmul.f32 %v6164_v41, %v8832_v13  ;;  %v8835_v43 = vld [vmem:[#allocation113_spill] sm:$0xff]  ;;  %v8839_v41 = vld [vmem:[#allocation12_spill] sm:$0xff] }
 0x13c   : > { %v1148_v35 = vmul.f32 %v8835_v43, %v8834_v34  ;;  %v8836_v51 = vld [vmem:[#allocation69_spill] sm:$0xff]  ;;  %v8845_v34 = vld [vmem:[#allocation14_spill] sm:$0xff]  ;;  %v2162_v6 = vadd.f32 %v2146_v27, %v2125_v56 }
 0x13d   : > { %v6174_v16 = vmul.f32 %v8836_v51, %v6152_v5  ;;  %v3923_v1 = vld [vmem:[#allocation2 + $0x6b] sm:$0xff]  ;;  %v1626_v54 = vadd.f32 %v1610_v33, %v1589_v61  ;;  %v8854_v61 = vld [vmem:[#allocation54_spill] sm:$0xff] }
 0x13e   : > { %v8837_v25 = vld [vmem:[#allocation109_spill] sm:$0xff] }
 0x13f   : > { %v6177_v47 = vmul.f32 %v3923_v1, %v8837_v25  ;;  %v6179_v38 = vld [vmem:[#allocation2 + $0xd0] sm:$0xff]  ;;  %v8846_v25 = vld [vmem:[#allocation47_spill] sm:$0xff] }
 0x140   : > { %8838 = vst [vmem:[#allocation108_spill] sm:$0xff] %v6179_v38  ;;  %v1647_v13 = vmul.f32 %v6179_v38, %v8839_v41  ;;  %v8840_v53 = vld [vmem:[#allocation89_spill] sm:$0xff]  ;;  %v1684_v43 = vmul.f32 %v8846_v25, %v8845_v34  ;;  %v8847_v38 = vld [vmem:[#allocation39_spill] sm:$0xff] }
 0x141   : > { %v6184_v26 = vadd.f32 %v8840_v53, %v2633_v39  ;;  %v8842_v2 = vld [vmem:[#allocation93_spill] sm:$0xff]  ;;  %v1250_v51 = vmul.f32 %v8847_v38, %v5599_v14  ;;  %v1164_v39 = vadd.f32 %v1148_v35, %v1127_v9  ;;  %v8850_v53 = vld [vmem:[#allocation114_spill] sm:$0xff]  ;;  %v8852_v38 = vld [vmem:[#allocation44_spill] sm:$0xff] }
 0x142   : > { %v1185_v15 = vmul.f32 %v8842_v2, %v6168_v32  ;;  %v6188_v23 = vld [vmem:[#allocation2 + $0x8b] sm:$0xff]  ;;  %v709_v32 = vmul.f32 %v8852_v38, %v5411_v10  ;;  %v1663_v35 = vadd.f32 %v1647_v13, %v1626_v54 }
 0x143   : > { %8841 = vst [vmem:[#allocation65_spill] sm:$0xff] %v6184_v26  ;;  %8843 = vst [vmem:[#allocation84_spill] sm:$0xff] %v6188_v23  ;;  %v8844_v5 = vld [vmem:[#allocation77_spill] sm:$0xff]  ;;  %v2682_v12 = vsel %vm512_vm0, %v6184_v26, 0.0  ;;  %v8853_v26 = vld [vmem:[#allocation48_spill] sm:$0xff] }
 0x144   : > { %v6192_v1 = vmul.f32 %v6188_v23, %v8844_v5  ;;  %v8848_v31 = vld [vmem:[#allocation33_spill] sm:$0xff]  ;;  %2683 = vadd.xlane.f32.xlu1 %v2682_v12  ;;  %v747_v33 = vmul.f32 %v8853_v26, %v5418_v3  ;;  %v1201_v9 = vadd.f32 %v1185_v15, %v1164_v39  ;;  %v2199_v12 = vadd.f32 %v2183_v52, %v2162_v6 }
 0x145   : > { %v671_v11 = vmul.f32 %v8848_v31, %v5401_v30  ;;  %v6202_v0 = vld [vmem:[#allocation2 + $0xab] sm:$0xff]  ;;  %v1721_v30 = vmul.f32 %v5780_v49, %v8854_v61  ;;  %v1700_v13 = vadd.f32 %v1684_v43, %v1663_v35 }
 0x146   : > { %8849 = vst [vmem:[#allocation25_spill] sm:$0xff] %v6202_v0  ;;  %v6206_v23 = vmul.f32 %v6202_v0, %v8850_v53  ;;  %v6208_v34 = vld [vmem:[#allocation2 + $0x130] sm:$0xff]  ;;  %v1266_v54 = vadd.f32 %v1250_v51, %v1201_v9  ;;  %v2236_v6 = vadd.f32 %v2220_v42, %v2199_v12 }
 0x147   : > { %8851 = vst [vmem:[#allocation16_spill] sm:$0xff] %v6208_v34  ;;  %v8855_v27 = vld [vmem:[#allocation117_spill] sm:$0xff]  ;;  %v725_v53 = vadd.f32 %v709_v32, %v671_v11  ;;  %v1758_v15 = vmul.f32 %v5796_v63, %v6208_v34  ;;  %v1737_v43 = vadd.f32 %v1721_v30, %v1700_v13  ;;  %v8878_v34 = vld [vmem:[#allocation80_spill] sm:$0xff] }
 0x148   : > { %v1287_v56 = vmul.f32 %v8855_v27, %v5612_v45  ;;  %v6218_v31 = vld [vmem:[#allocation2 + $0xcb] sm:$0xff] }
 0x149   : > { %8856 = vst [vmem:[#allocation118_spill] sm:$0xff] %v6218_v31  ;;  %v6222_v0 = vmul.f32 %v6218_v31, %v6044_v7  ;;  %v6224_v10 = vld [vmem:[#allocation2 + $0xed] sm:$0xff]  ;;  %v763_v32 = vadd.f32 %v747_v33, %v725_v53  ;;  %v8865_v33 = vld [vmem:[#allocation22_spill] sm:$0xff]  ;;  %v1774_v13 = vadd.f32 %v1758_v15, %v1737_v43 }
 0x14a   : > { %8857 = vst [vmem:[#allocation119_spill] sm:$0xff] %v6224_v10  ;;  %v785_v3 = vmul.f32 %v6224_v10, %v5433_v24  ;;  %v8858_v39 = vld [vmem:[#allocation49_spill] sm:$0xff]  ;;  %v1303_v9 = vadd.f32 %v1287_v56, %v1266_v54  ;;  %v6243_v10 = vld [vmem:[#allocation2 + $0xe7] sm:$0xff]  ;;  %v861_v30 = vmul.f32 %v5463_v59, %v8865_v33 }
 0x14b   : > { %v1324_v52 = vmul.f32 %v8858_v39, %v5627_v37  ;;  %v6232_v26 = vld [vmem:[#allocation2 + $0xeb] sm:$0xff]  ;;  %8862 = vst [vmem:[#allocation103_spill] sm:$0xff] %v6243_v10  ;;  %v1361_v42 = vmul.f32 %v6243_v10, %v5646_v62  ;;  %v8864_v39 = vld [vmem:[#allocation67_spill] sm:$0xff] }
 0x14c   : > { %8859 = vst [vmem:[#allocation98_spill] sm:$0xff] %v6232_v26  ;;  %v6236_v31 = vmul.f32 %v6232_v26, %v6059_v57  ;;  %v8860_v11 = vld [vmem:[#allocation105_spill] sm:$0xff]  ;;  %v2273_v26 = vadd.f32 %v2257_v60, %v2236_v6  ;;  %v6251_v53 = vmul.f32 %v6077_v48, %v8864_v39  ;;  %v8871_v33 = vld [vmem:[#allocation116_spill] sm:$0xff] }
 0x14d   : > { %v823_v38 = vmul.f32 %v5446_v22, %v8860_v11  ;;  %v6240_v24 = vld [vmem:[#allocation2 + $0x12b] sm:$0xff]  ;;  %v801_v22 = vadd.f32 %v785_v3, %v763_v32  ;;  %v1340_v54 = vadd.f32 %v1324_v52, %v1303_v9 }
 0x14e   : > { %8861 = vst [vmem:[#allocation102_spill] sm:$0xff] %v6240_v24  ;;  %v3930_v35 = vld [vmem:[#allocation2 + $0x71] sm:$0xff]  ;;  %v2310_v60 = vadd.f32 %v6162_v28, %v2273_v26  ;;  %v6264_v6 = vmul.f32 %v6094_v20, %v6240_v24  ;;  %v6266_v3 = vld [vmem:[#allocation2 + $0x147] sm:$0xff] }
 0x14f   : > { %v1823_v51 = vmul.f32 %v3930_v35, %v5811_v36  ;;  %v6247_v12 = vld [vmem:[#allocation2 + $0x14d] sm:$0xff]  ;;  %8868 = vst [vmem:[#allocation111_spill] sm:$0xff] %v6266_v3  ;;  %v839_v32 = vadd.f32 %v823_v38, %v801_v22  ;;  %v1377_v9 = vadd.f32 %v1361_v42, %v1340_v54 }
 0x150   : > { %8863 = vst [vmem:[#allocation110_spill] sm:$0xff] %v6247_v12  ;;  %v6255_v11 = vld [vmem:[#allocation2 + $0x91] sm:$0xff]  ;;  %v8867_v35 = vld [vmem:[#allocation104_spill] sm:$0xff]  ;;  %v2347_v26 = vadd.f32 %v6174_v16, %v2310_v60 }
 0x151   : > { %8866 = vst [vmem:[#allocation26_spill] sm:$0xff] %v6255_v11  ;;  %v1860_v56 = vmul.f32 %v6255_v11, %v5818_v46  ;;  %v1398_v10 = vmul.f32 %v5661_v29, %v8867_v35  ;;  %v8869_v59 = vld [vmem:[#allocation5_spill] sm:$0xff]  ;;  %v1839_v43 = vadd.f32 %v1823_v51, %v1774_v13  ;;  %v8872_v35 = vld [vmem:[#allocation23_spill] sm:$0xff]  ;;  %v8875_v38 = vld [vmem:[#allocation120_spill] sm:$0xff] }
 0x152   : > { %v899_v15 = vmul.f32 %v8869_v59, %v6247_v12  ;;  %v6270_v39 = vld [vmem:[#allocation2 + $0xb1] sm:$0xff]  ;;  %v1435_v28 = vmul.f32 %v5678_v18, %v8872_v35  ;;  %v877_v59 = vadd.f32 %v861_v30, %v839_v32  ;;  %v8877_v13 = vld [vmem:[#allocation64_spill] sm:$0xff]  ;;  %v1472_v35 = vmul.f32 %v5693_v21, %v6266_v3  ;;  %v8899_v3 = vld [vmem:[#allocation15_spill] sm:$0xff] }
 0x153   : > { %8870 = vst [vmem:[#allocation122_spill] sm:$0xff] %v6270_v39  ;;  %v1897_v52 = vmul.f32 %v6270_v39, %v8871_v33  ;;  %v6277_v24 = vld [vmem:[#allocation2 + $0x131] sm:$0xff]  ;;  %v1876_v27 = vadd.f32 %v1860_v56, %v1839_v43  ;;  %v8879_v39 = vld [vmem:[#allocation63_spill] sm:$0xff]  ;;  %v1414_v54 = vadd.f32 %v1398_v10, %v1377_v9  ;;  %v2412_v16 = vadd.f32 %v6177_v47, %v2347_v26 }
 0x154   : > { %8873 = vst [vmem:[#allocation40_spill] sm:$0xff] %v6277_v24  ;;  %v6279_v11 = vld [vmem:[#allocation2 + $0xd1] sm:$0xff]  ;;  %v1971_v42 = vmul.f32 %v8879_v39, %v8878_v34  ;;  %v915_v20 = vadd.f32 %v899_v15, %v877_v59  ;;  %v2045_v56 = vmul.f32 %v5903_v8, %v6277_v24  ;;  %v8882_v34 = vld [vmem:[#allocation91_spill] sm:$0xff] }
 0x155   : > { %8874 = vst [vmem:[#allocation123_spill] sm:$0xff] %v6279_v11  ;;  %v1934_v22 = vmul.f32 %v6279_v11, %v8875_v38  ;;  %v8876_v51 = vld [vmem:[#allocation106_spill] sm:$0xff]  ;;  %v8881_v11 = vld [vmem:[#allocation24_spill] sm:$0xff]  ;;  %v1913_v32 = vadd.f32 %v1897_v52, %v1876_v27  ;;  %v1451_v43 = vadd.f32 %v1435_v28, %v1414_v54  ;;  %v1537_v10 = vmul.f32 %v8882_v34, %v5706_v58 }
 0x156   : > { %v964_v12 = vmul.f32 %v8877_v13, %v8876_v51  ;;  %v8880_v60 = vld [vmem:[#allocation50_spill] sm:$0xff]  ;;  %v1001_v30 = vmul.f32 %v8881_v11, %v5505_v55  ;;  %v2449_v9 = vadd.f32 %v6192_v1, %v2412_v16  ;;  %v6313_v16 = vld [vmem:[#allocation2 + $0xee] sm:$0xff] }
 0x157   : > { %v2008_v61 = vmul.f32 %v8817_v50, %v8880_v60  ;;  %v3935_v51 = vld [vmem:[#allocation2 + $0x72] sm:$0xff]  ;;  %v1950_v59 = vadd.f32 %v1934_v22, %v1913_v32  ;;  %v1488_v27 = vadd.f32 %v1472_v35, %v1451_v43  ;;  %8887 = vst [vmem:[#allocation6_spill] sm:$0xff] %v6313_v16 }
 0x158   : > { %v2110_v47 = vmul.f32 %v3935_v51, %v5916_v40  ;;  %v980_v26 = vadd.f32 %v964_v12, %v915_v20  ;;  %v8883_v13 = vld [vmem:[#allocation30_spill] sm:$0xff]  ;;  %v2486_v54 = vadd.f32 %v6206_v23, %v2449_v9  ;;  %v8891_v43 = vld [vmem:[#allocation97_spill] sm:$0xff]  ;;  %v8892_v9 = vld [vmem:[#allocation31_spill] sm:$0xff] }
 0x159   : > { %v1038_v15 = vmul.f32 %v8883_v13, %v5520_v19  ;;  %v6302_v60 = vld [vmem:[#allocation2 + $0x92] sm:$0xff]  ;;  %v8888_v19 = vld [vmem:[#allocation7_spill] sm:$0xff]  ;;  %v1987_v32 = vadd.f32 %v1971_v42, %v1950_v59  ;;  %v1553_v23 = vadd.f32 %v1537_v10, %v1488_v27  ;;  %v8897_v42 = vld [vmem:[#allocation112_spill] sm:$0xff] }
 0x15a   : > { %8884 = vst [vmem:[#allocation34_spill] sm:$0xff] %v6302_v60  ;;  %v2147_v55 = vmul.f32 %v6302_v60, %v5930_v44  ;;  %v8885_v52 = vld [vmem:[#allocation58_spill] sm:$0xff]  ;;  %v1017_v12 = vadd.f32 %v1001_v30, %v980_v26  ;;  %v1075_v22 = vmul.f32 %v6313_v16, %v8888_v19  ;;  %v8893_v60 = vld [vmem:[#allocation52_spill] sm:$0xff]  ;;  %v8896_v19 = vld [vmem:[#allocation83_spill] sm:$0xff] }
 0x15b   : > { %v1574_v28 = vmul.f32 %v8885_v52, %v8826_v4  ;;  %v6309_v1 = vld [vmem:[#allocation2 + $0xb2] sm:$0xff]  ;;  %v1611_v52 = vmul.f32 %v8893_v60, %v8892_v9  ;;  %v1112_v59 = vmul.f32 %v8897_v42, %v8896_v19  ;;  %v2024_v16 = vadd.f32 %v2008_v61, %v1987_v32 }
 0x15c   : > { %8886 = vst [vmem:[#allocation8_spill] sm:$0xff] %v6309_v1  ;;  %v2184_v20 = vmul.f32 %v6309_v1, %v8822_v17  ;;  %v6317_v34 = vld [vmem:[#allocation2 + $0x132] sm:$0xff]  ;;  %v2523_v1 = vadd.f32 %v6222_v0, %v2486_v54  ;;  %v1054_v13 = vadd.f32 %v1038_v15, %v1017_v12  ;;  %v8903_v12 = vld [vmem:[#allocation100_spill] sm:$0xff] }
 0x15d   : > { %8889 = vst [vmem:[#allocation66_spill] sm:$0xff] %v6317_v34  ;;  %v6319_v35 = vld [vmem:[#allocation2 + $0xd2] sm:$0xff]  ;;  %v2061_v32 = vadd.f32 %v2045_v56, %v2024_v16 }
 0x15e   : > { %8890 = vst [vmem:[#allocation36_spill] sm:$0xff] %v6319_v35  ;;  %v2221_v51 = vmul.f32 %v6319_v35, %v8891_v43  ;;  %v8894_v30 = vld [vmem:[#allocation90_spill] sm:$0xff]  ;;  %v8898_v11 = vld [vmem:[#allocation41_spill] sm:$0xff]  ;;  %v1590_v35 = vadd.f32 %v1574_v28, %v1553_v23  ;;  %v2560_v0 = vadd.f32 %v6236_v31, %v2523_v1  ;;  %v1091_v15 = vadd.f32 %v1075_v22, %v1054_v13  ;;  %v6353_v31 = vld [vmem:[#allocation2 + $0x148] sm:$0xff] }
 0x15f   : > { %v8895_v26 = vld [vmem:[#allocation42_spill] sm:$0xff]  ;;  %v6334_v17 = vmul.f32 %v8899_v3, %v8898_v11  ;;  %v6338_v60 = vld [vmem:[#allocation2 + $0x14e] sm:$0xff]  ;;  %8907 = vst [vmem:[#allocation71_spill] sm:$0xff] %v6353_v31  ;;  %v2126_v56 = vadd.f32 %v2110_v47, %v2061_v32  ;;  %v8911_v47 = vld [vmem:[#allocation27_spill] sm:$0xff] }
 0x160   : > { %v6328_v24 = vmul.f32 %v8895_v26, %v8894_v30  ;;  %v8900_v10 = vld [vmem:[#allocation78_spill] sm:$0xff]  ;;  %8901 = vst [vmem:[#allocation87_spill] sm:$0xff] %v6338_v60  ;;  %v8902_v54 = vld [vmem:[#allocation69_spill] sm:$0xff]  ;;  %v1627_v28 = vadd.f32 %v1611_v52, %v1590_v35  ;;  %v2597_v26 = vadd.f32 %v6251_v53, %v2560_v0  ;;  %v1128_v13 = vadd.f32 %v1112_v59, %v1091_v15  ;;  %v6364_v52 = vld [vmem:[%s7846_s3] ss:$0 sm:$0xff] }
 0x161   : > { %v1648_v27 = vmul.f32 %v8900_v10, %v8839_v41  ;;  %v6343_v30 = vmul.f32 %v8902_v54, %v6317_v34  ;;  %v8904_v19 = vld [vmem:[#allocation113_spill] sm:$0xff]  ;;  %v8906_v23 = vld [vmem:[#allocation82_spill] sm:$0xff]  ;;  %v1186_v22 = vmul.f32 %v8842_v2, %v6338_v60  ;;  %v6372_v2 = vld [vmem:[%s7846_s3 + $0x8] ss:$0 sm:$0xff]  ;;  %v2163_v32 = vadd.f32 %v2147_v55, %v2126_v56 }
 0x162   : > { %v1149_v61 = vmul.f32 %v8904_v19, %v8903_v12  ;;  %v3940_v42 = vld [vmem:[#allocation2 + $0x73] sm:$0xff]  ;;  %v1685_v10 = vmul.f32 %v8846_v25, %v8906_v23  ;;  %v8909_v19 = vld [vmem:[#allocation79_spill] sm:$0xff]  ;;  %v2634_v0 = vadd.f32 %v6264_v6, %v2597_v26  ;;  %v710_v59 = vmul.f32 %v6372_v2, %v8911_v47  ;;  %v8913_v26 = vld [vmem:[#allocation56_spill] sm:$0xff] }
 0x163   : > { %v8905_v11 = vld [vmem:[#allocation109_spill] sm:$0xff]  ;;  %v8908_v1 = vld [vmem:[#allocation38_spill] sm:$0xff]  ;;  %v1664_v16 = vadd.f32 %v1648_v27, %v1627_v28  ;;  %v1759_v6 = vmul.f32 %v5796_v63, %v6353_v31  ;;  %v2200_v56 = vadd.f32 %v2184_v20, %v2163_v32  ;;  %v8941_v60 = vld [vmem:[#allocation60_spill] sm:$0xff] }
 0x164   : > { %v6348_v3 = vmul.f32 %v3940_v42, %v8905_v11  ;;  %v1722_v34 = vmul.f32 %v5780_v49, %v8908_v1  ;;  %v1251_v42 = vmul.f32 %v8909_v19, %v5599_v14  ;;  %v8910_v53 = vld [vmem:[#allocation9_spill] sm:$0xff]  ;;  %v1165_v23 = vadd.f32 %v1149_v61, %v1128_v13  ;;  %v6390_v13 = vld [vmem:[%s7847_s4] ss:$0 sm:$0xff]  ;;  %v6398_v55 = vld [vmem:[%s7846_s3 + $0x18] ss:$0 sm:$0xff] }
 0x165   : > { %v672_v35 = vmul.f32 %v6364_v52, %v8910_v53  ;;  %v6379_v14 = vld [vmem:[%s7846_s3 + $0x10] ss:$0 sm:$0xff]  ;;  %v1701_v28 = vadd.f32 %v1685_v10, %v1664_v16  ;;  %v1288_v61 = vmul.f32 %v8913_v26, %v5612_v45  ;;  %8914 = vst [vmem:[#allocation88_spill] sm:$0xff] %v6390_v13  ;;  %v6393_v19 = vadd.f32 %v6390_v13, %v2634_v0  ;;  %v6400_v10 = vld [vmem:[#allocation2 + $0x105] sm:$0xff]  ;;  %v8919_v1 = vld [vmem:[#allocation10_spill] sm:$0xff] }
 0x166   : > { %v8912_v27 = vld [vmem:[#allocation21_spill] sm:$0xff]  ;;  %v1202_v53 = vadd.f32 %v1186_v22, %v1165_v23  ;;  %8916 = vst [vmem:[#allocation92_spill] sm:$0xff] %v6400_v10  ;;  %v786_v45 = vmul.f32 %v6400_v10, %v6398_v55  ;;  %v8918_v0 = vld [vmem:[#allocation51_spill] sm:$0xff] }
 0x167   : > { %v748_v15 = vmul.f32 %v6379_v14, %v8912_v27  ;;  %8915 = vst [vmem:[#allocation45_spill] sm:$0xff] %v6393_v19  ;;  %v726_v47 = vadd.f32 %v710_v59, %v672_v35  ;;  %v1738_v16 = vadd.f32 %v1722_v34, %v1701_v28  ;;  %v8917_v27 = vld [vmem:[#allocation85_spill] sm:$0xff]  ;;  %v1325_v31 = vmul.f32 %v8918_v0, %v5627_v37  ;;  %v6413_v59 = vld [vmem:[%s7846_s3 + $0x20] ss:$0 sm:$0xff] }
 0x168   : > { %v1824_v26 = vmul.f32 %v8917_v27, %v5811_v36  ;;  %v2685_v22 = vsel %vm512_vm0, %v6393_v19, 0.0  ;;  %v1267_v35 = vadd.f32 %v1251_v42, %v1202_v53  ;;  %v824_v20 = vmul.f32 %v6413_v59, %v8919_v1  ;;  %v6417_v32 = vld [vmem:[#allocation2 + $0x93] sm:$0xff]  ;;  %v8921_v27 = vld [vmem:[#allocation55_spill] sm:$0xff]  ;;  %v6556_v12 = vld [vmem:[%s7846_s3 + $0x31] ss:$0 sm:$0xff] }
 0x169   : > { %v764_v23 = vadd.f32 %v748_v15, %v726_v47  ;;  %2686 = vadd.xlane.f32.xlu0 %v2685_v22  ;;  %v2237_v34 = vadd.f32 %v2221_v51, %v2200_v56  ;;  %8920 = vst [vmem:[#allocation121_spill] sm:$0xff] %v6417_v32  ;;  %v2434_v37 = vmul.f32 %v6417_v32, %v8844_v5  ;;  %v6423_v15 = vld [vmem:[#allocation2 + $0x165] sm:$0xff]  ;;  %v6425_v47 = vld [vmem:[#allocation2 + $0xef] sm:$0xff]  ;;  %v8926_v32 = vld [vmem:[#allocation114_spill] sm:$0xff] }
 0x16a   : > { %v1775_v28 = vadd.f32 %v1759_v6, %v1738_v16  ;;  %v1861_v42 = vmul.f32 %v8921_v27, %v5818_v46  ;;  %8922 = vst [vmem:[#allocation101_spill] sm:$0xff] %v6423_v15  ;;  %v1304_v53 = vadd.f32 %v1288_v61, %v1267_v35  ;;  %8923 = vst [vmem:[#allocation29_spill] sm:$0xff] %v6425_v47  ;;  %v6432_v51 = vld [vmem:[%s7846_s3 + $0x28] ss:$0 sm:$0xff]  ;;  %v8924_v56 = vld [vmem:[#allocation43_spill] sm:$0xff] }
 0x16b   : > { %v1362_v19 = vmul.f32 %v6425_v47, %v5646_v62  ;;  %v802_v1 = vadd.f32 %v786_v45, %v764_v23  ;;  %v862_v6 = vmul.f32 %v6432_v51, %v8924_v56  ;;  %v2274_v16 = vadd.f32 %v6328_v24, %v2237_v34  ;;  %v8925_v22 = vld [vmem:[#allocation3_spill] sm:$0xff]  ;;  %v8927_v35 = vld [vmem:[#allocation37_spill] sm:$0xff]  ;;  %v8928_v62 = vld [vmem:[#allocation94_spill] sm:$0xff] }
 0x16c   : > { %v2471_v27 = vmul.f32 %v8926_v32, %v8925_v22  ;;  %v1840_v61 = vadd.f32 %v1824_v26, %v1775_v28  ;;  %v1898_v10 = vmul.f32 %v8927_v35, %v8871_v33  ;;  %v1341_v0 = vadd.f32 %v1325_v31, %v1304_v53  ;;  %v6446_v47 = vld [vmem:[%s7846_s3 + $0x30] ss:$0 sm:$0xff]  ;;  %v8930_v22 = vld [vmem:[#allocation70_spill] sm:$0xff] }
 0x16d   : > { %v1399_v45 = vmul.f32 %v5661_v29, %v8928_v62  ;;  %v840_v23 = vadd.f32 %v824_v20, %v802_v1  ;;  %8929 = vst [vmem:[#allocation35_spill] sm:$0xff] %v6446_v47  ;;  %v900_v24 = vmul.f32 %v6446_v47, %v6423_v15  ;;  %v2311_v34 = vadd.f32 %v6334_v17, %v2274_v16  ;;  %v8931_v31 = vld [vmem:[#allocation18_spill] sm:$0xff]  ;;  %v6455_v56 = vld [vmem:[#allocation2 + $0x14f] sm:$0xff]  ;;  %v6462_v15 = vld [vmem:[%s7846_s3 + $0x1] ss:$0 sm:$0xff] }
 0x16e   : > { %v2508_v26 = vmul.f32 %v6044_v7, %v8930_v22  ;;  %v1877_v28 = vadd.f32 %v1861_v42, %v1840_v61  ;;  %v1935_v53 = vmul.f32 %v8931_v31, %v8875_v38  ;;  %8932 = vst [vmem:[#allocation28_spill] sm:$0xff] %v6455_v56  ;;  %v1378_v29 = vadd.f32 %v1362_v19, %v1341_v0  ;;  %v8933_v20 = vld [vmem:[#allocation61_spill] sm:$0xff]  ;;  %v8934_v17 = vld [vmem:[#allocation96_spill] sm:$0xff]  ;;  %v8935_v61 = vld [vmem:[#allocation95_spill] sm:$0xff] }
 0x16f   : > { %v1436_v1 = vmul.f32 %v5678_v18, %v8933_v20  ;;  %v878_v62 = vadd.f32 %v862_v6, %v840_v23  ;;  %v965_v16 = vmul.f32 %v6462_v15, %v8934_v17  ;;  %v2348_v42 = vadd.f32 %v6343_v30, %v2311_v34  ;;  %v8936_v35 = vld [vmem:[#allocation13_spill] sm:$0xff]  ;;  %v6480_v30 = vld [vmem:[%s7846_s3 + $0x9] ss:$0 sm:$0xff]  ;;  %v8939_v34 = vld [vmem:[#allocation46_spill] sm:$0xff] }
 0x170   : > { %v2545_v22 = vmul.f32 %v6059_v57, %v8935_v61  ;;  %v1914_v31 = vadd.f32 %v1898_v10, %v1877_v28  ;;  %v1972_v19 = vmul.f32 %v8879_v39, %v8936_v35  ;;  %v6471_v0 = vld [vmem:[#allocation2 + $0x133] sm:$0xff]  ;;  %v6473_v18 = vld [vmem:[#allocation2 + $0x149] sm:$0xff]  ;;  %v1415_v6 = vadd.f32 %v1399_v45, %v1378_v29 }
 0x171   : > { %8937 = vst [vmem:[#allocation74_spill] sm:$0xff] %v6471_v0  ;;  %8938 = vst [vmem:[#allocation12_spill] sm:$0xff] %v6473_v18  ;;  %v1473_v23 = vmul.f32 %v5693_v21, %v6455_v56  ;;  %v916_v20 = vadd.f32 %v900_v24, %v878_v62  ;;  %v1002_v10 = vmul.f32 %v6480_v30, %v8939_v34  ;;  %v8940_v35 = vld [vmem:[#allocation20_spill] sm:$0xff]  ;;  %v8942_v21 = vld [vmem:[#allocation73_spill] sm:$0xff] }
 0x172   : > { %v2413_v28 = vadd.f32 %v6348_v3, %v2348_v42  ;;  %v2582_v17 = vmul.f32 %v6077_v48, %v8940_v35  ;;  %v1951_v61 = vadd.f32 %v1935_v53, %v1914_v31  ;;  %v2009_v45 = vmul.f32 %v8817_v50, %v8941_v60  ;;  %v6494_v56 = vld [vmem:[%s7846_s3 + $0x11] ss:$0 sm:$0xff]  ;;  %v8944_v35 = vld [vmem:[#allocation115_spill] sm:$0xff] }
 0x173   : > { %v1452_v29 = vadd.f32 %v1436_v1, %v1415_v6  ;;  %v1538_v24 = vmul.f32 %v8942_v21, %v5706_v58  ;;  %v981_v62 = vadd.f32 %v965_v16, %v916_v20  ;;  %v8943_v34 = vld [vmem:[#allocation17_spill] sm:$0xff]  ;;  %v2619_v31 = vmul.f32 %v8944_v35, %v6471_v0  ;;  %v8945_v58 = vld [vmem:[#allocation19_spill] sm:$0xff]  ;;  %v6507_v21 = vld [vmem:[%s7846_s3 + $0x19] ss:$0 sm:$0xff] }
 0x174   : > { %v1039_v3 = vmul.f32 %v6494_v56, %v8943_v34  ;;  %v2450_v42 = vadd.f32 %v2434_v37, %v2413_v28  ;;  %v1988_v53 = vadd.f32 %v1972_v19, %v1951_v61  ;;  %v2046_v1 = vmul.f32 %v5903_v8, %v6473_v18  ;;  %8946 = vst [vmem:[#allocation89_spill] sm:$0xff] %v6507_v21  ;;  %v6509_v60 = vld [vmem:[#allocation2 + $0x106] sm:$0xff] }
 0x175   : > { %v1489_v6 = vadd.f32 %v1473_v23, %v1452_v29  ;;  %v1575_v20 = vmul.f32 %v8945_v58, %v8826_v4  ;;  %v1018_v16 = vadd.f32 %v1002_v10, %v981_v62  ;;  %8947 = vst [vmem:[#allocation93_spill] sm:$0xff] %v6509_v60  ;;  %v1076_v37 = vmul.f32 %v6509_v60, %v6507_v21  ;;  %v8948_v61 = vld [vmem:[#allocation68_spill] sm:$0xff]  ;;  %v6522_v58 = vld [vmem:[%s7846_s3 + $0x21] ss:$0 sm:$0xff] }
 0x176   : > { %v2487_v28 = vadd.f32 %v2471_v27, %v2450_v42  ;;  %v2025_v19 = vadd.f32 %v2009_v45, %v1988_v53  ;;  %v2111_v34 = vmul.f32 %v8948_v61, %v5916_v40  ;;  %v8949_v23 = vld [vmem:[#allocation72_spill] sm:$0xff]  ;;  %8951 = vst [vmem:[#allocation77_spill] sm:$0xff] %v6522_v58  ;;  %v8953_v53 = vld [vmem:[#allocation57_spill] sm:$0xff]  ;;  %v8954_v61 = vld [vmem:[#allocation99_spill] sm:$0xff] }
 0x177   : > { %v2148_v29 = vmul.f32 %v8949_v23, %v5930_v44  ;;  %v1554_v4 = vadd.f32 %v1538_v24, %v1489_v6  ;;  %v8950_v10 = vld [vmem:[#allocation108_spill] sm:$0xff]  ;;  %v1055_v0 = vadd.f32 %v1039_v3, %v1018_v16  ;;  %v2185_v60 = vmul.f32 %v8954_v61, %v8953_v53  ;;  %v8955_v23 = vld [vmem:[#allocation107_spill] sm:$0xff]  ;;  %v6534_v16 = vld [vmem:[#allocation2 + $0xf0] sm:$0xff] }
 0x178   : > { %v1612_v62 = vmul.f32 %v8950_v10, %v8892_v9  ;;  %v8952_v18 = vld [vmem:[#allocation32_spill] sm:$0xff]  ;;  %v2524_v45 = vadd.f32 %v2508_v26, %v2487_v28  ;;  %v2062_v42 = vadd.f32 %v2046_v1, %v2025_v19  ;;  %v2222_v24 = vmul.f32 %v8955_v23, %v8891_v43  ;;  %8958 = vst [vmem:[#allocation39_spill] sm:$0xff] %v6534_v16  ;;  %v8960_v23 = vld [vmem:[#allocation11_spill] sm:$0xff]  ;;  %v8961_v61 = vld [vmem:[#allocation42_spill] sm:$0xff] }
 0x179   : > { %v1113_v27 = vmul.f32 %v6522_v58, %v8952_v18  ;;  %v6530_v6 = vld [vmem:[#allocation2 + $0x166] sm:$0xff]  ;;  %v1591_v3 = vadd.f32 %v1575_v20, %v1554_v4  ;;  %v1649_v10 = vmul.f32 %v6534_v16, %v8839_v41  ;;  %v1092_v44 = vadd.f32 %v1076_v37, %v1055_v0  ;;  %v8959_v18 = vld [vmem:[#allocation81_spill] sm:$0xff]  ;;  %v8965_v0 = vld [vmem:[#allocation54_spill] sm:$0xff] }
 0x17a   : > { %8956 = vst [vmem:[#allocation14_spill] sm:$0xff] %v6530_v6  ;;  %v6532_v9 = vld [vmem:[#allocation2 + $0x14a] sm:$0xff]  ;;  %v6541_v26 = vld [vmem:[%s7846_s3 + $0x29] ss:$0 sm:$0xff]  ;;  %v2561_v28 = vadd.f32 %v2545_v22, %v2524_v45  ;;  %v2127_v19 = vadd.f32 %v2111_v34, %v2062_v42  ;;  %v2259_v43 = vmul.f32 %v8961_v61, %v8960_v23  ;;  %v8963_v4 = vld [vmem:[#allocation15_spill] sm:$0xff]  ;;  %v1686_v37 = vmul.f32 %v8846_v25, %v8965_v0 }
 0x17b   : > { %8957 = vst [vmem:[#allocation47_spill] sm:$0xff] %v6532_v9  ;;  %v1150_v1 = vmul.f32 %v6541_v26, %v8959_v18  ;;  %v8962_v20 = vld [vmem:[#allocation76_spill] sm:$0xff]  ;;  %v6549_v58 = vld [vmem:[#allocation2 + $0x150] sm:$0xff]  ;;  %v1628_v41 = vadd.f32 %v1612_v62, %v1591_v3  ;;  %v1129_v16 = vadd.f32 %v1113_v27, %v1092_v44  ;;  %v1187_v22 = vmul.f32 %v6556_v12, %v6530_v6  ;;  %v6569_v27 = vld [vmem:[%s7846_s3 + $0x2] ss:$0 sm:$0xff] }
 0x17c   : > { %v2296_v53 = vmul.f32 %v8963_v4, %v8962_v20  ;;  %8964 = vst [vmem:[#allocation33_spill] sm:$0xff] %v6549_v58  ;;  %v2598_v34 = vadd.f32 %v2582_v17, %v2561_v28  ;;  %v2164_v23 = vadd.f32 %v2148_v29, %v2127_v19  ;;  %v2333_v45 = vmul.f32 %v8902_v54, %v6532_v9  ;;  %v8966_v42 = vld [vmem:[#allocation16_spill] sm:$0xff]  ;;  %v8967_v0 = vld [vmem:[#allocation117_spill] sm:$0xff] }
 0x17d   : > { %v1723_v62 = vmul.f32 %v5780_v49, %v8966_v42  ;;  %v1665_v3 = vadd.f32 %v1649_v10, %v1628_v41  ;;  %v1760_v25 = vmul.f32 %v5796_v63, %v6549_v58  ;;  %v1166_v44 = vadd.f32 %v1150_v1, %v1129_v16  ;;  %v8968_v19 = vld [vmem:[#allocation44_spill] sm:$0xff]  ;;  %v8970_v16 = vld [vmem:[#allocation49_spill] sm:$0xff]  ;;  %v8971_v58 = vld [vmem:[#allocation119_spill] sm:$0xff] }
 0x17e   : > { %v1252_v17 = vmul.f32 %v6569_v27, %v8967_v0  ;;  %v2635_v29 = vadd.f32 %v2619_v31, %v2598_v34  ;;  %v2201_v28 = vadd.f32 %v2185_v60, %v2164_v23  ;;  %v673_v9 = vmul.f32 %v6364_v52, %v8968_v19  ;;  %v8969_v6 = vld [vmem:[#allocation48_spill] sm:$0xff]  ;;  %v6598_v19 = vld [vmem:[%s7846_s3 + $0x12] ss:$0 sm:$0xff] }
 0x17f   : > { %v711_v49 = vmul.f32 %v6372_v2, %v8969_v6  ;;  %v1702_v10 = vadd.f32 %v1686_v37, %v1665_v3  ;;  %v1203_v41 = vadd.f32 %v1187_v22, %v1166_v44  ;;  %v6580_v63 = vld [vmem:[%s7846_s3 + $0xa] ss:$0 sm:$0xff]  ;;  %v749_v31 = vmul.f32 %v6379_v14, %v8971_v58  ;;  %v6589_v0 = vld [vmem:[#allocation2 + $0x10d] sm:$0xff]  ;;  %v8974_v22 = vld [vmem:[#allocation26_spill] sm:$0xff] }
 0x180   : > { %v1289_v1 = vmul.f32 %v6580_v63, %v8970_v16  ;;  %v6587_v60 = vadd.f32 %v6390_v13, %v2635_v29  ;;  %v2238_v34 = vadd.f32 %v2222_v24, %v2201_v28  ;;  %8973 = vst [vmem:[#allocation104_spill] sm:$0xff] %v6589_v0  ;;  %v787_v6 = vmul.f32 %v6589_v0, %v6398_v55  ;;  %v8975_v16 = vld [vmem:[#allocation103_spill] sm:$0xff]  ;;  %v8990_v58 = vld [vmem:[#allocation50_spill] sm:$0xff]  ;;  %v6732_v42 = vld [vmem:[#allocation2 + $0x168] sm:$0xff] }
 0x181   : > { %v727_v23 = vadd.f32 %v711_v49, %v673_v9  ;;  %v1739_v37 = vadd.f32 %v1723_v62, %v1702_v10  ;;  %v1825_v3 = vmul.f32 %v8974_v22, %v5811_v36  ;;  %v1268_v44 = vadd.f32 %v1252_v17, %v1203_v41  ;;  %v8976_v49 = vld [vmem:[#allocation22_spill] sm:$0xff]  ;;  %v6613_v0 = vld [vmem:[#allocation2 + $0x107] sm:$0xff]  ;;  %9016 = vst [vmem:[#allocation83_spill] sm:$0xff] %v6732_v42 }
 0x182   : > { %8972 = vst [vmem:[#allocation105_spill] sm:$0xff] %v6587_v60  ;;  %v1326_v29 = vmul.f32 %v6598_v19, %v8975_v16  ;;  %v2688_v24 = vsel %vm512_vm0, %v6587_v60, 0.0  ;;  %v2275_v9 = vadd.f32 %v2259_v43, %v2238_v34  ;;  %v825_v62 = vmul.f32 %v6413_v59, %v8976_v49  ;;  %v8977_v36 = vld [vmem:[#allocation122_spill] sm:$0xff]  ;;  %8978 = vst [vmem:[#allocation5_spill] sm:$0xff] %v6613_v0  ;;  %v6628_v16 = vld [vmem:[%s7846_s3 + $0x22] ss:$0 sm:$0xff] }
 0x183   : > { %v765_v28 = vadd.f32 %v749_v31, %v727_v23  ;;  %2689 = vadd.xlane.f32.xlu1 %v2688_v24  ;;  %v1776_v10 = vadd.f32 %v1760_v25, %v1739_v37  ;;  %v1862_v17 = vmul.f32 %v8977_v36, %v5818_v46  ;;  %v1305_v41 = vadd.f32 %v1289_v1, %v1268_v44  ;;  %v6611_v22 = vld [vmem:[%s7846_s3 + $0x1a] ss:$0 sm:$0xff]  ;;  %v6617_v31 = vld [vmem:[#allocation2 + $0x16d] sm:$0xff]  ;;  %v8982_v44 = vld [vmem:[#allocation123_spill] sm:$0xff] }
 0x184   : > { %v1363_v43 = vmul.f32 %v6613_v0, %v6611_v22  ;;  %8979 = vst [vmem:[#allocation116_spill] sm:$0xff] %v6617_v31  ;;  %v2312_v34 = vadd.f32 %v2296_v53, %v2275_v9  ;;  %v8980_v23 = vld [vmem:[#allocation84_spill] sm:$0xff]  ;;  %v8981_v24 = vld [vmem:[#allocation110_spill] sm:$0xff]  ;;  %v1899_v49 = vmul.f32 %v8982_v44, %v8871_v33  ;;  %v8983_v0 = vld [vmem:[#allocation23_spill] sm:$0xff] }
 0x185   : > { %v2398_v25 = vmul.f32 %v8980_v23, %v8905_v11  ;;  %v803_v37 = vadd.f32 %v787_v6, %v765_v28  ;;  %v863_v46 = vmul.f32 %v6432_v51, %v8981_v24  ;;  %v1841_v1 = vadd.f32 %v1825_v3, %v1776_v10  ;;  %v8984_v23 = vld [vmem:[#allocation25_spill] sm:$0xff]  ;;  %v6634_v28 = vld [vmem:[#allocation2 + $0x167] sm:$0xff] }
 0x186   : > { %v1342_v60 = vadd.f32 %v1326_v29, %v1305_v41  ;;  %v1400_v53 = vmul.f32 %v6628_v16, %v8983_v0  ;;  %v2349_v9 = vadd.f32 %v2333_v45, %v2312_v34  ;;  %v2435_v6 = vmul.f32 %v8984_v23, %v8844_v5  ;;  %8985 = vst [vmem:[#allocation120_spill] sm:$0xff] %v6634_v28  ;;  %v6638_v29 = vld [vmem:[#allocation2 + $0xf1] sm:$0xff]  ;;  %v6645_v45 = vld [vmem:[%s7846_s3 + $0x2a] ss:$0 sm:$0xff]  ;;  %v8987_v0 = vld [vmem:[#allocation111_spill] sm:$0xff] }
 0x187   : > { %v841_v24 = vadd.f32 %v825_v62, %v803_v37  ;;  %v901_v3 = vmul.f32 %v6446_v47, %v6617_v31  ;;  %v1878_v33 = vadd.f32 %v1862_v17, %v1841_v1  ;;  %8986 = vst [vmem:[#allocation106_spill] sm:$0xff] %v6638_v29  ;;  %v1936_v10 = vmul.f32 %v6638_v29, %v8875_v38  ;;  %v8988_v62 = vld [vmem:[#allocation118_spill] sm:$0xff]  ;;  %v8989_v17 = vld [vmem:[#allocation24_spill] sm:$0xff] }
 0x188   : > { %v1379_v41 = vadd.f32 %v1363_v43, %v1342_v60  ;;  %v1437_v34 = vmul.f32 %v6645_v45, %v8987_v0  ;;  %v2414_v23 = vadd.f32 %v2398_v25, %v2349_v9  ;;  %v2472_v37 = vmul.f32 %v8988_v62, %v8926_v32  ;;  %v6658_v43 = vld [vmem:[%s7846_s3 + $0x32] ss:$0 sm:$0xff]  ;;  %v8991_v0 = vld [vmem:[#allocation98_spill] sm:$0xff]  ;;  %v6673_v62 = vld [vmem:[%s7846_s3 + $0x3] ss:$0 sm:$0xff] }
 0x189   : > { %v879_v31 = vadd.f32 %v863_v46, %v841_v24  ;;  %v966_v1 = vmul.f32 %v6462_v15, %v8989_v17  ;;  %v1915_v44 = vadd.f32 %v1899_v49, %v1878_v33  ;;  %v1973_v38 = vmul.f32 %v8879_v39, %v8990_v58  ;;  %v6664_v46 = vld [vmem:[#allocation2 + $0x151] sm:$0xff]  ;;  %v8994_v58 = vld [vmem:[#allocation40_spill] sm:$0xff] }
 0x18a   : > { %v1416_v60 = vadd.f32 %v1400_v53, %v1379_v41  ;;  %v1474_v25 = vmul.f32 %v6658_v43, %v6634_v28  ;;  %v2451_v9 = vadd.f32 %v2435_v6, %v2414_v23  ;;  %v2509_v24 = vmul.f32 %v8991_v0, %v6044_v7  ;;  %8992 = vst [vmem:[#allocation64_spill] sm:$0xff] %v6664_v46  ;;  %v8993_v49 = vld [vmem:[#allocation30_spill] sm:$0xff]  ;;  %v8996_v0 = vld [vmem:[#allocation67_spill] sm:$0xff]  ;;  %v6718_v36 = vld [vmem:[#allocation2 + $0x108] sm:$0xff] }
 0x18b   : > { %v917_v17 = vadd.f32 %v901_v3, %v879_v31  ;;  %v1003_v33 = vmul.f32 %v6480_v30, %v8993_v49  ;;  %v1952_v39 = vadd.f32 %v1936_v10, %v1915_v44  ;;  %v2010_v53 = vmul.f32 %v8817_v50, %v8994_v58  ;;  %v8995_v23 = vld [vmem:[#allocation58_spill] sm:$0xff]  ;;  %v6681_v10 = vld [vmem:[#allocation2 + $0x14b] sm:$0xff]  ;;  %9009 = vst [vmem:[#allocation7_spill] sm:$0xff] %v6718_v36 }
 0x18c   : > { %v1453_v41 = vadd.f32 %v1437_v34, %v1416_v60  ;;  %v1539_v6 = vmul.f32 %v6673_v62, %v8995_v23  ;;  %v2488_v28 = vadd.f32 %v2472_v37, %v2451_v9  ;;  %v2546_v31 = vmul.f32 %v6059_v57, %v8996_v0  ;;  %v8997_v29 = vld [vmem:[#allocation6_spill] sm:$0xff]  ;;  %8998 = vst [vmem:[#allocation80_spill] sm:$0xff] %v6681_v10  ;;  %v6688_v49 = vld [vmem:[%s7846_s3 + $0xb] ss:$0 sm:$0xff]  ;;  %v9006_v58 = vld [vmem:[#allocation53_spill] sm:$0xff] }
 0x18d   : > { %v982_v3 = vadd.f32 %v966_v1, %v917_v17  ;;  %v1040_v44 = vmul.f32 %v6494_v56, %v8997_v29  ;;  %v1989_v50 = vadd.f32 %v1973_v38, %v1952_v39  ;;  %v2047_v34 = vmul.f32 %v5903_v8, %v6664_v46  ;;  %v8999_v37 = vld [vmem:[#allocation52_spill] sm:$0xff]  ;;  %v9000_v1 = vld [vmem:[#allocation102_spill] sm:$0xff]  ;;  %v6703_v46 = vld [vmem:[%s7846_s3 + $0x13] ss:$0 sm:$0xff] }
 0x18e   : > { %v1490_v60 = vadd.f32 %v1474_v25, %v1453_v41  ;;  %v1576_v9 = vmul.f32 %v6688_v49, %v8999_v37  ;;  %v2525_v0 = vadd.f32 %v2509_v24, %v2488_v28  ;;  %v2583_v17 = vmul.f32 %v6077_v48, %v9000_v1  ;;  %v6694_v29 = vld [vmem:[#allocation2 + $0x10e] sm:$0xff]  ;;  %v9002_v25 = vld [vmem:[#allocation34_spill] sm:$0xff] }
 0x18f   : > { %v1019_v23 = vadd.f32 %v1003_v33, %v982_v3  ;;  %9001 = vst [vmem:[#allocation63_spill] sm:$0xff] %v6694_v29  ;;  %v1077_v38 = vmul.f32 %v6694_v29, %v6507_v21  ;;  %v2026_v8 = vadd.f32 %v2010_v53, %v1989_v50  ;;  %v2112_v39 = vmul.f32 %v9002_v25, %v5916_v40  ;;  %v9003_v28 = vld [vmem:[#allocation78_spill] sm:$0xff]  ;;  %v9004_v1 = vld [vmem:[#allocation100_spill] sm:$0xff]  ;;  %v9005_v29 = vld [vmem:[#allocation77_spill] sm:$0xff] }
 0x190   : > { %v1555_v41 = vadd.f32 %v1539_v6, %v1490_v60  ;;  %v1613_v24 = vmul.f32 %v6703_v46, %v9003_v28  ;;  %v2562_v37 = vadd.f32 %v2546_v31, %v2525_v0  ;;  %v2620_v33 = vmul.f32 %v8944_v35, %v6681_v10  ;;  %v9007_v40 = vld [vmem:[#allocation8_spill] sm:$0xff]  ;;  %v6716_v25 = vld [vmem:[%s7846_s3 + $0x1b] ss:$0 sm:$0xff]  ;;  %v9013_v28 = vld [vmem:[#allocation87_spill] sm:$0xff] }
 0x191   : > { %v1056_v3 = vadd.f32 %v1040_v44, %v1019_v23  ;;  %v1114_v53 = vmul.f32 %v9005_v29, %v9004_v1  ;;  %v2063_v50 = vadd.f32 %v2047_v34, %v2026_v8  ;;  %v2149_v6 = vmul.f32 %v9007_v40, %v9006_v58  ;;  %9008 = vst [vmem:[#allocation91_spill] sm:$0xff] %v6716_v25  ;;  %v6722_v0 = vld [vmem:[#allocation2 + $0x16e] sm:$0xff] }
 0x192   : > { %v1592_v60 = vadd.f32 %v1576_v9, %v1555_v41  ;;  %v1650_v31 = vmul.f32 %v6718_v36, %v6716_v25  ;;  %9010 = vst [vmem:[#allocation31_spill] sm:$0xff] %v6722_v0  ;;  %v2599_v44 = vadd.f32 %v2583_v17, %v2562_v37  ;;  %v9011_v23 = vld [vmem:[#allocation57_spill] sm:$0xff]  ;;  %v9012_v1 = vld [vmem:[#allocation36_spill] sm:$0xff]  ;;  %v1151_v58 = vmul.f32 %v6541_v26, %v9013_v28  ;;  %v6737_v17 = vld [vmem:[%s7846_s3 + $0x23] ss:$0 sm:$0xff] }
 0x193   : > { %v2186_v34 = vmul.f32 %v9012_v1, %v9011_v23  ;;  %v1093_v8 = vadd.f32 %v1077_v38, %v1056_v3  ;;  %v2128_v9 = vadd.f32 %v2112_v39, %v2063_v50  ;;  %v6728_v41 = vld [vmem:[#allocation2 + $0xf2] sm:$0xff]  ;;  %9017 = vst [vmem:[#allocation112_spill] sm:$0xff] %v6737_v17  ;;  %v1188_v28 = vmul.f32 %v6556_v12, %v6722_v0  ;;  %v6750_v36 = vld [vmem:[%s7846_s3 + $0x2b] ss:$0 sm:$0xff]  ;;  %v9021_v1 = vld [vmem:[#allocation71_spill] sm:$0xff] }
 0x194   : > { %9014 = vst [vmem:[#allocation90_spill] sm:$0xff] %v6728_v41  ;;  %v9015_v40 = vld [vmem:[#allocation97_spill] sm:$0xff]  ;;  %v1629_v20 = vadd.f32 %v1613_v24, %v1592_v60  ;;  %v9018_v37 = vld [vmem:[#allocation38_spill] sm:$0xff]  ;;  %v2636_v3 = vadd.f32 %v2620_v33, %v2599_v44  ;;  %v1724_v33 = vmul.f32 %v6750_v36, %v9021_v1 }
 0x195   : > { %v2223_v10 = vmul.f32 %v6728_v41, %v9015_v40  ;;  %v1687_v38 = vmul.f32 %v6737_v17, %v9018_v37  ;;  %v9019_v23 = vld [vmem:[#allocation41_spill] sm:$0xff]  ;;  %v1130_v50 = vadd.f32 %v1114_v53, %v1093_v8  ;;  %v2165_v40 = vadd.f32 %v2149_v6, %v2128_v9  ;;  %v9020_v41 = vld [vmem:[#allocation66_spill] sm:$0xff]  ;;  %v9024_v6 = vld [vmem:[#allocation56_spill] sm:$0xff] }
 0x196   : > { %v2260_v39 = vmul.f32 %v8961_v61, %v9019_v23  ;;  %v2297_v24 = vmul.f32 %v8963_v4, %v9020_v41  ;;  %v1666_v60 = vadd.f32 %v1650_v31, %v1629_v20  ;;  %v6755_v44 = vadd.f32 %v6390_v13, %v2636_v3  ;;  %v6757_v61 = vld [vmem:[#allocation2 + $0x152] sm:$0xff]  ;;  %v9025_v37 = vld [vmem:[#allocation51_spill] sm:$0xff] }
 0x197   : > { %9023 = vst [vmem:[#allocation113_spill] sm:$0xff] %v6757_v61  ;;  %v6762_v53 = vld [vmem:[%s7846_s3 + $0x33] ss:$0 sm:$0xff]  ;;  %v1167_v4 = vadd.f32 %v1151_v58, %v1130_v50  ;;  %v1253_v31 = vmul.f32 %v6569_v27, %v9024_v6  ;;  %v2202_v8 = vadd.f32 %v2186_v34, %v2165_v40  ;;  %v1290_v3 = vmul.f32 %v6580_v63, %v9025_v37  ;;  %v3981_v23 = vld [vmem:[#allocation2 + $0xc5] sm:$0xff] }
 0x198   : > { %9022 = vst [vmem:[#allocation69_spill] sm:$0xff] %v6755_v44  ;;  %v1761_v20 = vmul.f32 %v6762_v53, %v6732_v42  ;;  %v1703_v9 = vadd.f32 %v1687_v38, %v1666_v60  ;;  %v674_v1 = vmul.f32 %v3981_v23, %v6364_v52  ;;  %v2691_v41 = vsel %vm512_vm0, %v6755_v44, 0.0  ;;  %v6773_v13 = vld [vmem:[#allocation2 + $0xe5] sm:$0xff]  ;;  %v6784_v60 = vld [vmem:[%s7846_s3 + $0x4] ss:$0 sm:$0xff]  ;;  %v9030_v23 = vld [vmem:[#allocation29_spill] sm:$0xff] }
 0x199   : > { %v1204_v0 = vadd.f32 %v1188_v28, %v1167_v4  ;;  %9026 = vst [vmem:[#allocation109_spill] sm:$0xff] %v6773_v13  ;;  %v712_v58 = vmul.f32 %v6773_v13, %v6372_v2  ;;  %v9027_v50 = vld [vmem:[#allocation92_spill] sm:$0xff]  ;;  %2692 = vadd.xlane.f32.xlu0 %v2691_v41  ;;  %v2239_v34 = vadd.f32 %v2223_v10, %v2202_v8  ;;  %9028 = vst [vmem:[#allocation82_spill] sm:$0xff] %v6784_v60  ;;  %v9029_v28 = vld [vmem:[#allocation55_spill] sm:$0xff] }
 0x19a   : > { %v750_v6 = vmul.f32 %v9027_v50, %v6379_v14  ;;  %v2334_v38 = vmul.f32 %v8902_v54, %v6757_v61  ;;  %v1740_v40 = vadd.f32 %v1724_v33, %v1703_v9  ;;  %v1826_v4 = vmul.f32 %v6784_v60, %v9029_v28  ;;  %v6790_v50 = vld [vmem:[#allocation2 + $0x125] sm:$0xff]  ;;  %v9032_v41 = vld [vmem:[#allocation121_spill] sm:$0xff] }
 0x19b   : > { %v1269_v37 = vadd.f32 %v1253_v31, %v1204_v0  ;;  %v1327_v44 = vmul.f32 %v6598_v19, %v9030_v23  ;;  %v728_v13 = vadd.f32 %v712_v58, %v674_v1  ;;  %9031 = vst [vmem:[#allocation79_spill] sm:$0xff] %v6790_v50  ;;  %v788_v10 = vmul.f32 %v6790_v50, %v6398_v55  ;;  %v6799_v9 = vld [vmem:[%s7846_s3 + $0xc] ss:$0 sm:$0xff]  ;;  %v9033_v0 = vld [vmem:[#allocation37_spill] sm:$0xff] }
 0x19c   : > { %v2276_v54 = vadd.f32 %v2260_v39, %v2239_v34  ;;  %v2399_v33 = vmul.f32 %v9032_v41, %v8905_v11  ;;  %v1777_v8 = vadd.f32 %v1761_v20, %v1740_v40  ;;  %v1863_v31 = vmul.f32 %v6799_v9, %v9033_v0  ;;  %v6803_v1 = vld [vmem:[#allocation2 + $0x10f] sm:$0xff]  ;;  %v9035_v39 = vld [vmem:[#allocation43_spill] sm:$0xff]  ;;  %v6866_v42 = vld [vmem:[%s7846_s3 + $0x2c] ss:$0 sm:$0xff] }
 0x19d   : > { %v1306_v28 = vadd.f32 %v1290_v3, %v1269_v37  ;;  %9034 = vst [vmem:[#allocation9_spill] sm:$0xff] %v6803_v1  ;;  %v1364_v58 = vmul.f32 %v6803_v1, %v6611_v22  ;;  %v766_v23 = vadd.f32 %v750_v6, %v728_v13  ;;  %v826_v34 = vmul.f32 %v6413_v59, %v9035_v39  ;;  %v6809_v20 = vld [vmem:[#allocation2 + $0xb3] sm:$0xff]  ;;  %v6820_v1 = vld [vmem:[#allocation2 + $0x185] sm:$0xff] }
 0x19e   : > { %v2313_v11 = vadd.f32 %v2297_v24, %v2276_v54  ;;  %9036 = vst [vmem:[#allocation27_spill] sm:$0xff] %v6809_v20  ;;  %v2436_v40 = vmul.f32 %v6809_v20, %v8844_v5  ;;  %v1842_v41 = vadd.f32 %v1826_v4, %v1777_v8  ;;  %v6816_v3 = vld [vmem:[%s7846_s3 + $0x14] ss:$0 sm:$0xff]  ;;  %v9037_v37 = vld [vmem:[#allocation18_spill] sm:$0xff]  ;;  %9038 = vst [vmem:[#allocation21_spill] sm:$0xff] %v6820_v1 }
 0x19f   : > { %v1900_v0 = vmul.f32 %v6816_v3, %v9037_v37  ;;  %v1343_v13 = vadd.f32 %v1327_v44, %v1306_v28  ;;  %v9039_v6 = vld [vmem:[#allocation61_spill] sm:$0xff]  ;;  %v804_v54 = vadd.f32 %v788_v10, %v766_v23  ;;  %v6833_v37 = vld [vmem:[%s7846_s3 + $0x1c] ss:$0 sm:$0xff]  ;;  %9051 = vst [vmem:[#allocation95_spill] sm:$0xff] %v6866_v42 }
 0x1a0   : > { %v1401_v24 = vmul.f32 %v6628_v16, %v9039_v6  ;;  %v9040_v39 = vld [vmem:[#allocation101_spill] sm:$0xff]  ;;  %v2350_v5 = vadd.f32 %v2334_v38, %v2313_v11  ;;  %v1879_v20 = vadd.f32 %v1863_v31, %v1842_v41  ;;  %9042 = vst [vmem:[#allocation10_spill] sm:$0xff] %v6833_v37  ;;  %v9045_v38 = vld [vmem:[#allocation28_spill] sm:$0xff] }
 0x1a1   : > { %v864_v50 = vmul.f32 %v6432_v51, %v9040_v39  ;;  %v6826_v4 = vld [vmem:[#allocation2 + $0xd3] sm:$0xff]  ;;  %v6835_v44 = vld [vmem:[#allocation2 + $0x109] sm:$0xff]  ;;  %v1380_v28 = vadd.f32 %v1364_v58, %v1343_v13  ;;  %v1438_v11 = vmul.f32 %v6645_v45, %v9045_v38  ;;  %v842_v6 = vadd.f32 %v826_v34, %v804_v54 }
 0x1a2   : > { %9041 = vst [vmem:[#allocation85_spill] sm:$0xff] %v6826_v4  ;;  %v2473_v8 = vmul.f32 %v6826_v4, %v8926_v32  ;;  %9043 = vst [vmem:[#allocation3_spill] sm:$0xff] %v6835_v44  ;;  %v1937_v23 = vmul.f32 %v6835_v44, %v6833_v37  ;;  %v6839_v10 = vld [vmem:[#allocation2 + $0x16f] sm:$0xff]  ;;  %v902_v32 = vmul.f32 %v6446_v47, %v6820_v1  ;;  %v6852_v44 = vld [vmem:[%s7846_s3 + $0x24] ss:$0 sm:$0xff] }
 0x1a3   : > { %9044 = vst [vmem:[#allocation114_spill] sm:$0xff] %v6839_v10  ;;  %v2415_v31 = vadd.f32 %v2399_v33, %v2350_v5  ;;  %v6845_v41 = vld [vmem:[#allocation2 + $0xf3] sm:$0xff]  ;;  %v1916_v39 = vadd.f32 %v1900_v0, %v1879_v20  ;;  %9047 = vst [vmem:[#allocation70_spill] sm:$0xff] %v6852_v44  ;;  %v9048_v58 = vld [vmem:[#allocation60_spill] sm:$0xff]  ;;  %v1417_v34 = vadd.f32 %v1401_v24, %v1380_v28 }
 0x1a4   : > { %9046 = vst [vmem:[#allocation94_spill] sm:$0xff] %v6845_v41  ;;  %v2510_v4 = vmul.f32 %v6845_v41, %v6044_v7  ;;  %v1974_v13 = vmul.f32 %v6852_v44, %v9048_v58  ;;  %v6856_v38 = vld [vmem:[#allocation2 + $0x169] sm:$0xff]  ;;  %v1475_v33 = vmul.f32 %v6658_v43, %v6839_v10  ;;  %v880_v54 = vadd.f32 %v864_v50, %v842_v6  ;;  %v6870_v28 = vld [vmem:[#allocation2 + $0x153] sm:$0xff]  ;;  %v9054_v50 = vld [vmem:[#allocation19_spill] sm:$0xff] }
 0x1a5   : > { %9049 = vst [vmem:[#allocation96_spill] sm:$0xff] %v6856_v38  ;;  %v3994_v5 = vld [vmem:[#allocation2 + $0xc6] sm:$0xff]  ;;  %v2452_v7 = vadd.f32 %v2436_v40, %v2415_v31  ;;  %v1953_v41 = vadd.f32 %v1937_v23, %v1916_v39  ;;  %9053 = vst [vmem:[#allocation13_spill] sm:$0xff] %v6870_v28  ;;  %v1454_v10 = vadd.f32 %v1438_v11, %v1417_v34  ;;  %v9056_v23 = vld [vmem:[#allocation74_spill] sm:$0xff] }
 0x1a6   : > { %v967_v1 = vmul.f32 %v3994_v5, %v6462_v15  ;;  %v9050_v20 = vld [vmem:[#allocation20_spill] sm:$0xff]  ;;  %v1540_v6 = vmul.f32 %v6673_v62, %v9054_v50  ;;  %v918_v5 = vadd.f32 %v902_v32, %v880_v54  ;;  %v2584_v31 = vmul.f32 %v6077_v48, %v9056_v23 }
 0x1a7   : > { %v2547_v0 = vmul.f32 %v6059_v57, %v9050_v20  ;;  %v9052_v58 = vld [vmem:[#allocation12_spill] sm:$0xff]  ;;  %v2489_v39 = vadd.f32 %v2473_v8, %v2452_v7  ;;  %v1990_v20 = vadd.f32 %v1974_v13, %v1953_v41  ;;  %v1491_v34 = vadd.f32 %v1475_v33, %v1454_v10  ;;  %v6896_v13 = vld [vmem:[%s7846_s3 + $0x5] ss:$0 sm:$0xff] }
 0x1a8   : > { %v2011_v24 = vmul.f32 %v6866_v42, %v9052_v58  ;;  %v6874_v40 = vld [vmem:[#allocation2 + $0xe6] sm:$0xff]  ;;  %v6883_v58 = vld [vmem:[%s7846_s3 + $0x34] ss:$0 sm:$0xff]  ;;  %v983_v50 = vadd.f32 %v967_v1, %v918_v5  ;;  %v2621_v48 = vmul.f32 %v8944_v35, %v6870_v28  ;;  %9060 = vst [vmem:[#allocation17_spill] sm:$0xff] %v6896_v13 }
 0x1a9   : > { %9055 = vst [vmem:[#allocation46_spill] sm:$0xff] %v6874_v40  ;;  %v1004_v57 = vmul.f32 %v6874_v40, %v6480_v30  ;;  %9057 = vst [vmem:[#allocation73_spill] sm:$0xff] %v6883_v58  ;;  %v2048_v11 = vmul.f32 %v6883_v58, %v6856_v38  ;;  %v9058_v32 = vld [vmem:[#allocation108_spill] sm:$0xff]  ;;  %v9059_v40 = vld [vmem:[#allocation93_spill] sm:$0xff]  ;;  %v2526_v7 = vadd.f32 %v2510_v4, %v2489_v39 }
 0x1aa   : > { %v1577_v54 = vmul.f32 %v6688_v49, %v9058_v32  ;;  %v1041_v8 = vmul.f32 %v9059_v40, %v6494_v56  ;;  %v2027_v41 = vadd.f32 %v2011_v24, %v1990_v20  ;;  %v9061_v23 = vld [vmem:[#allocation72_spill] sm:$0xff]  ;;  %v1556_v33 = vadd.f32 %v1540_v6, %v1491_v34  ;;  %v9062_v38 = vld [vmem:[#allocation39_spill] sm:$0xff]  ;;  %v6916_v6 = vld [vmem:[%s7846_s3 + $0x15] ss:$0 sm:$0xff] }
 0x1ab   : > { %v2113_v10 = vmul.f32 %v6896_v13, %v9061_v23  ;;  %v1614_v1 = vmul.f32 %v6703_v46, %v9062_v38  ;;  %v1020_v5 = vadd.f32 %v1004_v57, %v983_v50  ;;  %v6902_v32 = vld [vmem:[#allocation2 + $0x126] sm:$0xff]  ;;  %v2563_v35 = vadd.f32 %v2547_v0, %v2526_v7  ;;  %9066 = vst [vmem:[#allocation32_spill] sm:$0xff] %v6916_v6  ;;  %v6920_v38 = vld [vmem:[#allocation2 + $0x110] sm:$0xff] }
 0x1ac   : > { %9063 = vst [vmem:[#allocation115_spill] sm:$0xff] %v6902_v32  ;;  %v1078_v4 = vmul.f32 %v6902_v32, %v6507_v21  ;;  %v2064_v24 = vadd.f32 %v2048_v11, %v2027_v41  ;;  %v6909_v39 = vld [vmem:[%s7846_s3 + $0xd] ss:$0 sm:$0xff]  ;;  %v9065_v20 = vld [vmem:[#allocation99_spill] sm:$0xff]  ;;  %v1593_v50 = vadd.f32 %v1577_v54, %v1556_v33  ;;  %9068 = vst [vmem:[#allocation81_spill] sm:$0xff] %v6920_v38 }
 0x1ad   : > { %9064 = vst [vmem:[#allocation68_spill] sm:$0xff] %v6909_v39  ;;  %v2150_v23 = vmul.f32 %v6909_v39, %v9065_v20  ;;  %v9067_v57 = vld [vmem:[#allocation107_spill] sm:$0xff]  ;;  %v1651_v0 = vmul.f32 %v6920_v38, %v6716_v25  ;;  %v1057_v11 = vadd.f32 %v1041_v8, %v1020_v5  ;;  %v1115_v7 = vmul.f32 %v9005_v29, %v8959_v18  ;;  %v6929_v32 = vld [vmem:[%s7846_s3 + $0x1d] ss:$0 sm:$0xff]  ;;  %v6931_v28 = vld [vmem:[#allocation2 + $0x10a] sm:$0xff] }
 0x1ae   : > { %v2187_v34 = vmul.f32 %v6916_v6, %v9067_v57  ;;  %v2600_v41 = vadd.f32 %v2584_v31, %v2563_v35  ;;  %v2129_v20 = vadd.f32 %v2113_v10, %v2064_v24  ;;  %9069 = vst [vmem:[#allocation11_spill] sm:$0xff] %v6929_v32  ;;  %9070 = vst [vmem:[#allocation42_spill] sm:$0xff] %v6931_v28  ;;  %v6938_v33 = vld [vmem:[%s7846_s3 + $0x25] ss:$0 sm:$0xff]  ;;  %v9072_v8 = vld [vmem:[#allocation76_spill] sm:$0xff] }
 0x1af   : > { %v2224_v54 = vmul.f32 %v6931_v28, %v6929_v32  ;;  %9071 = vst [vmem:[#allocation15_spill] sm:$0xff] %v6938_v33  ;;  %v2261_v18 = vmul.f32 %v6938_v33, %v9072_v8  ;;  %v6942_v31 = vld [vmem:[#allocation2 + $0x170] sm:$0xff]  ;;  %v6944_v10 = vld [vmem:[#allocation2 + $0x186] sm:$0xff]  ;;  %v1630_v5 = vadd.f32 %v1614_v1, %v1593_v50  ;;  %v1094_v57 = vadd.f32 %v1078_v4, %v1057_v11  ;;  %v9076_v38 = vld [vmem:[#allocation14_spill] sm:$0xff] }
 0x1b0   : > { %9073 = vst [vmem:[#allocation54_spill] sm:$0xff] %v6942_v31  ;;  %9074 = vst [vmem:[#allocation117_spill] sm:$0xff] %v6944_v10  ;;  %v9075_v35 = vld [vmem:[#allocation16_spill] sm:$0xff]  ;;  %v1152_v28 = vmul.f32 %v6541_v26, %v9076_v38  ;;  %v2637_v40 = vadd.f32 %v2621_v48, %v2600_v41  ;;  %v2166_v61 = vadd.f32 %v2150_v23, %v2129_v20  ;;  %v9078_v8 = vld [vmem:[#allocation47_spill] sm:$0xff] }
 0x1b1   : > { %v1688_v24 = vmul.f32 %v6737_v17, %v9075_v35  ;;  %v6953_v32 = vld [vmem:[%s7846_s3 + $0x2d] ss:$0 sm:$0xff]  ;;  %v9079_v25 = vld [vmem:[#allocation33_spill] sm:$0xff]  ;;  %v1667_v50 = vadd.f32 %v1651_v0, %v1630_v5  ;;  %v1762_v4 = vmul.f32 %v6762_v53, %v6942_v31  ;;  %v1131_v11 = vadd.f32 %v1115_v7, %v1094_v57  ;;  %v9082_v35 = vld [vmem:[#allocation122_spill] sm:$0xff] }
 0x1b2   : > { %9077 = vst [vmem:[#allocation44_spill] sm:$0xff] %v6953_v32  ;;  %v2298_v33 = vmul.f32 %v6953_v32, %v9078_v8  ;;  %v1725_v1 = vmul.f32 %v6750_v36, %v9079_v25  ;;  %v1189_v48 = vmul.f32 %v6556_v12, %v6944_v10  ;;  %v9080_v23 = vld [vmem:[#allocation88_spill] sm:$0xff]  ;;  %v2203_v20 = vadd.f32 %v2187_v34, %v2166_v61  ;;  %v9084_v57 = vld [vmem:[#allocation119_spill] sm:$0xff] }
 0x1b3   : > { %v6964_v41 = vadd.f32 %v9080_v23, %v2637_v40  ;;  %v1827_v38 = vmul.f32 %v6784_v60, %v9082_v35  ;;  %v4007_v17 = vld [vmem:[#allocation2 + $0xc7] sm:$0xff]  ;;  %v1704_v0 = vadd.f32 %v1688_v24, %v1667_v50  ;;  %v1168_v5 = vadd.f32 %v1152_v28, %v1131_v11 }
 0x1b4   : > { %v1254_v8 = vmul.f32 %v4007_v17, %v6569_v27  ;;  %v6969_v32 = vld [vmem:[#allocation2 + $0x16a] sm:$0xff]  ;;  %v713_v31 = vmul.f32 %v6372_v2, %v9084_v57  ;;  %v2240_v61 = vadd.f32 %v2224_v54, %v2203_v20  ;;  %v9085_v34 = vld [vmem:[#allocation103_spill] sm:$0xff]  ;;  %v6987_v54 = vld [vmem:[%s7846_s3 + $0x35] ss:$0 sm:$0xff] }
 0x1b5   : > { %9081 = vst [vmem:[#allocation48_spill] sm:$0xff] %v6964_v41  ;;  %9083 = vst [vmem:[#allocation49_spill] sm:$0xff] %v6969_v32  ;;  %v4008_v25 = vld [vmem:[#allocation2 + $0xcd] sm:$0xff]  ;;  %v2694_v40 = vsel %vm512_vm0, %v6964_v41, 0.0  ;;  %v1291_v35 = vmul.f32 %v6580_v63, %v9085_v34  ;;  %v1741_v60 = vadd.f32 %v1725_v1, %v1704_v0  ;;  %v1205_v24 = vadd.f32 %v1189_v48, %v1168_v5  ;;  %v9088_v57 = vld [vmem:[#allocation123_spill] sm:$0xff] }
 0x1b6   : > { %v675_v7 = vmul.f32 %v4008_v25, %v6364_v52  ;;  %v9086_v10 = vld [vmem:[#allocation104_spill] sm:$0xff]  ;;  %2695 = vadd.xlane.f32.xlu1 %v2694_v40  ;;  %v2277_v11 = vadd.f32 %v2261_v18, %v2240_v61  ;;  %v2335_v20 = vmul.f32 %v6987_v54, %v6969_v32  ;;  %v1864_v40 = vmul.f32 %v6799_v9, %v9088_v57  ;;  %v9089_v1 = vld [vmem:[#allocation5_spill] sm:$0xff]  ;;  %v7000_v34 = vld [vmem:[%s7846_s3 + $0x6] ss:$0 sm:$0xff] }
 0x1b7   : > { %v751_v17 = vmul.f32 %v9086_v10, %v6379_v14  ;;  %v6980_v50 = vld [vmem:[#allocation2 + $0x12d] sm:$0xff]  ;;  %v1778_v48 = vadd.f32 %v1762_v4, %v1741_v60  ;;  %v1270_v0 = vadd.f32 %v1254_v8, %v1205_v24 }
 0x1b8   : > { %v729_v28 = vadd.f32 %v713_v31, %v675_v7  ;;  %9087 = vst [vmem:[#allocation26_spill] sm:$0xff] %v6980_v50  ;;  %v789_v25 = vmul.f32 %v6980_v50, %v6398_v55  ;;  %v1328_v31 = vmul.f32 %v9089_v1, %v6598_v19  ;;  %v9090_v7 = vld [vmem:[#allocation110_spill] sm:$0xff]  ;;  %v2314_v61 = vadd.f32 %v2298_v33, %v2277_v11  ;;  %v9091_v41 = vld [vmem:[#allocation25_spill] sm:$0xff]  ;;  %v7006_v10 = vld [vmem:[#allocation2 + $0x127] sm:$0xff] }
 0x1b9   : > { %v827_v18 = vmul.f32 %v6413_v59, %v9090_v7  ;;  %v2400_v32 = vmul.f32 %v7000_v34, %v9091_v41  ;;  %v9092_v50 = vld [vmem:[#allocation106_spill] sm:$0xff]  ;;  %9093 = vst [vmem:[#allocation22_spill] sm:$0xff] %v7006_v10  ;;  %v1365_v60 = vmul.f32 %v7006_v10, %v6611_v22  ;;  %v7010_v8 = vld [vmem:[#allocation2 + $0x18d] sm:$0xff]  ;;  %v1843_v4 = vadd.f32 %v1827_v38, %v1778_v48  ;;  %v9098_v38 = vld [vmem:[#allocation111_spill] sm:$0xff] }
 0x1ba   : > { %v767_v5 = vadd.f32 %v751_v17, %v729_v28  ;;  %v1901_v57 = vmul.f32 %v6816_v3, %v9092_v50  ;;  %9094 = vst [vmem:[#allocation84_spill] sm:$0xff] %v7010_v8  ;;  %v1307_v33 = vadd.f32 %v1291_v35, %v1270_v0  ;;  %v9095_v24 = vld [vmem:[#allocation116_spill] sm:$0xff]  ;;  %v2351_v11 = vadd.f32 %v2335_v20, %v2314_v61  ;;  %v9096_v7 = vld [vmem:[#allocation118_spill] sm:$0xff] }
 0x1bb   : > { %v865_v28 = vmul.f32 %v6432_v51, %v9095_v24  ;;  %v7017_v41 = vld [vmem:[%s7846_s3 + $0xe] ss:$0 sm:$0xff]  ;;  %v7021_v1 = vld [vmem:[#allocation2 + $0x111] sm:$0xff]  ;;  %v1402_v35 = vmul.f32 %v6628_v16, %v9098_v38 }
 0x1bc   : > { %v805_v17 = vadd.f32 %v789_v25, %v767_v5  ;;  %v2437_v50 = vmul.f32 %v7017_v41, %v9096_v7  ;;  %9097 = vst [vmem:[#allocation23_spill] sm:$0xff] %v7021_v1  ;;  %v1938_v10 = vmul.f32 %v7021_v1, %v6833_v37  ;;  %v1880_v25 = vadd.f32 %v1864_v40, %v1843_v4  ;;  %v7027_v48 = vld [vmem:[#allocation2 + $0x187] sm:$0xff]  ;;  %v7034_v7 = vld [vmem:[%s7846_s3 + $0x16] ss:$0 sm:$0xff]  ;;  %v9100_v24 = vld [vmem:[#allocation98_spill] sm:$0xff] }
 0x1bd   : > { %9099 = vst [vmem:[#allocation24_spill] sm:$0xff] %v7027_v48  ;;  %v1344_v20 = vadd.f32 %v1328_v31, %v1307_v33  ;;  %v903_v5 = vmul.f32 %v6446_v47, %v7010_v8  ;;  %v2416_v61 = vadd.f32 %v2400_v32, %v2351_v11  ;;  %v2474_v1 = vmul.f32 %v7034_v7, %v9100_v24  ;;  %v9101_v37 = vld [vmem:[#allocation40_spill] sm:$0xff]  ;;  %v7042_v31 = vld [vmem:[#allocation2 + $0x171] sm:$0xff]  ;;  %v7048_v47 = vld [vmem:[%s7846_s3 + $0x1e] ss:$0 sm:$0xff] }
 0x1be   : > { %v843_v0 = vadd.f32 %v827_v18, %v805_v17  ;;  %v1975_v38 = vmul.f32 %v6852_v44, %v9101_v37  ;;  %v9102_v40 = vld [vmem:[#allocation120_spill] sm:$0xff]  ;;  %9103 = vst [vmem:[#allocation50_spill] sm:$0xff] %v7042_v31  ;;  %v1917_v18 = vadd.f32 %v1901_v57, %v1880_v25  ;;  %v1476_v57 = vmul.f32 %v6658_v43, %v7027_v48 }
 0x1bf   : > { %v1439_v4 = vmul.f32 %v6645_v45, %v9102_v40  ;;  %v1381_v33 = vadd.f32 %v1365_v60, %v1344_v20  ;;  %v4016_v32 = vld [vmem:[#allocation2 + $0xce] sm:$0xff]  ;;  %v2453_v8 = vadd.f32 %v2437_v50, %v2416_v61  ;;  %v9106_v50 = vld [vmem:[#allocation6_spill] sm:$0xff]  ;;  %v7063_v61 = vld [vmem:[%s7846_s3 + $0x26] ss:$0 sm:$0xff] }
 0x1c0   : > { %v881_v17 = vadd.f32 %v865_v28, %v843_v0  ;;  %v968_v11 = vmul.f32 %v4016_v32, %v6462_v15  ;;  %v7050_v24 = vld [vmem:[#allocation2 + $0x10b] sm:$0xff]  ;;  %v1954_v60 = vadd.f32 %v1938_v10, %v1917_v18  ;;  %v1005_v20 = vmul.f32 %v6480_v30, %v9106_v50  ;;  %v9107_v32 = vld [vmem:[#allocation102_spill] sm:$0xff] }
 0x1c1   : > { %9104 = vst [vmem:[#allocation30_spill] sm:$0xff] %v7050_v24  ;;  %v2511_v37 = vmul.f32 %v7050_v24, %v7048_v47  ;;  %v9105_v40 = vld [vmem:[#allocation64_spill] sm:$0xff]  ;;  %v1418_v28 = vadd.f32 %v1402_v35, %v1381_v33  ;;  %v2490_v0 = vadd.f32 %v2474_v1, %v2453_v8  ;;  %v2548_v24 = vmul.f32 %v7063_v61, %v9107_v32  ;;  %v9109_v1 = vld [vmem:[#allocation63_spill] sm:$0xff] }
 0x1c2   : > { %v2012_v44 = vmul.f32 %v6866_v42, %v9105_v40  ;;  %v919_v25 = vadd.f32 %v903_v5, %v881_v17  ;;  %v2049_v40 = vmul.f32 %v6883_v58, %v7042_v31  ;;  %v4020_v42 = vld [vmem:[#allocation2 + $0xc8] sm:$0xff]  ;;  %v1991_v5 = vadd.f32 %v1975_v38, %v1954_v60 }
 0x1c3   : > { %v1541_v10 = vmul.f32 %v4020_v42, %v6673_v62  ;;  %v7070_v35 = vld [vmem:[#allocation2 + $0x16b] sm:$0xff]  ;;  %v1455_v18 = vadd.f32 %v1439_v4, %v1418_v28  ;;  %v1042_v8 = vmul.f32 %v9109_v1, %v6494_v56  ;;  %v2527_v17 = vadd.f32 %v2511_v37, %v2490_v0  ;;  %v7094_v0 = vld [vmem:[%s7846_s3 + $0x36] ss:$0 sm:$0xff] }
 0x1c4   : > { %9108 = vst [vmem:[#allocation58_spill] sm:$0xff] %v7070_v35  ;;  %v984_v33 = vadd.f32 %v968_v11, %v919_v25  ;;  %v7077_v50 = vld [vmem:[%s7846_s3 + $0x2e] ss:$0 sm:$0xff]  ;;  %v2028_v4 = vadd.f32 %v2012_v44, %v1991_v5  ;;  %9115 = vst [vmem:[#allocation78_spill] sm:$0xff] %v7094_v0  ;;  %v9117_v44 = vld [vmem:[#allocation7_spill] sm:$0xff] }
 0x1c5   : > { %9110 = vst [vmem:[#allocation67_spill] sm:$0xff] %v7077_v50  ;;  %v9111_v32 = vld [vmem:[#allocation80_spill] sm:$0xff]  ;;  %v1492_v11 = vadd.f32 %v1476_v57, %v1455_v18  ;;  %v2564_v25 = vadd.f32 %v2548_v24, %v2527_v17  ;;  %v1615_v57 = vmul.f32 %v9117_v44, %v6703_v46 }
 0x1c6   : > { %v2585_v31 = vmul.f32 %v7077_v50, %v9111_v32  ;;  %v9112_v48 = vld [vmem:[#allocation8_spill] sm:$0xff]  ;;  %v1021_v60 = vadd.f32 %v1005_v20, %v984_v33  ;;  %v2065_v20 = vadd.f32 %v2049_v40, %v2028_v4  ;;  %v9118_v33 = vld [vmem:[#allocation87_spill] sm:$0xff] }
 0x1c7   : > { %v2114_v42 = vmul.f32 %v6896_v13, %v9112_v48  ;;  %v7083_v58 = vld [vmem:[#allocation2 + $0xe8] sm:$0xff]  ;;  %v2622_v48 = vmul.f32 %v7094_v0, %v7070_v35  ;;  %v1557_v5 = vadd.f32 %v1541_v10, %v1492_v11  ;;  %v1116_v24 = vmul.f32 %v9005_v29, %v9118_v33  ;;  %v9121_v13 = vld [vmem:[#allocation91_spill] sm:$0xff]  ;;  %v9127_v33 = vld [vmem:[#allocation66_spill] sm:$0xff] }
 0x1c8   : > { %9113 = vst [vmem:[#allocation52_spill] sm:$0xff] %v7083_v58  ;;  %v1578_v38 = vmul.f32 %v7083_v58, %v6688_v49  ;;  %v7087_v37 = vld [vmem:[#allocation2 + $0x12e] sm:$0xff]  ;;  %v1058_v18 = vadd.f32 %v1042_v8, %v1021_v60  ;;  %v2601_v17 = vadd.f32 %v2585_v31, %v2564_v25  ;;  %v9124_v8 = vld [vmem:[#allocation31_spill] sm:$0xff] }
 0x1c9   : > { %9114 = vst [vmem:[#allocation34_spill] sm:$0xff] %v7087_v37  ;;  %v1079_v28 = vmul.f32 %v7087_v37, %v6507_v21  ;;  %v9116_v32 = vld [vmem:[#allocation36_spill] sm:$0xff]  ;;  %v9119_v37 = vld [vmem:[#allocation90_spill] sm:$0xff]  ;;  %v1153_v4 = vmul.f32 %v6541_v26, %v9124_v8  ;;  %v9126_v60 = vld [vmem:[#allocation11_spill] sm:$0xff] }
 0x1ca   : > { %v2151_v58 = vmul.f32 %v6909_v39, %v9116_v32  ;;  %v2188_v1 = vmul.f32 %v6916_v6, %v9119_v37  ;;  %v7106_v21 = vld [vmem:[#allocation2 + $0x128] sm:$0xff]  ;;  %v2130_v32 = vadd.f32 %v2114_v42, %v2065_v20  ;;  %v1594_v40 = vadd.f32 %v1578_v38, %v1557_v5  ;;  %v7116_v31 = vld [vmem:[#allocation2 + $0x112] sm:$0xff]  ;;  %v9128_v37 = vld [vmem:[#allocation15_spill] sm:$0xff] }
 0x1cb   : > { %9120 = vst [vmem:[#allocation100_spill] sm:$0xff] %v7106_v21  ;;  %v1652_v35 = vmul.f32 %v7106_v21, %v9121_v13  ;;  %v7110_v0 = vld [vmem:[#allocation2 + $0x18e] sm:$0xff]  ;;  %v1095_v10 = vadd.f32 %v1079_v28, %v1058_v18  ;;  %v2638_v11 = vadd.f32 %v2622_v48, %v2601_v17  ;;  %9125 = vst [vmem:[#allocation97_spill] sm:$0xff] %v7116_v31  ;;  %v9129_v21 = vld [vmem:[#allocation71_spill] sm:$0xff] }
 0x1cc   : > { %9122 = vst [vmem:[#allocation53_spill] sm:$0xff] %v7110_v0  ;;  %v7112_v39 = vld [vmem:[#allocation2 + $0x188] sm:$0xff]  ;;  %v2225_v25 = vmul.f32 %v7116_v31, %v9126_v60  ;;  %v2262_v44 = vmul.f32 %v9128_v37, %v9127_v33  ;;  %v2167_v42 = vadd.f32 %v2151_v58, %v2130_v32  ;;  %v1631_v20 = vadd.f32 %v1615_v57, %v1594_v40  ;;  %v9132_v48 = vld [vmem:[#allocation113_spill] sm:$0xff]  ;;  %v9134_v17 = vld [vmem:[#allocation83_spill] sm:$0xff] }
 0x1cd   : > { %9123 = vst [vmem:[#allocation57_spill] sm:$0xff] %v7112_v39  ;;  %v9130_v6 = vld [vmem:[#allocation112_spill] sm:$0xff]  ;;  %v1132_v29 = vadd.f32 %v1116_v24, %v1095_v10  ;;  %v1190_v38 = vmul.f32 %v6556_v12, %v7110_v0  ;;  %v7127_v28 = vadd.f32 %v9080_v23, %v2638_v11  ;;  %v1726_v31 = vmul.f32 %v6750_v36, %v9134_v17  ;;  %v7135_v8 = vld [vmem:[#allocation2 + $0x172] sm:$0xff]  ;;  %v9138_v17 = vld [vmem:[#allocation79_spill] sm:$0xff] }
 0x1ce   : > { %v1689_v13 = vmul.f32 %v9130_v6, %v9129_v21  ;;  %v9133_v5 = vld [vmem:[#allocation44_spill] sm:$0xff]  ;;  %v1763_v33 = vmul.f32 %v6762_v53, %v7112_v39  ;;  %9135 = vst [vmem:[#allocation41_spill] sm:$0xff] %v7135_v8  ;;  %v2204_v21 = vadd.f32 %v2188_v1, %v2167_v42  ;;  %v1668_v58 = vadd.f32 %v1652_v35, %v1631_v20  ;;  %v9136_v40 = vld [vmem:[#allocation109_spill] sm:$0xff] }
 0x1cf   : > { %9131 = vst [vmem:[#allocation38_spill] sm:$0xff] %v7127_v28  ;;  %v2299_v18 = vmul.f32 %v9133_v5, %v9132_v48  ;;  %v1169_v57 = vadd.f32 %v1153_v4, %v1132_v29  ;;  %v4027_v24 = vld [vmem:[#allocation2 + $0xcf] sm:$0xff]  ;;  %v2697_v23 = vsel %vm512_vm0, %v7127_v28, 0.0  ;;  %v676_v10 = vmul.f32 %v9136_v40, %v6364_v52  ;;  %v4029_v40 = vld [vmem:[#allocation2 + $0x145] sm:$0xff] }
 0x1d0   : > { %v1255_v32 = vmul.f32 %v4027_v24, %v6569_v27  ;;  %v9137_v11 = vld [vmem:[#allocation92_spill] sm:$0xff]  ;;  %v752_v39 = vmul.f32 %v9138_v17, %v6379_v14  ;;  %2698 = vadd.xlane.f32.xlu0 %v2697_v23  ;;  %v2241_v0 = vadd.f32 %v2225_v25, %v2204_v21  ;;  %v1705_v1 = vadd.f32 %v1689_v13, %v1668_v58  ;;  %v9139_v29 = vld [vmem:[#allocation29_spill] sm:$0xff]  ;;  %v9140_v24 = vld [vmem:[#allocation82_spill] sm:$0xff] }
 0x1d1   : > { %v714_v48 = vmul.f32 %v9137_v11, %v6372_v2  ;;  %v1206_v35 = vadd.f32 %v1190_v38, %v1169_v57  ;;  %v1292_v4 = vmul.f32 %v6580_v63, %v9139_v29  ;;  %v2336_v42 = vmul.f32 %v6987_v54, %v7135_v8  ;;  %v4028_v20 = vld [vmem:[#allocation2 + $0xc9] sm:$0xff]  ;;  %v9142_v38 = vld [vmem:[#allocation27_spill] sm:$0xff] }
 0x1d2   : > { %v1828_v28 = vmul.f32 %v4028_v20, %v9140_v24  ;;  %v790_v2 = vmul.f32 %v4029_v40, %v6398_v55  ;;  %v2278_v11 = vadd.f32 %v2262_v44, %v2241_v0  ;;  %v1742_v5 = vadd.f32 %v1726_v31, %v1705_v1  ;;  %v9141_v25 = vld [vmem:[#allocation9_spill] sm:$0xff]  ;;  %v9147_v29 = vld [vmem:[#allocation3_spill] sm:$0xff] }
 0x1d3   : > { %v730_v52 = vadd.f32 %v714_v48, %v676_v10  ;;  %v1271_v14 = vadd.f32 %v1255_v32, %v1206_v35  ;;  %v1329_v13 = vmul.f32 %v9141_v25, %v6598_v19  ;;  %v2401_v17 = vmul.f32 %v7000_v34, %v9142_v38  ;;  %v7156_v21 = vld [vmem:[#allocation2 + $0xe9] sm:$0xff]  ;;  %v9169_v8 = vld [vmem:[#allocation39_spill] sm:$0xff] }
 0x1d4   : > { %9143 = vst [vmem:[#allocation56_spill] sm:$0xff] %v7156_v21  ;;  %v1865_v58 = vmul.f32 %v7156_v21, %v6799_v9  ;;  %v9144_v23 = vld [vmem:[#allocation101_spill] sm:$0xff]  ;;  %v2315_v10 = vadd.f32 %v2299_v18, %v2278_v11  ;;  %v1779_v55 = vadd.f32 %v1763_v33, %v1742_v5  ;;  %v655_v32 = vld [vmem:[#allocation2 + $0x1a5] sm:$0xff]  ;;  %v1902_v20 = vmul.f32 %v9147_v29, %v6816_v3  ;;  %v9150_v11 = vld [vmem:[#allocation94_spill] sm:$0xff] }
 0x1d5   : > { %v768_v57 = vadd.f32 %v752_v39, %v730_v52  ;;  %v828_v48 = vmul.f32 %v6413_v59, %v9144_v23  ;;  %v1308_v0 = vadd.f32 %v1292_v4, %v1271_v14  ;;  %v7162_v44 = vld [vmem:[#allocation2 + $0x12f] sm:$0xff]  ;;  %v2475_v14 = vmul.f32 %v7034_v7, %v9150_v11  ;;  %v9152_v23 = vld [vmem:[#allocation10_spill] sm:$0xff] }
 0x1d6   : > { %9145 = vst [vmem:[#allocation51_spill] sm:$0xff] %v7162_v44  ;;  %v1366_v31 = vmul.f32 %v7162_v44, %v6611_v22  ;;  %v9146_v1 = vld [vmem:[#allocation85_spill] sm:$0xff]  ;;  %v2352_v59 = vadd.f32 %v2336_v42, %v2315_v10  ;;  %v1844_v18 = vadd.f32 %v1828_v28, %v1779_v55  ;;  %v9149_v33 = vld [vmem:[#allocation28_spill] sm:$0xff]  ;;  %v9159_v21 = vld [vmem:[#allocation46_spill] sm:$0xff] }
 0x1d7   : > { %v2438_v35 = vmul.f32 %v7017_v41, %v9146_v1  ;;  %v806_v40 = vadd.f32 %v790_v2, %v768_v57  ;;  %v9148_v39 = vld [vmem:[#allocation21_spill] sm:$0xff]  ;;  %v1345_v5 = vadd.f32 %v1329_v13, %v1308_v0  ;;  %v1403_v4 = vmul.f32 %v6628_v16, %v9149_v33  ;;  %v9154_v57 = vld [vmem:[#allocation35_spill] sm:$0xff]  ;;  %v9155_v13 = vld [vmem:[#allocation114_spill] sm:$0xff] }
 0x1d8   : > { %v866_v52 = vmul.f32 %v6432_v51, %v9148_v39  ;;  %v7176_v38 = vld [vmem:[#allocation2 + $0x129] sm:$0xff]  ;;  %v904_v29 = vmul.f32 %v9154_v57, %v655_v32  ;;  %v2417_v51 = vadd.f32 %v2401_v17, %v2352_v59  ;;  %v1881_v42 = vadd.f32 %v1865_v58, %v1844_v18  ;;  %v7185_v55 = vld [vmem:[#allocation2 + $0x113] sm:$0xff]  ;;  %v9163_v57 = vld [vmem:[#allocation95_spill] sm:$0xff] }
 0x1d9   : > { %9151 = vst [vmem:[#allocation55_spill] sm:$0xff] %v7176_v38  ;;  %v1939_v1 = vmul.f32 %v7176_v38, %v9152_v23  ;;  %v7180_v44 = vld [vmem:[#allocation2 + $0x18f] sm:$0xff]  ;;  %v844_v2 = vadd.f32 %v828_v48, %v806_v40  ;;  %v1382_v28 = vadd.f32 %v1366_v31, %v1345_v5  ;;  %v1440_v10 = vmul.f32 %v6645_v45, %v9155_v13  ;;  %v9158_v33 = vld [vmem:[#allocation70_spill] sm:$0xff] }
 0x1da   : > { %9153 = vst [vmem:[#allocation121_spill] sm:$0xff] %v7180_v44  ;;  %9156 = vst [vmem:[#allocation37_spill] sm:$0xff] %v7185_v55  ;;  %v2512_v0 = vmul.f32 %v7185_v55, %v7048_v47  ;;  %v9157_v39 = vld [vmem:[#allocation12_spill] sm:$0xff]  ;;  %v969_v48 = vmul.f32 %v9159_v21, %v6462_v15  ;;  %v2454_v40 = vadd.f32 %v2438_v35, %v2417_v51  ;;  %v9161_v59 = vld [vmem:[#allocation74_spill] sm:$0xff] }
 0x1db   : > { %v1976_v11 = vmul.f32 %v9158_v33, %v9157_v39  ;;  %v882_v38 = vadd.f32 %v866_v52, %v844_v2  ;;  %v7193_v32 = vld [vmem:[#allocation2 + $0x189] sm:$0xff]  ;;  %v1918_v17 = vadd.f32 %v1902_v20, %v1881_v42  ;;  %v1419_v58 = vadd.f32 %v1403_v4, %v1382_v28  ;;  %v7203_v39 = vld [vmem:[#allocation2 + $0x173] sm:$0xff] }
 0x1dc   : > { %9160 = vst [vmem:[#allocation43_spill] sm:$0xff] %v7193_v32  ;;  %v1477_v31 = vmul.f32 %v6658_v43, %v7180_v44  ;;  %v2549_v18 = vmul.f32 %v7063_v61, %v9161_v59  ;;  %v9162_v5 = vld [vmem:[#allocation96_spill] sm:$0xff]  ;;  %v9164_v52 = vld [vmem:[#allocation93_spill] sm:$0xff]  ;;  %9165 = vst [vmem:[#allocation18_spill] sm:$0xff] %v7203_v39  ;;  %v2491_v15 = vadd.f32 %v2475_v14, %v2454_v40 }
 0x1dd   : > { %v2013_v55 = vmul.f32 %v9163_v57, %v9162_v5  ;;  %v920_v13 = vadd.f32 %v904_v29, %v882_v38  ;;  %v1006_v2 = vmul.f32 %v9164_v52, %v6480_v30  ;;  %v1955_v21 = vadd.f32 %v1939_v1, %v1918_v17  ;;  %v4034_v20 = vld [vmem:[#allocation2 + $0xd0] sm:$0xff]  ;;  %v9168_v29 = vld [vmem:[#allocation115_spill] sm:$0xff]  ;;  %v9170_v14 = vld [vmem:[#allocation78_spill] sm:$0xff] }
 0x1de   : > { %v1456_v35 = vadd.f32 %v1440_v10, %v1419_v58  ;;  %v1542_v4 = vmul.f32 %v4034_v20, %v6673_v62  ;;  %v9166_v51 = vld [vmem:[#allocation13_spill] sm:$0xff]  ;;  %v1043_v38 = vmul.f32 %v9168_v29, %v6494_v56  ;;  %v2528_v5 = vadd.f32 %v2512_v0, %v2491_v15 }
 0x1df   : > { %v2586_v42 = vmul.f32 %v7077_v50, %v9166_v51  ;;  %v9167_v28 = vld [vmem:[#allocation73_spill] sm:$0xff]  ;;  %v985_v44 = vadd.f32 %v969_v48, %v920_v13  ;;  %v1992_v30 = vadd.f32 %v1976_v11, %v1955_v21  ;;  %v1579_v1 = vmul.f32 %v6688_v49, %v9169_v8  ;;  %v4036_v51 = vld [vmem:[#allocation2 + $0x146] sm:$0xff]  ;;  %v9176_v21 = vld [vmem:[#allocation14_spill] sm:$0xff] }
 0x1e0   : > { %v2050_v59 = vmul.f32 %v9167_v28, %v7193_v32  ;;  %v1493_v52 = vadd.f32 %v1477_v31, %v1456_v35  ;;  %v2623_v10 = vmul.f32 %v9170_v14, %v7203_v39  ;;  %v4035_v40 = vld [vmem:[#allocation2 + $0xca] sm:$0xff]  ;;  %v2565_v13 = vadd.f32 %v2549_v18, %v2528_v5 }
 0x1e1   : > { %v9171_v17 = vld [vmem:[#allocation17_spill] sm:$0xff]  ;;  %v1022_v20 = vadd.f32 %v1006_v2, %v985_v44  ;;  %v2029_v48 = vadd.f32 %v2013_v55, %v1992_v30  ;;  %v9175_v31 = vld [vmem:[#allocation68_spill] sm:$0xff] }
 0x1e2   : > { %v2115_v58 = vmul.f32 %v4035_v40, %v9171_v17  ;;  %v9172_v25 = vld [vmem:[#allocation89_spill] sm:$0xff]  ;;  %v1558_v50 = vadd.f32 %v1542_v4, %v1493_v52  ;;  %v2602_v40 = vadd.f32 %v2586_v42, %v2565_v13  ;;  %v948_v18 = vld [vmem:[#allocation2 + $0x1a6] sm:$0xff]  ;;  %v9181_v4 = vld [vmem:[#allocation42_spill] sm:$0xff] }
 0x1e3   : > { %v1080_v32 = vmul.f32 %v4036_v51, %v9172_v25  ;;  %v9173_v56 = vld [vmem:[#allocation81_spill] sm:$0xff]  ;;  %v1059_v15 = vadd.f32 %v1043_v38, %v1022_v20  ;;  %v2066_v44 = vadd.f32 %v2050_v59, %v2029_v48  ;;  %v9179_v25 = vld [vmem:[#allocation91_spill] sm:$0xff]  ;;  %v9180_v5 = vld [vmem:[#allocation32_spill] sm:$0xff] }
 0x1e4   : > { %v1616_v11 = vmul.f32 %v9173_v56, %v6703_v46  ;;  %v7220_v0 = vld [vmem:[#allocation2 + $0xea] sm:$0xff]  ;;  %v1595_v2 = vadd.f32 %v1579_v1, %v1558_v50  ;;  %v2189_v51 = vmul.f32 %v9181_v4, %v9180_v5  ;;  %v2639_v59 = vadd.f32 %v2623_v10, %v2602_v40 }
 0x1e5   : > { %9174 = vst [vmem:[#allocation61_spill] sm:$0xff] %v7220_v0  ;;  %v2152_v8 = vmul.f32 %v7220_v0, %v9175_v31  ;;  %v9177_v35 = vld [vmem:[#allocation77_spill] sm:$0xff]  ;;  %v1096_v20 = vadd.f32 %v1080_v32, %v1059_v15  ;;  %v2131_v1 = vadd.f32 %v2115_v58, %v2066_v44  ;;  %v7250_v32 = vld [vmem:[%s7847_s4] ss:$0 sm:$0xff]  ;;  %v4041_v40 = vld [vmem:[#allocation2 + $0xe7] sm:$0xff] }
 0x1e6   : > { %v1117_v29 = vmul.f32 %v9177_v35, %v9176_v21  ;;  %v7226_v39 = vld [vmem:[#allocation2 + $0x130] sm:$0xff]  ;;  %v1632_v13 = vadd.f32 %v1616_v11, %v1595_v2  ;;  %v9185_v35 = vld [vmem:[#allocation47_spill] sm:$0xff]  ;;  %v1256_v44 = vmul.f32 %v4041_v40, %v6569_v27 }
 0x1e7   : > { %9178 = vst [vmem:[#allocation60_spill] sm:$0xff] %v7226_v39  ;;  %v1653_v55 = vmul.f32 %v7226_v39, %v9179_v25  ;;  %v7232_v30 = vld [vmem:[#allocation2 + $0x12a] sm:$0xff]  ;;  %v2263_v4 = vmul.f32 %v9128_v37, %v9185_v35  ;;  %v9186_v39 = vld [vmem:[#allocation54_spill] sm:$0xff]  ;;  %v2168_v10 = vadd.f32 %v2152_v8, %v2131_v1 }
 0x1e8   : > { %9182 = vst [vmem:[#allocation20_spill] sm:$0xff] %v7232_v30  ;;  %v2226_v38 = vmul.f32 %v7232_v30, %v9126_v60  ;;  %v7236_v52 = vld [vmem:[#allocation2 + $0x190] sm:$0xff]  ;;  %v1727_v0 = vmul.f32 %v6750_v36, %v9186_v39  ;;  %v1133_v56 = vadd.f32 %v1117_v29, %v1096_v20  ;;  %v1191_v30 = vmul.f32 %v6556_v12, %v948_v18  ;;  %v4042_v12 = vld [vmem:[%s7846_s3] ss:$0 sm:$0xff]  ;;  %v4044_v18 = vld [vmem:[%s7846_s3 + $0x8] ss:$0 sm:$0xff] }
 0x1e9   : > { %v9183_v42 = vld [vmem:[#allocation117_spill] sm:$0xff]  ;;  %v1669_v58 = vadd.f32 %v1653_v55, %v1632_v13  ;;  %v1764_v11 = vmul.f32 %v6762_v53, %v7236_v52  ;;  %v9188_v20 = vld [vmem:[#allocation104_spill] sm:$0xff] }
 0x1ea   : > { %v1154_v50 = vmul.f32 %v6541_v26, %v9183_v42  ;;  %v9184_v48 = vld [vmem:[#allocation33_spill] sm:$0xff]  ;;  %v7253_v26 = vadd.f32 %v7250_v32, %v2639_v59  ;;  %v715_v8 = vmul.f32 %v4044_v18, %v9188_v20  ;;  %v2205_v42 = vadd.f32 %v2189_v51, %v2168_v10 }
 0x1eb   : > { %v1690_v21 = vmul.f32 %v9130_v6, %v9184_v48  ;;  %v4043_v29 = vld [vmem:[#allocation2 + $0xed] sm:$0xff] }
 0x1ec   : > { %9187 = vst [vmem:[#allocation19_spill] sm:$0xff] %v7253_v26  ;;  %v1170_v15 = vadd.f32 %v1154_v50, %v1133_v56  ;;  %v677_v2 = vmul.f32 %v4043_v29, %v4042_v12  ;;  %v2700_v55 = vsel %vm512_vm0, %v7253_v26, 0.0  ;;  %v4045_v27 = vld [vmem:[%s7846_s3 + $0x10] ss:$0 sm:$0xff]  ;;  %v9189_v50 = vld [vmem:[#allocation26_spill] sm:$0xff]  ;;  %v2242_v10 = vadd.f32 %v2226_v38, %v2205_v42  ;;  %v9192_v29 = vld [vmem:[#allocation44_spill] sm:$0xff] }
 0x1ed   : > { %v1706_v56 = vadd.f32 %v1690_v21, %v1669_v58  ;;  %v753_v59 = vmul.f32 %v4045_v27, %v9189_v50  ;;  %2701 = vadd.xlane.f32.xlu1 %v2700_v55  ;;  %v7271_v1 = vld [vmem:[#allocation2 + $0x18a] sm:$0xff]  ;;  %v4046_v12 = vld [vmem:[%s7846_s3 + $0x18] ss:$0 sm:$0xff] }
 0x1ee   : > { %v1207_v13 = vadd.f32 %v1191_v30, %v1170_v15  ;;  %v9190_v48 = vld [vmem:[#allocation5_spill] sm:$0xff]  ;;  %v731_v40 = vadd.f32 %v715_v8, %v677_v2  ;;  %v9193_v30 = vld [vmem:[#allocation22_spill] sm:$0xff]  ;;  %v4049_v2 = vld [vmem:[%s7846_s3 + $0x20] ss:$0 sm:$0xff]  ;;  %v2337_v38 = vmul.f32 %v6987_v54, %v7271_v1 }
 0x1ef   : > { %v1293_v35 = vmul.f32 %v9190_v48, %v6580_v63  ;;  %v4047_v51 = vld [vmem:[#allocation2 + $0x14d] sm:$0xff]  ;;  %v1743_v20 = vadd.f32 %v1727_v0, %v1706_v56  ;;  %v1330_v15 = vmul.f32 %v9193_v30, %v6598_v19  ;;  %v9195_v0 = vld [vmem:[#allocation106_spill] sm:$0xff] }
 0x1f0   : > { %v791_v21 = vmul.f32 %v4047_v51, %v4046_v12  ;;  %v9191_v58 = vld [vmem:[#allocation49_spill] sm:$0xff]  ;;  %v1272_v50 = vadd.f32 %v1256_v44, %v1207_v13  ;;  %v769_v63 = vadd.f32 %v753_v59, %v731_v40  ;;  %v9194_v8 = vld [vmem:[#allocation116_spill] sm:$0xff]  ;;  %v2279_v12 = vadd.f32 %v2263_v4, %v2242_v10 }
 0x1f1   : > { %v2300_v18 = vmul.f32 %v9192_v29, %v9191_v58  ;;  %v4048_v27 = vld [vmem:[#allocation2 + $0xd1] sm:$0xff]  ;;  %v829_v48 = vmul.f32 %v4049_v2, %v9194_v8  ;;  %v1780_v42 = vadd.f32 %v1764_v11, %v1743_v20  ;;  %v1866_v56 = vmul.f32 %v6799_v9, %v9195_v0  ;;  %v4050_v13 = vld [vmem:[#allocation2 + $0x147] sm:$0xff] }
 0x1f2   : > { %v1829_v55 = vmul.f32 %v4048_v27, %v9140_v24  ;;  %v656_v51 = vld [vmem:[#allocation2 + $0x1ad] sm:$0xff]  ;;  %v1309_v44 = vadd.f32 %v1293_v35, %v1272_v50  ;;  %v1367_v19 = vmul.f32 %v4050_v13, %v6611_v22  ;;  %v807_v59 = vadd.f32 %v791_v21, %v769_v63  ;;  %v4051_v40 = vld [vmem:[%s7846_s3 + $0x28] ss:$0 sm:$0xff]  ;;  %v9197_v20 = vld [vmem:[#allocation23_spill] sm:$0xff] }
 0x1f3   : > { %v9196_v27 = vld [vmem:[#allocation84_spill] sm:$0xff]  ;;  %v2316_v4 = vadd.f32 %v2300_v18, %v2279_v12  ;;  %v1903_v8 = vmul.f32 %v9197_v20, %v6816_v3  ;;  %v4053_v21 = vld [vmem:[%s7846_s3 + $0x30] ss:$0 sm:$0xff]  ;;  %v7308_v12 = vld [vmem:[#allocation2 + $0x131] sm:$0xff] }
 0x1f4   : > { %v867_v30 = vmul.f32 %v4051_v40, %v9196_v27  ;;  %v4052_v10 = vld [vmem:[#allocation2 + $0xcb] sm:$0xff]  ;;  %v1845_v11 = vadd.f32 %v1829_v55, %v1780_v42  ;;  %v1346_v0 = vadd.f32 %v1330_v15, %v1309_v44  ;;  %v845_v22 = vadd.f32 %v829_v48, %v807_v59 }
 0x1f5   : > { %v2402_v2 = vmul.f32 %v4052_v10, %v7000_v34  ;;  %v9198_v35 = vld [vmem:[#allocation120_spill] sm:$0xff]  ;;  %v905_v63 = vmul.f32 %v4053_v21, %v656_v51  ;;  %v2353_v13 = vadd.f32 %v2337_v38, %v2316_v4  ;;  %v1940_v15 = vmul.f32 %v7308_v12, %v9152_v23  ;;  %v4056_v38 = vld [vmem:[%s7846_s3 + $0x1] ss:$0 sm:$0xff]  ;;  %v7321_v26 = vld [vmem:[#allocation2 + $0x191] sm:$0xff] }
 0x1f6   : > { %v1404_v50 = vmul.f32 %v6628_v16, %v9198_v35  ;;  %v7304_v40 = vld [vmem:[#allocation2 + $0xeb] sm:$0xff]  ;;  %v1882_v55 = vadd.f32 %v1866_v56, %v1845_v11  ;;  %v1383_v16 = vadd.f32 %v1367_v19, %v1346_v0  ;;  %v883_v59 = vadd.f32 %v867_v30, %v845_v22  ;;  %v9200_v56 = vld [vmem:[#allocation30_spill] sm:$0xff]  ;;  %9202 = vst [vmem:[#allocation108_spill] sm:$0xff] %v7321_v26  ;;  %v4058_v0 = vld [vmem:[%s7846_s3 + $0x9] ss:$0 sm:$0xff] }
 0x1f7   : > { %v2439_v18 = vmul.f32 %v7304_v40, %v7017_v41  ;;  %v1235_v42 = vld [vmem:[#allocation2 + $0x1a7] sm:$0xff]  ;;  %v2418_v4 = vadd.f32 %v2402_v2, %v2353_v13  ;;  %v2476_v10 = vmul.f32 %v9200_v56, %v7034_v7 }
 0x1f8   : > { %v9199_v48 = vld [vmem:[#allocation24_spill] sm:$0xff]  ;;  %v1919_v11 = vadd.f32 %v1903_v8, %v1882_v55  ;;  %v1420_v19 = vadd.f32 %v1404_v50, %v1383_v16  ;;  %v921_v30 = vadd.f32 %v905_v63, %v883_v59  ;;  %v9203_v22 = vld [vmem:[#allocation63_spill] sm:$0xff]  ;;  %v4060_v16 = vld [vmem:[%s7846_s3 + $0x11] ss:$0 sm:$0xff] }
 0x1f9   : > { %v1441_v44 = vmul.f32 %v6645_v45, %v9199_v48  ;;  %v4057_v51 = vld [vmem:[#allocation2 + $0xee] sm:$0xff]  ;;  %v1478_v45 = vmul.f32 %v6658_v43, %v1235_v42  ;;  %v1007_v48 = vmul.f32 %v4058_v0, %v9203_v22  ;;  %v2455_v2 = vadd.f32 %v2439_v18, %v2418_v4  ;;  %v9206_v59 = vld [vmem:[#allocation34_spill] sm:$0xff] }
 0x1fa   : > { %v970_v27 = vmul.f32 %v4057_v51, %v4056_v38  ;;  %v9201_v35 = vld [vmem:[#allocation64_spill] sm:$0xff]  ;;  %v1956_v55 = vadd.f32 %v1940_v15, %v1919_v11  ;;  %v9204_v38 = vld [vmem:[#allocation50_spill] sm:$0xff]  ;;  %v1044_v18 = vmul.f32 %v4060_v16, %v9206_v59  ;;  %v2051_v15 = vmul.f32 %v9167_v28, %v7321_v26  ;;  %v9210_v59 = vld [vmem:[#allocation67_spill] sm:$0xff] }
 0x1fb   : > { %v1977_v21 = vmul.f32 %v9158_v33, %v9201_v35  ;;  %v7328_v13 = vld [vmem:[#allocation2 + $0x12b] sm:$0xff]  ;;  %v2014_v51 = vmul.f32 %v9163_v57, %v9204_v38  ;;  %v1457_v50 = vadd.f32 %v1441_v44, %v1420_v19  ;;  %v2492_v4 = vadd.f32 %v2476_v10, %v2455_v2  ;;  %v9209_v16 = vld [vmem:[#allocation58_spill] sm:$0xff] }
 0x1fc   : > { %v2513_v8 = vmul.f32 %v7328_v13, %v7048_v47  ;;  %v9205_v43 = vld [vmem:[#allocation52_spill] sm:$0xff]  ;;  %v986_v42 = vadd.f32 %v970_v27, %v921_v30  ;;  %v4061_v30 = vld [vmem:[%s7846_s3 + $0x19] ss:$0 sm:$0xff] }
 0x1fd   : > { %v1543_v63 = vmul.f32 %v9205_v43, %v6673_v62  ;;  %v9207_v35 = vld [vmem:[#allocation80_spill] sm:$0xff]  ;;  %v1993_v22 = vadd.f32 %v1977_v21, %v1956_v55  ;;  %v1494_v44 = vadd.f32 %v1478_v45, %v1457_v50  ;;  %v9208_v62 = vld [vmem:[#allocation7_spill] sm:$0xff]  ;;  %v2587_v21 = vmul.f32 %v9210_v59, %v9209_v16 }
 0x1fe   : > { %v2550_v0 = vmul.f32 %v7063_v61, %v9207_v35  ;;  %v7344_v11 = vld [vmem:[#allocation2 + $0x18b] sm:$0xff]  ;;  %v1580_v27 = vmul.f32 %v9208_v62, %v6688_v49  ;;  %v1023_v19 = vadd.f32 %v1007_v48, %v986_v42  ;;  %v2529_v2 = vadd.f32 %v2513_v8, %v2492_v4  ;;  %v4064_v48 = vld [vmem:[%s7846_s3 + $0x21] ss:$0 sm:$0xff] }
 0x1ff   : > { %v4062_v43 = vld [vmem:[#allocation2 + $0x14e] sm:$0xff]  ;;  %v2030_v55 = vadd.f32 %v2014_v51, %v1993_v22  ;;  %v1559_v38 = vadd.f32 %v1543_v63, %v1494_v44  ;;  %v9212_v42 = vld [vmem:[#allocation31_spill] sm:$0xff]  ;;  %v2624_v8 = vmul.f32 %v9170_v14, %v7344_v11  ;;  %v9213_v51 = vld [vmem:[#allocation90_spill] sm:$0xff] }
 0x200   : > { %v1081_v10 = vmul.f32 %v4062_v43, %v4061_v30  ;;  %v4063_v35 = vld [vmem:[#allocation2 + $0xd2] sm:$0xff]  ;;  %v9211_v45 = vld [vmem:[#allocation100_spill] sm:$0xff]  ;;  %v1060_v49 = vadd.f32 %v1044_v18, %v1023_v19  ;;  %v1118_v62 = vmul.f32 %v4064_v48, %v9212_v42  ;;  %v2566_v30 = vadd.f32 %v2550_v0, %v2529_v2  ;;  %v9216_v42 = vld [vmem:[#allocation83_spill] sm:$0xff] }
 0x201   : > { %v2116_v26 = vmul.f32 %v4063_v35, %v9171_v17  ;;  %v1617_v50 = vmul.f32 %v9211_v45, %v6703_v46  ;;  %v2067_v4 = vadd.f32 %v2051_v15, %v2030_v55  ;;  %v2153_v22 = vmul.f32 %v9175_v31, %v9213_v51  ;;  %v949_v43 = vld [vmem:[#allocation2 + $0x1ae] sm:$0xff]  ;;  %v4066_v19 = vld [vmem:[%s7846_s3 + $0x29] ss:$0 sm:$0xff] }
 0x202   : > { %v1596_v63 = vadd.f32 %v1580_v27, %v1559_v38  ;;  %v4065_v44 = vld [vmem:[#allocation2 + $0x148] sm:$0xff]  ;;  %v1097_v18 = vadd.f32 %v1081_v10, %v1060_v49  ;;  %v9214_v35 = vld [vmem:[#allocation53_spill] sm:$0xff]  ;;  %v2603_v0 = vadd.f32 %v2587_v21, %v2566_v30  ;;  %v1691_v51 = vmul.f32 %v9130_v6, %v9216_v42 }
 0x203   : > { %v1654_v46 = vmul.f32 %v4065_v44, %v9179_v25  ;;  %v1155_v45 = vmul.f32 %v4066_v19, %v9214_v35  ;;  %v2132_v2 = vadd.f32 %v2116_v26, %v2067_v4  ;;  %v9215_v48 = vld [vmem:[#allocation97_spill] sm:$0xff]  ;;  %v1522_v21 = vld [vmem:[#allocation2 + $0x1a8] sm:$0xff] }
 0x204   : > { %v2190_v15 = vmul.f32 %v9215_v48, %v9180_v5  ;;  %v1633_v55 = vadd.f32 %v1617_v50, %v1596_v63  ;;  %v1134_v38 = vadd.f32 %v1118_v62, %v1097_v18  ;;  %v4067_v25 = vld [vmem:[%s7846_s3 + $0x31] ss:$0 sm:$0xff]  ;;  %v2640_v10 = vadd.f32 %v2624_v8, %v2603_v0  ;;  %v7376_v44 = vld [vmem:[#allocation2 + $0x132] sm:$0xff]  ;;  %v4069_v62 = vld [vmem:[%s7846_s3 + $0x2] ss:$0 sm:$0xff] }
 0x205   : > { %v1192_v27 = vmul.f32 %v4067_v25, %v949_v43  ;;  %v2169_v49 = vadd.f32 %v2153_v22, %v2132_v2  ;;  %v2227_v26 = vmul.f32 %v7376_v44, %v9126_v60  ;;  %v9217_v4 = vld [vmem:[#allocation57_spill] sm:$0xff]  ;;  %v1765_v2 = vmul.f32 %v6762_v53, %v1522_v21 }
 0x206   : > { %v1670_v30 = vadd.f32 %v1654_v46, %v1633_v55  ;;  %v1728_v50 = vmul.f32 %v6750_v36, %v9217_v4  ;;  %v1171_v63 = vadd.f32 %v1155_v45, %v1134_v38  ;;  %v4070_v18 = vld [vmem:[#allocation2 + $0xef] sm:$0xff]  ;;  %v7386_v8 = vadd.f32 %v7250_v32, %v2640_v10  ;;  %v4071_v45 = vld [vmem:[%s7846_s3 + $0xa] ss:$0 sm:$0xff] }
 0x207   : > { %v1257_v19 = vmul.f32 %v4070_v18, %v4069_v62  ;;  %v2206_v22 = vadd.f32 %v2190_v15, %v2169_v49  ;;  %v9219_v43 = vld [vmem:[#allocation113_spill] sm:$0xff] }
 0x208   : > { %9218 = vst [vmem:[#allocation72_spill] sm:$0xff] %v7386_v8  ;;  %v2264_v35 = vmul.f32 %v9128_v37, %v9219_v43  ;;  %v7390_v0 = vld [vmem:[#allocation2 + $0x192] sm:$0xff]  ;;  %v1707_v46 = vadd.f32 %v1691_v51, %v1670_v30  ;;  %v1208_v55 = vadd.f32 %v1192_v27, %v1171_v63  ;;  %v2703_v25 = vsel %vm512_vm0, %v7386_v8, 0.0  ;;  %v9222_v51 = vld [vmem:[#allocation56_spill] sm:$0xff]  ;;  %v9223_v63 = vld [vmem:[#allocation51_spill] sm:$0xff] }
 0x209   : > { %v9220_v42 = vld [vmem:[#allocation9_spill] sm:$0xff]  ;;  %v2243_v10 = vadd.f32 %v2227_v26, %v2206_v22  ;;  %2704 = vadd.xlane.f32.xlu0 %v2703_v25  ;;  %v1830_v30 = vmul.f32 %v9222_v51, %v9140_v24  ;;  %v2338_v43 = vmul.f32 %v6987_v54, %v7390_v0  ;;  %v9224_v22 = vld [vmem:[#allocation3_spill] sm:$0xff] }
 0x20a   : > { %v1294_v38 = vmul.f32 %v4071_v45, %v9220_v42  ;;  %v9221_v15 = vld [vmem:[#allocation41_spill] sm:$0xff]  ;;  %v1744_v4 = vadd.f32 %v1728_v50, %v1707_v46  ;;  %v1273_v21 = vadd.f32 %v1257_v19, %v1208_v55  ;;  %v1867_v45 = vmul.f32 %v9224_v22, %v6799_v9  ;;  %v4073_v50 = vld [vmem:[%s7846_s3 + $0x1a] ss:$0 sm:$0xff] }
 0x20b   : > { %v2301_v49 = vmul.f32 %v9192_v29, %v9221_v15  ;;  %v4072_v27 = vld [vmem:[%s7846_s3 + $0x12] ss:$0 sm:$0xff]  ;;  %v2280_v18 = vadd.f32 %v2264_v35, %v2243_v10  ;;  %v9226_v35 = vld [vmem:[#allocation55_spill] sm:$0xff]  ;;  %v9228_v22 = vld [vmem:[#allocation94_spill] sm:$0xff] }
 0x20c   : > { %v1331_v62 = vmul.f32 %v4072_v27, %v9223_v63  ;;  %v1781_v26 = vadd.f32 %v1765_v2, %v1744_v4  ;;  %v1310_v42 = vadd.f32 %v1294_v38, %v1273_v21  ;;  %v4074_v19 = vld [vmem:[#allocation2 + $0x14f] sm:$0xff]  ;;  %v1904_v10 = vmul.f32 %v9226_v35, %v6816_v3  ;;  %v4075_v2 = vld [vmem:[%s7846_s3 + $0x22] ss:$0 sm:$0xff]  ;;  %v9227_v38 = vld [vmem:[#allocation114_spill] sm:$0xff] }
 0x20d   : > { %v1368_v46 = vmul.f32 %v4074_v19, %v4073_v50  ;;  %v2317_v55 = vadd.f32 %v2301_v49, %v2280_v18  ;;  %v9225_v25 = vld [vmem:[#allocation85_spill] sm:$0xff]  ;;  %v1405_v4 = vmul.f32 %v4075_v2, %v9227_v38  ;;  %v2440_v8 = vmul.f32 %v7017_v41, %v9228_v22 }
 0x20e   : > { %v2403_v51 = vmul.f32 %v7000_v34, %v9225_v25  ;;  %v1846_v27 = vadd.f32 %v1830_v30, %v1781_v26  ;;  %v1347_v63 = vadd.f32 %v1331_v62, %v1310_v42  ;;  %v1236_v50 = vld [vmem:[#allocation2 + $0x1af] sm:$0xff]  ;;  %v4077_v62 = vld [vmem:[%s7846_s3 + $0x2a] ss:$0 sm:$0xff] }
 0x20f   : > { %v2354_v21 = vadd.f32 %v2338_v43, %v2317_v55  ;;  %v4076_v18 = vld [vmem:[#allocation2 + $0x149] sm:$0xff] }
 0x210   : > { %v1883_v49 = vadd.f32 %v1867_v45, %v1846_v27  ;;  %v1941_v19 = vmul.f32 %v4076_v18, %v9152_v23  ;;  %v1384_v30 = vadd.f32 %v1368_v46, %v1347_v63  ;;  %v9229_v26 = vld [vmem:[#allocation121_spill] sm:$0xff]  ;;  %v9231_v55 = vld [vmem:[#allocation96_spill] sm:$0xff] }
 0x211   : > { %v1442_v42 = vmul.f32 %v4077_v62, %v9229_v26  ;;  %v2419_v25 = vadd.f32 %v2403_v51, %v2354_v21  ;;  %v9230_v35 = vld [vmem:[#allocation37_spill] sm:$0xff]  ;;  %v1978_v38 = vmul.f32 %v9158_v33, %v9231_v55  ;;  %v9233_v62 = vld [vmem:[#allocation43_spill] sm:$0xff] }
 0x212   : > { %v2477_v2 = vmul.f32 %v9230_v35, %v7034_v7  ;;  %v1920_v43 = vadd.f32 %v1904_v10, %v1883_v49  ;;  %v1421_v22 = vadd.f32 %v1405_v4, %v1384_v30  ;;  %v4078_v45 = vld [vmem:[%s7846_s3 + $0x32] ss:$0 sm:$0xff]  ;;  %v7436_v63 = vld [vmem:[#allocation2 + $0x133] sm:$0xff]  ;;  %v1809_v51 = vld [vmem:[#allocation2 + $0x1a9] sm:$0xff]  ;;  %v2015_v10 = vmul.f32 %v9163_v57, %v9233_v62 }
 0x213   : > { %v1479_v46 = vmul.f32 %v4078_v45, %v1236_v50  ;;  %v2456_v27 = vadd.f32 %v2440_v8, %v2419_v25  ;;  %9232 = vst [vmem:[#allocation99_spill] sm:$0xff] %v7436_v63  ;;  %v2514_v18 = vmul.f32 %v7436_v63, %v7048_v47  ;;  %v4080_v4 = vld [vmem:[%s7846_s3 + $0x3] ss:$0 sm:$0xff]  ;;  %v4081_v30 = vld [vmem:[#allocation2 + $0xf0] sm:$0xff]  ;;  %v2052_v63 = vmul.f32 %v9167_v28, %v1809_v51  ;;  %v9237_v35 = vld [vmem:[#allocation18_spill] sm:$0xff] }
 0x214   : > { %v1957_v21 = vadd.f32 %v1941_v19, %v1920_v43  ;;  %v1458_v49 = vadd.f32 %v1442_v42, %v1421_v22  ;;  %v1544_v26 = vmul.f32 %v4081_v30, %v4080_v4  ;;  %v9234_v50 = vld [vmem:[#allocation13_spill] sm:$0xff]  ;;  %v4082_v42 = vld [vmem:[%s7846_s3 + $0xb] ss:$0 sm:$0xff]  ;;  %v2588_v4 = vmul.f32 %v9210_v59, %v9237_v35 }
 0x215   : > { %v2493_v55 = vadd.f32 %v2477_v2, %v2456_v27  ;;  %v2551_v8 = vmul.f32 %v7063_v61, %v9234_v50  ;;  %v7447_v25 = vld [vmem:[#allocation2 + $0x193] sm:$0xff]  ;;  %v9241_v35 = vld [vmem:[#allocation20_spill] sm:$0xff] }
 0x216   : > { %9235 = vst [vmem:[#allocation107_spill] sm:$0xff] %v7447_v25  ;;  %v1994_v45 = vadd.f32 %v1978_v38, %v1957_v21  ;;  %v1495_v19 = vadd.f32 %v1479_v46, %v1458_v49  ;;  %v9236_v43 = vld [vmem:[#allocation81_spill] sm:$0xff]  ;;  %v9239_v46 = vld [vmem:[#allocation60_spill] sm:$0xff]  ;;  %v2625_v49 = vmul.f32 %v9170_v14, %v7447_v25  ;;  %v1729_v25 = vmul.f32 %v6750_v36, %v7236_v52 }
 0x217   : > { %v1581_v22 = vmul.f32 %v4082_v42, %v9236_v43  ;;  %v2530_v62 = vadd.f32 %v2514_v18, %v2493_v55  ;;  %v9238_v27 = vld [vmem:[#allocation61_spill] sm:$0xff]  ;;  %v9240_v18 = vld [vmem:[#allocation42_spill] sm:$0xff] }
 0x218   : > { %v2031_v2 = vadd.f32 %v2015_v10, %v1994_v45  ;;  %v2117_v30 = vmul.f32 %v9238_v27, %v9171_v17  ;;  %v1560_v50 = vadd.f32 %v1544_v26, %v1495_v19  ;;  %v4083_v38 = vld [vmem:[%s7846_s3 + $0x13] ss:$0 sm:$0xff]  ;;  %v2154_v55 = vmul.f32 %v9240_v18, %v9175_v31  ;;  %v4084_v10 = vld [vmem:[%s7846_s3 + $0x1b] ss:$0 sm:$0xff]  ;;  %v4086_v18 = vld [vmem:[#allocation2 + $0x14a] sm:$0xff] }
 0x219   : > { %v1618_v51 = vmul.f32 %v4083_v38, %v9239_v46  ;;  %v2567_v21 = vadd.f32 %v2551_v8, %v2530_v62  ;;  %v4085_v26 = vld [vmem:[#allocation2 + $0x150] sm:$0xff]  ;;  %v2191_v38 = vmul.f32 %v9241_v35, %v9180_v5  ;;  %v1692_v62 = vmul.f32 %v9130_v6, %v9186_v39 }
 0x21a   : > { %v2068_v42 = vadd.f32 %v2052_v63, %v2031_v2  ;;  %v1597_v43 = vadd.f32 %v1581_v22, %v1560_v50  ;;  %v1655_v45 = vmul.f32 %v4085_v26, %v4084_v10  ;;  %v1523_v2 = vld [vmem:[#allocation2 + $0x1b0] sm:$0xff]  ;;  %v2228_v22 = vmul.f32 %v4086_v18, %v9126_v60  ;;  %v2669_v26 = vpop.xlane.xlu0 %2668 }
 0x21b   : > { %v2604_v19 = vadd.f32 %v2588_v4, %v2567_v21  ;;  %v2265_v35 = vmul.f32 %v9128_v37, %v9191_v58  ;;  %v1766_v6 = vmul.f32 %v6762_v53, %v1523_v2  ;;  %v2096_v21 = vld [vmem:[#allocation2 + $0x1aa] sm:$0xff]  ;;  %v1868_v53 = vmul.f32 %v9197_v20, %v6799_v9  ;;  %v9242_v2 = vld [vmem:[#allocation50_spill] sm:$0xff] }
 0x21c   : > { %v2133_v27 = vadd.f32 %v2117_v30, %v2068_v42  ;;  %v1634_v8 = vadd.f32 %v1618_v51, %v1597_v43  ;;  %v2302_v42 = vmul.f32 %v9192_v29, %v7271_v1  ;;  %v4087_v52 = vld [vmem:[#allocation2 + $0xf1] sm:$0xff]  ;;  %v2339_v10 = vmul.f32 %v6987_v54, %v2096_v21 }
 0x21d   : > { %v2641_v63 = vadd.f32 %v2625_v49, %v2604_v19  ;;  %v2404_v19 = vmul.f32 %v7304_v40, %v7000_v34  ;;  %v1905_v1 = vmul.f32 %v7308_v12, %v6816_v3  ;;  %v2478_v9 = vmul.f32 %v7328_v13, %v7034_v7  ;;  %v4089_v12 = vld [vmem:[#allocation2 + $0x14b] sm:$0xff] }
 0x21e   : > { %v2170_v46 = vadd.f32 %v2154_v55, %v2133_v27  ;;  %v1671_v50 = vadd.f32 %v1655_v45, %v1634_v8  ;;  %v1831_v55 = vmul.f32 %v4087_v52, %v9140_v24  ;;  %v2441_v24 = vmul.f32 %v9200_v56, %v7017_v41  ;;  %v4088_v8 = vld [vmem:[#allocation2 + $0x151] sm:$0xff]  ;;  %v7501_v18 = vpop.xlane.xlu0 %2671  ;;  %v2675_v52 = vpop.xlane.xlu1 %2674 }
 0x21f   : > { %v7477_v4 = vadd.f32 %v7250_v32, %v2641_v63  ;;  %v1979_v40 = vmul.f32 %v9158_v33, %v9242_v2  ;;  %v2589_v33 = vmul.f32 %v9210_v59, %v7344_v11  ;;  %v2192_v11 = vmul.f32 %v7376_v44, %v9180_v5 }
 0x220   : > { %v2207_v30 = vadd.f32 %v2191_v38, %v2170_v46  ;;  %v1708_v51 = vadd.f32 %v1692_v62, %v1671_v50  ;;  %v1942_v62 = vmul.f32 %v4088_v8, %v9152_v23  ;;  %v1810_v46 = vld [vmem:[#allocation2 + $0x1b1] sm:$0xff]  ;;  %v9243_v50 = vld [vmem:[#allocation108_spill] sm:$0xff] }
 0x221   : > { %v2706_v39 = vsel %vm512_vm0, %v7477_v4, 0.0  ;;  %v2097_v8 = vld [vmem:[#allocation2 + $0x1b2] sm:$0xff] }
 0x222   : > { %2707 = vadd.xlane.f32.xlu1 %v2706_v39  ;;  %v2244_v49 = vadd.f32 %v2228_v22, %v2207_v30  ;;  %v1745_v36 = vadd.f32 %v1729_v25, %v1708_v51  ;;  %v2515_v22 = vmul.f32 %v4089_v12, %v7048_v47  ;;  %v2016_v30 = vmul.f32 %v9163_v57, %v9243_v50 }
 0x223   : > { %v2053_v51 = vmul.f32 %v9167_v28, %v1810_v46  ;;  %v2718_v28 = vmul.f32 0.125, %v2675_v52 }
 0x224   : > { %v2281_v43 = vadd.f32 %v2265_v35, %v2244_v49  ;;  %v1782_v58 = vadd.f32 %v1766_v6, %v1745_v36  ;;  %v2552_v35 = vmul.f32 %v7063_v61, %v9209_v16  ;;  %v2383_v6 = vld [vmem:[#allocation2 + $0x1ab] sm:$0xff]  ;;  %v2716_v36 = vmul.f32 0.125, %v2669_v26 }
 0x225   : > { %v4090_v49 = vld [vmem:[#allocation2 + $0xf2] sm:$0xff]  ;;  %v2155_v16 = vmul.f32 %v9215_v48, %v9175_v31 }
 0x226   : > { %v2318_v45 = vadd.f32 %v2302_v42, %v2281_v43  ;;  %v1847_v27 = vadd.f32 %v1831_v55, %v1782_v58  ;;  %v2118_v42 = vmul.f32 %v4090_v49, %v9171_v17  ;;  %v2681_v55 = vpop.xlane.xlu0 %2680  ;;  %v2626_v43 = vmul.f32 %v9170_v14, %v2383_v6  ;;  %v2678_v49 = vpop.xlane.xlu1 %2677 }
 0x228   : > { %v2355_v25 = vadd.f32 %v2339_v10, %v2318_v45  ;;  %v1884_v38 = vadd.f32 %v1868_v53, %v1847_v27  ;;  %v9244_v45 = vld [vmem:[#allocation75_spill] sm:$0xff]  ;;  %v4091_v27 = vld [vmem:[#allocation2 + $0x152] sm:$0xff] }
 0x22a   : > { %v2420_v63 = vadd.f32 %v2404_v19, %v2355_v25  ;;  %v1921_v20 = vadd.f32 %v1905_v1, %v1884_v38  ;;  %v7518_v19 = vsub.f32 %v9244_v45, %v2716_v36  ;;  %v2229_v1 = vmul.f32 %v4091_v27, %v9126_v60  ;;  %v2687_v31 = vpop.xlane.xlu0 %2686  ;;  %v9250_v36 = vld [vmem:[#allocation69_spill] sm:$0xff]  ;;  %v2684_v45 = vpop.xlane.xlu1 %2683 }
 0x22b   : > { %v2266_v25 = vmul.f32 %v9128_v37, %v9221_v15  ;;  %v2303_v37 = vmul.f32 %v9192_v29, %v7390_v0  ;;  %v2340_v15 = vmul.f32 %v6987_v54, %v2097_v8  ;;  %v9247_v29 = vld [vmem:[#allocation37_spill] sm:$0xff]  ;;  %v9254_v8 = vld [vmem:[#allocation62_spill] sm:$0xff] }
 0x22c   : > { %v2457_v3 = vadd.f32 %v2441_v24, %v2420_v63  ;;  %v1958_v56 = vadd.f32 %v1942_v62, %v1921_v20  ;;  %v9245_v24 = vld [vmem:[#allocation4_spill] sm:$0xff]  ;;  %v2748_v44 = vmul.f32 %v7518_v19, %v7518_v19  ;;  %v2720_v62 = vmul.f32 0.125, %v2681_v55 }
 0x22d   : > { %v7524_v38 = vsub.f32 %v9245_v24, %v2718_v28  ;;  %v2442_v0 = vmul.f32 %v9247_v29, %v7017_v41 }
 0x22e   : > { %v2494_v23 = vadd.f32 %v2478_v9, %v2457_v3  ;;  %v1995_v13 = vadd.f32 %v1979_v40, %v1958_v56  ;;  %v2764_v2 = vsel %vm512_vm0, %v2748_v44, 0.0  ;;  %v9246_v40 = vld [vmem:[#allocation86_spill] sm:$0xff]  ;;  %v2722_v3 = vmul.f32 0.125, %v2687_v31  ;;  %v2693_v12 = vpop.xlane.xlu0 %2692  ;;  %v2690_v31 = vpop.xlane.xlu1 %2689 }
 0x22f   : > { %v2750_v9 = vmul.f32 %v7524_v38, %v7524_v38  ;;  %v7540_v46 = vsub.f32 %v9246_v40, %v2720_v62  ;;  %v4092_v56 = vld [vmem:[#allocation2 + $0xf3] sm:$0xff]  ;;  %v2721_v44 = vmul.f32 0.125, %v2684_v45 }
 0x230   : > { %v2531_v39 = vadd.f32 %v2515_v22, %v2494_v23  ;;  %v2032_v21 = vadd.f32 %v2016_v30, %v1995_v13  ;;  %v2405_v50 = vmul.f32 %v4092_v56, %v7000_v34  ;;  %v9248_v23 = vld [vmem:[#allocation45_spill] sm:$0xff] }
 0x231   : > { %v2770_v54 = vsel %vm512_vm0, %v2750_v9, 0.0  ;;  %v2752_v13 = vmul.f32 %v7540_v46, %v7540_v46 }
 0x232   : > { %v2568_v57 = vadd.f32 %v2552_v35, %v2531_v39  ;;  %v2069_v10 = vadd.f32 %v2053_v51, %v2032_v21  ;;  %v7547_v35 = vsub.f32 %v9248_v23, %v2722_v3  ;;  %v2724_v51 = vmul.f32 0.125, %v2693_v12  ;;  %v4093_v21 = vld [vmem:[#allocation2 + $0x153] sm:$0xff] }
 0x233   : > { %v2516_v34 = vmul.f32 %v4093_v21, %v7048_v47 }
 0x234   : > { %v2605_v58 = vadd.f32 %v2589_v33, %v2568_v57  ;;  %v2134_v53 = vadd.f32 %v2118_v42, %v2069_v10  ;;  %v9249_v33 = vld [vmem:[#allocation99_spill] sm:$0xff]  ;;  %v2776_v42 = vsel %vm512_vm0, %v2752_v13, 0.0  ;;  %v7556_v52 = vsub.f32 %v9250_v36, %v2724_v51  ;;  %v9258_v51 = vld [vmem:[#allocation38_spill] sm:$0xff] }
 0x235   : > { %v2479_v39 = vmul.f32 %v9249_v33, %v7034_v7  ;;  %v2754_v55 = vmul.f32 %v7547_v35, %v7547_v35  ;;  %v9252_v7 = vld [vmem:[#allocation107_spill] sm:$0xff] }
 0x236   : > { %v2642_v17 = vadd.f32 %v2626_v43, %v2605_v58  ;;  %v2171_v26 = vadd.f32 %v2155_v16, %v2134_v53  ;;  %v9251_v43 = vld [vmem:[#allocation18_spill] sm:$0xff]  ;;  %v2590_v28 = vmul.f32 %v9210_v59, %v9252_v7  ;;  %v2717_v58 = vmul.f32 0.125, %v7501_v18 }
 0x237   : > { %v2553_v10 = vmul.f32 %v7063_v61, %v9251_v43  ;;  %v2384_v16 = vld [vmem:[#allocation2 + $0x1b3] sm:$0xff]  ;;  %v2782_v53 = vsel %vm512_vm0, %v2754_v55, 0.0  ;;  %v9253_v61 = vld [vmem:[#allocation59_spill] sm:$0xff] }
 0x238   : > { %v7527_v48 = vadd.f32 %v7250_v32, %v2642_v17  ;;  %v2208_v5 = vadd.f32 %v2192_v11, %v2171_v26  ;;  %v2756_v11 = vmul.f32 %v7556_v52, %v7556_v52  ;;  %v2627_v26 = vmul.f32 %v9170_v14, %v2384_v16 }
 0x23a   : > { %v2709_v63 = vsel %vm512_vm0, %v7527_v48, 0.0  ;;  %v2245_v60 = vadd.f32 %v2229_v1, %v2208_v5  ;;  %v7570_v1 = vsub.f32 %v9253_v61, %v2717_v58  ;;  %v2788_v59 = vsel %vm512_vm0, %v2756_v11, 0.0 }
 0x23b   : > { %2710 = vadd.xlane.f32.xlu0 %v2709_v63  ;;  %v9255_v63 = vld [vmem:[#allocation65_spill] sm:$0xff] }
 0x23c   : > { %v2282_v20 = vadd.f32 %v2266_v25, %v2245_v60  ;;  %v2719_v25 = vmul.f32 0.125, %v2678_v49  ;;  %v2749_v14 = vmul.f32 %v7570_v1, %v7570_v1  ;;  %v7584_v60 = vsub.f32 %v9255_v63, %v2721_v44  ;;  %v2884_v49 = vld [vmem:[%s7848_s5] sm:$0xf] }
 0x23d   : > { %3720 = vmatprep.subr.msk.bf16.mxu0 %vm2916_vm1, %v2884_v49 }
 0x23e   : > { %v2319_v22 = vadd.f32 %v2303_v37, %v2282_v20  ;;  %v7577_v5 = vsub.f32 %v9254_v8, %v2719_v25  ;;  %v2767_v37 = vsel %vm512_vm0, %v2749_v14, 0.0  ;;  %v9256_v20 = vld [vmem:[#allocation105_spill] sm:$0xff]  ;;  %v2753_v12 = vmul.f32 %v7584_v60, %v7584_v60 }
 0x23f   : > { %2765 = vadd.xlane.f32.xlu0 %v2764_v2 }
 0x240   : > { %v2356_v30 = vadd.f32 %v2340_v15, %v2319_v22  ;;  %v2723_v15 = vmul.f32 0.125, %v2690_v31  ;;  %v9257_v22 = vld [vmem:[#allocation48_spill] sm:$0xff] }
 0x242   : > { %v2421_v6 = vadd.f32 %v2405_v50, %v2356_v30  ;;  %v7590_v2 = vsub.f32 %v9256_v20, %v2723_v15  ;;  %v2779_v50 = vsel %vm512_vm0, %v2753_v12, 0.0 }
 0x243   : > { %2771 = vadd.xlane.f32.xlu0 %v2770_v54  ;;  %v2696_v9 = vpop.xlane.xlu1 %2695 }
 0x244   : > { %v2458_v41 = vadd.f32 %v2442_v0, %v2421_v6  ;;  %v2725_v3 = vmul.f32 0.125, %v2696_v9  ;;  %v2755_v29 = vmul.f32 %v7590_v2, %v7590_v2 }
 0x246   : > { %v2495_v57 = vadd.f32 %v2479_v39, %v2458_v41  ;;  %v7596_v56 = vsub.f32 %v9257_v22, %v2725_v3  ;;  %v2785_v0 = vsel %vm512_vm0, %v2755_v29, 0.0  ;;  %v9259_v41 = vld [vmem:[#allocation19_spill] sm:$0xff] }
 0x247   : > { %2777 = vadd.xlane.f32.xlu0 %v2776_v42 }
 0x248   : > { %v2532_v47 = vadd.f32 %v2516_v34, %v2495_v57  ;;  %v2757_v54 = vmul.f32 %v7596_v56, %v7596_v56 }
 0x24a   : > { %v2569_v17 = vadd.f32 %v2553_v10, %v2532_v47  ;;  %v2791_v23 = vsel %vm512_vm0, %v2757_v54, 0.0  ;;  %v9260_v10 = vld [vmem:[#allocation72_spill] sm:$0xff] }
 0x24b   : > { %2783 = vadd.xlane.f32.xlu0 %v2782_v53  ;;  %v2918_v53 = vsel %vm2916_vm1, %v2884_v49, 0 }
 0x24c   : > { %v2606_v27 = vadd.f32 %v2590_v28, %v2569_v17  ;;  %3683 = vmatpush3.bf16.msra.mxu0 %v2918_v53 }
 0x24e   : > { %v2643_v24 = vadd.f32 %v2627_v26, %v2606_v27 }
 0x24f   : > { %2789 = vadd.xlane.f32.xlu0 %v2788_v59 }
 0x250   : > { %v7574_v18 = vadd.f32 %v7250_v32, %v2643_v24  ;;  %v2751_v32 = vmul.f32 %v7577_v5, %v7577_v5 }
 0x252   : > { %v2712_v62 = vsel %vm512_vm0, %v7574_v18, 0.0  ;;  %v2773_v40 = vsel %vm512_vm0, %v2751_v32, 0.0 }
 0x253   : > { %2713 = vadd.xlane.f32.xlu1 %v2712_v62 }
 0x257   : > { %2768 = vadd.xlane.f32.xlu1 %v2767_v37 }
 0x25b   : > { %2774 = vadd.xlane.f32.xlu1 %v2773_v40 }
 0x25d   : > { %v2699_v30 = vpop.xlane.xlu0 %2698 }
 0x25e   : > { %v2726_v13 = vmul.f32 0.125, %v2699_v30 }
 0x25f   : > { %2780 = vadd.xlane.f32.xlu1 %v2779_v50 }
 0x260   : > { %v7606_v6 = vsub.f32 %v9258_v51, %v2726_v13 }
 0x262   : > { %v2758_v33 = vmul.f32 %v7606_v6, %v7606_v6 }
 0x263   : > { %2786 = vadd.xlane.f32.xlu1 %v2785_v0 }
 0x264   : > { %v2794_v39 = vsel %vm512_vm0, %v2758_v33, 0.0 }
 0x265   : > { %2795 = vadd.xlane.f32.xlu0 %v2794_v39 }
 0x267   : > { %2792 = vadd.xlane.f32.xlu1 %v2791_v23 }
 0x27a   : > { %v2702_v21 = vpop.xlane.xlu1 %2701 }
 0x27b   : > { %v2727_v34 = vmul.f32 0.125, %v2702_v21 }
 0x27d   : > { %v7615_v42 = vsub.f32 %v9259_v41, %v2727_v34 }
 0x27f   : > { %v2759_v36 = vmul.f32 %v7615_v42, %v7615_v42 }
 0x281   : > { %v2797_v55 = vsel %vm512_vm0, %v2759_v36, 0.0 }
 0x282   : > { %2798 = vadd.xlane.f32.xlu1 %v2797_v55 }
 0x296   : > { %v2705_v57 = vpop.xlane.xlu0 %2704 }
 0x297   : > { %v2728_v43 = vmul.f32 0.125, %v2705_v57 }
 0x299   : > { %v7621_v16 = vsub.f32 %v9260_v10, %v2728_v43 }
 0x29b   : > { %v2760_v7 = vmul.f32 %v7621_v16, %v7621_v16 }
 0x29d   : > { %v2800_v28 = vsel %vm512_vm0, %v2760_v7, 0.0 }
 0x29e   : > { %2801 = vadd.xlane.f32.xlu0 %v2800_v28 }
 0x2af   : > { %v2708_v47 = vpop.xlane.xlu1 %2707 }
 0x2b0   : > { %v2729_v58 = vmul.f32 0.125, %v2708_v47 }
 0x2b2   : > { %v7627_v11 = vsub.f32 %v7477_v4, %v2729_v58 }
 0x2b4   : > { %v2761_v45 = vmul.f32 %v7627_v11, %v7627_v11 }
 0x2b6   : > { %v2803_v17 = vsel %vm512_vm0, %v2761_v45, 0.0 }
 0x2b7   : > { %2804 = vadd.xlane.f32.xlu1 %v2803_v17 }
 0x2c8   : > { %v2711_v26 = vpop.xlane.xlu0 %2710 }
 0x2c9   : > { %v2730_v27 = vmul.f32 0.125, %v2711_v26 }
 0x2cb   : > { %v7633_v61 = vsub.f32 %v7527_v48, %v2730_v27 }
 0x2cc   : > { %v2766_v4 = vpop.xlane.xlu0 %2765 }
 0x2cd   : > { %v2762_v25 = vmul.f32 %v7633_v61, %v7633_v61  ;;  %v2812_v31 = vmul.f32 0.125, %v2766_v4 }
 0x2cf   : > { %v2806_v59 = vsel %vm512_vm0, %v2762_v25, 0.0  ;;  %v2828_v62 = vadd.f32 1e-06, %v2812_v31 }
 0x2d0   : > { %2807 = vadd.xlane.f32.xlu0 %v2806_v59  ;;  %v2772_v24 = vpop.xlane.xlu0 %2771 }
 0x2d1   : > { %v2814_v37 = vmul.f32 0.125, %v2772_v24  ;;  %3766 = vrsqrt.f32 %v2828_v62 }
 0x2d3   : > { %v2830_v3 = vadd.f32 1e-06, %v2814_v37 }
 0x2d4   : > { %v2778_v44 = vpop.xlane.xlu0 %2777 }
 0x2d5   : > { %v2816_v12 = vmul.f32 0.125, %v2778_v44 }
 0x2d7   : > { %v2832_v29 = vadd.f32 1e-06, %v2816_v12 }
 0x2d8   : > { %v2784_v9 = vpop.xlane.xlu0 %2783 }
 0x2d9   : > { %v2818_v0 = vmul.f32 0.125, %v2784_v9 }
 0x2db   : > { %v2834_v51 = vadd.f32 1e-06, %v2818_v0  ;;  %v3767_v39 = vpop.eup %3766 }
 0x2dc   : > { %v2790_v30 = vpop.xlane.xlu0 %2789  ;;  %v2860_v57 = vmul.f32 %v3767_v39, %v7518_v19 }
 0x2dd   : > { %v2820_v33 = vmul.f32 0.125, %v2790_v30 }
 0x2df   : > { %v2836_v36 = vadd.f32 1e-06, %v2820_v33 }
 0x2e0   : > { %v2714_v8 = vpop.xlane.xlu1 %2713 }
 0x2e1   : > { %v2731_v14 = vmul.f32 0.125, %v2714_v8 }
 0x2e3   : > { %v7639_v63 = vsub.f32 %v7574_v18, %v2731_v14 }
 0x2e4   : > { %v2769_v15 = vpop.xlane.xlu1 %2768 }
 0x2e5   : > { %v2763_v48 = vmul.f32 %v7639_v63, %v7639_v63  ;;  %v2813_v32 = vmul.f32 0.125, %v2769_v15 }
 0x2e7   : > { %v2809_v20 = vsel %vm512_vm0, %v2763_v48, 0.0  ;;  %v2829_v40 = vadd.f32 1e-06, %v2813_v32 }
 0x2e8   : > { %2810 = vadd.xlane.f32.xlu1 %v2809_v20  ;;  %v2775_v22 = vpop.xlane.xlu1 %2774 }
 0x2e9   : > { %3768 = vrsqrt.f32 %v2829_v40  ;;  %v2815_v50 = vmul.f32 0.125, %v2775_v22 }
 0x2ea   : > { %3770 = vrsqrt.f32 %v2830_v3 }
 0x2eb   : > { %v2831_v18 = vadd.f32 1e-06, %v2815_v50 }
 0x2ec   : > { %v2781_v54 = vpop.xlane.xlu1 %2780 }
 0x2ed   : > { %3772 = vrsqrt.f32 %v2831_v18  ;;  %v2817_v23 = vmul.f32 0.125, %v2781_v54 }
 0x2ee   : > { %3774 = vrsqrt.f32 %v2832_v29 }
 0x2ef   : > { %v2833_v13 = vadd.f32 1e-06, %v2817_v23 }
 0x2f0   : > { %v2787_v21 = vpop.xlane.xlu1 %2786 }
 0x2f1   : > { %3776 = vrsqrt.f32 %v2833_v13  ;;  %v2819_v34 = vmul.f32 0.125, %v2787_v21 }
 0x2f2   : > { %3778 = vrsqrt.f32 %v2834_v51 }
 0x2f3   : > { %v3769_v49 = vpop.eup %3768  ;;  %v2835_v41 = vadd.f32 1e-06, %v2819_v34 }
 0x2f4   : > { %v2793_v55 = vpop.xlane.xlu1 %2792  ;;  %v2861_v43 = vmul.f32 %v3769_v49, %v7570_v1  ;;  %v3771_v10 = vpop.eup %3770 }
 0x2f5   : > { %3780 = vrsqrt.f32 %v2835_v41  ;;  %v2821_v7 = vmul.f32 0.125, %v2793_v55  ;;  %v2862_v53 = vmul.f32 %v3771_v10, %v7524_v38 }
 0x2f6   : > { %v2876_v28 = vpack.c.bf16 %v2861_v43, %v2860_v57  ;;  %3782 = vrsqrt.f32 %v2836_v36 }
 0x2f7   : > { %v3773_v47 = vpop.eup %3772  ;;  %v2837_v58 = vadd.f32 1e-06, %v2821_v7 }
 0x2f8   : > { %3684 = vmatprep.mubr.msk.bf16.mxu0 %vm512_vm0, %v2876_v28  ;;  %v2863_v45 = vmul.f32 %v3773_v47, %v7577_v5  ;;  %v3775_v17 = vpop.eup %3774 }
 0x2f9   : > { %3784 = vrsqrt.f32 %v2837_v58  ;;  %v2864_v19 = vmul.f32 %v3775_v17, %v7540_v46 }
 0x2fa   : > { %v2877_v26 = vpack.c.bf16 %v2863_v45, %v2862_v53 }
 0x2fb   : > { %v3777_v27 = vpop.eup %3776 }
 0x2fc   : > { %3685 = vmatmul.mubr.msk.bf16.vlgmr.msra.gmra.mrb[0].mxu0 %vm512_vm0, %v2877_v26  ;;  %v2865_v1 = vmul.f32 %v3777_v27, %v7584_v60  ;;  %v3779_v25 = vpop.eup %3778  ;;  %v2796_v60 = vpop.xlane.xlu0 %2795 }
 0x2fd   : > { %v2866_v24 = vmul.f32 %v3779_v25, %v7547_v35  ;;  %v2822_v62 = vmul.f32 0.125, %v2796_v60 }
 0x2fe   : > { %v2878_v59 = vpack.c.bf16 %v2865_v1, %v2864_v19 }
 0x2ff   : > { %v3781_v4 = vpop.eup %3780  ;;  %v2838_v37 = vadd.f32 1e-06, %v2822_v62 }
 0x300   : > { %3688 = vmatprep.mubr.msk.bf16.mxu0 %vm512_vm0, %v2878_v59  ;;  %v2867_v38 = vmul.f32 %v3781_v4, %v7590_v2  ;;  %v3783_v5 = vpop.eup %3782 }
 0x301   : > { %v2868_v44 = vmul.f32 %v3783_v5, %v7556_v52  ;;  %3786 = vrsqrt.f32 %v2838_v37 }
 0x302   : > { %v2879_v31 = vpack.c.bf16 %v2867_v38, %v2866_v24 }
 0x303   : > { %v3785_v8 = vpop.eup %3784 }
 0x304   : > { %3689 = vmatmul.mubr.msk.bf16.gmra.mrb[4].mxu0 %vm512_vm0, %v2879_v31  ;;  %v2869_v46 = vmul.f32 %v3785_v8, %v7596_v56 }
 0x306   : > { %v2880_v14 = vpack.c.bf16 %v2869_v46, %v2868_v44 }
 0x308   : > { %3692 = vmatprep.mubr.msk.bf16.mxu0 %vm512_vm0, %v2880_v14 }
 0x30b   : > { %v3787_v2 = vpop.eup %3786 }
 0x30c   : > { %v2870_v9 = vmul.f32 %v3787_v2, %v7606_v6 }
 0x30f   : > { %v2799_v15 = vpop.xlane.xlu1 %2798 }
 0x310   : > { %v2823_v48 = vmul.f32 0.125, %v2799_v15 }
 0x312   : > { %v2839_v35 = vadd.f32 1e-06, %v2823_v48 }
 0x314   : > { %3788 = vrsqrt.f32 %v2839_v35 }
 0x31e   : > { %v3789_v32 = vpop.eup %3788 }
 0x31f   : > { %v2871_v20 = vmul.f32 %v3789_v32, %v7615_v42 }
 0x321   : > { %v2881_v52 = vpack.c.bf16 %v2871_v20, %v2870_v9  ;;  %v3764_v20 = vld [vmem:[%s7850_s7] sm:$0xff]  }
 0x322   : > { %3700 = vmatprep.subr.bf16.mxu1 %v3764_v20 }
 0x323   : > { %3693 = vmatmul.mubr.msk.bf16.gmra.mrb[8].mxu0 %vm512_vm0, %v2881_v52  ;;  %3701 = vmatpush3.bf16.msra.mxu1 %v3764_v20 }
 0x32b   : > { %v2802_v56 = vpop.xlane.xlu0 %2801 }
 0x32c   : > { %v2824_v40 = vmul.f32 0.125, %v2802_v56 }
 0x32e   : > { %v2840_v3 = vadd.f32 1e-06, %v2824_v40 }
 0x330   : > { %3790 = vrsqrt.f32 %v2840_v3 }
 0x33a   : > { %v3791_v18 = vpop.eup %3790 }
 0x33b   : > { %v2872_v0 = vmul.f32 %v3791_v18, %v7621_v16 }
 0x344   : > { %v2805_v12 = vpop.xlane.xlu1 %2804 }
 0x345   : > { %v2825_v22 = vmul.f32 0.125, %v2805_v12 }
 0x347   : > { %v2841_v50 = vadd.f32 1e-06, %v2825_v22 }
 0x349   : > { %3792 = vrsqrt.f32 %v2841_v50 }
 0x353   : > { %v3793_v29 = vpop.eup %3792 }
 0x354   : > { %v2873_v54 = vmul.f32 %v3793_v29, %v7627_v11  ;;  %v7671_v11 = vld [vmem:[%s7849_s6] ss:$0 sm:$0xff] }
 0x356   : > { %v2882_v6 = vpack.c.bf16 %v2873_v54, %v2872_v0  ;;  %v3765_v0 = vld [vmem:[%s7850_s7 + $0x8] sm:$0xff]  }
 0x357   : > { %3702 = vmatprep.subr.bf16.mxu1 %v3765_v0 }
 0x358   : > { %3696 = vmatprep.mubr.msk.bf16.mxu0 %vm512_vm0, %v2882_v6  ;;  %3703 = vmatpush3.bf16.msra.mxu1 %v3765_v0 }
 0x35d   : > { %v2808_v42 = vpop.xlane.xlu0 %2807 }
 0x35e   : > { %v2826_v30 = vmul.f32 0.125, %v2808_v42 }
 0x360   : > { %v2842_v23 = vadd.f32 1e-06, %v2826_v30 }
 0x362   : > { %3794 = vrsqrt.f32 %v2842_v23 }
 0x36c   : > { %v3795_v39 = vpop.eup %3794 }
 0x36d   : > { %v2874_v34 = vmul.f32 %v3795_v39, %v7633_v61 }
 0x375   : > { %v2811_v13 = vpop.xlane.xlu1 %2810 }
 0x376   : > { %v2827_v51 = vmul.f32 0.125, %v2811_v13 }
 0x378   : > { %v2843_v33 = vadd.f32 1e-06, %v2827_v51 }
 0x37a   : > { %3796 = vrsqrt.f32 %v2843_v33 }
 0x384   : > { %v3797_v21 = vpop.eup %3796 }
 0x385   : > { %v2875_v49 = vmul.f32 %v3797_v21, %v7639_v63 }
 0x387   : > { %v2883_v16 = vpack.c.bf16 %v2875_v49, %v2874_v34 }
 0x389   : > { %3697 = vmatmul.mubr.msk.bf16.gmra.mrb[12].mxu0 %vm512_vm0, %v2883_v16 }
 0x3cf   : > { %v3686_v41 = vpop.f32.mrb[0].mxu0 }
 0x3d0   : > { %v7674_v36 = vadd.f32 %v3686_v41, %v7671_v11  ;;  %v2954_v55 = vpop.f32.mrb[1].mxu0 }
 0x3d1   : > { %v7677_v57 = vadd.f32 %v7671_v11, %v2954_v55  ;;  %v3687_v43 = vpop.f32.mrb[2].mxu0 }
 0x3d2   : > { %v3035_v61 = vmul.f32 0.044715, %v7674_v36  ;;  %v7681_v63 = vadd.f32 %v3687_v43, %v7671_v11  ;;  %v2957_v10 = vpop.f32.mrb[3].mxu0  ;;  %v3019_v55 = vmul.f32 0.5, %v7674_v36 }
 0x3d3   : > { %v3033_v7 = vmul.f32 0.044715, %v7677_v57  ;;  %v7685_v28 = vadd.f32 %v7671_v11, %v2957_v10  ;;  %v3017_v10 = vmul.f32 0.5, %v7677_v57 }
 0x3d4   : > { %v3051_v47 = vmul.f32 %v3035_v61, %v7674_v36  ;;  %v3036_v58 = vmul.f32 0.044715, %v7681_v63  ;;  %v3020_v43 = vmul.f32 0.5, %v7681_v63 }
 0x3d5   : > { %v3049_v53 = vmul.f32 %v3033_v7, %v7677_v57  ;;  %v3034_v45 = vmul.f32 0.044715, %v7685_v28  ;;  %v3018_v7 = vmul.f32 0.5, %v7685_v28 }
 0x3d6   : > { %v3067_v17 = vmul.f32 %v3051_v47, %v7674_v36  ;;  %v3052_v26 = vmul.f32 %v3036_v58, %v7681_v63 }
 0x3d7   : > { %v3050_v27 = vmul.f32 %v3034_v45, %v7685_v28  ;;  %v3690_v19 = vpop.f32.mrb[4].mxu0  ;;  %v3065_v1 = vmul.f32 %v3049_v53, %v7677_v57 }
 0x3d8   : > { %v3083_v25 = vadd.f32 %v3067_v17, %v7674_v36  ;;  %v3068_v59 = vmul.f32 %v3052_v26, %v7681_v63  ;;  %v7698_v4 = vadd.f32 %v3690_v19, %v7671_v11  ;;  %v2970_v24 = vpop.f32.mrb[5].mxu0 }
 0x3d9   : > { %v7701_v38 = vadd.f32 %v7671_v11, %v2970_v24  ;;  %v3691_v5 = vpop.f32.mrb[6].mxu0  ;;  %v3066_v31 = vmul.f32 %v3050_v27, %v7685_v28  ;;  %v3081_v8 = vadd.f32 %v3065_v1, %v7677_v57 }
 0x3da   : > { %v3099_v44 = vmul.f32 0.7978846, %v3083_v25  ;;  %v3084_v46 = vadd.f32 %v3068_v59, %v7681_v63  ;;  %v3039_v14 = vmul.f32 0.044715, %v7698_v4  ;;  %v7708_v60 = vadd.f32 %v3691_v5, %v7671_v11  ;;  %v2973_v62 = vpop.f32.mrb[7].mxu0 }
 0x3db   : > { %v3037_v37 = vmul.f32 0.044715, %v7701_v38  ;;  %v7712_v15 = vadd.f32 %v7671_v11, %v2973_v62  ;;  %v3082_v48 = vadd.f32 %v3066_v31, %v7685_v28  ;;  %v3097_v35 = vmul.f32 0.7978846, %v3081_v8 }
 0x3dc   : > { %3798 = vtanh.f32 %v3099_v44  ;;  %v3100_v2 = vmul.f32 0.7978846, %v3084_v46  ;;  %v3055_v32 = vmul.f32 %v3039_v14, %v7698_v4  ;;  %v3040_v9 = vmul.f32 0.044715, %v7708_v60 }
 0x3dd   : > { %v3053_v52 = vmul.f32 %v3037_v37, %v7701_v38  ;;  %v3038_v56 = vmul.f32 0.044715, %v7712_v15  ;;  %v3098_v40 = vmul.f32 0.7978846, %v3082_v48  ;;  %3800 = vtanh.f32 %v3097_v35 }
 0x3de   : > { %3802 = vtanh.f32 %v3100_v2  ;;  %v3071_v3 = vmul.f32 %v3055_v32, %v7698_v4  ;;  %v3056_v12 = vmul.f32 %v3040_v9, %v7708_v60  ;;  %v3023_v57 = vmul.f32 0.5, %v7698_v4 }
 0x3df   : > { %v3069_v22 = vmul.f32 %v3053_v52, %v7701_v38  ;;  %v3054_v50 = vmul.f32 %v3038_v56, %v7712_v15  ;;  %3804 = vtanh.f32 %v3098_v40  ;;  %v3024_v28 = vmul.f32 0.5, %v7708_v60 }
 0x3e0   : > { %v3087_v18 = vadd.f32 %v3071_v3, %v7698_v4  ;;  %v3072_v29 = vmul.f32 %v3056_v12, %v7708_v60  ;;  %v3021_v5 = vmul.f32 0.5, %v7701_v38  ;;  %v3022_v31 = vmul.f32 0.5, %v7712_v15 }
 0x3e1   : > { %v3085_v54 = vadd.f32 %v3069_v22, %v7701_v38  ;;  %v3070_v6 = vmul.f32 %v3054_v50, %v7712_v15 }
 0x3e2   : > { %v3103_v42 = vmul.f32 0.7978846, %v3087_v18  ;;  %v3088_v30 = vadd.f32 %v3072_v29, %v7708_v60 }
 0x3e3   : > { %v3101_v23 = vmul.f32 0.7978846, %v3085_v54  ;;  %v3086_v13 = vadd.f32 %v3070_v6, %v7712_v15 }
 0x3e4   : > { %3806 = vtanh.f32 %v3103_v42  ;;  %v3104_v51 = vmul.f32 0.7978846, %v3088_v30 }
 0x3e5   : > { %3808 = vtanh.f32 %v3101_v23  ;;  %v3102_v33 = vmul.f32 0.7978846, %v3086_v13 }
 0x3e6   : > { %v3799_v39 = vpop.eup %3798  ;;  %3810 = vtanh.f32 %v3104_v51 }
 0x3e7   : > { %v3801_v21 = vpop.eup %3800  ;;  %3812 = vtanh.f32 %v3102_v33  ;;  %v3131_v34 = vadd.f32 1.0, %v3799_v39 }
 0x3e8   : > { %v3803_v49 = vpop.eup %3802  ;;  %v3129_v16 = vadd.f32 1.0, %v3801_v21 }
 0x3e9   : > { %v3805_v41 = vpop.eup %3804  ;;  %v3132_v61 = vadd.f32 1.0, %v3803_v49  ;;  %v3147_v58 = vmul.f32 %v3131_v34, %v3019_v55 }
 0x3ea   : > { %v3130_v47 = vadd.f32 1.0, %v3805_v41  ;;  %v3145_v45 = vmul.f32 %v3129_v16, %v3017_v10 }
 0x3eb   : > { %v3148_v53 = vmul.f32 %v3132_v61, %v3020_v43 }
 0x3ec   : > { %v3146_v17 = vmul.f32 %v3130_v47, %v3018_v7 }
 0x3ed   : > { %v3162_v26 = vpack.c.bf16 %v3148_v53, %v3147_v58 }
 0x3ee   : > { %v3807_v27 = vpop.eup %3806  ;;  %v3161_v19 = vpack.c.bf16 %v3146_v17, %v3145_v45 }
 0x3ef   : > { %v3809_v1 = vpop.eup %3808  ;;  %v3135_v25 = vadd.f32 1.0, %v3807_v27 }
 0x3f0   : > { %v3811_v59 = vpop.eup %3810  ;;  %3704 = vmatprep.mubr.msk.bf16.mxu1 %vm3192_vm2, %v3161_v19  ;;  %v3133_v36 = vadd.f32 1.0, %v3809_v1 }
 0x3f1   : > { %v3813_v63 = vpop.eup %3812  ;;  %3705 = vmatmul.mubr.msk.bf16.vlgmr.msra.gmra.mrb[0].mxu1 %vm3192_vm2, %v3162_v26  ;;  %v3136_v24 = vadd.f32 1.0, %v3811_v59  ;;  %v3151_v44 = vmul.f32 %v3135_v25, %v3023_v57 }
 0x3f2   : > { %v3134_v8 = vadd.f32 1.0, %v3813_v63  ;;  %v3149_v14 = vmul.f32 %v3133_v36, %v3021_v5 }
 0x3f3   : > { %v3152_v46 = vmul.f32 %v3136_v24, %v3024_v28 }
 0x3f4   : > { %v3150_v62 = vmul.f32 %v3134_v8, %v3022_v31 }
 0x3f5   : > { %v3164_v37 = vpack.c.bf16 %v3152_v46, %v3151_v44 }
 0x3f6   : > { %v3163_v48 = vpack.c.bf16 %v3150_v62, %v3149_v14  ;;  %v3694_v35 = vpop.f32.mrb[8].mxu0 }
 0x3f7   : > { %v2995_v4 = vadd.f32 %v3694_v35, %v7671_v11  ;;  %v2986_v60 = vpop.f32.mrb[9].mxu0 }
 0x3f8   : > { %3708 = vmatprep.mubr.msk.bf16.mxu1 %vm3192_vm2, %v3163_v48  ;;  %v2987_v2 = vadd.f32 %v7671_v11, %v2986_v60  ;;  %v3695_v38 = vpop.f32.mrb[10].mxu0 }
 0x3f9   : > { %3709 = vmatmul.mubr.msk.bf16.gmra.mrb[4].mxu1 %vm3192_vm2, %v3164_v37  ;;  %v3043_v32 = vmul.f32 0.044715, %v2995_v4  ;;  %v2998_v15 = vadd.f32 %v3695_v38, %v7671_v11  ;;  %v2989_v9 = vpop.f32.mrb[11].mxu0  ;;  %v3027_v43 = vmul.f32 0.5, %v2995_v4 }
 0x3fa   : > { %v3041_v20 = vmul.f32 0.044715, %v2987_v2  ;;  %v2990_v52 = vadd.f32 %v7671_v11, %v2989_v9  ;;  %v3025_v7 = vmul.f32 0.5, %v2987_v2 }
 0x3fb   : > { %v3059_v56 = vmul.f32 %v3043_v32, %v2995_v4  ;;  %v3044_v40 = vmul.f32 0.044715, %v2998_v15  ;;  %v3028_v61 = vmul.f32 0.5, %v2998_v15 }
 0x3fc   : > { %v3057_v3 = vmul.f32 %v3041_v20, %v2987_v2  ;;  %v3042_v12 = vmul.f32 0.044715, %v2990_v52  ;;  %v3026_v47 = vmul.f32 0.5, %v2990_v52 }
 0x3fd   : > { %v3075_v22 = vmul.f32 %v3059_v56, %v2995_v4  ;;  %v3060_v50 = vmul.f32 %v3044_v40, %v2998_v15 }
 0x3fe   : > { %v3073_v18 = vmul.f32 %v3057_v3, %v2987_v2  ;;  %v3058_v29 = vmul.f32 %v3042_v12, %v2990_v52 }
 0x3ff   : > { %v3091_v0 = vadd.f32 %v3075_v22, %v2995_v4  ;;  %v3076_v54 = vmul.f32 %v3060_v50, %v2998_v15 }
 0x400   : > { %v3089_v6 = vadd.f32 %v3073_v18, %v2987_v2  ;;  %v3074_v42 = vmul.f32 %v3058_v29, %v2990_v52 }
 0x401   : > { %v3107_v30 = vmul.f32 0.7978846, %v3091_v0  ;;  %v3092_v23 = vadd.f32 %v3076_v54, %v2998_v15 }
 0x402   : > { %v3105_v13 = vmul.f32 0.7978846, %v3089_v6  ;;  %v3090_v51 = vadd.f32 %v3074_v42, %v2990_v52 }
 0x403   : > { %3814 = vtanh.f32 %v3107_v30  ;;  %v3108_v33 = vmul.f32 0.7978846, %v3092_v23 }
 0x404   : > { %3816 = vtanh.f32 %v3105_v13  ;;  %v3106_v39 = vmul.f32 0.7978846, %v3090_v51 }
 0x405   : > { %3818 = vtanh.f32 %v3108_v33 }
 0x406   : > { %3820 = vtanh.f32 %v3106_v39 }
 0x40d   : > { %v3815_v21 = vpop.eup %3814 }
 0x40e   : > { %v3817_v34 = vpop.eup %3816  ;;  %v3139_v49 = vadd.f32 1.0, %v3815_v21  ;;  %v7762_v21 = vld [vmem:[%s7851_s8] ss:$0 sm:$0xff] }
 0x40f   : > { %v3819_v16 = vpop.eup %3818  ;;  %v3137_v41 = vadd.f32 1.0, %v3817_v34 }
 0x410   : > { %v3821_v55 = vpop.eup %3820  ;;  %v3140_v10 = vadd.f32 1.0, %v3819_v16  ;;  %v3155_v53 = vmul.f32 %v3139_v49, %v3027_v43  ;;  %v3316_v49 = vld [vmem:[%s4265_s26 + $0x10] sm:$0xff] }
 0x411   : > { %v3138_v58 = vadd.f32 1.0, %v3821_v55  ;;  %v3153_v17 = vmul.f32 %v3137_v41, %v3025_v7  ;;  %v3314_v55 = vld [vmem:[%s4265_s26] sm:$0xff] }
 0x412   : > { %v3156_v45 = vmul.f32 %v3140_v10, %v3028_v61  ;;  %v3317_v10 = vld [vmem:[%s4265_s26 + $0x18] sm:$0xff] }
 0x413   : > { %v3154_v26 = vmul.f32 %v3138_v58, %v3026_v47 }
 0x414   : > { %v3166_v27 = vpack.c.bf16 %v3156_v45, %v3155_v53  ;;  %v3315_v53 = vld [vmem:[%s4265_s26 + $0x8] sm:$0xff] }
 0x415   : > { %v3165_v19 = vpack.c.bf16 %v3154_v26, %v3153_v17 }
 0x417   : > { %3712 = vmatprep.mubr.msk.bf16.mxu1 %vm3192_vm2, %v3165_v19 }
 0x418   : > { %3713 = vmatmul.mubr.msk.bf16.gmra.mrb[8].mxu1 %vm3192_vm2, %v3166_v27 }
 0x45c   : > { %v3698_v1 = vpop.f32.mrb[12].mxu0 }
 0x45d   : > { %v3011_v25 = vadd.f32 %v3698_v1, %v7671_v11  ;;  %v3002_v59 = vpop.f32.mrb[13].mxu0  ;;  %v3320_v1 = vld [vmem:[%s4265_s26 + $0x30] sm:$0xff] }
 0x45e   : > { %v3003_v36 = vadd.f32 %v7671_v11, %v3002_v59  ;;  %v3699_v63 = vpop.f32.mrb[14].mxu0 }
 0x45f   : > { %v3047_v57 = vmul.f32 0.044715, %v3011_v25  ;;  %v3014_v28 = vadd.f32 %v3699_v63, %v7671_v11  ;;  %v3005_v24 = vpop.f32.mrb[15].mxu0  ;;  %v3031_v18 = vmul.f32 0.5, %v3011_v25 }
 0x460   : > { %v3045_v5 = vmul.f32 0.044715, %v3003_v36  ;;  %v3006_v31 = vadd.f32 %v7671_v11, %v3005_v24  ;;  %v3029_v54 = vmul.f32 0.5, %v3003_v36 }
 0x461   : > { %v3063_v8 = vmul.f32 %v3047_v57, %v3011_v25  ;;  %v3048_v44 = vmul.f32 0.044715, %v3014_v28  ;;  %v3032_v29 = vmul.f32 0.5, %v3014_v28 }
 0x462   : > { %v3061_v46 = vmul.f32 %v3045_v5, %v3003_v36  ;;  %v3046_v14 = vmul.f32 0.044715, %v3006_v31  ;;  %v3030_v6 = vmul.f32 0.5, %v3006_v31 }
 0x463   : > { %v3079_v62 = vmul.f32 %v3063_v8, %v3011_v25  ;;  %v3064_v37 = vmul.f32 %v3048_v44, %v3014_v28  ;;  %v3319_v8 = vld [vmem:[%s4265_s26 + $0x28] sm:$0xff] }
 0x464   : > { %v3077_v48 = vmul.f32 %v3061_v46, %v3003_v36  ;;  %v3062_v35 = vmul.f32 %v3046_v14, %v3006_v31 }
 0x465   : > { %v3095_v4 = vadd.f32 %v3079_v62, %v3011_v25  ;;  %v3080_v60 = vmul.f32 %v3064_v37, %v3014_v28 }
 0x466   : > { %v3093_v2 = vadd.f32 %v3077_v48, %v3003_v36  ;;  %v3078_v38 = vmul.f32 %v3062_v35, %v3006_v31  ;;  %v3318_v36 = vld [vmem:[%s4265_s26 + $0x20] sm:$0xff]  ;;  %v3324_v48 = vld [vmem:[%s4265_s26 + $0x50] sm:$0xff] }
 0x467   : > { %v3111_v32 = vmul.f32 0.7978846, %v3095_v4  ;;  %v3096_v15 = vadd.f32 %v3080_v60, %v3014_v28  ;;  %v3321_v28 = vld [vmem:[%s4265_s26 + $0x38] sm:$0xff]  ;;  %v3322_v60 = vld [vmem:[%s4265_s26 + $0x40] sm:$0xff] }
 0x468   : > { %v3109_v9 = vmul.f32 0.7978846, %v3093_v2  ;;  %v3094_v20 = vadd.f32 %v3078_v38, %v3006_v31 }
 0x469   : > { %3822 = vtanh.f32 %v3111_v32  ;;  %v3112_v52 = vmul.f32 0.7978846, %v3096_v15  ;;  %v3325_v32 = vld [vmem:[%s4265_s26 + $0x58] sm:$0xff] }
 0x46a   : > { %3824 = vtanh.f32 %v3109_v9  ;;  %v3110_v11 = vmul.f32 0.7978846, %v3094_v20 }
 0x46b   : > { %3826 = vtanh.f32 %v3112_v52  ;;  %v3323_v52 = vld [vmem:[%s4265_s26 + $0x48] sm:$0xff] }
 0x46c   : > { %3828 = vtanh.f32 %v3110_v11 }
 0x473   : > { %v3823_v56 = vpop.eup %3822 }
 0x474   : > { %v3825_v40 = vpop.eup %3824  ;;  %v3143_v3 = vadd.f32 1.0, %v3823_v56 }
 0x475   : > { %v3827_v12 = vpop.eup %3826  ;;  %v3141_v22 = vadd.f32 1.0, %v3825_v40 }
 0x476   : > { %v3829_v50 = vpop.eup %3828  ;;  %v3144_v0 = vadd.f32 1.0, %v3827_v12  ;;  %v3159_v30 = vmul.f32 %v3143_v3, %v3031_v18 }
 0x477   : > { %v3142_v42 = vadd.f32 1.0, %v3829_v50  ;;  %v3157_v13 = vmul.f32 %v3141_v22, %v3029_v54  ;;  %v3328_v22 = vld [vmem:[%s4265_s26 + $0x70] sm:$0xff] }
 0x478   : > { %v3160_v23 = vmul.f32 %v3144_v0, %v3032_v29  ;;  %v3326_v29 = vld [vmem:[%s4265_s26 + $0x60] sm:$0xff] }
 0x479   : > { %v3158_v51 = vmul.f32 %v3142_v42, %v3030_v6  ;;  %v3329_v6 = vld [vmem:[%s4265_s26 + $0x78] sm:$0xff] }
 0x47a   : > { %v3168_v33 = vpack.c.bf16 %v3160_v23, %v3159_v30 }
 0x47b   : > { %v3167_v39 = vpack.c.bf16 %v3158_v51, %v3157_v13  ;;  %v3327_v13 = vld [vmem:[%s4265_s26 + $0x68] sm:$0xff] }
 0x47d   : > { %3716 = vmatprep.mubr.msk.bf16.mxu1 %vm3192_vm2, %v3167_v39 }
 0x47e   : > { %3717 = vmatmul.mubr.msk.bf16.gmra.mrb[12].mxu1 %vm3192_vm2, %v3168_v33 }
 0x4c4   : > { %v3706_v34 = vpop.f32.mrb[0].mxu1 }
 0x4c5   : > { %v3260_v16 = vadd.f32 %v3706_v34, %v7762_v21  ;;  %v3251_v41 = vpop.f32.mrb[1].mxu1 }
 0x4c6   : > { %v3252_v43 = vadd.f32 %v7762_v21, %v3251_v41  ;;  %v3707_v61 = vpop.f32.mrb[2].mxu1 }
 0x4c7   : > { %v3332_v7 = vadd.f32 %v3316_v49, %v3260_v16  ;;  %v3263_v47 = vadd.f32 %v3707_v61, %v7762_v21  ;;  %v3254_v58 = vpop.f32.mrb[3].mxu1 }
 0x4c8   : > { %v3330_v45 = vadd.f32 %v3314_v55, %v3252_v43  ;;  %v3255_v17 = vadd.f32 %v7762_v21, %v3254_v58 }
 0x4c9   : > { %3348 = vst.msk [vmem:[%s4270_s29 + $0x10] sm:$0xff] %vm512_vm0, %v3332_v7  ;;  %v3333_v26 = vadd.f32 %v3317_v10, %v3263_v47 }
 0x4ca   : > { %3346 = vst.msk [vmem:[%s4270_s29] sm:$0xff] %vm512_vm0, %v3330_v45  ;;  %v3331_v27 = vadd.f32 %v3315_v53, %v3255_v17 }
 0x4cb   : > { %3349 = vst.msk [vmem:[%s4270_s29 + $0x18] sm:$0xff] %vm512_vm0, %v3333_v26 }
 0x4cc   : > { %3347 = vst.msk [vmem:[%s4270_s29 + $0x8] sm:$0xff] %vm512_vm0, %v3331_v27  ;;  %v3710_v19 = vpop.f32.mrb[4].mxu1 }
 0x4cd   : > { %v3276_v25 = vadd.f32 %v3710_v19, %v7762_v21  ;;  %v3267_v59 = vpop.f32.mrb[5].mxu1 }
 0x4ce   : > { %v3268_v63 = vadd.f32 %v7762_v21, %v3267_v59  ;;  %v3711_v57 = vpop.f32.mrb[6].mxu1 }
 0x4cf   : > { %v3336_v24 = vadd.f32 %v3320_v1, %v3276_v25  ;;  %v3279_v5 = vadd.f32 %v3711_v57, %v7762_v21  ;;  %v3270_v31 = vpop.f32.mrb[7].mxu1 }
 0x4d0   : > { %v3334_v44 = vadd.f32 %v3318_v36, %v3268_v63  ;;  %v3271_v46 = vadd.f32 %v7762_v21, %v3270_v31 }
 0x4d1   : > { %3352 = vst.msk [vmem:[%s4270_s29 + $0x30] sm:$0xff] %vm512_vm0, %v3336_v24  ;;  %v3337_v14 = vadd.f32 %v3321_v28, %v3279_v5 }
 0x4d2   : > { %3350 = vst.msk [vmem:[%s4270_s29 + $0x20] sm:$0xff] %vm512_vm0, %v3334_v44  ;;  %v3335_v62 = vadd.f32 %v3319_v8, %v3271_v46 }
 0x4d3   : > { %3353 = vst.msk [vmem:[%s4270_s29 + $0x38] sm:$0xff] %vm512_vm0, %v3337_v14 }
 0x4d4   : > { %3351 = vst.msk [vmem:[%s4270_s29 + $0x28] sm:$0xff] %vm512_vm0, %v3335_v62 }
 0x4eb   : > { %v3714_v37 = vpop.f32.mrb[8].mxu1 }
 0x4ec   : > { %v3292_v35 = vadd.f32 %v3714_v37, %v7762_v21  ;;  %v3283_v4 = vpop.f32.mrb[9].mxu1 }
 0x4ed   : > { %v3284_v2 = vadd.f32 %v7762_v21, %v3283_v4  ;;  %v3715_v38 = vpop.f32.mrb[10].mxu1 }
 0x4ee   : > { %v3340_v15 = vadd.f32 %v3324_v48, %v3292_v35  ;;  %v3295_v9 = vadd.f32 %v3715_v38, %v7762_v21  ;;  %v3286_v20 = vpop.f32.mrb[11].mxu1 }
 0x4ef   : > { %v3338_v11 = vadd.f32 %v3322_v60, %v3284_v2  ;;  %v3287_v56 = vadd.f32 %v7762_v21, %v3286_v20 }
 0x4f0   : > { %3356 = vst.msk [vmem:[%s4270_s29 + $0x50] sm:$0xff] %vm512_vm0, %v3340_v15  ;;  %v3341_v40 = vadd.f32 %v3325_v32, %v3295_v9 }
 0x4f1   : > { %3354 = vst.msk [vmem:[%s4270_s29 + $0x40] sm:$0xff] %vm512_vm0, %v3338_v11  ;;  %v3339_v3 = vadd.f32 %v3323_v52, %v3287_v56 }
 0x4f2   : > { %3357 = vst.msk [vmem:[%s4270_s29 + $0x58] sm:$0xff] %vm512_vm0, %v3341_v40 }
 0x4f3   : > { %3355 = vst.msk [vmem:[%s4270_s29 + $0x48] sm:$0xff] %vm512_vm0, %v3339_v3 }
 0x551   : > { %v3718_v12 = vpop.f32.mrb[12].mxu1 }
 0x552   : > { %v3308_v50 = vadd.f32 %v3718_v12, %v7762_v21  ;;  %v3299_v18 = vpop.f32.mrb[13].mxu1 }
 0x553   : > { %v3300_v0 = vadd.f32 %v7762_v21, %v3299_v18  ;;  %v3719_v54 = vpop.f32.mrb[14].mxu1 }
 0x554   : > { %v3344_v42 = vadd.f32 %v3328_v22, %v3308_v50  ;;  %v3311_v30 = vadd.f32 %v3719_v54, %v7762_v21  ;;  %v3302_v23 = vpop.f32.mrb[15].mxu1 }
 0x555   : > { %v3342_v51 = vadd.f32 %v3326_v29, %v3300_v0  ;;  %v3303_v33 = vadd.f32 %v7762_v21, %v3302_v23 }
 0x556   : > { %3360 = vst.msk [vmem:[%s4270_s29 + $0x70] sm:$0xff] %vm512_vm0, %v3344_v42  ;;  %v3345_v39 = vadd.f32 %v3329_v6, %v3311_v30 }
 0x557   : > { %3358 = vst.msk [vmem:[%s4270_s29 + $0x60] sm:$0xff] %vm512_vm0, %v3342_v51  ;;  %v3343_v34 = vadd.f32 %v3327_v13, %v3303_v33 }
 0x558   : > { %3361 = vst.msk [vmem:[%s4270_s29 + $0x78] sm:$0xff] %vm512_vm0, %v3345_v39 }
 0x559   : > { %3359 = vst.msk [vmem:[%s4270_s29 + $0x68] sm:$0xff] %vm512_vm0, %v3343_v34 }
 0x55a PF: > { %s19_s13 = sadd.s32 1, %s4132_s13   ;;  %s9261_s30 = smov %s4124_s11 }
 0x55b   : > { %p16_p1 = scmp.ge.s32.totalorder %s19_s13, 6   ;;  %s9262_s10 = smov %s4128_s12 }
 0x55c   : > { %s9263_s11 = smov %s9266_s14  ;;  %s9264_s12 = smov %s9270_s15 }
 0x55d   :  { %18 = sbr.rel (!%p16_p1) target bundleno = 4 (0x4), region = 118 }

</bundles_post_ra>
